<compile_context>
chip_gen: v7x
topology: tpu7x:2x2x1
jax: 0.10.0
libtpu: 0.0.40
codegen_flags: <defaults>
</compile_context>

<pallas_src>
import functools

import jax
import jax.numpy as jnp
from jax.experimental import pallas as pl
from jax.experimental.pallas import tpu as pltpu

EPS = 1e-5
LANES = 128  # channel padding width == MXU/vreg lane width


def _round_up(x, m):
    return (x + m - 1) // m * m


def _vmem_limit_bytes():
    try:
        cap = pltpu.get_tpu_info().vmem_capacity_bytes
    except Exception:
        cap = 128 * 1024 * 1024
    return int(min(64 * 1024 * 1024, cap * 3 // 4))


_VMEM_LIMIT = _vmem_limit_bytes()


def _compiler_params():
    return pltpu.CompilerParams(dimension_semantics=("parallel",),
                                vmem_limit_bytes=_VMEM_LIMIT)


def _write_stats(stats_ref, t, count):
    """t: (P, 128) f32.  Writes per-tile [sum; sum of squared deviations]."""
    s1 = jnp.sum(t, axis=0, keepdims=True)                 # (1, 128)
    mean = s1 * (1.0 / count)
    d = t - mean
    ssd = jnp.sum(d * d, axis=0, keepdims=True)            # (1, 128)
    stats_ref[...] = jnp.concatenate([s1, ssd], axis=0)    # (2, 128)


# ---------------------------------------------------------------------------
# Kernel A (first layer only): conv1x1 -> pre1 (bf16) + per-tile BN stats
# ---------------------------------------------------------------------------
def _stats_pre1_kernel(x_ref, w1_ref, pre1_ref, stats_ref):
    H, W, C = x_ref.shape
    hw = H * W
    x = x_ref[...].reshape(hw, C)                                      # bf16
    t = jnp.dot(x, w1_ref[...], preferred_element_type=jnp.float32)    # f32
    tb = t.astype(jnp.bfloat16)
    pre1_ref[...] = tb.reshape(H, W, LANES)
    # stats on the bf16-rounded values: exactly what the next pass normalizes
    _write_stats(stats_ref, tb.astype(jnp.float32), hw)


# ---------------------------------------------------------------------------
# Kernel B: BN1+ReLU on pre1 (VMEM only) -> 3x3 conv via halo-padded scratch
#           (taps paired to K=256) -> pre-BN conv3 (bf16) + per-tile stats
# ---------------------------------------------------------------------------
def _conv3_kernel(pre1_ref, sc1_ref, sh1_ref, w3p_ref, w3l_ref,
                  y3_ref, stats_ref, ypad_ref):
    H, W, _ = pre1_ref.shape
    hw = H * W
    pre1 = pre1_ref[...].reshape(hw, LANES).astype(jnp.float32)
    y1 = jnp.maximum(pre1 * sc1_ref[...] + sh1_ref[...], 0.0)          # f32

    # Zero the halo scratch only once; the interior is overwritten each step
    # and the border (== conv padding=1) stays zero for later grid steps.
    @pl.when(pl.program_id(0) == 0)
    def _():
        ypad_ref[...] = jnp.zeros((H + 2, W + 2, LANES), jnp.float32)

    ypad_ref[1:H + 1, 1:W + 1, :] = y1.reshape(H, W, LANES)

    # 3x3 taps paired along K (K=256 matmuls for the 256-deep MXU), last tap
    # single.  Accumulation starts from the first matmul (no zero-init).
    acc = None
    for p2 in range(4):
        ta, tb_ = 2 * p2, 2 * p2 + 1
        dia, dja = ta // 3, ta % 3
        dib, djb = tb_ // 3, tb_ % 3
        a = ypad_ref[dia:dia + H, dja:dja + W, :].reshape(hw, LANES)
        b = ypad_ref[dib:dib + H, djb:djb + W, :].reshape(hw, LANES)
        act = jnp.concatenate([a.astype(jnp.bfloat16),
                               b.astype(jnp.bfloat16)], axis=-1)       # (hw,256)
        d = jnp.dot(act, w3p_ref[p2], preferred_element_type=jnp.float32)
        acc = d if acc is None else acc + d
    t8 = ypad_ref[2:2 + H, 2:2 + W, :].reshape(hw, LANES).astype(jnp.bfloat16)
    acc = acc + jnp.dot(t8, w3l_ref[...], preferred_element_type=jnp.float32)

    accb = acc.astype(jnp.bfloat16)
    y3_ref[...] = accb.reshape(H, W, LANES)
    _write_stats(stats_ref, accb.astype(jnp.float32), hw)


# ---------------------------------------------------------------------------
# Kernel C+A (middle layers): BN3+ReLU, scatter new channels into the narrow
# slab window (aliased partial write), and compute the NEXT layer's conv1x1
# pre-BN activations + stats while everything is resident in VMEM.
# ---------------------------------------------------------------------------
def _scatter_next_kernel(slab_ref, y3_ref, sc3_ref, sh3_ref, place_ref,
                         w1a_ref, w1b_ref,
                         slab_out_ref, pre1_ref, stats_ref, *, base):
    H, W, C = slab_ref.shape           # C = round_up(c_next, 128)
    hw = H * W
    wwidth = slab_out_ref.shape[-1]

    y3 = y3_ref[...].reshape(hw, LANES).astype(jnp.float32)
    y2 = jnp.maximum(y3 * sc3_ref[...] + sh3_ref[...], 0.0)            # f32
    y2b = y2.astype(jnp.bfloat16)                                      # lanes>=g are 0

    # Scatter into the narrow window: target lanes of the slab are exactly 0
    # and place has a single 1 per column, so add == exact placement.
    placed = jnp.dot(y2b, place_ref[...], preferred_element_type=jnp.float32)
    old = slab_ref[:, :, base:base + wwidth].reshape(hw, wwidth).astype(jnp.float32)
    slab_out_ref[...] = (old + placed).reshape(H, W, wwidth).astype(jnp.bfloat16)

    # Next layer's 1x1 conv: old channels (already in the slab read, new lanes
    # are still zero there) + new channels (y2) via the split weight w1b.
    x_old = slab_ref[...].reshape(hw, C)                               # bf16
    pre1 = (jnp.dot(x_old, w1a_ref[...], preferred_element_type=jnp.float32)
            + jnp.dot(y2b, w1b_ref[...], preferred_element_type=jnp.float32))
    pre1b = pre1.astype(jnp.bfloat16)
    pre1_ref[...] = pre1b.reshape(H, W, LANES)
    _write_stats(stats_ref, pre1b.astype(jnp.float32), hw)


# ---------------------------------------------------------------------------
# Kernel C (last layer): BN3+ReLU + scatter into the narrow slab window only
# ---------------------------------------------------------------------------
def _scatter_last_kernel(slab_ref, y3_ref, sc3_ref, sh3_ref, place_ref, out_ref):
    H, W, wwidth = slab_ref.shape
    hw = H * W
    y3 = y3_ref[...].reshape(hw, LANES).astype(jnp.float32)
    y2 = jnp.maximum(y3 * sc3_ref[...] + sh3_ref[...], 0.0)
    placed = jnp.dot(y2.astype(jnp.bfloat16), place_ref[...],
                     preferred_element_type=jnp.float32)
    old = slab_ref[...].reshape(hw, wwidth).astype(jnp.float32)
    out_ref[...] = (old + placed).reshape(H, W, wwidth).astype(jnp.bfloat16)


# ---------------------------------------------------------------------------
# pallas_call wrappers
# ---------------------------------------------------------------------------
def _stats_pre1(slab, w1p, c_need):
    N, H, W, _ = slab.shape
    return pl.pallas_call(
        _stats_pre1_kernel,
        out_shape=(jax.ShapeDtypeStruct((N, H, W, LANES), jnp.bfloat16),
                   jax.ShapeDtypeStruct((N, 2, LANES), jnp.float32)),
        grid=(N,),
        in_specs=[pl.BlockSpec((None, H, W, c_need), lambda n: (n, 0, 0, 0)),
                  pl.BlockSpec((c_need, LANES), lambda n: (0, 0))],
        out_specs=(pl.BlockSpec((None, H, W, LANES), lambda n: (n, 0, 0, 0)),
                   pl.BlockSpec((None, 2, LANES), lambda n: (n, 0, 0))),
        compiler_params=_compiler_params(),
    )(slab, w1p)


def _conv3(pre1, sc1, sh1, w3pair, w3last):
    N, H, W, _ = pre1.shape
    return pl.pallas_call(
        _conv3_kernel,
        out_shape=(jax.ShapeDtypeStruct((N, H, W, LANES), jnp.bfloat16),
                   jax.ShapeDtypeStruct((N, 2, LANES), jnp.float32)),
        grid=(N,),
        in_specs=[pl.BlockSpec((None, H, W, LANES), lambda n: (n, 0, 0, 0)),
                  pl.BlockSpec((1, LANES), lambda n: (0, 0)),
                  pl.BlockSpec((1, LANES), lambda n: (0, 0)),
                  pl.BlockSpec((4, 2 * LANES, LANES), lambda n: (0, 0, 0)),
                  pl.BlockSpec((LANES, LANES), lambda n: (0, 0))],
        out_specs=(pl.BlockSpec((None, H, W, LANES), lambda n: (n, 0, 0, 0)),
                   pl.BlockSpec((None, 2, LANES), lambda n: (n, 0, 0))),
        scratch_shapes=[pltpu.VMEM((H + 2, W + 2, LANES), jnp.float32)],
        compiler_params=_compiler_params(),
    )(pre1, sc1, sh1, w3pair, w3last)


def _scatter_next(slab, y3pre, sc3, sh3, place, w1a, w1b,
                  c_need_next, wblk, wwidth):
    N, H, W, _ = slab.shape
    kernel = functools.partial(_scatter_next_kernel, base=wblk * LANES)
    return pl.pallas_call(
        kernel,
        out_shape=(jax.ShapeDtypeStruct(slab.shape, jnp.bfloat16),
                   jax.ShapeDtypeStruct((N, H, W, LANES), jnp.bfloat16),
                   jax.ShapeDtypeStruct((N, 2, LANES), jnp.float32)),
        grid=(N,),
        in_specs=[pl.BlockSpec((None, H, W, c_need_next), lambda n: (n, 0, 0, 0)),
                  pl.BlockSpec((None, H, W, LANES), lambda n: (n, 0, 0, 0)),
                  pl.BlockSpec((1, LANES), lambda n: (0, 0)),
                  pl.BlockSpec((1, LANES), lambda n: (0, 0)),
                  pl.BlockSpec((LANES, wwidth), lambda n: (0, 0)),
                  pl.BlockSpec((c_need_next, LANES), lambda n: (0, 0)),
                  pl.BlockSpec((LANES, LANES), lambda n: (0, 0))],
        out_specs=(pl.BlockSpec((None, H, W, wwidth), lambda n: (n, 0, 0, wblk)),
                   pl.BlockSpec((None, H, W, LANES), lambda n: (n, 0, 0, 0)),
                   pl.BlockSpec((None, 2, LANES), lambda n: (n, 0, 0))),
        input_output_aliases={0: 0},
        compiler_params=_compiler_params(),
    )(slab, y3pre, sc3, sh3, place, w1a, w1b)


def _scatter_last(slab, y3pre, sc3, sh3, place, wblk, wwidth):
    N, H, W, _ = slab.shape
    return pl.pallas_call(
        _scatter_last_kernel,
        out_shape=jax.ShapeDtypeStruct(slab.shape, jnp.bfloat16),
        grid=(N,),
        in_specs=[pl.BlockSpec((None, H, W, wwidth), lambda n: (n, 0, 0, wblk)),
                  pl.BlockSpec((None, H, W, LANES), lambda n: (n, 0, 0, 0)),
                  pl.BlockSpec((1, LANES), lambda n: (0, 0)),
                  pl.BlockSpec((1, LANES), lambda n: (0, 0)),
                  pl.BlockSpec((LANES, wwidth), lambda n: (0, 0))],
        out_specs=pl.BlockSpec((None, H, W, wwidth), lambda n: (n, 0, 0, wblk)),
        input_output_aliases={0: 0},
        compiler_params=_compiler_params(),
    )(slab, y3pre, sc3, sh3, place)


# ---------------------------------------------------------------------------
# BN folding glue (Welford/Chan combine of per-tile shifted stats)
# ---------------------------------------------------------------------------
def _bn_fold(stats, gamma_pad, beta_pad, hw, eps):
    """stats: (N, 2, 128) per-tile [sum; ssd] -> folded scale/shift (1,128)."""
    s1 = stats[:, 0, :]                              # (N, 128)
    ssd = stats[:, 1, :]
    n = stats.shape[0]
    count = float(n * hw)
    mean_i = s1 / float(hw)
    mean = jnp.sum(s1, axis=0) / count
    m2 = jnp.sum(ssd, axis=0) + float(hw) * jnp.sum(
        jnp.square(mean_i - mean[None, :]), axis=0)
    var = jnp.maximum(m2 / count, 0.0)               # biased variance
    scale = gamma_pad * jax.lax.rsqrt(var + eps)
    shift = beta_pad - mean * scale
    return scale.reshape(1, LANES), shift.reshape(1, LANES)


# ---------------------------------------------------------------------------
# DenseBlock forward (NCHW in / NCHW out, like the PyTorch module)
# ---------------------------------------------------------------------------
def dense_block_forward(x_nchw, params, growth_rate, times, eps=EPS):
    g = growth_rate
    assert g <= LANES, "growth_rate > 128 not supported by this kernel"
    N, C_in, H, W = x_nchw.shape
    C_total = C_in + times * g
    C_pad = _round_up(C_total, LANES)
    lane_pad = LANES - g
    hw = H * W

    x_nhwc = jnp.transpose(x_nchw, (0, 2, 3, 1)).astype(jnp.float32)
    slab = jnp.pad(x_nhwc, ((0, 0), (0, 0), (0, 0),
                            (0, C_pad - C_in))).astype(jnp.bfloat16)

    def w1_padded(li, rows):
        c_cur = C_in + li * g
        w1 = jnp.transpose(params[li]["w1"][:, :, 0, 0])          # (c_cur, g)
        return jnp.pad(w1, ((0, rows - c_cur), (0, lane_pad))).astype(jnp.bfloat16)

    def bn_pads(li, which):
        p = params[li]
        return (jnp.pad(p["gamma" + which][0], (0, lane_pad)),
                jnp.pad(p["beta" + which][0], (0, lane_pad)))

    def scatter_geom(li):
        c_off = C_in + li * g
        blk0, blk1 = c_off // LANES, (c_off + g - 1) // LANES
        if blk0 == blk1:
            wblk, wwidth, woff = blk0, LANES, c_off - blk0 * LANES
        else:  # new channels straddle a 128-lane block: widen the window
            wblk, wwidth, woff = 0, (blk1 + 1) * LANES, c_off
        place = jnp.zeros((LANES, wwidth), jnp.float32)
        place = place.at[jnp.arange(g), woff + jnp.arange(g)].set(1.0)
        return wblk, wwidth, place.astype(jnp.bfloat16)

    # conv biases b1/b3 are intentionally dropped everywhere: a bias before a
    # training-mode BatchNorm is exactly cancelled by the mean subtraction.

    # ---- layer 0 stats + pre-BN conv1x1 activations from the initial slab --
    c_need0 = _round_up(C_in, LANES)
    pre1, st1 = _stats_pre1(slab, w1_padded(0, c_need0), c_need0)

    for li in range(times):
        p = params[li]
        gamma1, beta1 = bn_pads(li, "1")
        gamma3, beta3 = bn_pads(li, "3")
        sc1, sh1 = _bn_fold(st1, gamma1, beta1, hw, eps)

        # 3x3 weights: (tap, in, out), padded to 128 lanes, paired along K
        w3 = jnp.transpose(p["w3"], (2, 3, 1, 0)).reshape(9, g, g)
        w3p = jnp.pad(w3, ((0, 0), (0, lane_pad), (0, lane_pad))).astype(jnp.bfloat16)
        w3pair = w3p[:8].reshape(4, 2 * LANES, LANES)
        w3last = w3p[8]

        y3pre, st3 = _conv3(pre1, sc1, sh1, w3pair, w3last)
        sc3, sh3 = _bn_fold(st3, gamma3, beta3, hw, eps)

        wblk, wwidth, place = scatter_geom(li)
        if li + 1 < times:
            c_off = C_in + li * g
            c_next = c_off + g
            c_need_next = _round_up(c_next, LANES)
            w1n = jnp.transpose(params[li + 1]["w1"][:, :, 0, 0])  # (c_next, g)
            w1a = jnp.pad(w1n, ((0, c_need_next - c_next),
                                (0, lane_pad))).astype(jnp.bfloat16)
            w1b = jnp.pad(w1n[c_off:c_off + g, :],
                          ((0, LANES - g), (0, lane_pad))).astype(jnp.bfloat16)
            slab, pre1, st1 = _scatter_next(slab, y3pre, sc3, sh3, place,
                                            w1a, w1b, c_need_next, wblk, wwidth)
        else:
            slab = _scatter_last(slab, y3pre, sc3, sh3, place, wblk, wwidth)

    out_nhwc = slab[..., :C_total].astype(jnp.float32)
    return jnp.transpose(out_nhwc, (0, 3, 1, 2))


# ---------------------------------------------------------------------------
# Pure-JAX f32 reference (lax.conv) for the correctness check
# ---------------------------------------------------------------------------
def _bn_relu_ref(y, gamma, beta, eps):
    mean = jnp.mean(y, axis=(0, 1, 2), keepdims=True)
    var = jnp.mean(jnp.square(y - mean), axis=(0, 1, 2), keepdims=True)
    return jnp.maximum(gamma * (y - mean) * jax.lax.rsqrt(var + eps) + beta, 0.0)


def dense_block_reference(x_nchw, params, growth_rate, times, eps=EPS):
    x = jnp.transpose(x_nchw, (0, 2, 3, 1)).astype(jnp.float32)
    dn = ("NHWC", "HWIO", "NHWC")
    hp = jax.lax.Precision.HIGHEST
    features = [x]
    cur = x
    for li in range(times):
        p = params[li]
        y = jax.lax.conv_general_dilated(
            cur, jnp.transpose(p["w1"], (2, 3, 1, 0)), (1, 1), "VALID",
            dimension_numbers=dn, precision=hp) + p["b1"]
        y = _bn_relu_ref(y, p["gamma1"], p["beta1"], eps)
        y = jax.lax.conv_general_dilated(
            y, jnp.transpose(p["w3"], (2, 3, 1, 0)), (1, 1), "SAME",
            dimension_numbers=dn, precision=hp) + p["b3"]
        y = _bn_relu_ref(y, p["gamma3"], p["beta3"], eps)
        features.append(y)
        cur = jnp.concatenate(features, axis=-1)
    return jnp.transpose(cur, (0, 3, 1, 2))


# ---------------------------------------------------------------------------
# Deterministic parameter init (shapes follow nn.Conv2d / nn.BatchNorm2d)
# ---------------------------------------------------------------------------
def init_dense_block_params(key, in_channels, growth_rate, times):
    params = []
    c = in_channels
    for _ in range(times):
        key, *ks = jax.random.split(key, 9)
        params.append(dict(
            w1=0.1 * jax.random.normal(ks[0], (growth_rate, c, 1, 1), jnp.float32),
            b1=0.1 * jax.random.normal(ks[1], (1, growth_rate), jnp.float32),
            gamma1=1.0 + 0.1 * jax.random.normal(ks[2], (1, growth_rate), jnp.float32),
            beta1=0.1 * jax.random.normal(ks[3], (1, growth_rate), jnp.float32),
            w3=0.1 * jax.random.normal(ks[4], (growth_rate, growth_rate, 3, 3), jnp.float32),
            b3=0.1 * jax.random.normal(ks[5], (1, growth_rate), jnp.float32),
            gamma3=1.0 + 0.1 * jax.random.normal(ks[6], (1, growth_rate), jnp.float32),
            beta3=0.1 * jax.random.normal(ks[7], (1, growth_rate), jnp.float32),
        ))
        c += growth_rate
    return params


if __name__ == "__main__":
    in_channels, growth_rate, times = 8, 8, 3
    N, H, W = 2, 16, 16

    key = jax.random.PRNGKey(0)
    key, kx = jax.random.split(key)
    x = jax.random.normal(kx, (N, in_channels, H, W), jnp.float32)  # NCHW
    params = init_dense_block_params(key, in_channels, growth_rate, times)

    fwd = jax.jit(functools.partial(dense_block_forward,
                                    growth_rate=growth_rate, times=times))
    out = jax.block_until_ready(fwd(x, params))

    expected_c = in_channels + times * growth_rate
    assert out.shape == (N, expected_c, H, W), out.shape
    assert bool(jnp.all(jnp.isfinite(out)))

    ref = dense_block_reference(x, params, growth_rate, times)
    max_diff = float(jnp.max(jnp.abs(out - ref)))
    # bf16 MXU operands + bf16 feature/pre1 storage vs f32 reference.
    assert max_diff < 1e-1, f"mismatch vs reference: {max_diff}"

    print("KERNEL_OK")
</pallas_src>

<mosaic_0001>
module attributes {stable_mosaic.version = 11 : i64} {
  func.func @_stats_pre1_kernel(%arg0: i32, %arg1: memref<1x16x16x128xbf16, #tpu.memory_space<vmem>>, %arg2: memref<128x128xbf16, #tpu.memory_space<vmem>>, %arg3: memref<1x16x16x128xbf16, #tpu.memory_space<vmem>>, %arg4: memref<1x2x128xf32, #tpu.memory_space<vmem>>) attributes {dimension_semantics = [#tpu.dimension_semantics<parallel>], iteration_bounds = array<i64: 2>, scalar_prefetch = 0 : i64, scratch_operands = 0 : i64, tpu.core_type = #tpu.core_type<tc>, window_params = [{transform_indices = @transform_0, window_bounds = array<i64: 1, 16, 16, 128>}, {pipeline_mode = #tpu.pipeline_mode<synchronous>, transform_indices = @transform_1, window_bounds = array<i64: 128, 128>}, {transform_indices = @transform_2, window_bounds = array<i64: 1, 16, 16, 128>}, {transform_indices = @transform_3, window_bounds = array<i64: 1, 2, 128>}]} {
    %c0 = arith.constant 0 : index
    %c0_0 = arith.constant 0 : index
    %c0_1 = arith.constant 0 : index
    %c0_2 = arith.constant 0 : index
    %0 = vector.load %arg1[%c0, %c0_0, %c0_1, %c0_2] : memref<1x16x16x128xbf16, #tpu.memory_space<vmem>>, vector<1x16x16x128xbf16>
    %1 = vector.shape_cast %0 : vector<1x16x16x128xbf16> to vector<16x16x128xbf16>
    %2 = vector.shape_cast %1 : vector<16x16x128xbf16> to vector<256x128xbf16>
    %c0_3 = arith.constant 0 : index
    %c0_4 = arith.constant 0 : index
    %3 = vector.load %arg2[%c0_3, %c0_4] : memref<128x128xbf16, #tpu.memory_space<vmem>>, vector<128x128xbf16>
    %cst = arith.constant dense<0.000000e+00> : vector<256x128xf32>
    %4 = tpu.matmul %2, %3, %cst {dimension_numbers = #tpu.dot_dimension_numbers<[1], [0], [0], [1], [0, 0, 1, 1], [], []>} : vector<256x128xbf16>, vector<128x128xbf16>, vector<256x128xf32> -> vector<256x128xf32>
    %5 = arith.truncf %4 : vector<256x128xf32> to vector<256x128xbf16>
    %6 = vector.shape_cast %5 : vector<256x128xbf16> to vector<16x16x128xbf16>
    %c0_5 = arith.constant 0 : index
    %c0_6 = arith.constant 0 : index
    %c0_7 = arith.constant 0 : index
    %c0_8 = arith.constant 0 : index
    %7 = vector.load %arg3[%c0_5, %c0_6, %c0_7, %c0_8] : memref<1x16x16x128xbf16, #tpu.memory_space<vmem>>, vector<1x16x16x128xbf16>
    %8 = vector.shape_cast %7 : vector<1x16x16x128xbf16> to vector<16x16x128xbf16>
    %9 = vector.shape_cast %6 : vector<16x16x128xbf16> to vector<1x16x16x128xbf16>
    tpu.vector_store %arg3[%c0_5, %c0_6, %c0_7, %c0_8], %9 {strides = array<i32>} : memref<1x16x16x128xbf16, #tpu.memory_space<vmem>>, vector<1x16x16x128xbf16>,
    %10 = arith.extf %5 : vector<256x128xbf16> to vector<256x128xf32>
    %cst_9 = arith.constant dense<0.000000e+00> : vector<128xf32>
    %11 = vector.multi_reduction <add>, %10, %cst_9 [0] : vector<256x128xf32> to vector<128xf32>
    %12 = vector.shape_cast %11 : vector<128xf32> to vector<1x128xf32>
    %cst_10 = arith.constant 3.906250e-03 : f32
    %13 = vector.broadcast %cst_10 : f32 to vector<1x128xf32>
    %14 = arith.mulf %12, %13 : vector<1x128xf32>
    %15 = vector.broadcast %14 : vector<1x128xf32> to vector<256x128xf32>
    %16 = arith.subf %10, %15 : vector<256x128xf32>
    %17 = arith.mulf %16, %16 : vector<256x128xf32>
    %cst_11 = arith.constant dense<0.000000e+00> : vector<128xf32>
    %18 = vector.multi_reduction <add>, %17, %cst_11 [0] : vector<256x128xf32> to vector<128xf32>
    %19 = vector.shape_cast %18 : vector<128xf32> to vector<1x128xf32>
    %20 = tpu.concatenate %12, %19 in 0 : vector<1x128xf32>, vector<1x128xf32> -> vector<2x128xf32>
    %c0_12 = arith.constant 0 : index
    %c0_13 = arith.constant 0 : index
    %c0_14 = arith.constant 0 : index
    %21 = vector.load %arg4[%c0_12, %c0_13, %c0_14] : memref<1x2x128xf32, #tpu.memory_space<vmem>>, vector<1x2x128xf32>
    %22 = vector.shape_cast %21 : vector<1x2x128xf32> to vector<2x128xf32>
    %23 = vector.shape_cast %20 : vector<2x128xf32> to vector<1x2x128xf32>
    tpu.vector_store %arg4[%c0_12, %c0_13, %c0_14], %23 {strides = array<i32>} : memref<1x2x128xf32, #tpu.memory_space<vmem>>, vector<1x2x128xf32>,
    return
  }
  func.func @transform_0(%arg0: i32) -> (i32, i32, i32, i32) {
    %c0_i32 = arith.constant 0 : i32
    %c0_i32_0 = arith.constant 0 : i32
    %c0_i32_1 = arith.constant 0 : i32
    %c0_i32_2 = arith.constant 0 : i32
    return %arg0, %c0_i32, %c0_i32_0, %c0_i32_1 : i32, i32, i32, i32
  }
  func.func @transform_1(%arg0: i32) -> (i32, i32) {
    %c0_i32 = arith.constant 0 : i32
    %c0_i32_0 = arith.constant 0 : i32
    %c0_i32_1 = arith.constant 0 : i32
    return %c0_i32, %c0_i32_0 : i32, i32
  }
  func.func @transform_2(%arg0: i32) -> (i32, i32, i32, i32) {
    %c0_i32 = arith.constant 0 : i32
    %c0_i32_0 = arith.constant 0 : i32
    %c0_i32_1 = arith.constant 0 : i32
    %c0_i32_2 = arith.constant 0 : i32
    return %arg0, %c0_i32, %c0_i32_0, %c0_i32_1 : i32, i32, i32, i32
  }
  func.func @transform_3(%arg0: i32) -> (i32, i32, i32) {
    %c0_i32 = arith.constant 0 : i32
    %c0_i32_0 = arith.constant 0 : i32
    %c0_i32_1 = arith.constant 0 : i32
    return %arg0, %c0_i32, %c0_i32_0 : i32, i32, i32
  }
}

module attributes {stable_mosaic.version = 11 : i64} {
  func.func @_conv3_kernel(%arg0: i32, %arg1: memref<1x16x16x128xbf16, #tpu.memory_space<vmem>>, %arg2: memref<1x128xf32, #tpu.memory_space<vmem>>, %arg3: memref<1x128xf32, #tpu.memory_space<vmem>>, %arg4: memref<4x256x128xbf16, #tpu.memory_space<vmem>>, %arg5: memref<128x128xbf16, #tpu.memory_space<vmem>>, %arg6: memref<1x16x16x128xbf16, #tpu.memory_space<vmem>>, %arg7: memref<1x2x128xf32, #tpu.memory_space<vmem>>, %arg8: memref<18x18x128xf32, #tpu.memory_space<vmem>>) attributes {dimension_semantics = [#tpu.dimension_semantics<parallel>], iteration_bounds = array<i64: 2>, scalar_prefetch = 0 : i64, scratch_operands = 1 : i64, tpu.core_type = #tpu.core_type<tc>, window_params = [{transform_indices = @transform_0, window_bounds = array<i64: 1, 16, 16, 128>}, {pipeline_mode = #tpu.pipeline_mode<synchronous>, transform_indices = @transform_1, window_bounds = array<i64: 1, 128>}, {pipeline_mode = #tpu.pipeline_mode<synchronous>, transform_indices = @transform_2, window_bounds = array<i64: 1, 128>}, {pipeline_mode = #tpu.pipeline_mode<synchronous>, transform_indices = @transform_3, window_bounds = array<i64: 4, 256, 128>}, {pipeline_mode = #tpu.pipeline_mode<synchronous>, transform_indices = @transform_4, window_bounds = array<i64: 128, 128>}, {transform_indices = @transform_5, window_bounds = array<i64: 1, 16, 16, 128>}, {transform_indices = @transform_6, window_bounds = array<i64: 1, 2, 128>}]} {
    %c0 = arith.constant 0 : index
    %c0_0 = arith.constant 0 : index
    %c0_1 = arith.constant 0 : index
    %c0_2 = arith.constant 0 : index
    %0 = vector.load %arg1[%c0, %c0_0, %c0_1, %c0_2] : memref<1x16x16x128xbf16, #tpu.memory_space<vmem>>, vector<1x16x16x128xbf16>
    %1 = vector.shape_cast %0 : vector<1x16x16x128xbf16> to vector<16x16x128xbf16>
    %2 = vector.shape_cast %1 : vector<16x16x128xbf16> to vector<256x128xbf16>
    %3 = arith.extf %2 : vector<256x128xbf16> to vector<256x128xf32>
    %c0_3 = arith.constant 0 : index
    %c0_4 = arith.constant 0 : index
    %4 = vector.load %arg2[%c0_3, %c0_4] : memref<1x128xf32, #tpu.memory_space<vmem>>, vector<1x128xf32>
    %5 = vector.broadcast %4 : vector<1x128xf32> to vector<256x128xf32>
    %6 = arith.mulf %3, %5 : vector<256x128xf32>
    %c0_5 = arith.constant 0 : index
    %c0_6 = arith.constant 0 : index
    %7 = vector.load %arg3[%c0_5, %c0_6] : memref<1x128xf32, #tpu.memory_space<vmem>>, vector<1x128xf32>
    %8 = vector.broadcast %7 : vector<1x128xf32> to vector<256x128xf32>
    %9 = arith.addf %6, %8 : vector<256x128xf32>
    %cst = arith.constant 0.000000e+00 : f32
    %10 = vector.broadcast %cst : f32 to vector<256x128xf32>
    %11 = arith.maximumf %9, %10 : vector<256x128xf32>
    %c0_i32 = arith.constant 0 : i32
    %12 = arith.cmpi eq, %arg0, %c0_i32 : i32
    %13 = arith.extui %12 : i1 to i32
    %c0_i32_7 = arith.constant 0 : i32
    %14 = arith.cmpi ne, %13, %c0_i32_7 : i32
    scf.if %14 {
      %cst_64 = arith.constant 0.000000e+00 : f32
      %85 = vector.broadcast %cst_64 : f32 to vector<18x18x128xf32>
      %c0_65 = arith.constant 0 : index
      %c0_66 = arith.constant 0 : index
      %c0_67 = arith.constant 0 : index
      %86 = vector.load %arg8[%c0_65, %c0_66, %c0_67] : memref<18x18x128xf32, #tpu.memory_space<vmem>>, vector<18x18x128xf32>
      tpu.vector_store %arg8[%c0_65, %c0_66, %c0_67], %85 {strides = array<i32>} : memref<18x18x128xf32, #tpu.memory_space<vmem>>, vector<18x18x128xf32>,
    } else {
    }
    %15 = vector.shape_cast %11 : vector<256x128xf32> to vector<16x16x128xf32>
    %c1 = arith.constant 1 : index
    %c1_8 = arith.constant 1 : index
    %c0_9 = arith.constant 0 : index
    %16 = vector.load %arg8[%c1, %c1_8, %c0_9] : memref<18x18x128xf32, #tpu.memory_space<vmem>>, vector<16x16x128xf32>
    tpu.vector_store %arg8[%c1, %c1_8, %c0_9], %15 {strides = array<i32>} : memref<18x18x128xf32, #tpu.memory_space<vmem>>, vector<16x16x128xf32>,
    %c0_10 = arith.constant 0 : index
    %c0_11 = arith.constant 0 : index
    %c0_12 = arith.constant 0 : index
    %17 = vector.load %arg8[%c0_10, %c0_11, %c0_12] : memref<18x18x128xf32, #tpu.memory_space<vmem>>, vector<16x16x128xf32>
    %18 = vector.shape_cast %17 : vector<16x16x128xf32> to vector<256x128xf32>
    %c0_13 = arith.constant 0 : index
    %c1_14 = arith.constant 1 : index
    %c0_15 = arith.constant 0 : index
    %19 = vector.load %arg8[%c0_13, %c1_14, %c0_15] : memref<18x18x128xf32, #tpu.memory_space<vmem>>, vector<16x16x128xf32>
    %20 = vector.shape_cast %19 : vector<16x16x128xf32> to vector<256x128xf32>
    %21 = arith.truncf %18 : vector<256x128xf32> to vector<256x128xbf16>
    %22 = arith.truncf %20 : vector<256x128xf32> to vector<256x128xbf16>
    %23 = tpu.concatenate %21, %22 in 1 : vector<256x128xbf16>, vector<256x128xbf16> -> vector<256x256xbf16>
    %c0_16 = arith.constant 0 : index
    %c0_17 = arith.constant 0 : index
    %c0_18 = arith.constant 0 : index
    %24 = vector.load %arg4[%c0_16, %c0_17, %c0_18] : memref<4x256x128xbf16, #tpu.memory_space<vmem>>, vector<1x256x128xbf16>
    %25 = vector.shape_cast %24 : vector<1x256x128xbf16> to vector<256x128xbf16>
    %cst_19 = arith.constant dense<0.000000e+00> : vector<256x128xf32>
    %26 = tpu.matmul %23, %25, %cst_19 {dimension_numbers = #tpu.dot_dimension_numbers<[1], [0], [0], [1], [0, 0, 1, 1], [], []>} : vector<256x256xbf16>, vector<256x128xbf16>, vector<256x128xf32> -> vector<256x128xf32>
    %c0_20 = arith.constant 0 : index
    %c2 = arith.constant 2 : index
    %c0_21 = arith.constant 0 : index
    %27 = vector.load %arg8[%c0_20, %c2, %c0_21] : memref<18x18x128xf32, #tpu.memory_space<vmem>>, vector<16x16x128xf32>
    %28 = vector.shape_cast %27 : vector<16x16x128xf32> to vector<256x128xf32>
    %c1_22 = arith.constant 1 : index
    %c0_23 = arith.constant 0 : index
    %c0_24 = arith.constant 0 : index
    %29 = vector.load %arg8[%c1_22, %c0_23, %c0_24] : memref<18x18x128xf32, #tpu.memory_space<vmem>>, vector<16x16x128xf32>
    %30 = vector.shape_cast %29 : vector<16x16x128xf32> to vector<256x128xf32>
    %31 = arith.truncf %28 : vector<256x128xf32> to vector<256x128xbf16>
    %32 = arith.truncf %30 : vector<256x128xf32> to vector<256x128xbf16>
    %33 = tpu.concatenate %31, %32 in 1 : vector<256x128xbf16>, vector<256x128xbf16> -> vector<256x256xbf16>
    %c1_25 = arith.constant 1 : index
    %c0_26 = arith.constant 0 : index
    %c0_27 = arith.constant 0 : index
    %34 = vector.load %arg4[%c1_25, %c0_26, %c0_27] : memref<4x256x128xbf16, #tpu.memory_space<vmem>>, vector<1x256x128xbf16>
    %35 = vector.shape_cast %34 : vector<1x256x128xbf16> to vector<256x128xbf16>
    %cst_28 = arith.constant dense<0.000000e+00> : vector<256x128xf32>
    %36 = tpu.matmul %33, %35, %cst_28 {dimension_numbers = #tpu.dot_dimension_numbers<[1], [0], [0], [1], [0, 0, 1, 1], [], []>} : vector<256x256xbf16>, vector<256x128xbf16>, vector<256x128xf32> -> vector<256x128xf32>
    %37 = arith.addf %26, %36 : vector<256x128xf32>
    %c1_29 = arith.constant 1 : index
    %c1_30 = arith.constant 1 : index
    %c0_31 = arith.constant 0 : index
    %38 = vector.load %arg8[%c1_29, %c1_30, %c0_31] : memref<18x18x128xf32, #tpu.memory_space<vmem>>, vector<16x16x128xf32>
    %39 = vector.shape_cast %38 : vector<16x16x128xf32> to vector<256x128xf32>
    %c1_32 = arith.constant 1 : index
    %c2_33 = arith.constant 2 : index
    %c0_34 = arith.constant 0 : index
    %40 = vector.load %arg8[%c1_32, %c2_33, %c0_34] : memref<18x18x128xf32, #tpu.memory_space<vmem>>, vector<16x16x128xf32>
    %41 = vector.shape_cast %40 : vector<16x16x128xf32> to vector<256x128xf32>
    %42 = arith.truncf %39 : vector<256x128xf32> to vector<256x128xbf16>
    %43 = arith.truncf %41 : vector<256x128xf32> to vector<256x128xbf16>
    %44 = tpu.concatenate %42, %43 in 1 : vector<256x128xbf16>, vector<256x128xbf16> -> vector<256x256xbf16>
    %c2_35 = arith.constant 2 : index
    %c0_36 = arith.constant 0 : index
    %c0_37 = arith.constant 0 : index
    %45 = vector.load %arg4[%c2_35, %c0_36, %c0_37] : memref<4x256x128xbf16, #tpu.memory_space<vmem>>, vector<1x256x128xbf16>
    %46 = vector.shape_cast %45 : vector<1x256x128xbf16> to vector<256x128xbf16>
    %cst_38 = arith.constant dense<0.000000e+00> : vector<256x128xf32>
    %47 = tpu.matmul %44, %46, %cst_38 {dimension_numbers = #tpu.dot_dimension_numbers<[1], [0], [0], [1], [0, 0, 1, 1], [], []>} : vector<256x256xbf16>, vector<256x128xbf16>, vector<256x128xf32> -> vector<256x128xf32>
    %48 = arith.addf %37, %47 : vector<256x128xf32>
    %c2_39 = arith.constant 2 : index
    %c0_40 = arith.constant 0 : index
    %c0_41 = arith.constant 0 : index
    %49 = vector.load %arg8[%c2_39, %c0_40, %c0_41] : memref<18x18x128xf32, #tpu.memory_space<vmem>>, vector<16x16x128xf32>
    %50 = vector.shape_cast %49 : vector<16x16x128xf32> to vector<256x128xf32>
    %c2_42 = arith.constant 2 : index
    %c1_43 = arith.constant 1 : index
    %c0_44 = arith.constant 0 : index
    %51 = vector.load %arg8[%c2_42, %c1_43, %c0_44] : memref<18x18x128xf32, #tpu.memory_space<vmem>>, vector<16x16x128xf32>
    %52 = vector.shape_cast %51 : vector<16x16x128xf32> to vector<256x128xf32>
    %53 = arith.truncf %50 : vector<256x128xf32> to vector<256x128xbf16>
    %54 = arith.truncf %52 : vector<256x128xf32> to vector<256x128xbf16>
    %55 = tpu.concatenate %53, %54 in 1 : vector<256x128xbf16>, vector<256x128xbf16> -> vector<256x256xbf16>
    %c3 = arith.constant 3 : index
    %c0_45 = arith.constant 0 : index
    %c0_46 = arith.constant 0 : index
    %56 = vector.load %arg4[%c3, %c0_45, %c0_46] : memref<4x256x128xbf16, #tpu.memory_space<vmem>>, vector<1x256x128xbf16>
    %57 = vector.shape_cast %56 : vector<1x256x128xbf16> to vector<256x128xbf16>
    %cst_47 = arith.constant dense<0.000000e+00> : vector<256x128xf32>
    %58 = tpu.matmul %55, %57, %cst_47 {dimension_numbers = #tpu.dot_dimension_numbers<[1], [0], [0], [1], [0, 0, 1, 1], [], []>} : vector<256x256xbf16>, vector<256x128xbf16>, vector<256x128xf32> -> vector<256x128xf32>
    %59 = arith.addf %48, %58 : vector<256x128xf32>
    %c2_48 = arith.constant 2 : index
    %c2_49 = arith.constant 2 : index
    %c0_50 = arith.constant 0 : index
    %60 = vector.load %arg8[%c2_48, %c2_49, %c0_50] : memref<18x18x128xf32, #tpu.memory_space<vmem>>, vector<16x16x128xf32>
    %61 = vector.shape_cast %60 : vector<16x16x128xf32> to vector<256x128xf32>
    %62 = arith.truncf %61 : vector<256x128xf32> to vector<256x128xbf16>
    %c0_51 = arith.constant 0 : index
    %c0_52 = arith.constant 0 : index
    %63 = vector.load %arg5[%c0_51, %c0_52] : memref<128x128xbf16, #tpu.memory_space<vmem>>, vector<128x128xbf16>
    %cst_53 = arith.constant dense<0.000000e+00> : vector<256x128xf32>
    %64 = tpu.matmul %62, %63, %cst_53 {dimension_numbers = #tpu.dot_dimension_numbers<[1], [0], [0], [1], [0, 0, 1, 1], [], []>} : vector<256x128xbf16>, vector<128x128xbf16>, vector<256x128xf32> -> vector<256x128xf32>
    %65 = arith.addf %59, %64 : vector<256x128xf32>
    %66 = arith.truncf %65 : vector<256x128xf32> to vector<256x128xbf16>
    %67 = vector.shape_cast %66 : vector<256x128xbf16> to vector<16x16x128xbf16>
    %c0_54 = arith.constant 0 : index
    %c0_55 = arith.constant 0 : index
    %c0_56 = arith.constant 0 : index
    %c0_57 = arith.constant 0 : index
    %68 = vector.load %arg6[%c0_54, %c0_55, %c0_56, %c0_57] : memref<1x16x16x128xbf16, #tpu.memory_space<vmem>>, vector<1x16x16x128xbf16>
    %69 = vector.shape_cast %68 : vector<1x16x16x128xbf16> to vector<16x16x128xbf16>
    %70 = vector.shape_cast %67 : vector<16x16x128xbf16> to vector<1x16x16x128xbf16>
    tpu.vector_store %arg6[%c0_54, %c0_55, %c0_56, %c0_57], %70 {strides = array<i32>} : memref<1x16x16x128xbf16, #tpu.memory_space<vmem>>, vector<1x16x16x128xbf16>,
    %71 = arith.extf %66 : vector<256x128xbf16> to vector<256x128xf32>
    %cst_58 = arith.constant dense<0.000000e+00> : vector<128xf32>
    %72 = vector.multi_reduction <add>, %71, %cst_58 [0] : vector<256x128xf32> to vector<128xf32>
    %73 = vector.shape_cast %72 : vector<128xf32> to vector<1x128xf32>
    %cst_59 = arith.constant 3.906250e-03 : f32
    %74 = vector.broadcast %cst_59 : f32 to vector<1x128xf32>
    %75 = arith.mulf %73, %74 : vector<1x128xf32>
    %76 = vector.broadcast %75 : vector<1x128xf32> to vector<256x128xf32>
    %77 = arith.subf %71, %76 : vector<256x128xf32>
    %78 = arith.mulf %77, %77 : vector<256x128xf32>
    %cst_60 = arith.constant dense<0.000000e+00> : vector<128xf32>
    %79 = vector.multi_reduction <add>, %78, %cst_60 [0] : vector<256x128xf32> to vector<128xf32>
    %80 = vector.shape_cast %79 : vector<128xf32> to vector<1x128xf32>
    %81 = tpu.concatenate %73, %80 in 0 : vector<1x128xf32>, vector<1x128xf32> -> vector<2x128xf32>
    %c0_61 = arith.constant 0 : index
    %c0_62 = arith.constant 0 : index
    %c0_63 = arith.constant 0 : index
    %82 = vector.load %arg7[%c0_61, %c0_62, %c0_63] : memref<1x2x128xf32, #tpu.memory_space<vmem>>, vector<1x2x128xf32>
    %83 = vector.shape_cast %82 : vector<1x2x128xf32> to vector<2x128xf32>
    %84 = vector.shape_cast %81 : vector<2x128xf32> to vector<1x2x128xf32>
    tpu.vector_store %arg7[%c0_61, %c0_62, %c0_63], %84 {strides = array<i32>} : memref<1x2x128xf32, #tpu.memory_space<vmem>>, vector<1x2x128xf32>,
    return
  }
  func.func @transform_0(%arg0: i32) -> (i32, i32, i32, i32) {
    %c0_i32 = arith.constant 0 : i32
    %c0_i32_0 = arith.constant 0 : i32
    %c0_i32_1 = arith.constant 0 : i32
    %c0_i32_2 = arith.constant 0 : i32
    return %arg0, %c0_i32, %c0_i32_0, %c0_i32_1 : i32, i32, i32, i32
  }
  func.func @transform_1(%arg0: i32) -> (i32, i32) {
    %c0_i32 = arith.constant 0 : i32
    %c0_i32_0 = arith.constant 0 : i32
    %c0_i32_1 = arith.constant 0 : i32
    return %c0_i32, %c0_i32_0 : i32, i32
  }
  func.func @transform_2(%arg0: i32) -> (i32, i32) {
    %c0_i32 = arith.constant 0 : i32
    %c0_i32_0 = arith.constant 0 : i32
    %c0_i32_1 = arith.constant 0 : i32
    return %c0_i32, %c0_i32_0 : i32, i32
  }
  func.func @transform_3(%arg0: i32) -> (i32, i32, i32) {
    %c0_i32 = arith.constant 0 : i32
    %c0_i32_0 = arith.constant 0 : i32
    %c0_i32_1 = arith.constant 0 : i32
    %c0_i32_2 = arith.constant 0 : i32
    return %c0_i32, %c0_i32_0, %c0_i32_1 : i32, i32, i32
  }
  func.func @transform_4(%arg0: i32) -> (i32, i32) {
    %c0_i32 = arith.constant 0 : i32
    %c0_i32_0 = arith.constant 0 : i32
    %c0_i32_1 = arith.constant 0 : i32
    return %c0_i32, %c0_i32_0 : i32, i32
  }
  func.func @transform_5(%arg0: i32) -> (i32, i32, i32, i32) {
    %c0_i32 = arith.constant 0 : i32
    %c0_i32_0 = arith.constant 0 : i32
    %c0_i32_1 = arith.constant 0 : i32
    %c0_i32_2 = arith.constant 0 : i32
    return %arg0, %c0_i32, %c0_i32_0, %c0_i32_1 : i32, i32, i32, i32
  }
  func.func @transform_6(%arg0: i32) -> (i32, i32, i32) {
    %c0_i32 = arith.constant 0 : i32
    %c0_i32_0 = arith.constant 0 : i32
    %c0_i32_1 = arith.constant 0 : i32
    return %arg0, %c0_i32, %c0_i32_0 : i32, i32, i32
  }
}

module attributes {stable_mosaic.version = 11 : i64} {
  func.func @_scatter_next_kernel(%arg0: i32, %arg1: memref<1x16x16x128xbf16, #tpu.memory_space<vmem>>, %arg2: memref<1x16x16x128xbf16, #tpu.memory_space<vmem>>, %arg3: memref<1x128xf32, #tpu.memory_space<vmem>>, %arg4: memref<1x128xf32, #tpu.memory_space<vmem>>, %arg5: memref<128x128xbf16, #tpu.memory_space<vmem>>, %arg6: memref<128x128xbf16, #tpu.memory_space<vmem>>, %arg7: memref<128x128xbf16, #tpu.memory_space<vmem>>, %arg8: memref<1x16x16x128xbf16, #tpu.memory_space<vmem>>, %arg9: memref<1x16x16x128xbf16, #tpu.memory_space<vmem>>, %arg10: memref<1x2x128xf32, #tpu.memory_space<vmem>>) attributes {dimension_semantics = [#tpu.dimension_semantics<parallel>], iteration_bounds = array<i64: 2>, scalar_prefetch = 0 : i64, scratch_operands = 0 : i64, tpu.core_type = #tpu.core_type<tc>, window_params = [{transform_indices = @transform_0, window_bounds = array<i64: 1, 16, 16, 128>}, {transform_indices = @transform_1, window_bounds = array<i64: 1, 16, 16, 128>}, {pipeline_mode = #tpu.pipeline_mode<synchronous>, transform_indices = @transform_2, window_bounds = array<i64: 1, 128>}, {pipeline_mode = #tpu.pipeline_mode<synchronous>, transform_indices = @transform_3, window_bounds = array<i64: 1, 128>}, {pipeline_mode = #tpu.pipeline_mode<synchronous>, transform_indices = @transform_4, window_bounds = array<i64: 128, 128>}, {pipeline_mode = #tpu.pipeline_mode<synchronous>, transform_indices = @transform_5, window_bounds = array<i64: 128, 128>}, {pipeline_mode = #tpu.pipeline_mode<synchronous>, transform_indices = @transform_6, window_bounds = array<i64: 128, 128>}, {transform_indices = @transform_7, window_bounds = array<i64: 1, 16, 16, 128>}, {transform_indices = @transform_8, window_bounds = array<i64: 1, 16, 16, 128>}, {transform_indices = @transform_9, window_bounds = array<i64: 1, 2, 128>}]} {
    %c0 = arith.constant 0 : index
    %c0_0 = arith.constant 0 : index
    %c0_1 = arith.constant 0 : index
    %c0_2 = arith.constant 0 : index
    %0 = vector.load %arg2[%c0, %c0_0, %c0_1, %c0_2] : memref<1x16x16x128xbf16, #tpu.memory_space<vmem>>, vector<1x16x16x128xbf16>
    %1 = vector.shape_cast %0 : vector<1x16x16x128xbf16> to vector<16x16x128xbf16>
    %2 = vector.shape_cast %1 : vector<16x16x128xbf16> to vector<256x128xbf16>
    %3 = arith.extf %2 : vector<256x128xbf16> to vector<256x128xf32>
    %c0_3 = arith.constant 0 : index
    %c0_4 = arith.constant 0 : index
    %4 = vector.load %arg3[%c0_3, %c0_4] : memref<1x128xf32, #tpu.memory_space<vmem>>, vector<1x128xf32>
    %5 = vector.broadcast %4 : vector<1x128xf32> to vector<256x128xf32>
    %6 = arith.mulf %3, %5 : vector<256x128xf32>
    %c0_5 = arith.constant 0 : index
    %c0_6 = arith.constant 0 : index
    %7 = vector.load %arg4[%c0_5, %c0_6] : memref<1x128xf32, #tpu.memory_space<vmem>>, vector<1x128xf32>
    %8 = vector.broadcast %7 : vector<1x128xf32> to vector<256x128xf32>
    %9 = arith.addf %6, %8 : vector<256x128xf32>
    %cst = arith.constant 0.000000e+00 : f32
    %10 = vector.broadcast %cst : f32 to vector<256x128xf32>
    %11 = arith.maximumf %9, %10 : vector<256x128xf32>
    %12 = arith.truncf %11 : vector<256x128xf32> to vector<256x128xbf16>
    %c0_7 = arith.constant 0 : index
    %c0_8 = arith.constant 0 : index
    %13 = vector.load %arg5[%c0_7, %c0_8] : memref<128x128xbf16, #tpu.memory_space<vmem>>, vector<128x128xbf16>
    %cst_9 = arith.constant dense<0.000000e+00> : vector<256x128xf32>
    %14 = tpu.matmul %12, %13, %cst_9 {dimension_numbers = #tpu.dot_dimension_numbers<[1], [0], [0], [1], [0, 0, 1, 1], [], []>} : vector<256x128xbf16>, vector<128x128xbf16>, vector<256x128xf32> -> vector<256x128xf32>
    %c0_10 = arith.constant 0 : index
    %c0_11 = arith.constant 0 : index
    %c0_12 = arith.constant 0 : index
    %c0_13 = arith.constant 0 : index
    %15 = vector.load %arg1[%c0_10, %c0_11, %c0_12, %c0_13] : memref<1x16x16x128xbf16, #tpu.memory_space<vmem>>, vector<1x16x16x128xbf16>
    %16 = vector.shape_cast %15 : vector<1x16x16x128xbf16> to vector<16x16x128xbf16>
    %17 = vector.shape_cast %16 : vector<16x16x128xbf16> to vector<256x128xbf16>
    %18 = arith.extf %17 : vector<256x128xbf16> to vector<256x128xf32>
    %19 = arith.addf %18, %14 : vector<256x128xf32>
    %20 = vector.shape_cast %19 : vector<256x128xf32> to vector<16x16x128xf32>
    %21 = arith.truncf %20 : vector<16x16x128xf32> to vector<16x16x128xbf16>
    %c0_14 = arith.constant 0 : index
    %c0_15 = arith.constant 0 : index
    %c0_16 = arith.constant 0 : index
    %c0_17 = arith.constant 0 : index
    %22 = vector.load %arg8[%c0_14, %c0_15, %c0_16, %c0_17] : memref<1x16x16x128xbf16, #tpu.memory_space<vmem>>, vector<1x16x16x128xbf16>
    %23 = vector.shape_cast %22 : vector<1x16x16x128xbf16> to vector<16x16x128xbf16>
    %24 = vector.shape_cast %21 : vector<16x16x128xbf16> to vector<1x16x16x128xbf16>
    tpu.vector_store %arg8[%c0_14, %c0_15, %c0_16, %c0_17], %24 {strides = array<i32>} : memref<1x16x16x128xbf16, #tpu.memory_space<vmem>>, vector<1x16x16x128xbf16>,
    %c0_18 = arith.constant 0 : index
    %c0_19 = arith.constant 0 : index
    %c0_20 = arith.constant 0 : index
    %c0_21 = arith.constant 0 : index
    %25 = vector.load %arg1[%c0_18, %c0_19, %c0_20, %c0_21] : memref<1x16x16x128xbf16, #tpu.memory_space<vmem>>, vector<1x16x16x128xbf16>
    %26 = vector.shape_cast %25 : vector<1x16x16x128xbf16> to vector<16x16x128xbf16>
    %27 = vector.shape_cast %26 : vector<16x16x128xbf16> to vector<256x128xbf16>
    %c0_22 = arith.constant 0 : index
    %c0_23 = arith.constant 0 : index
    %28 = vector.load %arg6[%c0_22, %c0_23] : memref<128x128xbf16, #tpu.memory_space<vmem>>, vector<128x128xbf16>
    %cst_24 = arith.constant dense<0.000000e+00> : vector<256x128xf32>
    %29 = tpu.matmul %27, %28, %cst_24 {dimension_numbers = #tpu.dot_dimension_numbers<[1], [0], [0], [1], [0, 0, 1, 1], [], []>} : vector<256x128xbf16>, vector<128x128xbf16>, vector<256x128xf32> -> vector<256x128xf32>
    %c0_25 = arith.constant 0 : index
    %c0_26 = arith.constant 0 : index
    %30 = vector.load %arg7[%c0_25, %c0_26] : memref<128x128xbf16, #tpu.memory_space<vmem>>, vector<128x128xbf16>
    %cst_27 = arith.constant dense<0.000000e+00> : vector<256x128xf32>
    %31 = tpu.matmul %12, %30, %cst_27 {dimension_numbers = #tpu.dot_dimension_numbers<[1], [0], [0], [1], [0, 0, 1, 1], [], []>} : vector<256x128xbf16>, vector<128x128xbf16>, vector<256x128xf32> -> vector<256x128xf32>
    %32 = arith.addf %29, %31 : vector<256x128xf32>
    %33 = arith.truncf %32 : vector<256x128xf32> to vector<256x128xbf16>
    %34 = vector.shape_cast %33 : vector<256x128xbf16> to vector<16x16x128xbf16>
    %c0_28 = arith.constant 0 : index
    %c0_29 = arith.constant 0 : index
    %c0_30 = arith.constant 0 : index
    %c0_31 = arith.constant 0 : index
    %35 = vector.load %arg9[%c0_28, %c0_29, %c0_30, %c0_31] : memref<1x16x16x128xbf16, #tpu.memory_space<vmem>>, vector<1x16x16x128xbf16>
    %36 = vector.shape_cast %35 : vector<1x16x16x128xbf16> to vector<16x16x128xbf16>
    %37 = vector.shape_cast %34 : vector<16x16x128xbf16> to vector<1x16x16x128xbf16>
    tpu.vector_store %arg9[%c0_28, %c0_29, %c0_30, %c0_31], %37 {strides = array<i32>} : memref<1x16x16x128xbf16, #tpu.memory_space<vmem>>, vector<1x16x16x128xbf16>,
    %38 = arith.extf %33 : vector<256x128xbf16> to vector<256x128xf32>
    %cst_32 = arith.constant dense<0.000000e+00> : vector<128xf32>
    %39 = vector.multi_reduction <add>, %38, %cst_32 [0] : vector<256x128xf32> to vector<128xf32>
    %40 = vector.shape_cast %39 : vector<128xf32> to vector<1x128xf32>
    %cst_33 = arith.constant 3.906250e-03 : f32
    %41 = vector.broadcast %cst_33 : f32 to vector<1x128xf32>
    %42 = arith.mulf %40, %41 : vector<1x128xf32>
    %43 = vector.broadcast %42 : vector<1x128xf32> to vector<256x128xf32>
    %44 = arith.subf %38, %43 : vector<256x128xf32>
    %45 = arith.mulf %44, %44 : vector<256x128xf32>
    %cst_34 = arith.constant dense<0.000000e+00> : vector<128xf32>
    %46 = vector.multi_reduction <add>, %45, %cst_34 [0] : vector<256x128xf32> to vector<128xf32>
    %47 = vector.shape_cast %46 : vector<128xf32> to vector<1x128xf32>
    %48 = tpu.concatenate %40, %47 in 0 : vector<1x128xf32>, vector<1x128xf32> -> vector<2x128xf32>
    %c0_35 = arith.constant 0 : index
    %c0_36 = arith.constant 0 : index
    %c0_37 = arith.constant 0 : index
    %49 = vector.load %arg10[%c0_35, %c0_36, %c0_37] : memref<1x2x128xf32, #tpu.memory_space<vmem>>, vector<1x2x128xf32>
    %50 = vector.shape_cast %49 : vector<1x2x128xf32> to vector<2x128xf32>
    %51 = vector.shape_cast %48 : vector<2x128xf32> to vector<1x2x128xf32>
    tpu.vector_store %arg10[%c0_35, %c0_36, %c0_37], %51 {strides = array<i32>} : memref<1x2x128xf32, #tpu.memory_space<vmem>>, vector<1x2x128xf32>,
    return
  }
  func.func @transform_0(%arg0: i32) -> (i32, i32, i32, i32) {
    %c0_i32 = arith.constant 0 : i32
    %c0_i32_0 = arith.constant 0 : i32
    %c0_i32_1 = arith.constant 0 : i32
    %c0_i32_2 = arith.constant 0 : i32
    return %arg0, %c0_i32, %c0_i32_0, %c0_i32_1 : i32, i32, i32, i32
  }
  func.func @transform_1(%arg0: i32) -> (i32, i32, i32, i32) {
    %c0_i32 = arith.constant 0 : i32
    %c0_i32_0 = arith.constant 0 : i32
    %c0_i32_1 = arith.constant 0 : i32
    %c0_i32_2 = arith.constant 0 : i32
    return %arg0, %c0_i32, %c0_i32_0, %c0_i32_1 : i32, i32, i32, i32
  }
  func.func @transform_2(%arg0: i32) -> (i32, i32) {
    %c0_i32 = arith.constant 0 : i32
    %c0_i32_0 = arith.constant 0 : i32
    %c0_i32_1 = arith.constant 0 : i32
    return %c0_i32, %c0_i32_0 : i32, i32
  }
  func.func @transform_3(%arg0: i32) -> (i32, i32) {
    %c0_i32 = arith.constant 0 : i32
    %c0_i32_0 = arith.constant 0 : i32
    %c0_i32_1 = arith.constant 0 : i32
    return %c0_i32, %c0_i32_0 : i32, i32
  }
  func.func @transform_4(%arg0: i32) -> (i32, i32) {
    %c0_i32 = arith.constant 0 : i32
    %c0_i32_0 = arith.constant 0 : i32
    %c0_i32_1 = arith.constant 0 : i32
    return %c0_i32, %c0_i32_0 : i32, i32
  }
  func.func @transform_5(%arg0: i32) -> (i32, i32) {
    %c0_i32 = arith.constant 0 : i32
    %c0_i32_0 = arith.constant 0 : i32
    %c0_i32_1 = arith.constant 0 : i32
    return %c0_i32, %c0_i32_0 : i32, i32
  }
  func.func @transform_6(%arg0: i32) -> (i32, i32) {
    %c0_i32 = arith.constant 0 : i32
    %c0_i32_0 = arith.constant 0 : i32
    %c0_i32_1 = arith.constant 0 : i32
    return %c0_i32, %c0_i32_0 : i32, i32
  }
  func.func @transform_7(%arg0: i32) -> (i32, i32, i32, i32) {
    %c0_i32 = arith.constant 0 : i32
    %c0_i32_0 = arith.constant 0 : i32
    %c0_i32_1 = arith.constant 0 : i32
    %c0_i32_2 = arith.constant 0 : i32
    return %arg0, %c0_i32, %c0_i32_0, %c0_i32_1 : i32, i32, i32, i32
  }
  func.func @transform_8(%arg0: i32) -> (i32, i32, i32, i32) {
    %c0_i32 = arith.constant 0 : i32
    %c0_i32_0 = arith.constant 0 : i32
    %c0_i32_1 = arith.constant 0 : i32
    %c0_i32_2 = arith.constant 0 : i32
    return %arg0, %c0_i32, %c0_i32_0, %c0_i32_1 : i32, i32, i32, i32
  }
  func.func @transform_9(%arg0: i32) -> (i32, i32, i32) {
    %c0_i32 = arith.constant 0 : i32
    %c0_i32_0 = arith.constant 0 : i32
    %c0_i32_1 = arith.constant 0 : i32
    return %arg0, %c0_i32, %c0_i32_0 : i32, i32, i32
  }
}

module attributes {stable_mosaic.version = 11 : i64} {
  func.func @_scatter_last_kernel(%arg0: i32, %arg1: memref<1x16x16x128xbf16, #tpu.memory_space<vmem>>, %arg2: memref<1x16x16x128xbf16, #tpu.memory_space<vmem>>, %arg3: memref<1x128xf32, #tpu.memory_space<vmem>>, %arg4: memref<1x128xf32, #tpu.memory_space<vmem>>, %arg5: memref<128x128xbf16, #tpu.memory_space<vmem>>, %arg6: memref<1x16x16x128xbf16, #tpu.memory_space<vmem>>) attributes {dimension_semantics = [#tpu.dimension_semantics<parallel>], iteration_bounds = array<i64: 2>, scalar_prefetch = 0 : i64, scratch_operands = 0 : i64, tpu.core_type = #tpu.core_type<tc>, window_params = [{transform_indices = @transform_0, window_bounds = array<i64: 1, 16, 16, 128>}, {transform_indices = @transform_1, window_bounds = array<i64: 1, 16, 16, 128>}, {pipeline_mode = #tpu.pipeline_mode<synchronous>, transform_indices = @transform_2, window_bounds = array<i64: 1, 128>}, {pipeline_mode = #tpu.pipeline_mode<synchronous>, transform_indices = @transform_3, window_bounds = array<i64: 1, 128>}, {pipeline_mode = #tpu.pipeline_mode<synchronous>, transform_indices = @transform_4, window_bounds = array<i64: 128, 128>}, {transform_indices = @transform_5, window_bounds = array<i64: 1, 16, 16, 128>}]} {
    %c0 = arith.constant 0 : index
    %c0_0 = arith.constant 0 : index
    %c0_1 = arith.constant 0 : index
    %c0_2 = arith.constant 0 : index
    %0 = vector.load %arg2[%c0, %c0_0, %c0_1, %c0_2] : memref<1x16x16x128xbf16, #tpu.memory_space<vmem>>, vector<1x16x16x128xbf16>
    %1 = vector.shape_cast %0 : vector<1x16x16x128xbf16> to vector<16x16x128xbf16>
    %2 = vector.shape_cast %1 : vector<16x16x128xbf16> to vector<256x128xbf16>
    %3 = arith.extf %2 : vector<256x128xbf16> to vector<256x128xf32>
    %c0_3 = arith.constant 0 : index
    %c0_4 = arith.constant 0 : index
    %4 = vector.load %arg3[%c0_3, %c0_4] : memref<1x128xf32, #tpu.memory_space<vmem>>, vector<1x128xf32>
    %5 = vector.broadcast %4 : vector<1x128xf32> to vector<256x128xf32>
    %6 = arith.mulf %3, %5 : vector<256x128xf32>
    %c0_5 = arith.constant 0 : index
    %c0_6 = arith.constant 0 : index
    %7 = vector.load %arg4[%c0_5, %c0_6] : memref<1x128xf32, #tpu.memory_space<vmem>>, vector<1x128xf32>
    %8 = vector.broadcast %7 : vector<1x128xf32> to vector<256x128xf32>
    %9 = arith.addf %6, %8 : vector<256x128xf32>
    %cst = arith.constant 0.000000e+00 : f32
    %10 = vector.broadcast %cst : f32 to vector<256x128xf32>
    %11 = arith.maximumf %9, %10 : vector<256x128xf32>
    %12 = arith.truncf %11 : vector<256x128xf32> to vector<256x128xbf16>
    %c0_7 = arith.constant 0 : index
    %c0_8 = arith.constant 0 : index
    %13 = vector.load %arg5[%c0_7, %c0_8] : memref<128x128xbf16, #tpu.memory_space<vmem>>, vector<128x128xbf16>
    %cst_9 = arith.constant dense<0.000000e+00> : vector<256x128xf32>
    %14 = tpu.matmul %12, %13, %cst_9 {dimension_numbers = #tpu.dot_dimension_numbers<[1], [0], [0], [1], [0, 0, 1, 1], [], []>} : vector<256x128xbf16>, vector<128x128xbf16>, vector<256x128xf32> -> vector<256x128xf32>
    %c0_10 = arith.constant 0 : index
    %c0_11 = arith.constant 0 : index
    %c0_12 = arith.constant 0 : index
    %c0_13 = arith.constant 0 : index
    %15 = vector.load %arg1[%c0_10, %c0_11, %c0_12, %c0_13] : memref<1x16x16x128xbf16, #tpu.memory_space<vmem>>, vector<1x16x16x128xbf16>
    %16 = vector.shape_cast %15 : vector<1x16x16x128xbf16> to vector<16x16x128xbf16>
    %17 = vector.shape_cast %16 : vector<16x16x128xbf16> to vector<256x128xbf16>
    %18 = arith.extf %17 : vector<256x128xbf16> to vector<256x128xf32>
    %19 = arith.addf %18, %14 : vector<256x128xf32>
    %20 = vector.shape_cast %19 : vector<256x128xf32> to vector<16x16x128xf32>
    %21 = arith.truncf %20 : vector<16x16x128xf32> to vector<16x16x128xbf16>
    %c0_14 = arith.constant 0 : index
    %c0_15 = arith.constant 0 : index
    %c0_16 = arith.constant 0 : index
    %c0_17 = arith.constant 0 : index
    %22 = vector.load %arg6[%c0_14, %c0_15, %c0_16, %c0_17] : memref<1x16x16x128xbf16, #tpu.memory_space<vmem>>, vector<1x16x16x128xbf16>
    %23 = vector.shape_cast %22 : vector<1x16x16x128xbf16> to vector<16x16x128xbf16>
    %24 = vector.shape_cast %21 : vector<16x16x128xbf16> to vector<1x16x16x128xbf16>
    tpu.vector_store %arg6[%c0_14, %c0_15, %c0_16, %c0_17], %24 {strides = array<i32>} : memref<1x16x16x128xbf16, #tpu.memory_space<vmem>>, vector<1x16x16x128xbf16>,
    return
  }
  func.func @transform_0(%arg0: i32) -> (i32, i32, i32, i32) {
    %c0_i32 = arith.constant 0 : i32
    %c0_i32_0 = arith.constant 0 : i32
    %c0_i32_1 = arith.constant 0 : i32
    %c0_i32_2 = arith.constant 0 : i32
    return %arg0, %c0_i32, %c0_i32_0, %c0_i32_1 : i32, i32, i32, i32
  }
  func.func @transform_1(%arg0: i32) -> (i32, i32, i32, i32) {
    %c0_i32 = arith.constant 0 : i32
    %c0_i32_0 = arith.constant 0 : i32
    %c0_i32_1 = arith.constant 0 : i32
    %c0_i32_2 = arith.constant 0 : i32
    return %arg0, %c0_i32, %c0_i32_0, %c0_i32_1 : i32, i32, i32, i32
  }
  func.func @transform_2(%arg0: i32) -> (i32, i32) {
    %c0_i32 = arith.constant 0 : i32
    %c0_i32_0 = arith.constant 0 : i32
    %c0_i32_1 = arith.constant 0 : i32
    return %c0_i32, %c0_i32_0 : i32, i32
  }
  func.func @transform_3(%arg0: i32) -> (i32, i32) {
    %c0_i32 = arith.constant 0 : i32
    %c0_i32_0 = arith.constant 0 : i32
    %c0_i32_1 = arith.constant 0 : i32
    return %c0_i32, %c0_i32_0 : i32, i32
  }
  func.func @transform_4(%arg0: i32) -> (i32, i32) {
    %c0_i32 = arith.constant 0 : i32
    %c0_i32_0 = arith.constant 0 : i32
    %c0_i32_1 = arith.constant 0 : i32
    return %c0_i32, %c0_i32_0 : i32, i32
  }
  func.func @transform_5(%arg0: i32) -> (i32, i32, i32, i32) {
    %c0_i32 = arith.constant 0 : i32
    %c0_i32_0 = arith.constant 0 : i32
    %c0_i32_1 = arith.constant 0 : i32
    %c0_i32_2 = arith.constant 0 : i32
    return %arg0, %c0_i32, %c0_i32_0, %c0_i32_1 : i32, i32, i32, i32
  }
}

</mosaic_0001>

<bundles_post_ra>
// kernel: dense_block_forward.7
= control target key start
LH: loop header
LB: loop body
LE: loop exit
PB: predicated region body
PF: predicated region fallthrough
CT: control target
= control target key end

     0   :  { %9 = vsyncpa [#allocation3], 0  ;;  %s2147_s0 = inlined_call_operand.hbm [shape: bf16[2,16,16,128], index: 0, kind: input, shape index: {}]   ;;  %s2148_s1 = inlined_call_operand.hbm [shape: bf16[128,128], index: 1, kind: input, shape index: {}]   ;;  %s2149_s2 = inlined_call_operand.hbm [shape: bf16[2,16,16,128], index: 2, kind: output, shape index: {0}]   ;;  %s2150_s3 = inlined_call_operand.hbm [shape: f32[2,2,128], index: 3, kind: output, shape index: {1}]  }
   0x1   :  { %11 = vsyncpa [#allocation3 + $0x1], 0 }
   0x2   :  { %12 = vsyncpa [#allocation6], 0 }
   0x3   :  { %13 = vsyncpa [#allocation4], 0 }
   0x4   :  { %15 = vsyncpa [#allocation4 + $0x1], 0 }
   0x5   :  { %16 = vsyncpa [#allocation9], 0 }
   0x6   :  { %18 = vsyncpa [#allocation9 + $0x1], 0  ;;  %s1622_s12 = smov 0   ;;  %s1624_s13 = smov 0  }
   0x7   :  { %s1626_s14 = smov 0   ;;  %s1628_s15 = smov 0  }
   0x8 LB: > { %s1643_s16 = sadd.s32 4294967295, %s1592_s15   ;;  %s1050_s17 = sadd.s32 4294967294, %s1592_s15   ;;  %s1592_s15 = sphi %s1628_s15, %s2170_s15   ;;  %s1588_s14 = sphi %s1626_s14, %s2169_s14   ;;  %s1584_s13 = sphi %s1624_s13, %s2168_s13   ;;  %s1580_s12 = sphi %s1622_s12, %s2167_s12  }
   0x9   : > { %p44_p0 = scmp.ne.s32.totalorder %s1584_s13, %s1580_s12  ;;  %p2151_p1 = scmp.eq.s32.totalorder %s1643_s16, 0 }
   0xa   : > { %p95_p3 = scmp.eq.s32.totalorder %s1050_s17, 1  ;;  %p1051_p5 = scmp.ge.s32.totalorder %s1592_s15, 1 }
   0xb   : > { %p1652_p4 = por %p2151_p1, %p44_p0  ;;  %p128_p7 = scmp.lt.s32.totalorder %s1592_s15, 3 }
   0xc   : > { %p1657_p6 = por %p95_p3, %p44_p0  ;;  %s1594_s21 = smov [#allocation5]  }
   0xd   : > { %s2154_s18 = scalar_select %p1652_p4, 1, 0 }
   0xe   : > { %s2155_s19 = scalar_select %p1657_p6, 1, 0 }
   0xf   : > { %p1662_p8 = pnand %p1051_p5, %p128_p7  ;;  %s140_s22 = sshll.u32 %s1594_s21, 4  ;;  %s1666_s22 = int_to_ptr.vmem [resolvable:$true] %s140_s22 }
  0x10   : > { %s1678_s24 = sadd.s32 1, %s1592_s15   ;;  %s31_s25 = sadd.s32 1, %s1588_s14 }
  0x11   : > { %s2156_s20 = scalar_select %p1662_p8, 1, 0 }
  0x12   : > { %p1352_p9 = pneg %p1662_p8  ;;  %s28_s26 = ssub.s32 %s1592_s15, %s1678_s24 }
  0x13   : > { %s1432_s29 = scalar_lea.hbm %s2148_s1, 1024 }
  0x14   : > { %p1673_p11 = pnand %p1352_p9, %p2151_p1  ;;  %p1433_p12 = scmp.ne.s32.totalorder %s2148_s1, %s1432_s29 }
  0x15   : > { %p1439_p5 = scmp.lt.u32.totalorder %s1432_s29, %s2148_s1 }
  0x16   : > { %p1434_p13 = pneg %p1673_p11 }
  0x18   : > { %p1435_p0 = pnand %p1434_p13, %p1433_p12 }
  0x1a   : > { %p1436_p3 = pneg %p1435_p0 }
  0x1c   : > { %p1441_p7 = pnand %p1439_p5, %p1436_p3 }
  0x1e   : > { %1444 = shalt.err (!%p1441_p7)
}
  0x1f   : > { %s1445_s7 = scalar_lea.vmem %s1666_s22, 1024  ;;  %p1453_p2 = scmp.lt.s32.totalorder %s1666_s22, %s1666_s22 }
  0x20   : > { %p1446_p9 = scmp.ne.s32.totalorder %s1666_s22, %s1445_s7  ;;  %p1454_p6 = scmp.lt.s32.totalorder %s1445_s7, %s1445_s7 }
  0x22   : > { %p1448_p10 = pnand %p1446_p9, %p1434_p13  ;;  %p1455_p4 = por %p1454_p6, %p1453_p2 }
  0x24   : > { %p1449_p1 = pneg %p1448_p10 }
  0x26   : > { %p1456_p8 = pnand %p1455_p4, %p1449_p1 }
  0x28   : > { %1459 = shalt.err (!%p1456_p8)
}
  0x29   : > { %s1595_s8 = smov 64   ;;  %s1596_s9 = smov 4  }
  0x2a   : > { %1355 = dma.hbm_to_vmem [thread:$0]  (!%p1673_p11), %s2148_s1, 1024, %s1666_s22, [#allocation6], %s1595_s8, %s1595_s8, %s1596_s9  }
  0x2b   : > { %p29_p1 = scmp.eq.s32.totalorder %s28_s26, 0  ;;  %p38_p2 = scmp.ne.s32.totalorder %s1588_s14, %s1584_s13 }
  0x2c   : > { %p39_p4 = scmp.eq.s32.totalorder %s1592_s15, 0  ;;  %p1368_p6 = scmp.lt.s32.totalorder %s1592_s15, 2 }
  0x2d   : > { %s1712_s17 = scalar_select %p29_p1, %s1588_s14, %s31_s25  }
  0x2e   : > { %p40_p8 = por %p39_p4, %p38_p2  ;;  %p2158_p10 = scmp.eq.s32.totalorder %s1643_s16, 1 }
  0x2f   : > { %s154_s23 = sand.u32 1, %s1588_s14   ;;  %s1125_s27 = sshll.u32 %s1592_s15, 11 }
  0x30   : > { %p1716_p12 = por %p2158_p10, %p38_p2  ;;  %s1054_s28 = sshll.u32 %s154_s23, 7 }
  0x31   : > { %s1725_s4 = scalar_lea.hbm %s2147_s0, %s1125_s27  ;;  %s158_s22 = scalar_lea.vmem [#allocation2], %s1054_s28 }
  0x32   : > { %s165_s25 = sshll.u32 %s158_s22, 4  ;;  %p1727_p11 = pnand %p1368_p6, %p40_p8  ;;  %s1731_s25 = int_to_ptr.vmem [resolvable:$true] %s165_s25 }
  0x33   : > { %s1733_s5 = scalar_lea.sflag [#allocation3], %s154_s23  ;;  %s1460_s6 = scalar_lea.hbm %s1725_s4, 2048 }
  0x34   : > { %p1461_p13 = scmp.ne.s32.totalorder %s1725_s4, %s1460_s6  ;;  %p1462_p0 = pneg %p1727_p11 }
  0x35   : > { %s1465_s11 = scalar_lea.hbm %s2147_s0, 4096  ;;  %p1466_p7 = scmp.lt.u32.totalorder %s1725_s4, %s2147_s0 }
  0x36   : > { %p1463_p3 = pnand %p1462_p0, %p1461_p13  ;;  %p1467_p9 = scmp.lt.u32.totalorder %s1465_s11, %s1460_s6 }
  0x37   : > { %p1469_p2 = scmp.lt.u32.totalorder %s1460_s6, %s1725_s4 }
  0x38   : > { %p1464_p5 = pneg %p1463_p3  ;;  %p1468_p1 = por %p1467_p9, %p1466_p7 }
  0x3a   : > { %p1470_p4 = por %p1469_p2, %p1468_p1 }
  0x3c   : > { %p1471_p6 = pnand %p1470_p4, %p1464_p5 }
  0x3e   : > { %1474 = shalt.err (!%p1471_p6)
}
  0x3f   : > { %s1475_s23 = scalar_lea.vmem %s1731_s25, 2048  ;;  %s1597_s29 = smov [#allocation2]  }
  0x40   : > { %p1476_p8 = scmp.ne.s32.totalorder %s1731_s25, %s1475_s23  ;;  %s1480_s30 = sshll.u32 %s1597_s29, 4  ;;  %s1481_s30 = int_to_ptr.vmem [resolvable:$false] %s1480_s30 }
  0x41   : > { %s1482_s22 = scalar_lea.vmem %s1481_s30, 4096  ;;  %p1483_p3 = scmp.lt.s32.totalorder %s1731_s25, %s1481_s30 }
  0x42   : > { %p1478_p10 = pnand %p1476_p8, %p1462_p0  ;;  %p1484_p7 = scmp.lt.s32.totalorder %s1482_s22, %s1475_s23 }
  0x44   : > { %p1479_p13 = pneg %p1478_p10  ;;  %p1485_p9 = por %p1484_p7, %p1483_p3 }
  0x46   : > { %p1486_p1 = pnand %p1485_p9, %p1479_p13 }
  0x48   : > { %1489 = shalt.err (!%p1486_p1)
}
  0x49   : > { %1359 = dma.hbm_to_vmem [thread:$0]  (!%p1727_p11), %s1725_s4, 2048, %s1731_s25, %s1733_s5, %s1595_s8, %s1595_s8, %s1596_s9  }
  0x4a   : > { %p2161_p0 = scmp.ne.s32.totalorder %s2156_s20, 0 }
  0x4b   : > { %s1767_s6 = sand.u32 (!%p2161_p0), 1, %s1584_s13   ;;  %p2162_p5 = scmp.ne.s32.totalorder (!%p2161_p0), %s2154_s18, 0 }
  0x4c   : > { %177 = sbr.rel (%p2161_p0) target bundleno = 521 (0x209), region = 28  ;;  %s1058_s7 = sshll.u32 (!%p2161_p0), %s1767_s6, 7 }
  0x4d   : > { %s180_s10 = scalar_lea.sflag (!%p2161_p0), [#allocation3], %s1767_s6  ;;  %s1773_s26 = scalar_lea.vmem (!%p2161_p0), [#allocation2], %s1058_s7 }
  0x53   : > { %1563 = dma.done.wait (%p2162_p5), %s180_s10, 2048  }
  0x54   : > { %1565 = vsyncadd (%p2162_p5), %s180_s10, 4294965248  ;;  %p2163_p11 = scmp.eq.s32.totalorder %s1643_s16, 0 }
  0x56   : > { %1567 = dma.done.wait (%p2163_p11), [#allocation6], 1024   ;;  %p2164_p2 = pmov %p2163_p11 }
  0x57   : > { %v1408_v0 = vld [vmem:[#allocation5] sm:$0xff]   ;;  %v1409_v1 = vld [vmem:[#allocation5 + $0x8] sm:$0xff]   ;;  %v1410_v2 = vld [vmem:[#allocation5 + $0x10] sm:$0xff]   ;;  %s1809_s18 = scalar_lea.vmem [#allocation7], %s1058_s7  ;;  %s1158_s20 = sshll.u32 %s1643_s16, 11 }
  0x58   : > { %1569 = vsyncadd (%p2164_p2), [#allocation6], 4294966272  ;;  %1278 = vmatprep.subr.bf16.mxu0 %v1408_v0  ;;  %1326 = vmatprep.subr.bf16.mxu1 %v1408_v0  ;;  %v1411_v3 = vld [vmem:[#allocation5 + $0x18] sm:$0xff]   ;;  %v1416_v4 = vld [vmem:[%s1773_s26] sm:$0xff]   ;;  %s1920_s4 = scalar_lea.hbm %s2149_s2, %s1158_s20  ;;  %s922_s25 = sshll.u32 %s1809_s18, 4  ;;  %s1926_s25 = int_to_ptr.vmem [resolvable:$true] %s922_s25 }
  0x59   : > { %1279 = vmatpush3.bf16.msra.mxu0 %v1408_v0  ;;  %1334 = vmatpush3.bf16.msra.mxu1 %v1408_v0  ;;  %v1412_v5 = vld [vmem:[#allocation5 + $0x20] sm:$0xff]   ;;  %v1413_v6 = vld [vmem:[#allocation5 + $0x28] sm:$0xff]   ;;  %v1414_v8 = vld [vmem:[#allocation5 + $0x30] sm:$0xff]   ;;  %s904_s5 = scalar_lea.sflag [#allocation4], %s1767_s6  ;;  %s1490_s11 = scalar_lea.vmem %s1926_s25, 2048 }
  0x5a   : > { %1280 = vmatprep.subr.bf16.mxu0 %v1409_v1  ;;  %1327 = vmatprep.subr.bf16.mxu1 %v1409_v1  ;;  %v1424_v7 = vld [vmem:[%s1773_s26 + $0x40] sm:$0xff]   ;;  %v1415_v9 = vld [vmem:[#allocation5 + $0x38] sm:$0xff]   ;;  %v1417_v10 = vld [vmem:[%s1773_s26 + $0x8] sm:$0xff]   ;;  %p1491_p4 = scmp.ne.s32.totalorder %s1926_s25, %s1490_s11  ;;  %s1598_s27 = smov [#allocation7]  }
  0x5b   : > { %1294 = vmatprep.mubr.bf16.mxu0 %v1416_v4  ;;  %1310 = vmatprep.mubr.bf16.mxu1 %v1424_v7  ;;  %v1425_v11 = vld [vmem:[%s1773_s26 + $0x48] sm:$0xff]   ;;  %v1418_v12 = vld [vmem:[%s1773_s26 + $0x10] sm:$0xff]   ;;  %v1419_v14 = vld [vmem:[%s1773_s26 + $0x18] sm:$0xff]   ;;  %s1494_s28 = sshll.u32 %s1598_s27, 4  ;;  %s1495_s28 = int_to_ptr.vmem [resolvable:$false] %s1494_s28 }
  0x5c   : > { %v1426_v13 = vld [vmem:[%s1773_s26 + $0x50] sm:$0xff]   ;;  %v1427_v15 = vld [vmem:[%s1773_s26 + $0x58] sm:$0xff]   ;;  %v1420_v16 = vld [vmem:[%s1773_s26 + $0x20] sm:$0xff]   ;;  %p1492_p6 = pnand %p1491_p4, %p1716_p12  ;;  %s1496_s23 = scalar_lea.vmem %s1495_s28, 4096 }
  0x5d   : > { %1281 = vmatpush3.bf16.msra.mxu0 %v1409_v1  ;;  %1335 = vmatpush3.bf16.msra.mxu1 %v1409_v1  ;;  %v1428_v17 = vld [vmem:[%s1773_s26 + $0x60] sm:$0xff]   ;;  %v1421_v18 = vld [vmem:[%s1773_s26 + $0x28] sm:$0xff]   ;;  %v1422_v20 = vld [vmem:[%s1773_s26 + $0x30] sm:$0xff]   ;;  %p1497_p10 = scmp.lt.s32.totalorder %s1926_s25, %s1495_s28  ;;  %p1498_p13 = scmp.lt.s32.totalorder %s1496_s23, %s1490_s11 }
  0x5e   : > { %1282 = vmatprep.subr.bf16.mxu0 %v1410_v2  ;;  %1328 = vmatprep.subr.bf16.mxu1 %v1410_v2  ;;  %v1429_v19 = vld [vmem:[%s1773_s26 + $0x68] sm:$0xff]   ;;  %v1430_v21 = vld [vmem:[%s1773_s26 + $0x70] sm:$0xff]   ;;  %v1423_v22 = vld [vmem:[%s1773_s26 + $0x38] sm:$0xff]   ;;  %p1493_p8 = pneg %p1492_p6 }
  0x5f   : > { %v1431_v23 = vld [vmem:[%s1773_s26 + $0x78] sm:$0xff]   ;;  %p1499_p3 = por %p1498_p13, %p1497_p10 }
  0x61   : > { %1283 = vmatpush3.bf16.msra.mxu0 %v1410_v2  ;;  %1336 = vmatpush3.bf16.msra.mxu1 %v1410_v2  ;;  %p1500_p7 = pnand %p1499_p3, %p1493_p8 }
  0x62   : > { %1284 = vmatprep.subr.bf16.mxu0 %v1411_v3  ;;  %1329 = vmatprep.subr.bf16.mxu1 %v1411_v3 }
  0x65   : > { %1285 = vmatpush3.bf16.msra.mxu0 %v1411_v3  ;;  %1337 = vmatpush3.bf16.msra.mxu1 %v1411_v3 }
  0x66   : > { %1286 = vmatprep.subr.bf16.mxu0 %v1412_v5  ;;  %1330 = vmatprep.subr.bf16.mxu1 %v1412_v5 }
  0x69   : > { %1287 = vmatpush3.bf16.msra.mxu0 %v1412_v5  ;;  %1338 = vmatpush3.bf16.msra.mxu1 %v1412_v5 }
  0x6a   : > { %1288 = vmatprep.subr.bf16.mxu0 %v1413_v6  ;;  %1331 = vmatprep.subr.bf16.mxu1 %v1413_v6 }
  0x6d   : > { %1289 = vmatpush3.bf16.msra.mxu0 %v1413_v6  ;;  %1339 = vmatpush3.bf16.msra.mxu1 %v1413_v6 }
  0x6e   : > { %1290 = vmatprep.subr.bf16.mxu0 %v1414_v8  ;;  %1332 = vmatprep.subr.bf16.mxu1 %v1414_v8 }
  0x71   : > { %1291 = vmatpush3.bf16.msra.mxu0 %v1414_v8  ;;  %1340 = vmatpush3.bf16.msra.mxu1 %v1414_v8 }
  0x72   : > { %1292 = vmatprep.subr.bf16.mxu0 %v1415_v9  ;;  %1333 = vmatprep.subr.bf16.mxu1 %v1415_v9 }
  0x75   : > { %1293 = vmatpush3.bf16.msra.mxu0 %v1415_v9  ;;  %1341 = vmatpush3.bf16.msra.mxu1 %v1415_v9 }
  0x78   : > { %1295 = vmatmul.mubr.bf16.vlgmr.msra.gmra.mrb[0].mxu0 %v1417_v10  ;;  %1311 = vmatmul.mubr.bf16.vlgmr.msra.gmra.mrb[0].mxu1 %v1425_v11 }
  0x79   : > { %1298 = vmatprep.mubr.bf16.mxu0 %v1418_v12  ;;  %1314 = vmatprep.mubr.bf16.mxu1 %v1426_v13 }
  0x80   : > { %1299 = vmatmul.mubr.bf16.gmra.mrb[4].mxu0 %v1419_v14  ;;  %1315 = vmatmul.mubr.bf16.gmra.mrb[4].mxu1 %v1427_v15 }
  0x81   : > { %1302 = vmatprep.mubr.bf16.mxu0 %v1420_v16  ;;  %1318 = vmatprep.mubr.bf16.mxu1 %v1428_v17 }
  0x88   : > { %1303 = vmatmul.mubr.bf16.gmra.mrb[8].mxu0 %v1421_v18  ;;  %1319 = vmatmul.mubr.bf16.gmra.mrb[8].mxu1 %v1429_v19 }
  0x89   : > { %1306 = vmatprep.mubr.bf16.mxu0 %v1422_v20  ;;  %1322 = vmatprep.mubr.bf16.mxu1 %v1430_v21 }
  0x90   : > { %1307 = vmatmul.mubr.bf16.gmra.mrb[12].mxu0 %v1423_v22  ;;  %1323 = vmatmul.mubr.bf16.gmra.mrb[12].mxu1 %v1431_v23 }
 0x14b   : > { %v1296_v24 = vpop.f32.mrb[0].mxu0  ;;  %v1312_v25 = vpop.f32.mrb[0].mxu1 }
 0x14c   : > { %v442_v26 = vpop.f32.mrb[1].mxu0  ;;  %v506_v27 = vpop.f32.mrb[1].mxu1 }
 0x14d   : > { %v1297_v28 = vpop.f32.mrb[2].mxu0  ;;  %v1313_v29 = vpop.f32.mrb[2].mxu1 }
 0x14e   : > { %v1799_v30 = vpack.c.bf16 %v1297_v28, %v1296_v24  ;;  %v445_v31 = vpop.f32.mrb[3].mxu0  ;;  %v1801_v32 = vpack.c.bf16 %v1313_v29, %v1312_v25  ;;  %v509_v33 = vpop.f32.mrb[3].mxu1 }
 0x14f   : > { %v1803_v34 = vpack.c.bf16 %v445_v31, %v442_v26  ;;  %v1805_v35 = vpack.c.bf16 %v509_v33, %v506_v27 }
 0x150   : > { %1239 = vst [vmem:[%s1809_s18 + $0x8] sm:$0xff] %v1799_v30   ;;  %1247 = vst [vmem:[%s1809_s18 + $0x48] sm:$0xff] %v1801_v32   ;;  %v731_v38 = vunpack.c.l.bf16 %v1799_v30  ;;  %v732_v51 = vunpack.c.h.bf16 %v1799_v30 }
 0x151   : > { %1163 = vst [vmem:[%s1809_s18] sm:$0xff] %v1803_v34   ;;  %v729_v36 = vunpack.c.l.bf16 %v1803_v34  ;;  %v730_v37 = vunpack.c.h.bf16 %v1803_v34  ;;  %1246 = vst [vmem:[%s1809_s18 + $0x40] sm:$0xff] %v1805_v35  }
 0x153   : > { %v761_v39 = vadd.f32 %v730_v37, %v729_v36  ;;  %v1300_v40 = vpop.f32.mrb[4].mxu0  ;;  %v1316_v41 = vpop.f32.mrb[4].mxu1 }
 0x154   : > { %v458_v42 = vpop.f32.mrb[5].mxu0  ;;  %v522_v43 = vpop.f32.mrb[5].mxu1 }
 0x155   : > { %v762_v44 = vadd.f32 %v761_v39, %v731_v38  ;;  %v1301_v45 = vpop.f32.mrb[6].mxu0  ;;  %v1317_v46 = vpop.f32.mrb[6].mxu1 }
 0x156   : > { %v1828_v47 = vpack.c.bf16 %v1301_v45, %v1300_v40  ;;  %v461_v48 = vpop.f32.mrb[7].mxu0  ;;  %v1830_v49 = vpack.c.bf16 %v1317_v46, %v1316_v41  ;;  %v525_v50 = vpop.f32.mrb[7].mxu1  ;;  %v745_v45 = vunpack.c.l.bf16 %v1805_v35 }
 0x157   : > { %v1833_v52 = vpack.c.bf16 %v461_v48, %v458_v42  ;;  %v1835_v53 = vpack.c.bf16 %v525_v50, %v522_v43  ;;  %v763_v55 = vadd.f32 %v762_v44, %v732_v51  ;;  %v746_v48 = vunpack.c.h.bf16 %v1805_v35 }
 0x158   : > { %1241 = vst [vmem:[%s1809_s18 + $0x18] sm:$0xff] %v1828_v47   ;;  %1249 = vst [vmem:[%s1809_s18 + $0x58] sm:$0xff] %v1830_v49   ;;  %v735_v62 = vunpack.c.l.bf16 %v1828_v47  ;;  %v736_v6 = vunpack.c.h.bf16 %v1828_v47 }
 0x159   : > { %1240 = vst [vmem:[%s1809_s18 + $0x10] sm:$0xff] %v1833_v52   ;;  %v733_v54 = vunpack.c.l.bf16 %v1833_v52  ;;  %1248 = vst [vmem:[%s1809_s18 + $0x50] sm:$0xff] %v1835_v53   ;;  %v734_v56 = vunpack.c.h.bf16 %v1833_v52 }
 0x15b   : > { %v764_v57 = vadd.f32 %v763_v55, %v733_v54  ;;  %v1304_v58 = vpop.f32.mrb[8].mxu0  ;;  %v1320_v59 = vpop.f32.mrb[8].mxu1  ;;  %v747_v55 = vunpack.c.l.bf16 %v1801_v32 }
 0x15c   : > { %v474_v60 = vpop.f32.mrb[9].mxu0  ;;  %v538_v61 = vpop.f32.mrb[9].mxu1 }
 0x15d   : > { %v765_v63 = vadd.f32 %v764_v57, %v734_v56  ;;  %v1305_v0 = vpop.f32.mrb[10].mxu0  ;;  %v1321_v1 = vpop.f32.mrb[10].mxu1 }
 0x15e   : > { %v1854_v2 = vpack.c.bf16 %v1305_v0, %v1304_v58  ;;  %v477_v3 = vpop.f32.mrb[11].mxu0  ;;  %v1856_v4 = vpack.c.bf16 %v1321_v1, %v1320_v59  ;;  %v541_v5 = vpop.f32.mrb[11].mxu1 }
 0x15f   : > { %v766_v7 = vadd.f32 %v765_v63, %v735_v62  ;;  %v1861_v8 = vpack.c.bf16 %v477_v3, %v474_v60  ;;  %v1863_v9 = vpack.c.bf16 %v541_v5, %v538_v61 }
 0x160   : > { %1243 = vst [vmem:[%s1809_s18 + $0x28] sm:$0xff] %v1854_v2   ;;  %1251 = vst [vmem:[%s1809_s18 + $0x68] sm:$0xff] %v1856_v4   ;;  %v739_v18 = vunpack.c.l.bf16 %v1854_v2  ;;  %v740_v26 = vunpack.c.h.bf16 %v1854_v2 }
 0x161   : > { %1242 = vst [vmem:[%s1809_s18 + $0x20] sm:$0xff] %v1861_v8   ;;  %v737_v10 = vunpack.c.l.bf16 %v1861_v8  ;;  %v767_v11 = vadd.f32 %v766_v7, %v736_v6  ;;  %1250 = vst [vmem:[%s1809_s18 + $0x60] sm:$0xff] %v1863_v9   ;;  %v738_v12 = vunpack.c.h.bf16 %v1861_v8 }
 0x163   : > { %v768_v13 = vadd.f32 %v767_v11, %v737_v10  ;;  %v1308_v14 = vpop.f32.mrb[12].mxu0  ;;  %v1324_v15 = vpop.f32.mrb[12].mxu1 }
 0x164   : > { %v490_v16 = vpop.f32.mrb[13].mxu0  ;;  %v554_v17 = vpop.f32.mrb[13].mxu1 }
 0x165   : > { %v769_v19 = vadd.f32 %v768_v13, %v738_v12  ;;  %v1309_v20 = vpop.f32.mrb[14].mxu0  ;;  %v1325_v21 = vpop.f32.mrb[14].mxu1 }
 0x166   : > { %v1882_v22 = vpack.c.bf16 %v1309_v20, %v1308_v14  ;;  %v493_v23 = vpop.f32.mrb[15].mxu0  ;;  %v1884_v24 = vpack.c.bf16 %v1325_v21, %v1324_v15  ;;  %v557_v25 = vpop.f32.mrb[15].mxu1 }
 0x167   : > { %v770_v27 = vadd.f32 %v769_v19, %v739_v18  ;;  %v1889_v28 = vpack.c.bf16 %v493_v23, %v490_v16  ;;  %v1891_v29 = vpack.c.bf16 %v557_v25, %v554_v17 }
 0x168   : > { %1245 = vst [vmem:[%s1809_s18 + $0x38] sm:$0xff] %v1882_v22   ;;  %1253 = vst [vmem:[%s1809_s18 + $0x78] sm:$0xff] %v1884_v24   ;;  %v743_v41 = vunpack.c.l.bf16 %v1882_v22  ;;  %v744_v43 = vunpack.c.h.bf16 %v1882_v22 }
 0x169   : > { %1244 = vst [vmem:[%s1809_s18 + $0x30] sm:$0xff] %v1889_v28   ;;  %v741_v31 = vunpack.c.l.bf16 %v1889_v28  ;;  %v771_v33 = vadd.f32 %v770_v27, %v740_v26  ;;  %1252 = vst [vmem:[%s1809_s18 + $0x70] sm:$0xff] %v1891_v29   ;;  %v742_v39 = vunpack.c.h.bf16 %v1889_v28 }
 0x16b   : > { %v772_v40 = vadd.f32 %v771_v33, %v741_v31 }
 0x16d   : > { %v773_v42 = vadd.f32 %v772_v40, %v742_v39 }
 0x16f   : > { %v774_v44 = vadd.f32 %v773_v42, %v743_v41 }
 0x171   : > { %v775_v46 = vadd.f32 %v774_v44, %v744_v43 }
 0x173   : > { %v776_v50 = vadd.f32 %v775_v46, %v745_v45 }
 0x175   : > { %v777_v57 = vadd.f32 %v776_v50, %v746_v48 }
 0x176   : > { %1503 = shalt.err (!%p1500_p7)
}
 0x177   : > { %s1504_s29 = scalar_lea.hbm %s1920_s4, 2048  ;;  %s1508_s7 = scalar_lea.hbm %s2149_s2, 4096 }
 0x178   : > { %p1505_p9 = scmp.ne.s32.totalorder %s1920_s4, %s1504_s29  ;;  %p1509_p5 = scmp.lt.u32.totalorder %s1920_s4, %s2149_s2 }
 0x179   : > { %p1510_p11 = scmp.lt.u32.totalorder %s1508_s7, %s1504_s29  ;;  %p1512_p4 = scmp.lt.u32.totalorder %s1504_s29, %s1920_s4 }
 0x17a   : > { %p1506_p1 = pnand %p1505_p9, %p1716_p12 }
 0x17b   : > { %p1511_p2 = por %p1510_p11, %p1509_p5 }
 0x17c   : > { %p1507_p0 = pneg %p1506_p1 }
 0x17d   : > { %p1513_p6 = por %p1512_p4, %p1511_p2 }
 0x17f   : > { %p1514_p8 = pnand %p1513_p6, %p1507_p0 }
 0x181   : > { %1517 = shalt.err (!%p1514_p8)
}
 0x182   : > { %s1599_s18 = smov 64   ;;  %s1600_s20 = smov 4   ;;  %v748_v58 = vunpack.c.h.bf16 %v1801_v32  ;;  %v778_v59 = vadd.f32 %v777_v57, %v747_v55  ;;  %v749_v60 = vunpack.c.l.bf16 %v1835_v53  ;;  %v750_v63 = vunpack.c.h.bf16 %v1835_v53 }
 0x183   : > { %1348 = dma.vmem_to_hbm [thread:$0]  (%p1716_p12), %s1926_s25, 2048, %s1920_s4, %s904_s5, %s1599_s18, %s1599_s18, %s1600_s20   ;;  %v751_v1 = vunpack.c.l.bf16 %v1830_v49  ;;  %v752_v5 = vunpack.c.h.bf16 %v1830_v49  ;;  %v753_v11 = vunpack.c.l.bf16 %v1863_v9  ;;  %v754_v14 = vunpack.c.h.bf16 %v1863_v9 }
 0x184   : > { %v779_v61 = vadd.f32 %v778_v59, %v748_v58  ;;  %v755_v16 = vunpack.c.l.bf16 %v1856_v4  ;;  %v756_v19 = vunpack.c.h.bf16 %v1856_v4  ;;  %v757_v21 = vunpack.c.l.bf16 %v1891_v29  ;;  %s1061_s8 = sshll.u32 %s1767_s6, 1  ;;  %s1122_s9 = sshll.u32 %s1643_s16, 5 }
 0x185   : > { %v758_v25 = vunpack.c.h.bf16 %v1891_v29  ;;  %v759_v33 = vunpack.c.l.bf16 %v1884_v24  ;;  %v760_v42 = vunpack.c.h.bf16 %v1884_v24  ;;  %s214_s4 = scalar_lea.vmem [#allocation8], %s1061_s8  ;;  %vm900_vm0 = vcmask 1040384   ;;  %s2102_s27 = scalar_lea.hbm %s2150_s3, %s1122_s9 }
 0x186   : > { %v780_v0 = vadd.f32 %v779_v61, %v749_v60  ;;  %s938_s25 = sshll.u32 %s214_s4, 4  ;;  %s909_s28 = scalar_lea.sflag [#allocation9], %s1767_s6  ;;  %s2104_s25 = int_to_ptr.vmem [resolvable:$true] %s938_s25 }
 0x187   : > { %s1518_s23 = scalar_lea.vmem %s2104_s25, 32  ;;  %s1601_s16 = smov [#allocation8]  }
 0x188   : > { %v781_v3 = vadd.f32 %v780_v0, %v750_v63  ;;  %p1519_p10 = scmp.ne.s32.totalorder %s2104_s25, %s1518_s23  ;;  %s1522_s29 = sshll.u32 %s1601_s16, 4  ;;  %s1523_s29 = int_to_ptr.vmem [resolvable:$false] %s1522_s29 }
 0x189   : > { %s1524_s30 = scalar_lea.vmem %s1523_s29, 64  ;;  %p1525_p7 = scmp.lt.s32.totalorder %s2104_s25, %s1523_s29 }
 0x18a   : > { %v782_v7 = vadd.f32 %v781_v3, %v751_v1  ;;  %p1520_p13 = pnand %p1519_p10, %p1716_p12  ;;  %p1526_p9 = scmp.lt.s32.totalorder %s1524_s30, %s1518_s23 }
 0x18c   : > { %v783_v13 = vadd.f32 %v782_v7, %v752_v5  ;;  %p1521_p3 = pneg %p1520_p13  ;;  %p1527_p1 = por %p1526_p9, %p1525_p7 }
 0x18e   : > { %v784_v15 = vadd.f32 %v783_v13, %v753_v11  ;;  %p1528_p0 = pnand %p1527_p1, %p1521_p3 }
 0x190   : > { %v785_v17 = vadd.f32 %v784_v15, %v754_v14 }
 0x192   : > { %v786_v20 = vadd.f32 %v785_v17, %v755_v16 }
 0x194   : > { %v787_v23 = vadd.f32 %v786_v20, %v756_v19 }
 0x196   : > { %v788_v27 = vadd.f32 %v787_v23, %v757_v21 }
 0x198   : > { %v789_v40 = vadd.f32 %v788_v27, %v758_v25 }
 0x19a   : > { %v790_v44 = vadd.f32 %v789_v40, %v759_v33 }
 0x19c   : > { %v791_v46 = vadd.f32 %v790_v44, %v760_v42 }
 0x19e   : > { %v792_v50 = vrot.slane %v791_v46, 4 }
 0x1a0   : > { %v793_v57 = vadd.f32 %v792_v50, %v791_v46 }
 0x1a2   : > { %v794_v59 = vrot.slane %v793_v57, 2 }
 0x1a4   : > { %v795_v61 = vadd.f32 %v794_v59, %v793_v57 }
 0x1a6   : > { %v796_v0 = vrot.slane %v795_v61, 1 }
 0x1a8   : > { %v1996_v3 = vadd.f32 %v796_v0, %v795_v61 }
 0x1aa   : > { %v1999_v7 = vmul.f32 0.00390625, %v1996_v3 }
 0x1ac   : > { %v799_v13 = vsub.f32 %v729_v36, %v1999_v7  ;;  %v800_v15 = vsub.f32 %v730_v37, %v1999_v7  ;;  %v801_v17 = vsub.f32 %v731_v38, %v1999_v7  ;;  %v802_v27 = vsub.f32 %v732_v51, %v1999_v7 }
 0x1ad   : > { %v803_v40 = vsub.f32 %v733_v54, %v1999_v7  ;;  %v804_v34 = vsub.f32 %v734_v56, %v1999_v7  ;;  %v805_v38 = vsub.f32 %v735_v62, %v1999_v7  ;;  %v806_v30 = vsub.f32 %v736_v6, %v1999_v7 }
 0x1ae   : > { %v831_v20 = vmul.f32 %v799_v13, %v799_v13  ;;  %v832_v23 = vmul.f32 %v800_v15, %v800_v15  ;;  %v833_v44 = vmul.f32 %v801_v17, %v801_v17  ;;  %v834_v37 = vmul.f32 %v802_v27, %v802_v27 }
 0x1af   : > { %v835_v50 = vmul.f32 %v803_v40, %v803_v40  ;;  %v836_v51 = vmul.f32 %v804_v34, %v804_v34  ;;  %v807_v59 = vsub.f32 %v737_v10, %v1999_v7  ;;  %v837_v52 = vmul.f32 %v805_v38, %v805_v38 }
 0x1b0   : > { %v863_v36 = vadd.f32 %v832_v23, %v831_v20  ;;  %v808_v61 = vsub.f32 %v738_v12, %v1999_v7  ;;  %v838_v0 = vmul.f32 %v806_v30, %v806_v30  ;;  %v809_v13 = vsub.f32 %v739_v18, %v1999_v7 }
 0x1b1   : > { %v839_v47 = vmul.f32 %v807_v59, %v807_v59  ;;  %v810_v15 = vsub.f32 %v740_v26, %v1999_v7  ;;  %v811_v20 = vsub.f32 %v741_v31, %v1999_v7  ;;  %v812_v23 = vsub.f32 %v742_v39, %v1999_v7 }
 0x1b2   : > { %v864_v46 = vadd.f32 %v863_v36, %v833_v44  ;;  %v840_v17 = vmul.f32 %v808_v61, %v808_v61  ;;  %v841_v8 = vmul.f32 %v809_v13, %v809_v13  ;;  %v813_v40 = vsub.f32 %v743_v41, %v1999_v7 }
 0x1b3   : > { %v842_v27 = vmul.f32 %v810_v15, %v810_v15  ;;  %v843_v2 = vmul.f32 %v811_v20, %v811_v20  ;;  %v814_v44 = vsub.f32 %v744_v43, %v1999_v7  ;;  %v844_v36 = vmul.f32 %v812_v23, %v812_v23 }
 0x1b4   : > { %v865_v57 = vadd.f32 %v864_v46, %v834_v37  ;;  %v815_v34 = vsub.f32 %v745_v45, %v1999_v7  ;;  %v845_v28 = vmul.f32 %v813_v40, %v813_v40  ;;  %v816_v37 = vsub.f32 %v746_v48, %v1999_v7 }
 0x1b5   : > { %v846_v46 = vmul.f32 %v814_v44, %v814_v44  ;;  %v817_v38 = vsub.f32 %v747_v55, %v1999_v7  ;;  %v819_v30 = vsub.f32 %v749_v60, %v1999_v7  ;;  %v821_v59 = vsub.f32 %v751_v1, %v1999_v7 }
 0x1b6   : > { %v866_v54 = vadd.f32 %v865_v57, %v835_v50  ;;  %v847_v22 = vmul.f32 %v815_v34, %v815_v34  ;;  %v818_v50 = vsub.f32 %v748_v58, %v1999_v7  ;;  %v848_v57 = vmul.f32 %v816_v37, %v816_v37 }
 0x1b7   : > { %v849_v35 = vmul.f32 %v817_v38, %v817_v38  ;;  %v851_v32 = vmul.f32 %v819_v30, %v819_v30  ;;  %v823_v61 = vsub.f32 %v753_v11, %v1999_v7  ;;  %v853_v53 = vmul.f32 %v821_v59, %v821_v59 }
 0x1b8   : > { %v867_v56 = vadd.f32 %v866_v54, %v836_v51  ;;  %v820_v51 = vsub.f32 %v750_v63, %v1999_v7  ;;  %v850_v54 = vmul.f32 %v818_v50, %v818_v50  ;;  %v825_v13 = vsub.f32 %v755_v16, %v1999_v7 }
 0x1b9   : > { %v855_v49 = vmul.f32 %v823_v61, %v823_v61  ;;  %v827_v15 = vsub.f32 %v757_v21, %v1999_v7  ;;  %v829_v4 = vsub.f32 %v759_v33, %v1999_v7  ;;  %v830_v21 = vsub.f32 %v760_v42, %v1999_v7 }
 0x1ba   : > { %v868_v62 = vadd.f32 %v867_v56, %v837_v52  ;;  %v822_v52 = vsub.f32 %v752_v5, %v1999_v7  ;;  %v852_v56 = vmul.f32 %v820_v51, %v820_v51  ;;  %v857_v9 = vmul.f32 %v825_v13, %v825_v13 }
 0x1bb   : > { %v861_v23 = vmul.f32 %v829_v4, %v829_v4  ;;  %v862_v29 = vmul.f32 %v830_v21, %v830_v21 }
 0x1bc   : > { %v869_v6 = vadd.f32 %v868_v62, %v838_v0  ;;  %v824_v0 = vsub.f32 %v754_v14, %v1999_v7  ;;  %v854_v62 = vmul.f32 %v822_v52, %v822_v52 }
 0x1be   : > { %v870_v10 = vadd.f32 %v869_v6, %v839_v47  ;;  %v826_v47 = vsub.f32 %v756_v19, %v1999_v7  ;;  %v856_v6 = vmul.f32 %v824_v0, %v824_v0  ;;  %v859_v19 = vmul.f32 %v827_v15, %v827_v15 }
 0x1c0   : > { %v871_v12 = vadd.f32 %v870_v10, %v840_v17  ;;  %v828_v17 = vsub.f32 %v758_v25, %v1999_v7  ;;  %v858_v16 = vmul.f32 %v826_v47, %v826_v47 }
 0x1c2   : > { %v872_v18 = vadd.f32 %v871_v12, %v841_v8  ;;  %v860_v8 = vmul.f32 %v828_v17, %v828_v17 }
 0x1c4   : > { %v873_v26 = vadd.f32 %v872_v18, %v842_v27 }
 0x1c6   : > { %v874_v31 = vadd.f32 %v873_v26, %v843_v2 }
 0x1c8   : > { %v875_v39 = vadd.f32 %v874_v31, %v844_v36 }
 0x1ca   : > { %v876_v41 = vadd.f32 %v875_v39, %v845_v28 }
 0x1cc   : > { %v877_v43 = vadd.f32 %v876_v41, %v846_v46 }
 0x1ce   : > { %v878_v45 = vadd.f32 %v877_v43, %v847_v22 }
 0x1d0   : > { %v879_v48 = vadd.f32 %v878_v45, %v848_v57 }
 0x1d2   : > { %v880_v55 = vadd.f32 %v879_v48, %v849_v35 }
 0x1d4   : > { %v881_v58 = vadd.f32 %v880_v55, %v850_v54 }
 0x1d6   : > { %v882_v60 = vadd.f32 %v881_v58, %v851_v32 }
 0x1d8   : > { %v883_v63 = vadd.f32 %v882_v60, %v852_v56 }
 0x1da   : > { %v884_v1 = vadd.f32 %v883_v63, %v853_v53 }
 0x1dc   : > { %v885_v5 = vadd.f32 %v884_v1, %v854_v62 }
 0x1de   : > { %v886_v11 = vadd.f32 %v885_v5, %v855_v49 }
 0x1e0   : > { %v887_v14 = vadd.f32 %v886_v11, %v856_v6 }
 0x1e2   : > { %v888_v10 = vadd.f32 %v887_v14, %v857_v9 }
 0x1e4   : > { %v889_v20 = vadd.f32 %v888_v10, %v858_v16 }
 0x1e6   : > { %v890_v12 = vadd.f32 %v889_v20, %v859_v19 }
 0x1e8   : > { %v891_v27 = vadd.f32 %v890_v12, %v860_v8 }
 0x1ea   : > { %v892_v25 = vadd.f32 %v891_v27, %v861_v23 }
 0x1ec   : > { %v893_v18 = vadd.f32 %v892_v25, %v862_v29 }
 0x1ee   : > { %v894_v40 = vrot.slane %v893_v18, 4 }
 0x1f0   : > { %v895_v2 = vadd.f32 %v894_v40, %v893_v18 }
 0x1f2   : > { %v896_v33 = vrot.slane %v895_v2, 2 }
 0x1f4   : > { %v897_v26 = vadd.f32 %v896_v33, %v895_v2 }
 0x1f6   : > { %v898_v44 = vrot.slane %v897_v26, 1 }
 0x1f8   : > { %v899_v24 = vadd.f32 %v898_v44, %v897_v26 }
 0x1fa   : > { %v901_v42 = vsel %vm900_vm0, %v1996_v3, %v899_v24 }
 0x1fb   : > { %902 = vst [vmem:[%s214_s4] sm:$0x3] %v901_v42 }
 0x1fc   : > { %1531 = shalt.err (!%p1528_p0)
}
 0x1fd   : > { %s1532_s6 = scalar_lea.hbm %s2102_s27, 32  ;;  %s1536_s10 = scalar_lea.hbm %s2150_s3, 64 }
 0x1fe   : > { %p1533_p5 = scmp.ne.s32.totalorder %s2102_s27, %s1532_s6  ;;  %p1537_p4 = scmp.lt.u32.totalorder %s2102_s27, %s2150_s3 }
 0x1ff   : > { %p1538_p6 = scmp.lt.u32.totalorder %s1536_s10, %s1532_s6  ;;  %p1540_p10 = scmp.lt.u32.totalorder %s1532_s6, %s2102_s27 }
 0x200   : > { %p1534_p11 = pnand %p1533_p5, %p1716_p12 }
 0x201   : > { %p1539_p8 = por %p1538_p6, %p1537_p4 }
 0x202   : > { %p1535_p2 = pneg %p1534_p11 }
 0x203   : > { %p1541_p13 = por %p1540_p10, %p1539_p8 }
 0x205   : > { %p1542_p3 = pnand %p1541_p13, %p1535_p2 }
 0x207   : > { %1545 = shalt.err (!%p1542_p3)
}
 0x208   : > { %1349 = dma.vmem_to_hbm [thread:$0]  (%p1716_p12), %s2104_s25, 32, %s2102_s27, %s909_s28  }
 0x209 PF: > { %s950_s20 = sand.u32 1, %s1580_s12   ;;  %p2165_p7 = scmp.ne.s32.totalorder %s2155_s19, 0 }
 0x20a   : > { %p2166_p9 = scmp.ge.s32.totalorder %s1592_s15, 2  ;;  %s951_s8 = scalar_lea.sflag [#allocation4], %s950_s20 }
 0x20c   : > { %p1361_p1 = pnand %p2166_p9, %p2165_p7 }
 0x20e   : > { %1571 = dma.done.wait (!%p1361_p1), %s951_s8, 2048  }
 0x20f   : > { %1573 = vsyncadd (!%p1361_p1), %s951_s8, 4294965248  ;;  %s960_s9 = scalar_lea.sflag [#allocation9], %s950_s20 }
 0x210   : > { %1575 = dma.done.wait (!%p1361_p1), %s960_s9, 32  }
 0x211   : > { %1577 = vsyncadd (!%p1361_p1), %s960_s9, 4294967264  ;;  %p21_p12 = scmp.ge.s32.totalorder %s1678_s24, 4   ;;  %s2167_s12 = smov %s1584_s13 }
 0x212   : > { %s2168_s13 = smov %s1588_s14  ;;  %s2169_s14 = smov %s1712_s17 }
 0x213   : > { %s2170_s15 = smov %s1678_s24  ;;  %23 = sbr.rel (!%p21_p12) target bundleno = 8 (0x8), region = 94 }
 0x21a   :  { %965 = vsyncpa [#allocation3], 1 }
 0x21b   :  { %967 = vsyncpa [#allocation3 + $0x1], 1 }
 0x21c   :  { %968 = vsyncpa [#allocation6], 1 }
 0x21d   :  { %969 = vsyncpa [#allocation4], 1 }
 0x21e   :  { %971 = vsyncpa [#allocation4 + $0x1], 1 }
 0x21f   :  { %972 = vsyncpa [#allocation9], 1 }
 0x220   :  { %974 = vsyncpa [#allocation9 + $0x1], 1 }

// kernel: dense_block_forward.13
= control target key start
LH: loop header
LB: loop body
LE: loop exit
PB: predicated region body
PF: predicated region fallthrough
CT: control target
= control target key end

     0   :  { %s2369_s0 = inlined_call_operand.hbm [shape: bf16[2,16,16,128], index: 0, kind: input, shape index: {}, may-alias: {0,5}]   ;;  %s2370_s1 = inlined_call_operand.hbm [shape: bf16[2,16,16,128], index: 1, kind: input, shape index: {}]   ;;  %s2371_s2 = inlined_call_operand.hbm [shape: f32[1,128], index: 2, kind: input, shape index: {}]   ;;  %s2372_s3 = inlined_call_operand.hbm [shape: f32[1,128], index: 3, kind: input, shape index: {}]   ;;  %s2373_s4 = inlined_call_operand.hbm [shape: bf16[128,128], index: 4, kind: input, shape index: {}]   ;;  %s2374_s5 = inlined_call_operand.hbm [shape: bf16[2,16,16,128], index: 5, kind: output, shape index: {}, may-alias: {0,5}]  }
   0x1   :  { %2382 = sst [smem:[#allocation17_spill]] %s2369_s0 }
   0x2   :  { %2383 = sst [smem:[#allocation18_spill]] %s2371_s2 }
   0x3   :  { %2384 = sst [smem:[#allocation19_spill]] %s2372_s3 }
   0x4   :  { %2385 = sst [smem:[#allocation20_spill]] %s2373_s4 }
   0x5   :  { %10 = vsyncpa [#allocation3], 0 }
   0x6   :  { %12 = vsyncpa [#allocation3 + $0x1], 0 }
   0x7   :  { %13 = vsyncpa [#allocation6], 0 }
   0x8   :  { %15 = vsyncpa [#allocation6 + $0x1], 0 }
   0x9   :  { %16 = vsyncpa [#allocation9], 0 }
   0xa   :  { %17 = vsyncpa [#allocation4], 0 }
   0xb   :  { %19 = vsyncpa [#allocation4 + $0x1], 0  ;;  %s1932_s18 = smov 0   ;;  %s1934_s19 = smov 0  }
   0xc   :  { %s1936_s20 = smov 0   ;;  %s1938_s21 = smov 0  }
   0xd LB: > { %s1953_s22 = sadd.s32 4294967295, %s1890_s21   ;;  %s1132_s23 = sadd.s32 4294967294, %s1890_s21   ;;  %s1890_s21 = sphi %s1938_s21, %s2411_s21   ;;  %s1886_s20 = sphi %s1936_s20, %s2410_s20   ;;  %s1882_s19 = sphi %s1934_s19, %s2409_s19   ;;  %s1878_s18 = sphi %s1932_s18, %s2408_s18  }
   0xe   : > { %p45_p0 = scmp.ne.s32.totalorder %s1882_s19, %s1878_s18  ;;  %p2375_p1 = scmp.eq.s32.totalorder %s1953_s22, 0 }
   0xf   : > { %p164_p3 = scmp.eq.s32.totalorder %s1132_s23, 1  ;;  %p1133_p5 = scmp.ge.s32.totalorder %s1890_s21, 1 }
  0x10   : > { %p1962_p4 = por %p2375_p1, %p45_p0  ;;  %p171_p7 = scmp.lt.s32.totalorder %s1890_s21, 3 }
  0x11   : > { %p1967_p6 = por %p164_p3, %p45_p0  ;;  %s1892_s27 = smov [#allocation7]  }
  0x12   : > { %s2386_s24 = scalar_select %p1962_p4, 1, 0 }
  0x13   : > { %s2387_s25 = scalar_select %p1967_p6, 1, 0 }
  0x14   : > { %p1972_p8 = pnand %p1133_p5, %p171_p7  ;;  %s184_s28 = sshll.u32 %s1892_s27, 4  ;;  %s185_s28 = int_to_ptr.vmem [resolvable:$true] %s184_s28 }
  0x15   : > { %s1893_s29 = smov [#allocation8]   ;;  %s1894_s7 = smov [#allocation10]  }
  0x16   : > { %s2388_s26 = scalar_select %p1972_p8, 1, 0 }
  0x17   : > { %p1592_p10 = pneg %p1972_p8  ;;  %s195_s30 = sshll.u32 %s1893_s29, 4  ;;  %s1985_s30 = int_to_ptr.vmem [resolvable:$true] %s195_s30 }
  0x18   : > { %s205_s8 = sshll.u32 %s1894_s7, 4  ;;  %s2390_s2 = sld [smem:[#allocation18_spill]]  ;;  %s1987_s8 = int_to_ptr.vmem [resolvable:$true] %s205_s8 }
  0x19   : > { %p1981_p11 = pnand %p1592_p10, %p2375_p1 }
  0x1b   : > { %p1997_p13 = pneg %p1981_p11 }
  0x1e   : > { %s1668_s11 = scalar_lea.hbm %s2390_s2, 16 }
  0x1f   : > { %p1669_p12 = scmp.ne.s32.totalorder %s2390_s2, %s1668_s11  ;;  %p1675_p5 = scmp.lt.u32.totalorder %s1668_s11, %s2390_s2 }
  0x21   : > { %p1671_p0 = pnand %p1997_p13, %p1669_p12 }
  0x23   : > { %p1672_p3 = pneg %p1671_p0 }
  0x25   : > { %p1677_p7 = pnand %p1675_p5, %p1672_p3 }
  0x27   : > { %1680 = shalt.err (!%p1677_p7)
}
  0x28   : > { %s1681_s17 = scalar_lea.vmem %s185_s28, 16  ;;  %s1688_s23 = scalar_lea.vmem %s185_s28, 32 }
  0x29   : > { %p1682_p10 = scmp.ne.s32.totalorder %s185_s28, %s1681_s17  ;;  %p1689_p2 = scmp.lt.s32.totalorder %s185_s28, %s185_s28 }
  0x2a   : > { %p1690_p6 = scmp.lt.s32.totalorder %s1688_s23, %s1681_s17 }
  0x2b   : > { %p1684_p9 = pnand %p1682_p10, %p1997_p13 }
  0x2c   : > { %p1691_p4 = por %p1690_p6, %p1689_p2 }
  0x2d   : > { %p1685_p1 = pneg %p1684_p9 }
  0x2f   : > { %p1692_p8 = pnand %p1691_p4, %p1685_p1 }
  0x31   : > { %1695 = shalt.err (!%p1692_p8)
}
  0x32   : > { %1595 = dma.hbm_to_vmem [thread:$0]  (!%p1981_p11), %s2390_s2, 16, %s185_s28, [#allocation6]  }
  0x33   : > { %s2392_s3 = sld [smem:[#allocation19_spill]] }
  0x39   : > { %s1696_s10 = scalar_lea.hbm %s2392_s3, 16 }
  0x3a   : > { %p1697_p9 = scmp.ne.s32.totalorder %s2392_s3, %s1696_s10  ;;  %p1703_p1 = scmp.lt.u32.totalorder %s1696_s10, %s2392_s3 }
  0x3c   : > { %p1699_p12 = pnand %p1697_p9, %p1997_p13 }
  0x3e   : > { %p1700_p2 = pneg %p1699_p12 }
  0x40   : > { %p1705_p4 = pnand %p1703_p1, %p1700_p2 }
  0x42   : > { %1708 = shalt.err (!%p1705_p4)
}
  0x43   : > { %s1709_s28 = scalar_lea.vmem %s1985_s30, 16  ;;  %s1716_s16 = scalar_lea.vmem %s1985_s30, 32 }
  0x44   : > { %p1710_p6 = scmp.ne.s32.totalorder %s1985_s30, %s1709_s28  ;;  %p1717_p3 = scmp.lt.s32.totalorder %s1985_s30, %s1985_s30 }
  0x45   : > { %p1718_p5 = scmp.lt.s32.totalorder %s1716_s16, %s1709_s28 }
  0x46   : > { %p1712_p8 = pnand %p1710_p6, %p1997_p13 }
  0x47   : > { %p1719_p7 = por %p1718_p5, %p1717_p3 }
  0x48   : > { %p1713_p0 = pneg %p1712_p8 }
  0x4a   : > { %p1720_p10 = pnand %p1719_p7, %p1713_p0 }
  0x4c   : > { %1723 = shalt.err (!%p1720_p10)
}
  0x4d   : > { %1598 = dma.hbm_to_vmem [thread:$0]  (!%p1981_p11), %s2392_s3, 16, %s1985_s30, [#allocation9]  }
  0x4e   : > { %s2393_s4 = sld [smem:[#allocation20_spill]] }
  0x54   : > { %s1724_s7 = scalar_lea.hbm %s2393_s4, 1024 }
  0x55   : > { %p1725_p9 = scmp.ne.s32.totalorder %s2393_s4, %s1724_s7  ;;  %p1731_p1 = scmp.lt.u32.totalorder %s1724_s7, %s2393_s4 }
  0x57   : > { %p1727_p12 = pnand %p1725_p9, %p1997_p13 }
  0x59   : > { %p1728_p2 = pneg %p1727_p12 }
  0x5b   : > { %p1733_p4 = pnand %p1731_p1, %p1728_p2 }
  0x5d   : > { %1736 = shalt.err (!%p1733_p4)
}
  0x5e   : > { %s1737_s30 = scalar_lea.vmem %s1987_s8, 1024  ;;  %p1745_p3 = scmp.lt.s32.totalorder %s1987_s8, %s1987_s8 }
  0x5f   : > { %p1738_p6 = scmp.ne.s32.totalorder %s1987_s8, %s1737_s30  ;;  %p1746_p5 = scmp.lt.s32.totalorder %s1737_s30, %s1737_s30 }
  0x61   : > { %p1740_p8 = pnand %p1738_p6, %p1997_p13  ;;  %p1747_p7 = por %p1746_p5, %p1745_p3 }
  0x63   : > { %p1741_p0 = pneg %p1740_p8 }
  0x65   : > { %p1748_p10 = pnand %p1747_p7, %p1741_p0 }
  0x67   : > { %1751 = shalt.err (!%p1748_p10)
}
  0x68   : > { %s2378_s13 = smov 64   ;;  %s2380_s14 = smov 4  }
  0x69   : > { %1601 = dma.hbm_to_vmem [thread:$0]  (!%p1981_p11), %s2393_s4, 1024, %s1987_s8, [#allocation9], %s2378_s13, %s2378_s13, %s2380_s14  }
  0x6a   : > { %s2064_s16 = sadd.s32 1, %s1890_s21   ;;  %s32_s23 = sadd.s32 1, %s1886_s20 }
  0x6b   : > { %s29_s17 = ssub.s32 %s1890_s21, %s2064_s16  ;;  %p39_p9 = scmp.ne.s32.totalorder %s1886_s20, %s1882_s19 }
  0x6c   : > { %p30_p13 = scmp.eq.s32.totalorder %s29_s17, 0  ;;  %p40_p12 = scmp.eq.s32.totalorder %s1890_s21, 0 }
  0x6d   : > { %p1616_p2 = scmp.lt.s32.totalorder %s1890_s21, 2  ;;  %p2394_p4 = scmp.eq.s32.totalorder %s1953_s22, 1 }
  0x6e   : > { %s2074_s27 = scalar_select %p30_p13, %s1886_s20, %s32_s23  }
  0x6f   : > { %p41_p1 = por %p40_p12, %p39_p9  ;;  %p2078_p6 = por %p2394_p4, %p39_p9 }
  0x70   : > { %s219_s29 = sand.u32 1, %s1886_s20   ;;  %s1198_s7 = sshll.u32 %s1890_s21, 11 }
  0x71   : > { %s2084_s8 = sshll.u32 %s219_s29, 7  ;;  %s2396_s0 = sld [smem:[#allocation17_spill]] }
  0x72   : > { %s223_s12 = scalar_lea.vmem [#allocation2], %s2084_s8  ;;  %p2092_p11 = pnand %p1616_p2, %p41_p1 }
  0x73   : > { %s230_s30 = sshll.u32 %s223_s12, 4  ;;  %s2101_s23 = scalar_lea.hbm %s2370_s1, %s1198_s7  ;;  %s2096_s30 = int_to_ptr.vmem [resolvable:$true] %s230_s30 }
  0x74   : > { %s2103_s9 = scalar_lea.sflag [#allocation3], %s219_s29  ;;  %p1754_p0 = pneg %p2092_p11 }
  0x77   : > { %s2089_s11 = scalar_lea.hbm %s2396_s0, %s1198_s7  ;;  %s1757_s14 = scalar_lea.hbm %s2396_s0, 4096 }
  0x78   : > { %s1752_s10 = scalar_lea.hbm %s2089_s11, 2048  ;;  %p1758_p7 = scmp.lt.u32.totalorder %s2089_s11, %s2396_s0 }
  0x79   : > { %p1753_p8 = scmp.ne.s32.totalorder %s2089_s11, %s1752_s10  ;;  %p1759_p10 = scmp.lt.u32.totalorder %s1757_s14, %s1752_s10 }
  0x7a   : > { %p1761_p9 = scmp.lt.u32.totalorder %s1752_s10, %s2089_s11 }
  0x7b   : > { %p1755_p3 = pnand %p1754_p0, %p1753_p8  ;;  %p1760_p13 = por %p1759_p10, %p1758_p7 }
  0x7d   : > { %p1756_p5 = pneg %p1755_p3  ;;  %p1762_p12 = por %p1761_p9, %p1760_p13 }
  0x7f   : > { %p1763_p2 = pnand %p1762_p12, %p1756_p5 }
  0x81   : > { %1766 = shalt.err (!%p1763_p2)
}
  0x82   : > { %s1767_s29 = scalar_lea.vmem %s2096_s30, 2048  ;;  %s1897_s13 = smov [#allocation2]  }
  0x83   : > { %p1768_p1 = scmp.ne.s32.totalorder %s2096_s30, %s1767_s29  ;;  %s1772_s7 = sshll.u32 %s1897_s13, 4  ;;  %s1773_s7 = int_to_ptr.vmem [resolvable:$false] %s1772_s7 }
  0x84   : > { %s1774_s2 = scalar_lea.vmem %s1773_s7, 4096  ;;  %p1775_p3 = scmp.lt.s32.totalorder %s2096_s30, %s1773_s7 }
  0x85   : > { %p1770_p4 = pnand %p1768_p1, %p1754_p0  ;;  %p1776_p7 = scmp.lt.s32.totalorder %s1774_s2, %s1767_s29 }
  0x87   : > { %p1771_p8 = pneg %p1770_p4  ;;  %p1777_p10 = por %p1776_p7, %p1775_p3 }
  0x89   : > { %p1778_p13 = pnand %p1777_p10, %p1771_p8 }
  0x8b   : > { %1781 = shalt.err (!%p1778_p13)
}
  0x8c   : > { %s2398_s3 = smov 4   ;;  %s2399_s14 = smov 64  }
  0x8d   : > { %1605 = dma.hbm_to_vmem [thread:$0]  (!%p2092_p11), %s2089_s11, 2048, %s2096_s30, %s2103_s9, %s2399_s14, %s2399_s14, %s2398_s3  }
  0x8e   : > { %s244_s28 = scalar_lea.vmem [#allocation5], %s2084_s8  ;;  %s240_s10 = sand.u32 1, %s1890_s21  }
  0x8f   : > { %s251_s17 = sshll.u32 %s244_s28, 4  ;;  %s2138_s12 = scalar_lea.sflag [#allocation6], %s240_s10  ;;  %s2136_s17 = int_to_ptr.vmem [resolvable:$true] %s251_s17 }
  0x90   : > { %s1782_s29 = scalar_lea.hbm %s2101_s23, 2048  ;;  %s1787_s2 = scalar_lea.hbm %s2370_s1, 4096 }
  0x91   : > { %p1783_p5 = scmp.ne.s32.totalorder %s2101_s23, %s1782_s29  ;;  %p1788_p2 = scmp.lt.u32.totalorder %s2101_s23, %s2370_s1 }
  0x92   : > { %p1789_p1 = scmp.lt.u32.totalorder %s1787_s2, %s1782_s29  ;;  %p1791_p8 = scmp.lt.u32.totalorder %s1782_s29, %s2101_s23 }
  0x93   : > { %p1785_p9 = pnand %p1783_p5, %p1754_p0 }
  0x94   : > { %p1790_p4 = por %p1789_p1, %p1788_p2 }
  0x95   : > { %p1786_p12 = pneg %p1785_p9 }
  0x96   : > { %p1792_p3 = por %p1791_p8, %p1790_p4 }
  0x98   : > { %p1793_p7 = pnand %p1792_p3, %p1786_p12 }
  0x9a   : > { %1796 = shalt.err (!%p1793_p7)
}
  0x9b   : > { %s1797_s8 = scalar_lea.vmem %s2136_s17, 2048  ;;  %s1898_s11 = smov [#allocation5]  }
  0x9c   : > { %p1798_p10 = scmp.ne.s32.totalorder %s2136_s17, %s1797_s8  ;;  %s1802_s30 = sshll.u32 %s1898_s11, 4  ;;  %s1803_s30 = int_to_ptr.vmem [resolvable:$false] %s1802_s30 }
  0x9d   : > { %s1804_s0 = scalar_lea.vmem %s1803_s30, 4096  ;;  %p1805_p9 = scmp.lt.s32.totalorder %s2136_s17, %s1803_s30 }
  0x9e   : > { %p1800_p13 = pnand %p1798_p10, %p1754_p0  ;;  %p1806_p2 = scmp.lt.s32.totalorder %s1804_s0, %s1797_s8 }
  0xa0   : > { %p1801_p5 = pneg %p1800_p13  ;;  %p1807_p1 = por %p1806_p2, %p1805_p9 }
  0xa2   : > { %p1808_p4 = pnand %p1807_p1, %p1801_p5 }
  0xa4   : > { %1811 = shalt.err (!%p1808_p4)
}
  0xa5   : > { %1608 = dma.hbm_to_vmem [thread:$0]  (!%p2092_p11), %s2101_s23, 2048, %s2136_s17, %s2138_s12, %s2399_s14, %s2399_s14, %s2398_s3  }
  0xa6   : > { %p2400_p0 = scmp.ne.s32.totalorder %s2388_s26, 0 }
  0xa7   : > { %s2170_s4 = sand.u32 (!%p2400_p0), 1, %s1882_s19   ;;  %p2401_p12 = scmp.ne.s32.totalorder (!%p2400_p0), %s2386_s24, 0 }
  0xa8   : > { %263 = sbr.rel (%p2400_p0) target bundleno = 477 (0x1dd), region = 40  ;;  %s2173_s9 = sshll.u32 (!%p2400_p0), %s2170_s4, 7 }
  0xa9   : > { %s266_s15 = scalar_lea.sflag (!%p2400_p0), [#allocation3], %s2170_s4  ;;  %s2177_s28 = scalar_lea.vmem (!%p2400_p0), [#allocation2], %s2173_s9 }
  0xaf   : > { %1857 = dma.done.wait (%p2401_p12), %s266_s15, 2048  }
  0xb0   : > { %1859 = vsyncadd (%p2401_p12), %s266_s15, 4294965248  ;;  %s274_s26 = sand.u32 1, %s1953_s22   ;;  %s2185_s3 = scalar_lea.vmem [#allocation5], %s2173_s9 }
  0xb1   : > { %s275_s23 = scalar_lea.sflag [#allocation6], %s274_s26 }
  0xb2   : > { %1861 = dma.done.wait (%p2401_p12), %s275_s23, 2048  }
  0xb3   : > { %1863 = vsyncadd (%p2401_p12), %s275_s23, 4294965248  ;;  %p2402_p11 = scmp.eq.s32.totalorder %s1953_s22, 0 }
  0xb5   : > { %1865 = dma.done.wait (%p2402_p11), [#allocation6], 16   ;;  %p2403_p8 = pmov %p2402_p11 }
  0xb7   : > { %1867 = vsyncadd (%p2403_p8), [#allocation6], 4294967280  ;;  %p2404_p3 = pmov %p2403_p8 }
  0xb9   : > { %1869 = dma.done.wait (%p2404_p3), [#allocation9], 1040   ;;  %p2405_p7 = pmov %p2404_p3 }
  0xba   : > { %v1660_v0 = vld [vmem:[#allocation10] sm:$0xff]   ;;  %v1661_v1 = vld [vmem:[#allocation10 + $0x8] sm:$0xff]   ;;  %v1662_v2 = vld [vmem:[#allocation10 + $0x10] sm:$0xff]   ;;  %s2292_s24 = scalar_lea.vmem [#allocation11], %s2173_s9  ;;  %s1232_s14 = sshll.u32 %s1953_s22, 11 }
  0xbb   : > { %1871 = vsyncadd (%p2405_p7), [#allocation9], 4294966256  ;;  %1510 = vmatprep.subr.bf16.mxu0 %v1660_v0  ;;  %1558 = vmatprep.subr.bf16.mxu1 %v1660_v0  ;;  %v1663_v3 = vld [vmem:[#allocation10 + $0x18] sm:$0xff]   ;;  %v1441_v9 = vld [vmem:[%s2185_s3 + $0x8] sm:$0xff]   ;;  %s1008_s17 = sshll.u32 %s2292_s24, 4  ;;  %s2319_s12 = scalar_lea.hbm %s2374_s5, %s1232_s14  ;;  %s2321_s17 = int_to_ptr.vmem [resolvable:$true] %s1008_s17 }
  0xbc   : > { %1511 = vmatpush3.bf16.msra.mxu0 %v1660_v0  ;;  %1566 = vmatpush3.bf16.msra.mxu1 %v1660_v0  ;;  %v1234_v4 = vld [vmem:[%s2185_s3] sm:$0xff]   ;;  %v1449_v10 = vld [vmem:[%s2185_s3 + $0x48] sm:$0xff]   ;;  %v1239_v14 = vunpack.c.l.bf16 %v1441_v9  ;;  %v1240_v15 = vunpack.c.h.bf16 %v1441_v9  ;;  %v1442_v20 = vld [vmem:[%s2185_s3 + $0x10] sm:$0xff]   ;;  %s995_s29 = scalar_lea.sflag [#allocation4], %s2170_s4  ;;  %s1812_s13 = scalar_lea.vmem %s2321_s17, 2048 }
  0xbd   : > { %1512 = vmatprep.subr.bf16.mxu0 %v1661_v1  ;;  %1559 = vmatprep.subr.bf16.mxu1 %v1661_v1  ;;  %v2200_v5 = vld [vmem:[#allocation7] ss:$0 sm:$0xff]  ;;  %v1235_v6 = vunpack.c.l.bf16 %v1234_v4  ;;  %v1236_v7 = vunpack.c.h.bf16 %v1234_v4  ;;  %v2205_v11 = vld [vmem:[#allocation8] ss:$0 sm:$0xff]  ;;  %v1271_v18 = vunpack.c.l.bf16 %v1449_v10  ;;  %v1272_v19 = vunpack.c.h.bf16 %v1449_v10  ;;  %v1664_v21 = vld [vmem:[#allocation10 + $0x20] sm:$0xff]   ;;  %p1813_p10 = scmp.ne.s32.totalorder %s2321_s17, %s1812_s13  ;;  %s1899_s7 = smov [#allocation11]  }
  0xbe   : > { %v1448_v8 = vld [vmem:[%s2185_s3 + $0x40] sm:$0xff]   ;;  %v396_v24 = vmul.f32 %v1239_v14, %v2200_v5  ;;  %v397_v27 = vmul.f32 %v1240_v15, %v2200_v5  ;;  %v1243_v32 = vunpack.c.l.bf16 %v1442_v20  ;;  %v1450_v36 = vld [vmem:[%s2185_s3 + $0x50] sm:$0xff]   ;;  %v1443_v41 = vld [vmem:[%s2185_s3 + $0x18] sm:$0xff]   ;;  %v1244_v44 = vunpack.c.h.bf16 %v1442_v20  ;;  %s1816_s2 = sshll.u32 %s1899_s7, 4  ;;  %s1817_s2 = int_to_ptr.vmem [resolvable:$false] %s1816_s2 }
  0xbf   : > { %v1267_v12 = vunpack.c.l.bf16 %v1448_v8  ;;  %v1268_v13 = vunpack.c.h.bf16 %v1448_v8  ;;  %v394_v16 = vmul.f32 %v1235_v6, %v2200_v5  ;;  %v395_v17 = vmul.f32 %v1236_v7, %v2200_v5  ;;  %v1665_v37 = vld [vmem:[#allocation10 + $0x28] sm:$0xff]   ;;  %v1451_v49 = vld [vmem:[%s2185_s3 + $0x58] sm:$0xff]   ;;  %v1444_v63 = vld [vmem:[%s2185_s3 + $0x20] sm:$0xff]   ;;  %p1814_p13 = pnand %p1813_p10, %p2078_p6  ;;  %s1818_s8 = scalar_lea.vmem %s1817_s2, 4096 }
  0xc0   : > { %1513 = vmatpush3.bf16.msra.mxu0 %v1661_v1  ;;  %1567 = vmatpush3.bf16.msra.mxu1 %v1661_v1  ;;  %v412_v28 = vmul.f32 %v1271_v18, %v2200_v5  ;;  %v435_v31 = vadd.f32 %v2205_v11, %v396_v24  ;;  %v413_v35 = vmul.f32 %v1272_v19, %v2200_v5  ;;  %v1275_v48 = vunpack.c.l.bf16 %v1450_v36  ;;  %v1666_v54 = vld [vmem:[#allocation10 + $0x30] sm:$0xff]   ;;  %v1667_v9 = vld [vmem:[#allocation10 + $0x38] sm:$0xff]   ;;  %p1819_p9 = scmp.lt.s32.totalorder %s2321_s17, %s1817_s2  ;;  %p1820_p2 = scmp.lt.s32.totalorder %s1818_s8, %s1812_s13 }
  0xc1   : > { %1514 = vmatprep.subr.bf16.mxu0 %v1662_v2  ;;  %1560 = vmatprep.subr.bf16.mxu1 %v1662_v2  ;;  %v410_v22 = vmul.f32 %v1267_v12, %v2200_v5  ;;  %v411_v23 = vmul.f32 %v1268_v13, %v2200_v5  ;;  %v433_v25 = vadd.f32 %v2205_v11, %v394_v16  ;;  %v1276_v52 = vunpack.c.h.bf16 %v1450_v36  ;;  %v1452_v15 = vld [vmem:[%s2185_s3 + $0x60] sm:$0xff]   ;;  %v1446_v36 = vld [vmem:[%s2185_s3 + $0x30] sm:$0xff]   ;;  %p1815_p5 = pneg %p1814_p13 }
  0xc2   : > { %v434_v26 = vadd.f32 %v2205_v11, %v395_v17  ;;  %v436_v40 = vadd.f32 %v2205_v11, %v397_v27  ;;  %v451_v43 = vadd.f32 %v2205_v11, %v412_v28  ;;  %v467_v46 = vmax.f32 %v435_v31, 0.0  ;;  %v1453_v27 = vld [vmem:[%s2185_s3 + $0x68] sm:$0xff]   ;;  %p1821_p1 = por %p1820_p2, %p1819_p9 }
  0xc3   : > { %v449_v29 = vadd.f32 %v2205_v11, %v410_v22  ;;  %v450_v30 = vadd.f32 %v2205_v11, %v411_v23  ;;  %v465_v33 = vmax.f32 %v433_v25, 0.0  ;;  %v398_v47 = vmul.f32 %v1243_v32, %v2200_v5  ;;  %v1445_v22 = vld [vmem:[%s2185_s3 + $0x28] sm:$0xff]  }
  0xc4   : > { %1515 = vmatpush3.bf16.msra.mxu0 %v1662_v2  ;;  %1568 = vmatpush3.bf16.msra.mxu1 %v1662_v2  ;;  %v466_v34 = vmax.f32 %v434_v26, 0.0  ;;  %v452_v50 = vadd.f32 %v2205_v11, %v413_v35  ;;  %v399_v51 = vmul.f32 %v1244_v44, %v2200_v5  ;;  %v1247_v53 = vunpack.c.l.bf16 %v1443_v41  ;;  %p1822_p4 = pnand %p1821_p1, %p1815_p5 }
  0xc5   : > { %1516 = vmatprep.subr.bf16.mxu0 %v1663_v3  ;;  %1561 = vmatprep.subr.bf16.mxu1 %v1663_v3  ;;  %v481_v38 = vmax.f32 %v449_v29, 0.0  ;;  %v482_v39 = vmax.f32 %v450_v30, 0.0  ;;  %v468_v55 = vmax.f32 %v436_v40, 0.0  ;;  %v437_v56 = vadd.f32 %v2205_v11, %v398_v47 }
  0xc6   : > { %v497_v42 = vpack.c.bf16 %v466_v34, %v465_v33  ;;  %v414_v57 = vmul.f32 %v1275_v48, %v2200_v5  ;;  %v1248_v58 = vunpack.c.h.bf16 %v1443_v41  ;;  %v438_v59 = vadd.f32 %v2205_v11, %v399_v51 }
  0xc7   : > { %v505_v45 = vpack.c.bf16 %v482_v39, %v481_v38  ;;  %v415_v60 = vmul.f32 %v1276_v52, %v2200_v5  ;;  %v400_v61 = vmul.f32 %v1247_v53, %v2200_v5  ;;  %v1279_v62 = vunpack.c.l.bf16 %v1451_v49  ;;  %v1454_v52 = vld [vmem:[%s2185_s3 + $0x70] sm:$0xff]  }
  0xc8   : > { %1517 = vmatpush3.bf16.msra.mxu0 %v1663_v3  ;;  %1569 = vmatpush3.bf16.msra.mxu1 %v1663_v3  ;;  %v483_v0 = vmax.f32 %v451_v43, 0.0  ;;  %v453_v1 = vadd.f32 %v2205_v11, %v414_v57  ;;  %v401_v2 = vmul.f32 %v1248_v58, %v2200_v5  ;;  %v1280_v3 = vunpack.c.h.bf16 %v1451_v49 }
  0xc9   : > { %1518 = vmatprep.subr.bf16.mxu0 %v1664_v21  ;;  %1562 = vmatprep.subr.bf16.mxu1 %v1664_v21  ;;  %v484_v4 = vmax.f32 %v452_v50, 0.0  ;;  %v469_v6 = vmax.f32 %v437_v56, 0.0  ;;  %v470_v7 = vmax.f32 %v438_v59, 0.0  ;;  %v454_v8 = vadd.f32 %v2205_v11, %v415_v60  ;;  %v1447_v60 = vld [vmem:[%s2185_s3 + $0x38] sm:$0xff]  }
  0xca   : > { %1526 = vmatprep.mubr.bf16.mxu0 %v497_v42  ;;  %1542 = vmatprep.mubr.bf16.mxu1 %v505_v45  ;;  %v439_v10 = vadd.f32 %v2205_v11, %v400_v61  ;;  %v416_v12 = vmul.f32 %v1279_v62, %v2200_v5  ;;  %v417_v13 = vmul.f32 %v1280_v3, %v2200_v5  ;;  %v1251_v14 = vunpack.c.l.bf16 %v1444_v63 }
  0xcb   : > { %v498_v16 = vpack.c.bf16 %v468_v55, %v467_v46  ;;  %v485_v17 = vmax.f32 %v453_v1, 0.0  ;;  %v486_v18 = vmax.f32 %v454_v8, 0.0  ;;  %v440_v19 = vadd.f32 %v2205_v11, %v401_v2 }
  0xcc   : > { %1519 = vmatpush3.bf16.msra.mxu0 %v1664_v21  ;;  %1570 = vmatpush3.bf16.msra.mxu1 %v1664_v21  ;;  %v1252_v20 = vunpack.c.h.bf16 %v1444_v63  ;;  %v402_v21 = vmul.f32 %v1251_v14, %v2200_v5  ;;  %v506_v23 = vpack.c.bf16 %v484_v4, %v483_v0  ;;  %v499_v24 = vpack.c.bf16 %v470_v7, %v469_v6  ;;  %v1455_v6 = vld [vmem:[%s2185_s3 + $0x78] sm:$0xff]  }
  0xcd   : > { %1520 = vmatprep.subr.bf16.mxu0 %v1665_v37  ;;  %1563 = vmatprep.subr.bf16.mxu1 %v1665_v37  ;;  %v1283_v25 = vunpack.c.l.bf16 %v1452_v15  ;;  %v1284_v26 = vunpack.c.h.bf16 %v1452_v15  ;;  %v471_v28 = vmax.f32 %v439_v10, 0.0  ;;  %v455_v29 = vadd.f32 %v2205_v11, %v416_v12 }
  0xce   : > { %v456_v30 = vadd.f32 %v2205_v11, %v417_v13  ;;  %v403_v31 = vmul.f32 %v1252_v20, %v2200_v5  ;;  %v1255_v34 = vunpack.c.l.bf16 %v1445_v22  ;;  %v1256_v35 = vunpack.c.h.bf16 %v1445_v22 }
  0xcf   : > { %v418_v32 = vmul.f32 %v1283_v25, %v2200_v5  ;;  %v419_v33 = vmul.f32 %v1284_v26, %v2200_v5  ;;  %v472_v38 = vmax.f32 %v440_v19, 0.0  ;;  %v441_v39 = vadd.f32 %v2205_v11, %v402_v21 }
  0xd0   : > { %1521 = vmatpush3.bf16.msra.mxu0 %v1665_v37  ;;  %1571 = vmatpush3.bf16.msra.mxu1 %v1665_v37  ;;  %v507_v37 = vpack.c.bf16 %v486_v18, %v485_v17  ;;  %v1287_v40 = vunpack.c.l.bf16 %v1453_v27  ;;  %v442_v41 = vadd.f32 %v2205_v11, %v403_v31  ;;  %v1288_v44 = vunpack.c.h.bf16 %v1453_v27 }
  0xd1   : > { %1522 = vmatprep.subr.bf16.mxu0 %v1666_v54  ;;  %1564 = vmatprep.subr.bf16.mxu1 %v1666_v54  ;;  %v457_v42 = vadd.f32 %v2205_v11, %v418_v32  ;;  %v458_v43 = vadd.f32 %v2205_v11, %v419_v33  ;;  %v404_v45 = vmul.f32 %v1255_v34, %v2200_v5  ;;  %v1259_v47 = vunpack.c.l.bf16 %v1446_v36 }
  0xd2   : > { %v405_v46 = vmul.f32 %v1256_v35, %v2200_v5  ;;  %v487_v48 = vmax.f32 %v455_v29, 0.0  ;;  %v488_v49 = vmax.f32 %v456_v30, 0.0  ;;  %v420_v50 = vmul.f32 %v1287_v40, %v2200_v5 }
  0xd3   : > { %v421_v51 = vmul.f32 %v1288_v44, %v2200_v5  ;;  %v500_v53 = vpack.c.bf16 %v472_v38, %v471_v28  ;;  %v1260_v55 = vunpack.c.h.bf16 %v1446_v36  ;;  %v474_v56 = vmax.f32 %v442_v41, 0.0 }
  0xd4   : > { %1523 = vmatpush3.bf16.msra.mxu0 %v1666_v54  ;;  %1572 = vmatpush3.bf16.msra.mxu1 %v1666_v54  ;;  %v473_v54 = vmax.f32 %v441_v39, 0.0  ;;  %v489_v57 = vmax.f32 %v457_v42, 0.0  ;;  %v490_v58 = vmax.f32 %v458_v43, 0.0  ;;  %v406_v59 = vmul.f32 %v1259_v47, %v2200_v5  ;;  %v1463_v47 = vld [vmem:[%s2177_s28 + $0x40] sm:$0xff]  }
  0xd5   : > { %1524 = vmatprep.subr.bf16.mxu0 %v1667_v9  ;;  %1565 = vmatprep.subr.bf16.mxu1 %v1667_v9  ;;  %v443_v61 = vadd.f32 %v2205_v11, %v404_v45  ;;  %v444_v62 = vadd.f32 %v2205_v11, %v405_v46  ;;  %v407_v63 = vmul.f32 %v1260_v55, %v2200_v5  ;;  %v1291_v0 = vunpack.c.l.bf16 %v1454_v52  ;;  %v1456_v45 = vld [vmem:[%s2177_s28 + $0x8] sm:$0xff]  }
  0xd6   : > { %v508_v1 = vpack.c.bf16 %v488_v49, %v487_v48  ;;  %v459_v2 = vadd.f32 %v2205_v11, %v420_v50  ;;  %v460_v3 = vadd.f32 %v2205_v11, %v421_v51  ;;  %v1292_v4 = vunpack.c.h.bf16 %v1454_v52  ;;  %v1464_v46 = vld [vmem:[%s2177_s28 + $0x48] sm:$0xff]  }
  0xd7   : > { %v445_v7 = vadd.f32 %v2205_v11, %v406_v59  ;;  %v422_v8 = vmul.f32 %v1291_v0, %v2200_v5  ;;  %v1264_v10 = vunpack.c.h.bf16 %v1447_v60  ;;  %v501_v12 = vpack.c.bf16 %v474_v56, %v473_v54 }
  0xd8   : > { %1525 = vmatpush3.bf16.msra.mxu0 %v1667_v9  ;;  %1573 = vmatpush3.bf16.msra.mxu1 %v1667_v9  ;;  %v1263_v9 = vunpack.c.l.bf16 %v1447_v60  ;;  %v509_v13 = vpack.c.bf16 %v490_v58, %v489_v57  ;;  %v446_v14 = vadd.f32 %v2205_v11, %v407_v63  ;;  %v423_v15 = vmul.f32 %v1292_v4, %v2200_v5 }
  0xd9   : > { %v476_v17 = vmax.f32 %v444_v62, 0.0  ;;  %v461_v18 = vadd.f32 %v2205_v11, %v422_v8  ;;  %v1295_v19 = vunpack.c.l.bf16 %v1455_v6  ;;  %v491_v20 = vmax.f32 %v459_v2, 0.0 }
  0xda   : > { %v492_v21 = vmax.f32 %v460_v3, 0.0  ;;  %v462_v22 = vadd.f32 %v2205_v11, %v423_v15  ;;  %v408_v25 = vmul.f32 %v1263_v9, %v2200_v5  ;;  %v409_v26 = vmul.f32 %v1264_v10, %v2200_v5  ;;  %v1458_v9 = vld [vmem:[%s2177_s28 + $0x18] sm:$0xff]   ;;  %v1465_v15 = vld [vmem:[%s2177_s28 + $0x50] sm:$0xff]  }
  0xdb   : > { %1527 = vmatmul.mubr.bf16.vlgmr.msra.gmra.mrb[0].mxu0 %v498_v16  ;;  %1543 = vmatmul.mubr.bf16.vlgmr.msra.gmra.mrb[0].mxu1 %v506_v23  ;;  %v475_v16 = vmax.f32 %v443_v61, 0.0  ;;  %v1296_v23 = vunpack.c.h.bf16 %v1455_v6  ;;  %v424_v27 = vmul.f32 %v1295_v19, %v2200_v5  ;;  %v478_v28 = vmax.f32 %v446_v14, 0.0  ;;  %v1466_v10 = vld [vmem:[%s2177_s28 + $0x58] sm:$0xff]   ;;  %v1457_v14 = vld [vmem:[%s2177_s28 + $0x10] sm:$0xff]  }
  0xdc   : > { %1530 = vmatprep.mubr.bf16.mxu0 %v499_v24  ;;  %1546 = vmatprep.mubr.bf16.mxu1 %v507_v37  ;;  %v477_v24 = vmax.f32 %v445_v7, 0.0  ;;  %v493_v29 = vmax.f32 %v461_v18, 0.0  ;;  %v494_v30 = vmax.f32 %v462_v22, 0.0  ;;  %v510_v33 = vpack.c.bf16 %v492_v21, %v491_v20 }
  0xdd   : > { %v425_v31 = vmul.f32 %v1296_v23, %v2200_v5  ;;  %v502_v32 = vpack.c.bf16 %v476_v17, %v475_v16  ;;  %v447_v34 = vadd.f32 %v2205_v11, %v408_v25  ;;  %v448_v35 = vadd.f32 %v2205_v11, %v409_v26 }
  0xde   : > { %v463_v36 = vadd.f32 %v2205_v11, %v424_v27  ;;  %v503_v38 = vpack.c.bf16 %v478_v28, %v477_v24  ;;  %v511_v39 = vpack.c.bf16 %v494_v30, %v493_v29  ;;  %v1303_v48 = vunpack.c.l.bf16 %v1456_v45 }
  0xdf   : > { %v464_v37 = vadd.f32 %v2205_v11, %v425_v31  ;;  %v479_v40 = vmax.f32 %v447_v34, 0.0  ;;  %v480_v5 = vmax.f32 %v448_v35, 0.0  ;;  %v1298_v11 = vld [vmem:[%s2177_s28] sm:$0xff]   ;;  %v1335_v49 = vunpack.c.l.bf16 %v1464_v46 }
  0xe0   : > { %v495_v41 = vmax.f32 %v463_v36, 0.0  ;;  %v1304_v50 = vunpack.c.h.bf16 %v1456_v45  ;;  %v1336_v51 = vunpack.c.h.bf16 %v1464_v46  ;;  %v1299_v54 = vunpack.c.l.bf16 %v1298_v11  ;;  %v1459_v45 = vld [vmem:[%s2177_s28 + $0x20] sm:$0xff]  }
  0xe1   : > { %v496_v42 = vmax.f32 %v464_v37, 0.0  ;;  %v504_v43 = vpack.c.bf16 %v480_v5, %v479_v40  ;;  %v1331_v55 = vunpack.c.l.bf16 %v1463_v47  ;;  %v1300_v56 = vunpack.c.h.bf16 %v1298_v11  ;;  %v1467_v46 = vld [vmem:[%s2177_s28 + $0x60] sm:$0xff]  }
  0xe2   : > { %v1332_v57 = vunpack.c.h.bf16 %v1463_v47  ;;  %v1311_v18 = vunpack.c.l.bf16 %v1458_v9  ;;  %v1343_v19 = vunpack.c.l.bf16 %v1466_v10  ;;  %v1312_v20 = vunpack.c.h.bf16 %v1458_v9  ;;  %v1462_v9 = vld [vmem:[%s2177_s28 + $0x38] sm:$0xff]  }
  0xe3   : > { %1531 = vmatmul.mubr.bf16.gmra.mrb[4].mxu0 %v500_v53  ;;  %1547 = vmatmul.mubr.bf16.gmra.mrb[4].mxu1 %v508_v1  ;;  %v512_v44 = vpack.c.bf16 %v496_v42, %v495_v41  ;;  %v1344_v21 = vunpack.c.h.bf16 %v1466_v10  ;;  %v1307_v24 = vunpack.c.l.bf16 %v1457_v14  ;;  %v1339_v25 = vunpack.c.l.bf16 %v1465_v15  ;;  %v1460_v41 = vld [vmem:[%s2177_s28 + $0x28] sm:$0xff]   ;;  %v1470_v10 = vld [vmem:[%s2177_s28 + $0x78] sm:$0xff]  }
  0xe4   : > { %1534 = vmatprep.mubr.bf16.mxu0 %v501_v12  ;;  %1550 = vmatprep.mubr.bf16.mxu1 %v509_v13  ;;  %v1308_v26 = vunpack.c.h.bf16 %v1457_v14  ;;  %v1340_v27 = vunpack.c.h.bf16 %v1465_v15  ;;  %v1468_v42 = vld [vmem:[%s2177_s28 + $0x68] sm:$0xff]   ;;  %v1461_v14 = vld [vmem:[%s2177_s28 + $0x30] sm:$0xff]  }
  0xe5   : > { %v1469_v15 = vld [vmem:[%s2177_s28 + $0x70] sm:$0xff]  }
  0xeb   : > { %1535 = vmatmul.mubr.bf16.gmra.mrb[8].mxu0 %v502_v32  ;;  %1551 = vmatmul.mubr.bf16.gmra.mrb[8].mxu1 %v510_v33 }
  0xec   : > { %1538 = vmatprep.mubr.bf16.mxu0 %v503_v38  ;;  %1554 = vmatprep.mubr.bf16.mxu1 %v511_v39 }
  0xf3   : > { %1539 = vmatmul.mubr.bf16.gmra.mrb[12].mxu0 %v504_v43  ;;  %1555 = vmatmul.mubr.bf16.gmra.mrb[12].mxu1 %v512_v44 }
 0x1ae   : > { %v1528_v52 = vpop.f32.mrb[0].mxu0  ;;  %v1544_v53 = vpop.f32.mrb[0].mxu1 }
 0x1af   : > { %v611_v58 = vpop.f32.mrb[1].mxu0  ;;  %v675_v59 = vpop.f32.mrb[1].mxu1  ;;  %v804_v62 = vadd.f32 %v1528_v52, %v1303_v48  ;;  %v820_v63 = vadd.f32 %v1544_v53, %v1335_v49  ;;  %v1319_v48 = vunpack.c.l.bf16 %v1460_v41  ;;  %v1351_v49 = vunpack.c.l.bf16 %v1468_v42 }
 0x1b0   : > { %v1529_v60 = vpop.f32.mrb[2].mxu0  ;;  %v1545_v61 = vpop.f32.mrb[2].mxu1  ;;  %v802_v4 = vadd.f32 %v1299_v54, %v611_v58  ;;  %v818_v6 = vadd.f32 %v1331_v55, %v675_v59  ;;  %v1315_v54 = vunpack.c.l.bf16 %v1459_v45  ;;  %v1347_v55 = vunpack.c.l.bf16 %v1467_v46 }
 0x1b1   : > { %v805_v0 = vadd.f32 %v1529_v60, %v1304_v50  ;;  %v821_v1 = vadd.f32 %v1545_v61, %v1336_v51  ;;  %v614_v2 = vpop.f32.mrb[3].mxu0  ;;  %v678_v3 = vpop.f32.mrb[3].mxu1  ;;  %v1320_v50 = vunpack.c.h.bf16 %v1460_v41  ;;  %v1352_v51 = vunpack.c.h.bf16 %v1468_v42 }
 0x1b2   : > { %v803_v7 = vadd.f32 %v1300_v56, %v614_v2  ;;  %v819_v8 = vadd.f32 %v1332_v57, %v678_v3  ;;  %v1316_v56 = vunpack.c.h.bf16 %v1459_v45  ;;  %v1348_v57 = vunpack.c.h.bf16 %v1467_v46 }
 0x1b3   : > { %v1369_v12 = vpack.c.bf16 %v805_v0, %v804_v62  ;;  %v1409_v13 = vpack.c.bf16 %v821_v1, %v820_v63 }
 0x1b4   : > { %v1364_v16 = vpack.c.bf16 %v803_v7, %v802_v4  ;;  %v1404_v17 = vpack.c.bf16 %v819_v8, %v818_v6 }
 0x1b5   : > { %1471 = vst [vmem:[%s2292_s24 + $0x8] sm:$0xff] %v1369_v12   ;;  %1479 = vst [vmem:[%s2292_s24 + $0x48] sm:$0xff] %v1409_v13  }
 0x1b6   : > { %1365 = vst [vmem:[%s2292_s24] sm:$0xff] %v1364_v16   ;;  %1478 = vst [vmem:[%s2292_s24 + $0x40] sm:$0xff] %v1404_v17   ;;  %v1532_v22 = vpop.f32.mrb[4].mxu0  ;;  %v1548_v23 = vpop.f32.mrb[4].mxu1 }
 0x1b7   : > { %v627_v28 = vpop.f32.mrb[5].mxu0  ;;  %v691_v29 = vpop.f32.mrb[5].mxu1  ;;  %v808_v32 = vadd.f32 %v1532_v22, %v1311_v18  ;;  %v824_v33 = vadd.f32 %v1548_v23, %v1343_v19  ;;  %v1327_v18 = vunpack.c.l.bf16 %v1462_v9  ;;  %v1359_v19 = vunpack.c.l.bf16 %v1470_v10 }
 0x1b8   : > { %v1533_v30 = vpop.f32.mrb[6].mxu0  ;;  %v1549_v31 = vpop.f32.mrb[6].mxu1  ;;  %v806_v38 = vadd.f32 %v1307_v24, %v627_v28  ;;  %v822_v39 = vadd.f32 %v1339_v25, %v691_v29  ;;  %v1323_v24 = vunpack.c.l.bf16 %v1461_v14  ;;  %v1355_v25 = vunpack.c.l.bf16 %v1469_v15 }
 0x1b9   : > { %v809_v34 = vadd.f32 %v1533_v30, %v1312_v20  ;;  %v825_v35 = vadd.f32 %v1549_v31, %v1344_v21  ;;  %v630_v36 = vpop.f32.mrb[7].mxu0  ;;  %v694_v37 = vpop.f32.mrb[7].mxu1  ;;  %v1328_v20 = vunpack.c.h.bf16 %v1462_v9  ;;  %v1360_v21 = vunpack.c.h.bf16 %v1470_v10 }
 0x1ba   : > { %v807_v40 = vadd.f32 %v1308_v26, %v630_v36  ;;  %v823_v5 = vadd.f32 %v1340_v27, %v694_v37  ;;  %v1324_v26 = vunpack.c.h.bf16 %v1461_v14  ;;  %v1356_v27 = vunpack.c.h.bf16 %v1469_v15 }
 0x1bb   : > { %v1379_v43 = vpack.c.bf16 %v809_v34, %v808_v32  ;;  %v1419_v44 = vpack.c.bf16 %v825_v35, %v824_v33 }
 0x1bc   : > { %v1374_v11 = vpack.c.bf16 %v807_v40, %v806_v38  ;;  %v1414_v47 = vpack.c.bf16 %v823_v5, %v822_v39 }
 0x1bd   : > { %1473 = vst [vmem:[%s2292_s24 + $0x18] sm:$0xff] %v1379_v43   ;;  %1481 = vst [vmem:[%s2292_s24 + $0x58] sm:$0xff] %v1419_v44  }
 0x1be   : > { %1472 = vst [vmem:[%s2292_s24 + $0x10] sm:$0xff] %v1374_v11   ;;  %1480 = vst [vmem:[%s2292_s24 + $0x50] sm:$0xff] %v1414_v47   ;;  %v1536_v52 = vpop.f32.mrb[8].mxu0  ;;  %v1552_v53 = vpop.f32.mrb[8].mxu1 }
 0x1bf   : > { %v643_v58 = vpop.f32.mrb[9].mxu0  ;;  %v707_v59 = vpop.f32.mrb[9].mxu1  ;;  %v812_v62 = vadd.f32 %v1536_v52, %v1319_v48  ;;  %v828_v63 = vadd.f32 %v1552_v53, %v1351_v49 }
 0x1c0   : > { %v1537_v60 = vpop.f32.mrb[10].mxu0  ;;  %v1553_v61 = vpop.f32.mrb[10].mxu1  ;;  %v810_v4 = vadd.f32 %v1315_v54, %v643_v58  ;;  %v826_v6 = vadd.f32 %v1347_v55, %v707_v59 }
 0x1c1   : > { %v813_v0 = vadd.f32 %v1537_v60, %v1320_v50  ;;  %v829_v1 = vadd.f32 %v1553_v61, %v1352_v51  ;;  %v646_v2 = vpop.f32.mrb[11].mxu0  ;;  %v710_v3 = vpop.f32.mrb[11].mxu1 }
 0x1c2   : > { %v811_v7 = vadd.f32 %v1316_v56, %v646_v2  ;;  %v827_v8 = vadd.f32 %v1348_v57, %v710_v3 }
 0x1c3   : > { %v1389_v12 = vpack.c.bf16 %v813_v0, %v812_v62  ;;  %v1429_v13 = vpack.c.bf16 %v829_v1, %v828_v63 }
 0x1c4   : > { %v1384_v16 = vpack.c.bf16 %v811_v7, %v810_v4  ;;  %v1424_v17 = vpack.c.bf16 %v827_v8, %v826_v6 }
 0x1c5   : > { %1475 = vst [vmem:[%s2292_s24 + $0x28] sm:$0xff] %v1389_v12   ;;  %1483 = vst [vmem:[%s2292_s24 + $0x68] sm:$0xff] %v1429_v13  }
 0x1c6   : > { %1474 = vst [vmem:[%s2292_s24 + $0x20] sm:$0xff] %v1384_v16   ;;  %1482 = vst [vmem:[%s2292_s24 + $0x60] sm:$0xff] %v1424_v17   ;;  %v1540_v22 = vpop.f32.mrb[12].mxu0  ;;  %v1556_v23 = vpop.f32.mrb[12].mxu1 }
 0x1c7   : > { %v659_v28 = vpop.f32.mrb[13].mxu0  ;;  %v723_v29 = vpop.f32.mrb[13].mxu1  ;;  %v816_v32 = vadd.f32 %v1540_v22, %v1327_v18  ;;  %v832_v33 = vadd.f32 %v1556_v23, %v1359_v19 }
 0x1c8   : > { %v1541_v30 = vpop.f32.mrb[14].mxu0  ;;  %v1557_v31 = vpop.f32.mrb[14].mxu1  ;;  %v814_v38 = vadd.f32 %v1323_v24, %v659_v28  ;;  %v830_v39 = vadd.f32 %v1355_v25, %v723_v29 }
 0x1c9   : > { %v817_v34 = vadd.f32 %v1541_v30, %v1328_v20  ;;  %v833_v35 = vadd.f32 %v1557_v31, %v1360_v21  ;;  %v662_v36 = vpop.f32.mrb[15].mxu0  ;;  %v726_v37 = vpop.f32.mrb[15].mxu1 }
 0x1ca   : > { %v815_v40 = vadd.f32 %v1324_v26, %v662_v36  ;;  %v831_v5 = vadd.f32 %v1356_v27, %v726_v37 }
 0x1cb   : > { %v1399_v41 = vpack.c.bf16 %v817_v34, %v816_v32  ;;  %v1439_v42 = vpack.c.bf16 %v833_v35, %v832_v33 }
 0x1cc   : > { %v1394_v43 = vpack.c.bf16 %v815_v40, %v814_v38  ;;  %v1434_v44 = vpack.c.bf16 %v831_v5, %v830_v39 }
 0x1cd   : > { %1477 = vst [vmem:[%s2292_s24 + $0x38] sm:$0xff] %v1399_v41   ;;  %1485 = vst [vmem:[%s2292_s24 + $0x78] sm:$0xff] %v1439_v42  }
 0x1ce   : > { %1476 = vst [vmem:[%s2292_s24 + $0x30] sm:$0xff] %v1394_v43   ;;  %1484 = vst [vmem:[%s2292_s24 + $0x70] sm:$0xff] %v1434_v44  }
 0x1cf   : > { %1825 = shalt.err (!%p1822_p4)
}
 0x1d0   : > { %s1826_s11 = scalar_lea.hbm %s2319_s12, 2048  ;;  %s1830_s9 = scalar_lea.hbm %s2374_s5, 4096 }
 0x1d1   : > { %p1827_p0 = scmp.ne.s32.totalorder %s2319_s12, %s1826_s11  ;;  %p1831_p8 = scmp.lt.u32.totalorder %s2319_s12, %s2374_s5 }
 0x1d2   : > { %p1832_p3 = scmp.lt.u32.totalorder %s1830_s9, %s1826_s11  ;;  %p1834_p10 = scmp.lt.u32.totalorder %s1826_s11, %s2319_s12 }
 0x1d3   : > { %p1828_p12 = pnand %p1827_p0, %p2078_p6 }
 0x1d4   : > { %p1833_p7 = por %p1832_p3, %p1831_p8 }
 0x1d5   : > { %p1829_p11 = pneg %p1828_p12 }
 0x1d6   : > { %p1835_p13 = por %p1834_p10, %p1833_p7 }
 0x1d8   : > { %p1836_p5 = pnand %p1835_p13, %p1829_p11 }
 0x1da   : > { %1839 = shalt.err (!%p1836_p5)
}
 0x1db   : > { %s1900_s26 = smov 64   ;;  %s1901_s23 = smov 4  }
 0x1dc   : > { %1590 = dma.vmem_to_hbm [thread:$0]  (%p2078_p6), %s2321_s17, 2048, %s2319_s12, %s995_s29, %s1900_s26, %s1900_s26, %s1901_s23  }
 0x1dd PF: > { %s1023_s3 = sand.u32 1, %s1878_s18   ;;  %p2406_p9 = scmp.ne.s32.totalorder %s2387_s25, 0 }
 0x1de   : > { %p2407_p2 = scmp.ge.s32.totalorder %s1890_s21, 2  ;;  %s1024_s24 = scalar_lea.sflag [#allocation4], %s1023_s3 }
 0x1e0   : > { %p1610_p1 = pnand %p2407_p2, %p2406_p9 }
 0x1e2   : > { %1873 = dma.done.wait (!%p1610_p1), %s1024_s24, 2048  }
 0x1e3   : > { %1875 = vsyncadd (!%p1610_p1), %s1024_s24, 4294965248  ;;  %p22_p4 = scmp.ge.s32.totalorder %s2064_s16, 4   ;;  %s2408_s18 = smov %s1882_s19 }
 0x1e4   : > { %s2409_s19 = smov %s1886_s20  ;;  %s2410_s20 = smov %s2074_s27 }
 0x1e5   : > { %s2411_s21 = smov %s2064_s16  ;;  %24 = sbr.rel (!%p22_p4) target bundleno = 13 (0xd), region = 110 }
 0x1ec   :  { %1029 = vsyncpa [#allocation3], 1 }
 0x1ed   :  { %1031 = vsyncpa [#allocation3 + $0x1], 1 }
 0x1ee   :  { %1032 = vsyncpa [#allocation6], 1 }
 0x1ef   :  { %1034 = vsyncpa [#allocation6 + $0x1], 1 }
 0x1f0   :  { %1035 = vsyncpa [#allocation9], 1 }
 0x1f1   :  { %1036 = vsyncpa [#allocation4], 1 }
 0x1f2   :  { %1038 = vsyncpa [#allocation4 + $0x1], 1 }

// kernel: dense_block_forward.8
= control target key start
LH: loop header
LB: loop body
LE: loop exit
PB: predicated region body
PF: predicated region fallthrough
CT: control target
= control target key end

     0   :  { %12 = vsyncpa [#allocation4], 0  ;;  %s5755_s0 = inlined_call_operand.hbm [shape: bf16[2,16,16,128], index: 0, kind: input, shape index: {}]   ;;  %s5756_s1 = inlined_call_operand.hbm [shape: f32[1,128], index: 1, kind: input, shape index: {}]   ;;  %s5757_s2 = inlined_call_operand.hbm [shape: f32[1,128], index: 2, kind: input, shape index: {}]   ;;  %s5758_s3 = inlined_call_operand.hbm [shape: bf16[4,256,128], index: 3, kind: input, shape index: {}]   ;;  %s5759_s4 = inlined_call_operand.hbm [shape: bf16[128,128], index: 4, kind: input, shape index: {}]   ;;  %s5760_s5 = inlined_call_operand.hbm [shape: bf16[2,16,16,128], index: 5, kind: output, shape index: {0}]   ;;  %s5761_s6 = inlined_call_operand.hbm [shape: f32[2,2,128], index: 6, kind: output, shape index: {1}]  }
   0x1   :  { %14 = vsyncpa [#allocation4 + $0x1], 0 }
   0x2   :  { %15 = vsyncpa [#allocation7], 0 }
   0x3   :  { %16 = vsyncpa [#allocation10], 0 }
   0x4   :  { %17 = vsyncpa [#allocation5], 0 }
   0x5   :  { %19 = vsyncpa [#allocation5 + $0x1], 0 }
   0x6   :  { %20 = vsyncpa [#allocation14], 0 }
   0x7   :  { %22 = vsyncpa [#allocation14 + $0x1], 0  ;;  %s4389_s21 = smov 0   ;;  %s4391_s22 = smov 0  }
   0x8   :  { %s4393_s23 = smov 0   ;;  %s4395_s24 = smov 0  }
   0x9 LB: > { %s4410_s25 = sadd.s32 4294967295, %s4340_s24   ;;  %s3023_s26 = sadd.s32 4294967294, %s4340_s24   ;;  %s4340_s24 = sphi %s4395_s24, %s5817_s24   ;;  %s4336_s23 = sphi %s4393_s23, %s5816_s23   ;;  %s4332_s22 = sphi %s4391_s22, %s5815_s22   ;;  %s4328_s21 = sphi %s4389_s21, %s5814_s21  }
   0xa   : > { %p48_p0 = scmp.ne.s32.totalorder %s4332_s22, %s4328_s21  ;;  %p5762_p1 = scmp.eq.s32.totalorder %s4410_s25, 0 }
   0xb   : > { %p162_p3 = scmp.eq.s32.totalorder %s3023_s26, 1  ;;  %p3024_p5 = scmp.ge.s32.totalorder %s4340_s24, 1 }
   0xc   : > { %p4419_p4 = por %p5762_p1, %p48_p0  ;;  %p195_p7 = scmp.lt.s32.totalorder %s4340_s24, 3 }
   0xd   : > { %p4424_p6 = por %p162_p3, %p48_p0  ;;  %s4342_s30 = smov [#allocation6]  }
   0xe   : > { %s5779_s27 = scalar_select %p4419_p4, 1, 0 }
   0xf   : > { %s5780_s28 = scalar_select %p4424_p6, 1, 0 }
  0x10   : > { %p4430_p9 = pnand %p3024_p5, %p195_p7  ;;  %s208_s7 = sshll.u32 %s4342_s30, 4  ;;  %s209_s7 = int_to_ptr.vmem [resolvable:$true] %s208_s7 }
  0x11   : > { %s4343_s8 = smov [#allocation9]   ;;  %s4344_s11 = smov [#allocation8]  }
  0x12   : > { %s5781_s29 = scalar_select %p4430_p9, 1, 0 }
  0x13   : > { %p3921_p11 = pneg %p4430_p9  ;;  %s229_s9 = sshll.u32 %s4343_s8, 4  ;;  %s4443_s9 = int_to_ptr.vmem [resolvable:$true] %s229_s9 }
  0x14   : > { %s4445_s12 = sshll.u32 %s4344_s11, 4  ;;  %s4092_s15 = scalar_lea.hbm %s5756_s1, 16  ;;  %s220_s12 = int_to_ptr.vmem [resolvable:$true] %s4445_s12 }
  0x15   : > { %p4439_p12 = pnand %p3921_p11, %p5762_p1  ;;  %p4093_p13 = scmp.ne.s32.totalorder %s5756_s1, %s4092_s15 }
  0x16   : > { %p4099_p7 = scmp.lt.u32.totalorder %s4092_s15, %s5756_s1 }
  0x17   : > { %p4455_p0 = pneg %p4439_p12 }
  0x19   : > { %p4095_p3 = pnand %p4455_p0, %p4093_p13 }
  0x1b   : > { %p4096_p5 = pneg %p4095_p3 }
  0x1d   : > { %p4101_p11 = pnand %p4099_p7, %p4096_p5 }
  0x1f   : > { %4104 = shalt.err (!%p4101_p11)
}
  0x20   : > { %s4105_s26 = scalar_lea.vmem %s209_s7, 16  ;;  %s4112_s30 = scalar_lea.vmem %s209_s7, 32 }
  0x21   : > { %p4106_p10 = scmp.ne.s32.totalorder %s209_s7, %s4105_s26  ;;  %p4113_p2 = scmp.lt.s32.totalorder %s209_s7, %s209_s7 }
  0x22   : > { %p4114_p6 = scmp.lt.s32.totalorder %s4112_s30, %s4105_s26 }
  0x23   : > { %p4108_p8 = pnand %p4106_p10, %p4455_p0 }
  0x24   : > { %p4115_p4 = por %p4114_p6, %p4113_p2 }
  0x25   : > { %p4109_p1 = pneg %p4108_p8 }
  0x27   : > { %p4116_p9 = pnand %p4115_p4, %p4109_p1 }
  0x29   : > { %4119 = shalt.err (!%p4116_p9)
}
  0x2a   : > { %3924 = dma.hbm_to_vmem [thread:$0]  (!%p4439_p12), %s5756_s1, 16, %s209_s7, [#allocation7]  }
  0x2b   : > { %s4120_s15 = scalar_lea.hbm %s5758_s3, 8192 }
  0x2c   : > { %p4121_p8 = scmp.ne.s32.totalorder %s5758_s3, %s4120_s15  ;;  %p4127_p1 = scmp.lt.u32.totalorder %s4120_s15, %s5758_s3 }
  0x2e   : > { %p4123_p10 = pnand %p4121_p8, %p4455_p0 }
  0x30   : > { %p4124_p2 = pneg %p4123_p10 }
  0x32   : > { %p4129_p4 = pnand %p4127_p1, %p4124_p2 }
  0x34   : > { %4132 = shalt.err (!%p4129_p4)
}
  0x35   : > { %s4133_s7 = scalar_lea.vmem %s4443_s9, 8192  ;;  %p4141_p3 = scmp.lt.s32.totalorder %s4443_s9, %s4443_s9 }
  0x36   : > { %p4134_p6 = scmp.ne.s32.totalorder %s4443_s9, %s4133_s7  ;;  %p4142_p5 = scmp.lt.s32.totalorder %s4133_s7, %s4133_s7 }
  0x38   : > { %p4136_p9 = pnand %p4134_p6, %p4455_p0  ;;  %p4143_p7 = por %p4142_p5, %p4141_p3 }
  0x3a   : > { %p4137_p13 = pneg %p4136_p9 }
  0x3c   : > { %p4144_p11 = pnand %p4143_p7, %p4137_p13 }
  0x3e   : > { %4147 = shalt.err (!%p4144_p11)
}
  0x3f   : > { %s4345_s26 = smov 64   ;;  %s4346_s30 = smov 4  }
  0x40   : > { %3930 = dma.hbm_to_vmem [thread:$0]  (!%p4439_p12), %s5758_s3, 8192, %s4443_s9, [#allocation10], %s4345_s26, %s4345_s26, %s4346_s30  }
  0x41   : > { %s4148_s15 = scalar_lea.hbm %s5757_s2, 16 }
  0x42   : > { %p4149_p8 = scmp.ne.s32.totalorder %s5757_s2, %s4148_s15  ;;  %p4155_p1 = scmp.lt.u32.totalorder %s4148_s15, %s5757_s2 }
  0x44   : > { %p4151_p10 = pnand %p4149_p8, %p4455_p0 }
  0x46   : > { %p4152_p2 = pneg %p4151_p10 }
  0x48   : > { %p4157_p4 = pnand %p4155_p1, %p4152_p2 }
  0x4a   : > { %4160 = shalt.err (!%p4157_p4)
}
  0x4b   : > { %s4161_s7 = scalar_lea.vmem %s220_s12, 16  ;;  %s4168_s9 = scalar_lea.vmem %s220_s12, 32 }
  0x4c   : > { %p4162_p6 = scmp.ne.s32.totalorder %s220_s12, %s4161_s7  ;;  %p4169_p3 = scmp.lt.s32.totalorder %s220_s12, %s220_s12 }
  0x4d   : > { %p4170_p5 = scmp.lt.s32.totalorder %s4168_s9, %s4161_s7 }
  0x4e   : > { %p4164_p9 = pnand %p4162_p6, %p4455_p0 }
  0x4f   : > { %p4171_p7 = por %p4170_p5, %p4169_p3 }
  0x50   : > { %p4165_p13 = pneg %p4164_p9 }
  0x52   : > { %p4172_p11 = pnand %p4171_p7, %p4165_p13 }
  0x54   : > { %4175 = shalt.err (!%p4172_p11)
}
  0x55   : > { %3927 = dma.hbm_to_vmem [thread:$0]  (!%p4439_p12), %s5757_s2, 16, %s220_s12, [#allocation7]  }
  0x56   : > { %s4347_s13 = smov [#allocation11]   ;;  %s4176_s17 = scalar_lea.hbm %s5759_s4, 1024 }
  0x57   : > { %s242_s14 = sshll.u32 %s4347_s13, 4  ;;  %p4177_p8 = scmp.ne.s32.totalorder %s5759_s4, %s4176_s17  ;;  %s243_s14 = int_to_ptr.vmem [resolvable:$true] %s242_s14 }
  0x58   : > { %p4183_p1 = scmp.lt.u32.totalorder %s4176_s17, %s5759_s4 }
  0x59   : > { %p4179_p10 = pnand %p4177_p8, %p4455_p0 }
  0x5b   : > { %p4180_p2 = pneg %p4179_p10 }
  0x5d   : > { %p4185_p4 = pnand %p4183_p1, %p4180_p2 }
  0x5f   : > { %4188 = shalt.err (!%p4185_p4)
}
  0x60   : > { %s4189_s12 = scalar_lea.vmem %s243_s14, 1024  ;;  %p4197_p3 = scmp.lt.s32.totalorder %s243_s14, %s243_s14 }
  0x61   : > { %p4190_p6 = scmp.ne.s32.totalorder %s243_s14, %s4189_s12  ;;  %p4198_p5 = scmp.lt.s32.totalorder %s4189_s12, %s4189_s12 }
  0x63   : > { %p4192_p9 = pnand %p4190_p6, %p4455_p0  ;;  %p4199_p7 = por %p4198_p5, %p4197_p3 }
  0x65   : > { %p4193_p13 = pneg %p4192_p9 }
  0x67   : > { %p4200_p11 = pnand %p4199_p7, %p4193_p13 }
  0x69   : > { %4203 = shalt.err (!%p4200_p11)
}
  0x6a   : > { %3933 = dma.hbm_to_vmem [thread:$0]  (!%p4439_p12), %s5759_s4, 1024, %s243_s14, [#allocation10], %s4345_s26, %s4345_s26, %s4346_s30  }
  0x6b   : > { %s4538_s18 = sadd.s32 1, %s4340_s24   ;;  %s35_s10 = sadd.s32 1, %s4336_s23 }
  0x6c   : > { %s32_s13 = ssub.s32 %s4340_s24, %s4538_s18  ;;  %p42_p0 = scmp.ne.s32.totalorder %s4336_s23, %s4332_s22 }
  0x6d   : > { %p33_p8 = scmp.eq.s32.totalorder %s32_s13, 0  ;;  %p43_p10 = scmp.eq.s32.totalorder %s4340_s24, 0 }
  0x6e   : > { %p5784_p2 = scmp.eq.s32.totalorder %s4410_s25, 1  ;;  %p3949_p4 = scmp.lt.s32.totalorder %s4340_s24, 2 }
  0x6f   : > { %s4554_s16 = scalar_select %p33_p8, %s4336_s23, %s35_s10  }
  0x70   : > { %p4548_p1 = por %p5784_p2, %p42_p0  ;;  %p44_p6 = por %p43_p10, %p42_p0 }
  0x71   : > { %s256_s17 = sand.u32 1, %s4336_s23   ;;  %s3155_s14 = sshll.u32 %s4340_s24, 11 }
  0x72   : > { %s3030_s19 = sshll.u32 %s256_s17, 7  ;;  %s4561_s9 = scalar_lea.hbm %s5755_s0, %s3155_s14 }
  0x73   : > { %s260_s12 = scalar_lea.vmem [#allocation3], %s3030_s19  ;;  %p4565_p12 = pnand %p3949_p4, %p44_p6 }
  0x74   : > { %s267_s8 = sshll.u32 %s260_s12, 4  ;;  %s4569_s10 = scalar_lea.sflag [#allocation4], %s256_s17  ;;  %s4563_s8 = int_to_ptr.vmem [resolvable:$true] %s267_s8 }
  0x75   : > { %s4204_s13 = scalar_lea.hbm %s4561_s9, 2048  ;;  %p4206_p13 = pneg %p4565_p12 }
  0x76   : > { %p4205_p9 = scmp.ne.s32.totalorder %s4561_s9, %s4204_s13  ;;  %s4209_s20 = scalar_lea.hbm %s5755_s0, 4096 }
  0x77   : > { %p4210_p7 = scmp.lt.u32.totalorder %s4561_s9, %s5755_s0  ;;  %p4211_p11 = scmp.lt.u32.totalorder %s4209_s20, %s4204_s13 }
  0x78   : > { %p4207_p3 = pnand %p4206_p13, %p4205_p9  ;;  %p4213_p8 = scmp.lt.u32.totalorder %s4204_s13, %s4561_s9 }
  0x79   : > { %p4212_p0 = por %p4211_p11, %p4210_p7 }
  0x7a   : > { %p4208_p5 = pneg %p4207_p3 }
  0x7b   : > { %p4214_p10 = por %p4213_p8, %p4212_p0 }
  0x7d   : > { %p4215_p2 = pnand %p4214_p10, %p4208_p5 }
  0x7f   : > { %4218 = shalt.err (!%p4215_p2)
}
  0x80   : > { %s4219_s17 = scalar_lea.vmem %s4563_s8, 2048  ;;  %s4348_s19 = smov [#allocation3]  }
  0x81   : > { %p4220_p4 = scmp.ne.s32.totalorder %s4563_s8, %s4219_s17  ;;  %s4224_s14 = sshll.u32 %s4348_s19, 4  ;;  %s4225_s14 = int_to_ptr.vmem [resolvable:$false] %s4224_s14 }
  0x82   : > { %s4226_s7 = scalar_lea.vmem %s4225_s14, 4096  ;;  %p4227_p3 = scmp.lt.s32.totalorder %s4563_s8, %s4225_s14 }
  0x83   : > { %p4222_p6 = pnand %p4220_p4, %p4206_p13  ;;  %p4228_p7 = scmp.lt.s32.totalorder %s4226_s7, %s4219_s17 }
  0x85   : > { %p4223_p9 = pneg %p4222_p6  ;;  %p4229_p11 = por %p4228_p7, %p4227_p3 }
  0x87   : > { %p4230_p0 = pnand %p4229_p11, %p4223_p9 }
  0x89   : > { %4233 = shalt.err (!%p4230_p0)
}
  0x8a   : > { %3937 = dma.hbm_to_vmem [thread:$0]  (!%p4565_p12), %s4561_s9, 2048, %s4563_s8, %s4569_s10, %s4345_s26, %s4345_s26, %s4346_s30  }
  0x8b   : > { %p5787_p13 = scmp.ne.s32.totalorder %s5781_s29, 0 }
  0x8c   : > { %s4603_s13 = sand.u32 (!%p5787_p13), 1, %s4332_s22   ;;  %p5788_p5 = scmp.ne.s32.totalorder (!%p5787_p13), %s5779_s27, 0 }
  0x8d   : > { %279 = sbr.rel (%p5787_p13) target bundleno = 876 (0x36c), region = 40  ;;  %s3034_s20 = sshll.u32 (!%p5787_p13), %s4603_s13, 7 }
  0x8e   : > { %s282_s12 = scalar_lea.sflag (!%p5787_p13), [#allocation4], %s4603_s13  ;;  %s4609_s11 = scalar_lea.vmem (!%p5787_p13), [#allocation3], %s3034_s20 }
  0x94   : > { %4307 = dma.done.wait (%p5788_p5), %s282_s12, 2048  }
  0x95   : > { %4309 = vsyncadd (%p5788_p5), %s282_s12, 4294965248  ;;  %p5789_p12 = scmp.eq.s32.totalorder %s4410_s25, 0 }
  0x97   : > { %4311 = dma.done.wait (%p5789_p12), [#allocation7], 32   ;;  %p5790_p8 = pmov %p5789_p12 }
  0x99   : > { %4313 = vsyncadd (%p5790_p8), [#allocation7], 4294967264  ;;  %p5791_p10 = pmov %p5790_p8 }
  0x9a   : > { %p5792_p2 = pmov %p5790_p8 }
  0x9b   : > { %4315 = dma.done.wait (%p5791_p10), [#allocation10], 9216  }
  0x9c   : > { %4317 = vsyncadd (%p5792_p2), [#allocation10], 4294958080  ;;  %s3040_s27 = sshll.u32 %s4603_s13, 1  ;;  %v3190_v0 = vld [vmem:[%s4609_s11] sm:$0xff]   ;;  %v3333_v1 = vld [vmem:[%s4609_s11 + $0x8] sm:$0xff]   ;;  %s4738_s29 = scalar_lea.vmem [#allocation12], %s3034_s20 }
  0x9d   : > { %v3334_v2 = vld [vmem:[%s4609_s11 + $0x10] sm:$0xff]   ;;  %v3191_v3 = vunpack.c.l.bf16 %v3190_v0  ;;  %v3192_v4 = vunpack.c.h.bf16 %v3190_v0  ;;  %v3195_v5 = vunpack.c.l.bf16 %v3333_v1  ;;  %v3196_v6 = vunpack.c.h.bf16 %v3333_v1  ;;  %v3335_v7 = vld [vmem:[%s4609_s11 + $0x18] sm:$0xff]   ;;  %v3336_v8 = vld [vmem:[%s4609_s11 + $0x20] sm:$0xff]   ;;  %s4742_s26 = scalar_lea.vmem [#allocation13], %s3040_s27  ;;  %p5793_p4 = scmp.ne.s32.totalorder %s4410_s25, 0 }
  0x9e   : > { %v3337_v9 = vld [vmem:[%s4609_s11 + $0x28] sm:$0xff]   ;;  %v3199_v10 = vunpack.c.l.bf16 %v3334_v2  ;;  %v3200_v11 = vunpack.c.h.bf16 %v3334_v2  ;;  %v3203_v12 = vunpack.c.l.bf16 %v3335_v7  ;;  %v3204_v13 = vunpack.c.h.bf16 %v3335_v7  ;;  %v3338_v14 = vld [vmem:[%s4609_s11 + $0x30] sm:$0xff]   ;;  %v3339_v15 = vld [vmem:[%s4609_s11 + $0x38] sm:$0xff]  }
  0x9f   : > { %v3340_v16 = vld [vmem:[%s4609_s11 + $0x40] sm:$0xff]   ;;  %v3207_v17 = vunpack.c.l.bf16 %v3336_v8  ;;  %v3208_v18 = vunpack.c.h.bf16 %v3336_v8  ;;  %v3211_v19 = vunpack.c.l.bf16 %v3337_v9  ;;  %v3212_v20 = vunpack.c.h.bf16 %v3337_v9  ;;  %v3341_v21 = vld [vmem:[%s4609_s11 + $0x48] sm:$0xff]   ;;  %v3342_v22 = vld [vmem:[%s4609_s11 + $0x50] sm:$0xff]  }
  0xa0   : > { %v3343_v23 = vld [vmem:[%s4609_s11 + $0x58] sm:$0xff]   ;;  %v3215_v24 = vunpack.c.l.bf16 %v3338_v14  ;;  %v3216_v25 = vunpack.c.h.bf16 %v3338_v14  ;;  %v3219_v26 = vunpack.c.l.bf16 %v3339_v15  ;;  %v3220_v27 = vunpack.c.h.bf16 %v3339_v15  ;;  %v3344_v28 = vld [vmem:[%s4609_s11 + $0x60] sm:$0xff]   ;;  %v3345_v29 = vld [vmem:[%s4609_s11 + $0x68] sm:$0xff]  }
  0xa1   : > { %v3223_v30 = vunpack.c.l.bf16 %v3340_v16  ;;  %v3224_v31 = vunpack.c.h.bf16 %v3340_v16  ;;  %v3227_v32 = vunpack.c.l.bf16 %v3341_v21  ;;  %v3228_v33 = vunpack.c.h.bf16 %v3341_v21  ;;  %v3346_v34 = vld [vmem:[%s4609_s11 + $0x70] sm:$0xff]   ;;  %v3347_v35 = vld [vmem:[%s4609_s11 + $0x78] sm:$0xff]   ;;  %v3041_v40 = vld [vmem:[#allocation6] ss:$0 sm:$0xff] }
  0xa2   : > { %v3231_v36 = vunpack.c.l.bf16 %v3342_v22  ;;  %v3232_v37 = vunpack.c.h.bf16 %v3342_v22  ;;  %v3235_v38 = vunpack.c.l.bf16 %v3343_v23  ;;  %v3236_v39 = vunpack.c.h.bf16 %v3343_v23  ;;  %v3042_v9 = vld [vmem:[#allocation8] ss:$0 sm:$0xff] }
  0xa3   : > { %v3239_v41 = vunpack.c.l.bf16 %v3344_v28  ;;  %v3240_v42 = vunpack.c.h.bf16 %v3344_v28  ;;  %v3243_v43 = vunpack.c.l.bf16 %v3345_v29  ;;  %v3244_v44 = vunpack.c.h.bf16 %v3345_v29 }
  0xa4   : > { %v3247_v45 = vunpack.c.l.bf16 %v3346_v34  ;;  %v3248_v46 = vunpack.c.h.bf16 %v3346_v34  ;;  %v3251_v47 = vunpack.c.l.bf16 %v3347_v35  ;;  %v3252_v48 = vunpack.c.h.bf16 %v3347_v35 }
  0xa5   : > { %v407_v49 = vmul.f32 %v3191_v3, %v3041_v40  ;;  %v408_v50 = vmul.f32 %v3192_v4, %v3041_v40  ;;  %v409_v51 = vmul.f32 %v3195_v5, %v3041_v40  ;;  %v410_v52 = vmul.f32 %v3196_v6, %v3041_v40 }
  0xa6   : > { %v411_v53 = vmul.f32 %v3199_v10, %v3041_v40  ;;  %v412_v54 = vmul.f32 %v3200_v11, %v3041_v40  ;;  %v413_v55 = vmul.f32 %v3203_v12, %v3041_v40  ;;  %v414_v56 = vmul.f32 %v3204_v13, %v3041_v40 }
  0xa7   : > { %v415_v57 = vmul.f32 %v3207_v17, %v3041_v40  ;;  %v416_v58 = vmul.f32 %v3208_v18, %v3041_v40  ;;  %v417_v59 = vmul.f32 %v3211_v19, %v3041_v40  ;;  %v418_v60 = vmul.f32 %v3212_v20, %v3041_v40 }
  0xa8   : > { %v419_v61 = vmul.f32 %v3215_v24, %v3041_v40  ;;  %v420_v62 = vmul.f32 %v3216_v25, %v3041_v40  ;;  %v421_v63 = vmul.f32 %v3219_v26, %v3041_v40  ;;  %v422_v0 = vmul.f32 %v3220_v27, %v3041_v40 }
  0xa9   : > { %v423_v1 = vmul.f32 %v3223_v30, %v3041_v40  ;;  %v424_v2 = vmul.f32 %v3224_v31, %v3041_v40  ;;  %v425_v7 = vmul.f32 %v3227_v32, %v3041_v40  ;;  %v426_v8 = vmul.f32 %v3228_v33, %v3041_v40 }
  0xaa   : > { %v427_v3 = vmul.f32 %v3231_v36, %v3041_v40  ;;  %v428_v4 = vmul.f32 %v3232_v37, %v3041_v40  ;;  %v429_v5 = vmul.f32 %v3235_v38, %v3041_v40  ;;  %v430_v6 = vmul.f32 %v3236_v39, %v3041_v40 }
  0xab   : > { %v431_v10 = vmul.f32 %v3239_v41, %v3041_v40  ;;  %v432_v11 = vmul.f32 %v3240_v42, %v3041_v40  ;;  %v433_v12 = vmul.f32 %v3243_v43, %v3041_v40  ;;  %v434_v13 = vmul.f32 %v3244_v44, %v3041_v40 }
  0xac   : > { %v435_v14 = vmul.f32 %v3247_v45, %v3041_v40  ;;  %v436_v15 = vmul.f32 %v3248_v46, %v3041_v40  ;;  %v437_v16 = vmul.f32 %v3251_v47, %v3041_v40  ;;  %v438_v17 = vmul.f32 %v3252_v48, %v3041_v40 }
  0xad   : > { %v4640_v18 = vadd.f32 %v3042_v9, %v407_v49  ;;  %v4642_v19 = vadd.f32 %v3042_v9, %v408_v50  ;;  %v4644_v20 = vadd.f32 %v3042_v9, %v409_v51  ;;  %v4646_v21 = vadd.f32 %v3042_v9, %v410_v52 }
  0xae   : > { %v4648_v22 = vadd.f32 %v3042_v9, %v411_v53  ;;  %v4650_v23 = vadd.f32 %v3042_v9, %v412_v54  ;;  %v4652_v24 = vadd.f32 %v3042_v9, %v413_v55  ;;  %v4654_v25 = vadd.f32 %v3042_v9, %v414_v56 }
  0xaf   : > { %v4656_v26 = vadd.f32 %v3042_v9, %v415_v57  ;;  %v4658_v27 = vadd.f32 %v3042_v9, %v416_v58  ;;  %v4660_v28 = vadd.f32 %v3042_v9, %v417_v59  ;;  %v4662_v29 = vadd.f32 %v3042_v9, %v418_v60 }
  0xb0   : > { %v4664_v30 = vadd.f32 %v3042_v9, %v419_v61  ;;  %v4666_v31 = vadd.f32 %v3042_v9, %v420_v62  ;;  %v4668_v32 = vadd.f32 %v3042_v9, %v421_v63  ;;  %v4670_v33 = vadd.f32 %v3042_v9, %v422_v0 }
  0xb1   : > { %v4672_v34 = vadd.f32 %v3042_v9, %v423_v1  ;;  %v4674_v35 = vadd.f32 %v3042_v9, %v424_v2  ;;  %v4676_v36 = vadd.f32 %v3042_v9, %v425_v7  ;;  %v4678_v37 = vadd.f32 %v3042_v9, %v426_v8 }
  0xb2   : > { %v4680_v38 = vadd.f32 %v3042_v9, %v427_v3  ;;  %v4682_v39 = vadd.f32 %v3042_v9, %v428_v4  ;;  %v4684_v40 = vadd.f32 %v3042_v9, %v429_v5  ;;  %v4686_v41 = vadd.f32 %v3042_v9, %v430_v6 }
  0xb3   : > { %v4688_v42 = vadd.f32 %v3042_v9, %v431_v10  ;;  %v4690_v43 = vadd.f32 %v3042_v9, %v432_v11  ;;  %v4692_v44 = vadd.f32 %v3042_v9, %v433_v12  ;;  %v4694_v45 = vadd.f32 %v3042_v9, %v434_v13 }
  0xb4   : > { %v4696_v46 = vadd.f32 %v3042_v9, %v435_v14  ;;  %v4698_v47 = vadd.f32 %v3042_v9, %v436_v15  ;;  %v4700_v48 = vadd.f32 %v3042_v9, %v437_v16  ;;  %v4702_v49 = vadd.f32 %v3042_v9, %v438_v17 }
  0xb5   : > { %v478_v50 = vmax.f32 %v4640_v18, 0.0  ;;  %v479_v51 = vmax.f32 %v4642_v19, 0.0  ;;  %v480_v52 = vmax.f32 %v4644_v20, 0.0  ;;  %v481_v53 = vmax.f32 %v4646_v21, 0.0 }
  0xb6   : > { %v482_v54 = vmax.f32 %v4648_v22, 0.0  ;;  %v483_v55 = vmax.f32 %v4650_v23, 0.0  ;;  %v484_v56 = vmax.f32 %v4652_v24, 0.0  ;;  %v485_v57 = vmax.f32 %v4654_v25, 0.0  ;;  %513 = sbr.rel (%p5793_p4) target bundleno = 216 (0xd8), region = 64 }
  0xb7   : > { %v5778_v58 = vmax.f32 %v4656_v26, 0.0  ;;  %v5777_v59 = vmax.f32 %v4658_v27, 0.0  ;;  %v5776_v60 = vmax.f32 %v4660_v28, 0.0  ;;  %v5775_v61 = vmax.f32 %v4662_v29, 0.0 }
  0xb8   : > { %v5774_v62 = vmax.f32 %v4664_v30, 0.0  ;;  %v5773_v63 = vmax.f32 %v4666_v31, 0.0  ;;  %v5772_v0 = vmax.f32 %v4668_v32, 0.0  ;;  %v5771_v1 = vmax.f32 %v4670_v33, 0.0 }
  0xb9   : > { %v5770_v2 = vmax.f32 %v4672_v34, 0.0  ;;  %v5769_v7 = vmax.f32 %v4674_v35, 0.0  ;;  %v5768_v8 = vmax.f32 %v4676_v36, 0.0  ;;  %v5767_v3 = vmax.f32 %v4678_v37, 0.0 }
  0xba   : > { %v5766_v6 = vmax.f32 %v4684_v40, 0.0  ;;  %v5765_v9 = vmax.f32 %v4686_v41, 0.0  ;;  %v502_v10 = vmax.f32 %v4688_v42, 0.0  ;;  %v503_v11 = vmax.f32 %v4690_v43, 0.0 }
  0xbb   : > { %v504_v12 = vmax.f32 %v4692_v44, 0.0  ;;  %v505_v13 = vmax.f32 %v4694_v45, 0.0  ;;  %v506_v14 = vmax.f32 %v4696_v46, 0.0  ;;  %v507_v15 = vmax.f32 %v4698_v47, 0.0 }
  0xbc   : > { %v508_v16 = vmax.f32 %v4700_v48, 0.0  ;;  %v509_v17 = vmax.f32 %v4702_v49, 0.0  ;;  %v4349_v5 = vmov (!%p5793_p4), 0.0  }
  0xbd   : > { %514 = vst [vmem:[#allocation2] sm:$0xff] %v4349_v5  ;;  %515 = vst [vmem:[#allocation2 + $0x8] sm:$0xff] %v4349_v5 }
  0xbe   : > { %516 = vst [vmem:[#allocation2 + $0x10] sm:$0x3] %v4349_v5  ;;  %517 = vst [vmem:[#allocation2 + $0x18] sm:$0xff] %v4349_v5 }
  0xbf   : > { %518 = vst [vmem:[#allocation2 + $0x20] sm:$0xff] %v4349_v5  ;;  %519 = vst [vmem:[#allocation2 + $0x28] sm:$0x3] %v4349_v5 }
  0xc0   : > { %520 = vst [vmem:[#allocation2 + $0x30] sm:$0xff] %v4349_v5  ;;  %521 = vst [vmem:[#allocation2 + $0x38] sm:$0xff] %v4349_v5 }
  0xc1   : > { %522 = vst [vmem:[#allocation2 + $0x40] sm:$0x3] %v4349_v5  ;;  %523 = vst [vmem:[#allocation2 + $0x48] sm:$0xff] %v4349_v5 }
  0xc2   : > { %524 = vst [vmem:[#allocation2 + $0x50] sm:$0xff] %v4349_v5  ;;  %525 = vst [vmem:[#allocation2 + $0x58] sm:$0x3] %v4349_v5 }
  0xc3   : > { %526 = vst [vmem:[#allocation2 + $0x60] sm:$0xff] %v4349_v5  ;;  %527 = vst [vmem:[#allocation2 + $0x68] sm:$0xff] %v4349_v5 }
  0xc4   : > { %528 = vst [vmem:[#allocation2 + $0x70] sm:$0x3] %v4349_v5  ;;  %529 = vst [vmem:[#allocation2 + $0x78] sm:$0xff] %v4349_v5 }
  0xc5   : > { %530 = vst [vmem:[#allocation2 + $0x80] sm:$0xff] %v4349_v5  ;;  %531 = vst [vmem:[#allocation2 + $0x88] sm:$0x3] %v4349_v5 }
  0xc6   : > { %532 = vst [vmem:[#allocation2 + $0x90] sm:$0xff] %v4349_v5  ;;  %533 = vst [vmem:[#allocation2 + $0x98] sm:$0xff] %v4349_v5 }
  0xc7   : > { %534 = vst [vmem:[#allocation2 + $0xa0] sm:$0x3] %v4349_v5  ;;  %535 = vst [vmem:[#allocation2 + $0xa8] sm:$0xff] %v4349_v5 }
  0xc8   : > { %536 = vst [vmem:[#allocation2 + $0xb0] sm:$0xff] %v4349_v5  ;;  %537 = vst [vmem:[#allocation2 + $0xb8] sm:$0x3] %v4349_v5 }
  0xc9   : > { %538 = vst [vmem:[#allocation2 + $0xc0] sm:$0xff] %v4349_v5  ;;  %539 = vst [vmem:[#allocation2 + $0xc8] sm:$0xff] %v4349_v5 }
  0xca   : > { %540 = vst [vmem:[#allocation2 + $0xd0] sm:$0x3] %v4349_v5  ;;  %541 = vst [vmem:[#allocation2 + $0xd8] sm:$0xff] %v4349_v5 }
  0xcb   : > { %542 = vst [vmem:[#allocation2 + $0xe0] sm:$0xff] %v4349_v5  ;;  %543 = vst [vmem:[#allocation2 + $0xe8] sm:$0x3] %v4349_v5 }
  0xcc   : > { %544 = vst [vmem:[#allocation2 + $0xf0] sm:$0xff] %v4349_v5  ;;  %545 = vst [vmem:[#allocation2 + $0xf8] sm:$0xff] %v4349_v5 }
  0xcd   : > { %546 = vst [vmem:[#allocation2 + $0x100] sm:$0x3] %v4349_v5  ;;  %547 = vst [vmem:[#allocation2 + $0x108] sm:$0xff] %v4349_v5 }
  0xce   : > { %548 = vst [vmem:[#allocation2 + $0x110] sm:$0xff] %v4349_v5  ;;  %549 = vst [vmem:[#allocation2 + $0x118] sm:$0x3] %v4349_v5 }
  0xcf   : > { %550 = vst [vmem:[#allocation2 + $0x120] sm:$0xff] %v4349_v5  ;;  %551 = vst [vmem:[#allocation2 + $0x128] sm:$0xff] %v4349_v5 }
  0xd0   : > { %552 = vst [vmem:[#allocation2 + $0x130] sm:$0x3] %v4349_v5  ;;  %553 = vst [vmem:[#allocation2 + $0x138] sm:$0xff] %v4349_v5 }
  0xd1   : > { %554 = vst [vmem:[#allocation2 + $0x140] sm:$0xff] %v4349_v5  ;;  %555 = vst [vmem:[#allocation2 + $0x148] sm:$0x3] %v4349_v5 }
  0xd2   : > { %556 = vst [vmem:[#allocation2 + $0x150] sm:$0xff] %v4349_v5  ;;  %557 = vst [vmem:[#allocation2 + $0x158] sm:$0xff] %v4349_v5 }
  0xd3   : > { %558 = vst [vmem:[#allocation2 + $0x160] sm:$0x3] %v4349_v5  ;;  %559 = vst [vmem:[#allocation2 + $0x168] sm:$0xff] %v4349_v5 }
  0xd4   : > { %560 = vst [vmem:[#allocation2 + $0x170] sm:$0xff] %v4349_v5  ;;  %561 = vst [vmem:[#allocation2 + $0x178] sm:$0x3] %v4349_v5 }
  0xd5   : > { %562 = vst [vmem:[#allocation2 + $0x180] sm:$0xff] %v4349_v5  ;;  %563 = vst [vmem:[#allocation2 + $0x188] sm:$0xff] %v4349_v5 }
  0xd6   : > { %564 = vst [vmem:[#allocation2 + $0x190] sm:$0x3] %v4349_v5  ;;  %565 = vst [vmem:[#allocation2 + $0x198] sm:$0xff] %v4349_v5 }
  0xd7   : > { %566 = vst [vmem:[#allocation2 + $0x1a0] sm:$0xff] %v4349_v5  ;;  %567 = vst [vmem:[#allocation2 + $0x1a8] sm:$0x3] %v4349_v5 }
  0xd8 PF: > { %v3996_v4 = vld [vmem:[#allocation9 + $0xc0] sm:$0xff]   ;;  %569 = vst [vmem:[#allocation2 + $0x19] sm:$0xff] %v478_v50  ;;  %570 = vst [vmem:[#allocation2 + $0x21] sm:$0xff] %v479_v51  ;;  %v5794_v42 = vmax.f32 %v4680_v38, 0.0  ;;  %v5795_v43 = vmax.f32 %v4682_v39, 0.0  ;;  %v3998_v45 = vld [vmem:[#allocation9 + $0xc8] sm:$0xff]  }
  0xd9   : > { %593 = vst [vmem:[#allocation2 + $0x139] sm:$0xff] %v502_v10  ;;  %594 = vst [vmem:[#allocation2 + $0x141] sm:$0xff] %v503_v11  ;;  %v3997_v44 = vld [vmem:[#allocation9 + $0x80] sm:$0xff]   ;;  %3363 = vmatprep.subr.bf16.mxu0 %v3996_v4  ;;  %3883 = vmatprep.subr.bf16.mxu1 %v3996_v4  ;;  %v3999_v46 = vld [vmem:[#allocation9 + $0x88] sm:$0xff]   ;;  %s3188_s30 = sshll.u32 %s4410_s25, 11  ;;  %s2867_s9 = sshll.u32 %s4738_s29, 4  ;;  %s5562_s9 = int_to_ptr.vmem [resolvable:$true] %s2867_s9 }
  0xda   : > { %591 = vst [vmem:[#allocation2 + $0x121] sm:$0xff] %v5766_v6  ;;  %592 = vst [vmem:[#allocation2 + $0x129] sm:$0xff] %v5765_v9  ;;  %3364 = vmatpush3.bf16.msra.mxu0 %v3997_v44  ;;  %3891 = vmatpush3.bf16.msra.mxu1 %v3997_v44  ;;  %v4000_v47 = vld [vmem:[#allocation9 + $0xd0] sm:$0xff]   ;;  %v4002_v49 = vld [vmem:[#allocation9 + $0xd8] sm:$0xff]   ;;  %s5560_s17 = scalar_lea.hbm %s5760_s5, %s3188_s30  ;;  %s2849_s19 = scalar_lea.sflag [#allocation5], %s4603_s13 }
  0xdb   : > { %571 = vst [vmem:[#allocation2 + $0x31] sm:$0xff] %v480_v52  ;;  %572 = vst [vmem:[#allocation2 + $0x39] sm:$0xff] %v481_v53  ;;  %3365 = vmatprep.subr.bf16.mxu0 %v3998_v45  ;;  %3884 = vmatprep.subr.bf16.mxu1 %v3998_v45  ;;  %v4001_v48 = vld [vmem:[#allocation9 + $0x90] sm:$0xff]   ;;  %v4003_v5 = vld [vmem:[#allocation9 + $0x98] sm:$0xff]   ;;  %s4234_s14 = scalar_lea.vmem %s5562_s9, 2048  ;;  %s4350_s7 = smov [#allocation12]  }
  0xdc   : > { %595 = vst [vmem:[#allocation2 + $0x151] sm:$0xff] %v504_v12  ;;  %596 = vst [vmem:[#allocation2 + $0x159] sm:$0xff] %v505_v13  ;;  %v4004_v10 = vld [vmem:[#allocation9 + $0xe0] sm:$0xff]   ;;  %v4006_v11 = vld [vmem:[#allocation9 + $0xe8] sm:$0xff]   ;;  %p4235_p6 = scmp.ne.s32.totalorder %s5562_s9, %s4234_s14  ;;  %s4238_s20 = sshll.u32 %s4350_s7, 4  ;;  %s4239_s20 = int_to_ptr.vmem [resolvable:$false] %s4238_s20 }
  0xdd   : > { %573 = vst [vmem:[#allocation2 + $0x49] sm:$0xff] %v482_v54  ;;  %574 = vst [vmem:[#allocation2 + $0x51] sm:$0xff] %v483_v55  ;;  %v4005_v4 = vld [vmem:[#allocation9 + $0xa0] sm:$0xff]   ;;  %v4009_v44 = vld [vmem:[#allocation9 + $0xb0] sm:$0xff]   ;;  %s4240_s12 = scalar_lea.vmem %s4239_s20, 4096  ;;  %p4241_p7 = scmp.lt.s32.totalorder %s5562_s9, %s4239_s20 }
  0xde   : > { %597 = vst [vmem:[#allocation2 + $0x169] sm:$0xff] %v506_v14  ;;  %598 = vst [vmem:[#allocation2 + $0x171] sm:$0xff] %v507_v15  ;;  %3366 = vmatpush3.bf16.msra.mxu0 %v3999_v46  ;;  %3892 = vmatpush3.bf16.msra.mxu1 %v3999_v46  ;;  %v4010_v45 = vld [vmem:[#allocation9 + $0xf8] sm:$0xff]   ;;  %v4016_v6 = vld [vmem:[#allocation9 + $0x48] sm:$0xff]   ;;  %p4236_p9 = pnand %p4235_p6, %p4548_p1  ;;  %p4242_p11 = scmp.lt.s32.totalorder %s4240_s12, %s4234_s14 }
  0xdf   : > { %575 = vst [vmem:[#allocation2 + $0x61] sm:$0xff] %v484_v56  ;;  %576 = vst [vmem:[#allocation2 + $0x69] sm:$0xff] %v485_v57  ;;  %3367 = vmatprep.subr.bf16.mxu0 %v4000_v47  ;;  %3885 = vmatprep.subr.bf16.mxu1 %v4000_v47  ;;  %v761_v12 = vld [vmem:[#allocation2 + $0x18] sm:$0xff]  ;;  %v762_v13 = vld [vmem:[#allocation2 + $0x20] sm:$0xff] }
  0xe0   : > { %599 = vst [vmem:[#allocation2 + $0x181] sm:$0xff] %v508_v16  ;;  %600 = vst [vmem:[#allocation2 + $0x189] sm:$0xff] %v509_v17  ;;  %v785_v14 = vld [vmem:[#allocation2 + $0x138] sm:$0xff]  ;;  %v4810_v15 = vpack.c.bf16 %v762_v13, %v761_v12  ;;  %v786_v16 = vld [vmem:[#allocation2 + $0x140] sm:$0xff]  ;;  %p4237_p3 = pneg %p4236_p9  ;;  %p4243_p0 = por %p4242_p11, %p4241_p7 }
  0xe1   : > { %577 = vst [vmem:[#allocation2 + $0x79] sm:$0xff] %v5778_v58  ;;  %578 = vst [vmem:[#allocation2 + $0x81] sm:$0xff] %v5777_v59  ;;  %v4812_v17 = vpack.c.bf16 %v786_v16, %v785_v14  ;;  %v4011_v46 = vld [vmem:[#allocation9 + $0xb8] sm:$0xff]   ;;  %v729_v47 = vld [vmem:[#allocation2 + $0x2] sm:$0xff] }
  0xe2   : > { %579 = vst [vmem:[#allocation2 + $0x91] sm:$0xff] %v5776_v60  ;;  %580 = vst [vmem:[#allocation2 + $0x99] sm:$0xff] %v5775_v61  ;;  %3368 = vmatpush3.bf16.msra.mxu0 %v4001_v48  ;;  %3893 = vmatpush3.bf16.msra.mxu1 %v4001_v48  ;;  %v730_v48 = vld [vmem:[#allocation2 + $0xa] sm:$0xff]  ;;  %v764_v12 = vld [vmem:[#allocation2 + $0x38] sm:$0xff]  ;;  %p4244_p13 = pnand %p4243_p0, %p4237_p3 }
  0xe3   : > { %581 = vst [vmem:[#allocation2 + $0xa9] sm:$0xff] %v5774_v62  ;;  %582 = vst [vmem:[#allocation2 + $0xb1] sm:$0xff] %v5773_v63  ;;  %3369 = vmatprep.subr.bf16.mxu0 %v4002_v49  ;;  %3886 = vmatprep.subr.bf16.mxu1 %v4002_v49  ;;  %v753_v49 = vld [vmem:[#allocation2 + $0x122] sm:$0xff]  ;;  %v4014_v13 = vld [vmem:[#allocation9] sm:$0xff]   ;;  %v793_v16 = vpack.c.bf16 %v730_v48, %v729_v47 }
  0xe4   : > { %583 = vst [vmem:[#allocation2 + $0xc1] sm:$0xff] %v5772_v0  ;;  %584 = vst [vmem:[#allocation2 + $0xc9] sm:$0xff] %v5771_v1  ;;  %986 = vmatprep.mubr.bf16.mxu0 %v4810_v15  ;;  %1082 = vmatprep.mubr.bf16.mxu1 %v4812_v17  ;;  %v787_v14 = vld [vmem:[#allocation2 + $0x150] sm:$0xff]  ;;  %v788_v9 = vld [vmem:[#allocation2 + $0x158] sm:$0xff] }
  0xe5   : > { %585 = vst [vmem:[#allocation2 + $0xd9] sm:$0xff] %v5770_v2  ;;  %586 = vst [vmem:[#allocation2 + $0xe1] sm:$0xff] %v5769_v7  ;;  %v4818_v7 = vpack.c.bf16 %v788_v9, %v787_v14  ;;  %v732_v2 = vld [vmem:[#allocation2 + $0x22] sm:$0xff]  ;;  %v755_v1 = vld [vmem:[#allocation2 + $0x13a] sm:$0xff] }
  0xe6   : > { %587 = vst [vmem:[#allocation2 + $0xf1] sm:$0xff] %v5768_v8  ;;  %588 = vst [vmem:[#allocation2 + $0xf9] sm:$0xff] %v5767_v3  ;;  %3370 = vmatpush3.bf16.msra.mxu0 %v4003_v5  ;;  %3894 = vmatpush3.bf16.msra.mxu1 %v4003_v5  ;;  %v754_v5 = vld [vmem:[#allocation2 + $0x12a] sm:$0xff]  ;;  %v4017_v8 = vld [vmem:[#allocation9 + $0x8] sm:$0xff]  }
  0xe7   : > { %589 = vst [vmem:[#allocation2 + $0x109] sm:$0xff] %v5794_v42  ;;  %590 = vst [vmem:[#allocation2 + $0x111] sm:$0xff] %v5795_v43  ;;  %3371 = vmatprep.subr.bf16.mxu0 %v4004_v10  ;;  %3887 = vmatprep.subr.bf16.mxu1 %v4004_v10  ;;  %v4007_v42 = vld [vmem:[#allocation9 + $0xa8] sm:$0xff]   ;;  %v4008_v43 = vld [vmem:[#allocation9 + $0xf0] sm:$0xff]  }
  0xe8   : > { %v4012_v10 = vld [vmem:[#allocation9 + $0x40] sm:$0xff]   ;;  %v756_v47 = vld [vmem:[#allocation2 + $0x142] sm:$0xff]  ;;  %v735_v62 = vld [vmem:[#allocation2 + $0x4a] sm:$0xff] }
  0xe9   : > { %v4018_v48 = vld [vmem:[#allocation9 + $0x50] sm:$0xff]   ;;  %v790_v9 = vld [vmem:[#allocation2 + $0x170] sm:$0xff]  ;;  %v758_v63 = vld [vmem:[#allocation2 + $0x15a] sm:$0xff] }
  0xea   : > { %3372 = vmatpush3.bf16.msra.mxu0 %v4005_v4  ;;  %3895 = vmatpush3.bf16.msra.mxu1 %v4005_v4  ;;  %v4013_v4 = vld [vmem:[#allocation9 + $0x140] sm:$0xff]   ;;  %v759_v61 = vld [vmem:[#allocation2 + $0x16a] sm:$0xff]  ;;  %v737_v59 = vld [vmem:[#allocation2 + $0x62] sm:$0xff] }
  0xeb   : > { %3373 = vmatprep.subr.bf16.mxu0 %v4006_v11  ;;  %3888 = vmatprep.subr.bf16.mxu1 %v4006_v11  ;;  %v763_v11 = vld [vmem:[#allocation2 + $0x30] sm:$0xff]  ;;  %v4044_v19 = vld [vmem:[#allocation9 + $0x1d0] sm:$0xff]   ;;  %v4057_v23 = vld [vmem:[#allocation9 + $0x1a8] sm:$0xff]  }
  0xec   : > { %v4816_v3 = vpack.c.bf16 %v764_v12, %v763_v11  ;;  %v806_v11 = vpack.c.bf16 %v756_v47, %v755_v1  ;;  %v4019_v12 = vld [vmem:[#allocation9 + $0x10] sm:$0xff]   ;;  %v757_v0 = vld [vmem:[#allocation2 + $0x152] sm:$0xff] }
  0xed   : > { %v768_v1 = vld [vmem:[#allocation2 + $0x68] sm:$0xff]  ;;  %v774_v18 = vld [vmem:[#allocation2 + $0xb0] sm:$0xff]  ;;  %v778_v22 = vld [vmem:[#allocation2 + $0xe0] sm:$0xff] }
  0xee   : > { %3374 = vmatpush3.bf16.msra.mxu0 %v4007_v42  ;;  %3896 = vmatpush3.bf16.msra.mxu1 %v4007_v42  ;;  %v805_v42 = vpack.c.bf16 %v754_v5, %v753_v49  ;;  %v765_v49 = vld [vmem:[#allocation2 + $0x48] sm:$0xff]  ;;  %v766_v5 = vld [vmem:[#allocation2 + $0x50] sm:$0xff]  ;;  %v780_v24 = vld [vmem:[#allocation2 + $0xf8] sm:$0xff] }
  0xef   : > { %3375 = vmatprep.subr.bf16.mxu0 %v4008_v43  ;;  %3889 = vmatprep.subr.bf16.mxu1 %v4008_v43  ;;  %v4015_v43 = vld [vmem:[#allocation9 + $0x100] sm:$0xff]   ;;  %v4824_v14 = vpack.c.bf16 %v766_v5, %v765_v49  ;;  %v792_v47 = vld [vmem:[#allocation2 + $0x188] sm:$0xff] }
  0xf0   : > { %v4031_v49 = vld [vmem:[#allocation9 + $0x110] sm:$0xff]   ;;  %v4025_v5 = vld [vmem:[#allocation9 + $0x20] sm:$0xff]   ;;  %v4049_v20 = vld [vmem:[#allocation9 + $0x198] sm:$0xff]  }
  0xf1   : > { %v738_v58 = vld [vmem:[#allocation2 + $0x6a] sm:$0xff] }
  0xf2   : > { %3376 = vmatpush3.bf16.msra.mxu0 %v4009_v44  ;;  %3897 = vmatpush3.bf16.msra.mxu1 %v4009_v44  ;;  %v731_v44 = vld [vmem:[#allocation2 + $0x1a] sm:$0xff]  ;;  %v4050_v21 = vld [vmem:[#allocation9 + $0x178] sm:$0xff]  }
  0xf3   : > { %3377 = vmatprep.subr.bf16.mxu0 %v4010_v45  ;;  %3890 = vmatprep.subr.bf16.mxu1 %v4010_v45  ;;  %v4021_v45 = vld [vmem:[#allocation9 + $0x148] sm:$0xff]   ;;  %v4063_v25 = vld [vmem:[#allocation9 + $0x1b8] sm:$0xff]  }
  0xf6   : > { %3378 = vmatpush3.bf16.msra.mxu0 %v4011_v46  ;;  %3898 = vmatpush3.bf16.msra.mxu1 %v4011_v46  ;;  %v4023_v46 = vld [vmem:[#allocation9 + $0x108] sm:$0xff]  }
  0xf7   : > { %3475 = vmatprep.subr.bf16.mxu1 %v4012_v10  ;;  %3587 = vmatprep.subr.bf16.mxu0 %v4013_v4  ;;  %v789_v10 = vld [vmem:[#allocation2 + $0x168] sm:$0xff]  ;;  %v4822_v4 = vpack.c.bf16 %v732_v2, %v731_v44  ;;  %v4024_v2 = vld [vmem:[#allocation9 + $0x60] sm:$0xff]   ;;  %v767_v44 = vld [vmem:[#allocation2 + $0x60] sm:$0xff] }
  0xf9   : > { %987 = vmatmul.mubr.bf16.vlgmr.msra.gmra.mrb[0].mxu0 %v793_v16  ;;  %1083 = vmatmul.mubr.bf16.vlgmr.msra.gmra.mrb[0].mxu1 %v805_v42  ;;  %v4826_v16 = vpack.c.bf16 %v790_v9, %v789_v10  ;;  %v733_v42 = vld [vmem:[#allocation2 + $0x32] sm:$0xff]  ;;  %v4833_v10 = vpack.c.bf16 %v768_v1, %v767_v44  ;;  %v4026_v9 = vld [vmem:[#allocation9 + $0x68] sm:$0xff]  }
  0xfa   : > { %3476 = vmatpush3.bf16.msra.mxu1 %v4014_v13  ;;  %3588 = vmatpush3.bf16.msra.mxu0 %v4015_v43  ;;  %v4020_v13 = vld [vmem:[#allocation9 + $0x58] sm:$0xff]   ;;  %v734_v43 = vld [vmem:[#allocation2 + $0x3a] sm:$0xff] }
  0xfb   : > { %3477 = vmatprep.subr.bf16.mxu1 %v4016_v6  ;;  %994 = vmatprep.mubr.bf16.mxu0 %v4816_v3  ;;  %v4022_v6 = vld [vmem:[#allocation9 + $0x18] sm:$0xff]  }
  0xfc   : > { %1090 = vmatprep.mubr.bf16.mxu1 %v4818_v7  ;;  %3589 = vmatprep.subr.bf16.mxu0 %v4021_v45  ;;  %v4029_v45 = vld [vmem:[#allocation9 + $0x150] sm:$0xff]  }
  0xfe   : > { %3478 = vmatpush3.bf16.msra.mxu1 %v4017_v8  ;;  %3590 = vmatpush3.bf16.msra.mxu0 %v4023_v46  ;;  %v791_v8 = vld [vmem:[#allocation2 + $0x180] sm:$0xff]  ;;  %v807_v46 = vpack.c.bf16 %v758_v63, %v757_v0  ;;  %v769_v63 = vld [vmem:[#allocation2 + $0x78] sm:$0xff] }
  0xff   : > { %3479 = vmatprep.subr.bf16.mxu1 %v4018_v48  ;;  %v4831_v48 = vpack.c.bf16 %v734_v43, %v733_v42  ;;  %3591 = vmatprep.subr.bf16.mxu0 %v4029_v45  ;;  %v760_v42 = vld [vmem:[#allocation2 + $0x172] sm:$0xff]  ;;  %v4028_v43 = vld [vmem:[#allocation9 + $0x70] sm:$0xff]  }
 0x100   : > { %v770_v0 = vld [vmem:[#allocation2 + $0x80] sm:$0xff]  ;;  %v808_v1 = vpack.c.bf16 %v760_v42, %v759_v61  ;;  %v4034_v61 = vld [vmem:[#allocation9 + $0x1c0] sm:$0xff]  }
 0x101   : > { %995 = vmatmul.mubr.bf16.gmra.mrb[4].mxu0 %v4822_v4  ;;  %1091 = vmatmul.mubr.bf16.gmra.mrb[4].mxu1 %v806_v11  ;;  %v824_v11 = vpack.c.bf16 %v792_v47, %v791_v8  ;;  %v4036_v8 = vld [vmem:[#allocation9 + $0x158] sm:$0xff]   ;;  %v4030_v45 = vld [vmem:[#allocation9 + $0x30] sm:$0xff]   ;;  %v4839_v47 = vpack.c.bf16 %v770_v0, %v769_v63  ;;  %v4040_v42 = vld [vmem:[#allocation9 + $0x120] sm:$0xff]  }
 0x102   : > { %3480 = vmatpush3.bf16.msra.mxu1 %v4019_v12  ;;  %1002 = vmatprep.mubr.bf16.mxu0 %v4824_v14  ;;  %v4027_v12 = vld [vmem:[#allocation9 + $0x28] sm:$0xff]   ;;  %v4035_v0 = vld [vmem:[#allocation9 + $0x180] sm:$0xff]  }
 0x103   : > { %3481 = vmatprep.subr.bf16.mxu1 %v4020_v13  ;;  %1098 = vmatprep.mubr.bf16.mxu1 %v4826_v16  ;;  %v736_v13 = vld [vmem:[#allocation2 + $0x52] sm:$0xff] }
 0x104   : > { %3592 = vmatpush3.bf16.msra.mxu0 %v4031_v49  ;;  %v4837_v44 = vpack.c.bf16 %v736_v13, %v735_v62  ;;  %v4032_v49 = vld [vmem:[#allocation9 + $0x78] sm:$0xff]   ;;  %v772_v13 = vld [vmem:[#allocation2 + $0x98] sm:$0xff] }
 0x105   : > { %3593 = vmatprep.subr.bf16.mxu0 %v4036_v8  ;;  %v771_v62 = vld [vmem:[#allocation2 + $0x90] sm:$0xff]  ;;  %v739_v8 = vld [vmem:[#allocation2 + $0x7a] sm:$0xff] }
 0x106   : > { %3482 = vmatpush3.bf16.msra.mxu1 %v4022_v6  ;;  %v633_v6 = vld [vmem:[#allocation2 + $0x1] sm:$0xff] }
 0x107   : > { %3483 = vmatprep.subr.bf16.mxu1 %v4024_v2  ;;  %v634_v2 = vld [vmem:[#allocation2 + $0x9] sm:$0xff] }
 0x108   : > { %v681_v60 = vpack.c.bf16 %v634_v2, %v633_v6  ;;  %v4845_v6 = vpack.c.bf16 %v772_v13, %v771_v62  ;;  %v4851_v2 = vpack.c.bf16 %v479_v51, %v478_v50  ;;  %v4046_v51 = vld [vmem:[#allocation9 + $0x170] sm:$0xff]   ;;  %v742_v62 = vld [vmem:[#allocation2 + $0x9a] sm:$0xff] }
 0x109   : > { %1003 = vmatmul.mubr.bf16.gmra.mrb[8].mxu0 %v4831_v48  ;;  %1099 = vmatmul.mubr.bf16.gmra.mrb[8].mxu1 %v807_v46  ;;  %v4037_v46 = vld [vmem:[#allocation9 + $0x118] sm:$0xff]  }
 0x10a   : > { %3484 = vmatpush3.bf16.msra.mxu1 %v4025_v5  ;;  %1010 = vmatprep.mubr.bf16.mxu0 %v4833_v10  ;;  %v4033_v5 = vld [vmem:[#allocation9 + $0x38] sm:$0xff]  }
 0x10b   : > { %3485 = vmatprep.subr.bf16.mxu1 %v4026_v9  ;;  %1106 = vmatprep.mubr.bf16.mxu1 %v824_v11  ;;  %v601_v9 = vld [vmem:[#allocation2] sm:$0xff]  ;;  %v602_v11 = vld [vmem:[#allocation2 + $0x8] sm:$0xff] }
 0x10c   : > { %3594 = vmatpush3.bf16.msra.mxu0 %v4037_v46  ;;  %v665_v63 = vpack.c.bf16 %v602_v11, %v601_v9  ;;  %v4041_v46 = vld [vmem:[#allocation9 + $0x188] sm:$0xff]   ;;  %v4045_v9 = vld [vmem:[#allocation9 + $0x190] sm:$0xff]  }
 0x10d   : > { %v4047_v11 = vld [vmem:[#allocation9 + $0x130] sm:$0xff]  }
 0x10e   : > { %3486 = vmatpush3.bf16.msra.mxu1 %v4027_v12  ;;  %v4038_v12 = vld [vmem:[#allocation9 + $0x160] sm:$0xff]   ;;  %v776_v13 = vld [vmem:[#allocation2 + $0xc8] sm:$0xff] }
 0x10f   : > { %3487 = vmatprep.subr.bf16.mxu1 %v4028_v43  ;;  %3595 = vmatprep.subr.bf16.mxu0 %v4038_v12  ;;  %v4843_v43 = vpack.c.bf16 %v738_v58, %v737_v59  ;;  %v773_v58 = vld [vmem:[#allocation2 + $0xa8] sm:$0xff]  ;;  %v4043_v59 = vld [vmem:[#allocation9 + $0x128] sm:$0xff]  }
 0x110   : > { %3596 = vmatpush3.bf16.msra.mxu0 %v4040_v42  ;;  %v775_v12 = vld [vmem:[#allocation2 + $0xc0] sm:$0xff]  ;;  %v4048_v42 = vld [vmem:[#allocation9 + $0x1d8] sm:$0xff]  }
 0x111   : > { %1011 = vmatmul.mubr.bf16.gmra.mrb[12].mxu0 %v4837_v44  ;;  %1107 = vmatmul.mubr.bf16.gmra.mrb[12].mxu1 %v808_v1  ;;  %v4039_v1 = vld [vmem:[#allocation9 + $0x1c8] sm:$0xff]  }
 0x112   : > { %3488 = vmatpush3.bf16.msra.mxu1 %v4030_v45  ;;  %1018 = vmatprep.mubr.bf16.mxu0 %v4839_v47  ;;  %v4042_v45 = vld [vmem:[#allocation9 + $0x168] sm:$0xff]  }
 0x113   : > { %3489 = vmatprep.subr.bf16.mxu1 %v4032_v49  ;;  %1243 = vmatprep.mubr.bf16.mxu1 %v681_v60  ;;  %v740_v60 = vld [vmem:[#allocation2 + $0x82] sm:$0xff]  ;;  %v4858_v49 = vpack.c.bf16 %v774_v18, %v773_v58  ;;  %v777_v58 = vld [vmem:[#allocation2 + $0xd8] sm:$0xff] }
 0x114   : > { %3597 = vmatprep.subr.bf16.mxu0 %v4042_v45  ;;  %v4856_v50 = vpack.c.bf16 %v740_v60, %v739_v8  ;;  %v743_v8 = vld [vmem:[#allocation2 + $0xaa] sm:$0xff]  ;;  %v744_v60 = vld [vmem:[#allocation2 + $0xb2] sm:$0xff] }
 0x115   : > { %3598 = vmatpush3.bf16.msra.mxu0 %v4043_v59  ;;  %v4054_v45 = vld [vmem:[#allocation9 + $0x1a0] sm:$0xff]   ;;  %v4055_v59 = vld [vmem:[#allocation9 + $0x1e8] sm:$0xff]   ;;  %v4060_v18 = vld [vmem:[#allocation9 + $0x1b0] sm:$0xff]  }
 0x116   : > { %3490 = vmatpush3.bf16.msra.mxu1 %v4033_v5  ;;  %v4864_v5 = vpack.c.bf16 %v481_v53, %v480_v52  ;;  %3599 = vmatprep.subr.bf16.mxu0 %v4046_v51  ;;  %v4051_v52 = vld [vmem:[#allocation9 + $0x138] sm:$0xff]   ;;  %v745_v51 = vld [vmem:[#allocation2 + $0xc2] sm:$0xff] }
 0x117   : > { %3699 = vmatprep.subr.bf16.mxu1 %v4034_v61  ;;  %v741_v61 = vld [vmem:[#allocation2 + $0x92] sm:$0xff] }
 0x118   : > { %v4870_v53 = vpack.c.bf16 %v742_v62, %v741_v61  ;;  %v5796_v61 = vmax.f32 %v4656_v26, 0.0  ;;  %v5797_v62 = vmax.f32 %v4658_v27, 0.0  ;;  %v5798_v27 = vmax.f32 %v4660_v28, 0.0 }
 0x119   : > { %1019 = vmatmul.mubr.bf16.gmra.mrb[16].mxu0 %v4843_v43  ;;  %1244 = vmatmul.mubr.bf16.vlgmr.msra.gmra.mrb[16].mxu1 %v665_v63  ;;  %v4872_v63 = vpack.c.bf16 %v776_v13, %v775_v12  ;;  %v747_v13 = vld [vmem:[#allocation2 + $0xda] sm:$0xff]  ;;  %v5800_v28 = vmax.f32 %v4664_v30, 0.0  ;;  %v5804_v30 = vmax.f32 %v4672_v34, 0.0 }
 0x11a   : > { %3700 = vmatpush3.bf16.msra.mxu1 %v4035_v0  ;;  %1026 = vmatprep.mubr.bf16.mxu0 %v4845_v6  ;;  %v4052_v0 = vld [vmem:[#allocation9 + $0x1e0] sm:$0xff]   ;;  %v4909_v12 = vpack.c.bf16 %v5797_v62, %v5796_v61  ;;  %v4056_v61 = vld [vmem:[#allocation11 + $0x8] sm:$0xff]  }
 0x11b   : > { %1251 = vmatprep.mubr.bf16.mxu1 %v4851_v2  ;;  %3701 = vmatprep.subr.bf16.mxu1 %v4039_v1  ;;  %v4880_v1 = vld [vmem:[#allocation11] sm:$0xff]  }
 0x11c   : > { %3600 = vmatpush3.bf16.msra.mxu0 %v4047_v11  ;;  %v779_v11 = vld [vmem:[#allocation2 + $0xf0] sm:$0xff] }
 0x11d   : > { %3601 = vmatprep.subr.bf16.mxu0 %v4050_v21  ;;  %v782_v21 = vld [vmem:[#allocation2 + $0x110] sm:$0xff] }
 0x11e   : > { %3702 = vmatpush3.bf16.msra.mxu1 %v4041_v46  ;;  %v4889_v46 = vpack.c.bf16 %v778_v22, %v777_v58  ;;  %v783_v58 = vld [vmem:[#allocation2 + $0x120] sm:$0xff] }
 0x11f   : > { %3703 = vmatprep.subr.bf16.mxu1 %v4044_v19  ;;  %v4061_v19 = vld [vmem:[#allocation9 + $0x1f8] sm:$0xff]  }
 0x120   : > { %3602 = vmatpush3.bf16.msra.mxu0 %v4051_v52 }
 0x121   : > { %1027 = vmatmul.mubr.bf16.gmra.mrb[20].mxu0 %v4856_v50  ;;  %1252 = vmatmul.mubr.bf16.gmra.mrb[20].mxu1 %v4810_v15  ;;  %v4878_v15 = vpack.c.bf16 %v483_v55, %v482_v54  ;;  %v4058_v54 = vld [vmem:[#allocation9 + $0x1f0] sm:$0xff]   ;;  %v4887_v55 = vpack.c.bf16 %v744_v60, %v743_v8  ;;  %v749_v60 = vld [vmem:[#allocation2 + $0xf2] sm:$0xff] }
 0x122   : > { %1034 = vmatprep.mubr.bf16.mxu0 %v4858_v49  ;;  %1259 = vmatprep.mubr.bf16.mxu1 %v4864_v5 }
 0x123   : > { %3704 = vmatpush3.bf16.msra.mxu1 %v4045_v9  ;;  %3835 = vmatprep.subr.bf16.mxu0 %v4880_v1  ;;  %v746_v9 = vld [vmem:[#allocation2 + $0xca] sm:$0xff] }
 0x124   : > { %3705 = vmatprep.subr.bf16.mxu1 %v4048_v42  ;;  %v748_v42 = vld [vmem:[#allocation2 + $0xe2] sm:$0xff] }
 0x125   : > { %v4915_v52 = vpack.c.bf16 %v748_v42, %v747_v13 }
 0x127   : > { %3706 = vmatpush3.bf16.msra.mxu1 %v4049_v20  ;;  %v781_v20 = vld [vmem:[#allocation2 + $0x108] sm:$0xff] }
 0x128   : > { %3707 = vmatprep.subr.bf16.mxu1 %v4052_v0  ;;  %v4917_v26 = vpack.c.bf16 %v782_v21, %v781_v20  ;;  %v5799_v0 = vmax.f32 %v4662_v29, 0.0  ;;  %v5801_v29 = vmax.f32 %v4666_v31, 0.0  ;;  %v5805_v31 = vmax.f32 %v4674_v35, 0.0  ;;  %v4062_v35 = vld [vmem:[#allocation11 + $0x18] sm:$0xff]  }
 0x129   : > { %1035 = vmatmul.mubr.bf16.gmra.mrb[24].mxu0 %v4870_v53  ;;  %1260 = vmatmul.mubr.bf16.gmra.mrb[24].mxu1 %v4816_v3  ;;  %v4895_v3 = vpack.c.bf16 %v485_v57, %v484_v56  ;;  %v4901_v56 = vpack.c.bf16 %v746_v9, %v745_v51  ;;  %v4903_v57 = vpack.c.bf16 %v780_v24, %v779_v11  ;;  %v5802_v9 = vmax.f32 %v4668_v32, 0.0  ;;  %v4059_v32 = vld [vmem:[#allocation11 + $0x10] sm:$0xff]  }
 0x12a   : > { %1042 = vmatprep.mubr.bf16.mxu0 %v4872_v63  ;;  %1267 = vmatprep.mubr.bf16.mxu1 %v4878_v15  ;;  %v4923_v8 = vpack.c.bf16 %v5799_v0, %v5798_v27  ;;  %v5803_v11 = vmax.f32 %v4670_v33, 0.0  ;;  %v5806_v33 = vmax.f32 %v4676_v36, 0.0  ;;  %v5809_v36 = vmax.f32 %v4682_v39, 0.0  ;;  %v4067_v39 = vld [vmem:[#allocation11 + $0x38] sm:$0xff]   ;;  %v4076_v0 = vld [vmem:[#allocation2 + $0xc1] sm:$0xff] }
 0x12b   : > { %3708 = vmatpush3.bf16.msra.mxu1 %v4054_v45  ;;  %v750_v45 = vld [vmem:[#allocation2 + $0xfa] sm:$0xff]  ;;  %v4074_v21 = vld [vmem:[#allocation2 + $0x169] sm:$0xff]  ;;  %v4075_v27 = vld [vmem:[#allocation2 + $0x171] sm:$0xff] }
 0x12c   : > { %3709 = vmatprep.subr.bf16.mxu1 %v4055_v59  ;;  %v784_v59 = vld [vmem:[#allocation2 + $0x128] sm:$0xff]  ;;  %v4929_v22 = vpack.c.bf16 %v750_v45, %v749_v60  ;;  %v689_v24 = vpack.c.bf16 %v5803_v11, %v5802_v9  ;;  %v1792_v45 = vld [vmem:[#allocation2 + $0x38] sm:$0xff] }
 0x12d   : > { %v4084_v9 = vld [vmem:[#allocation2 + $0x61] sm:$0xff]  ;;  %v4085_v11 = vld [vmem:[#allocation2 + $0x69] sm:$0xff] }
 0x12f   : > { %3710 = vmatpush3.bf16.msra.mxu1 %v4057_v23  ;;  %v4931_v23 = vpack.c.bf16 %v784_v59, %v783_v58  ;;  %v4078_v58 = vld [vmem:[#allocation2 + $0xd9] sm:$0xff]  ;;  %v4079_v59 = vld [vmem:[#allocation2 + $0xe1] sm:$0xff] }
 0x130   : > { %3711 = vmatprep.subr.bf16.mxu1 %v4058_v54  ;;  %v688_v54 = vpack.c.bf16 %v5801_v29, %v5800_v28  ;;  %v4994_v28 = vpack.c.bf16 %v4079_v59, %v4078_v58  ;;  %v4080_v29 = vld [vmem:[#allocation2 + $0x49] sm:$0xff] }
 0x131   : > { %1043 = vmatmul.mubr.bf16.gmra.mrb[28].mxu0 %v4887_v55  ;;  %1268 = vmatmul.mubr.bf16.gmra.mrb[28].mxu1 %v4824_v14 }
 0x132   : > { %1050 = vmatprep.mubr.bf16.mxu0 %v4889_v46  ;;  %1275 = vmatprep.mubr.bf16.mxu1 %v4895_v3 }
 0x133   : > { %3712 = vmatpush3.bf16.msra.mxu1 %v4060_v18  ;;  %v751_v18 = vld [vmem:[#allocation2 + $0x10a] sm:$0xff] }
 0x134   : > { %3713 = vmatprep.subr.bf16.mxu1 %v4061_v19  ;;  %v752_v19 = vld [vmem:[#allocation2 + $0x112] sm:$0xff] }
 0x135   : > { %v4940_v51 = vpack.c.bf16 %v752_v19, %v751_v18  ;;  %v4083_v19 = vld [vmem:[#allocation2 + $0xf9] sm:$0xff] }
 0x137   : > { %3714 = vmatpush3.bf16.msra.mxu1 %v4063_v25  ;;  %v690_v25 = vpack.c.bf16 %v5805_v31, %v5804_v30  ;;  %v1426_v30 = vld [vmem:[#allocation2 + $0x122] sm:$0xff]  ;;  %v1427_v31 = vld [vmem:[#allocation2 + $0x12a] sm:$0xff] }
 0x139   : > { %1051 = vmatmul.mubr.bf16.gmra.mrb[32].mxu0 %v4901_v56  ;;  %1276 = vmatmul.mubr.bf16.gmra.mrb[32].mxu1 %v4833_v10 }
 0x13a   : > { %1058 = vmatprep.mubr.bf16.mxu0 %v4903_v57  ;;  %1283 = vmatprep.mubr.bf16.mxu1 %v4909_v12 }
 0x141   : > { %1059 = vmatmul.mubr.bf16.gmra.mrb[36].mxu0 %v4915_v52  ;;  %1284 = vmatmul.mubr.bf16.gmra.mrb[36].mxu1 %v4839_v47 }
 0x142   : > { %1066 = vmatprep.mubr.bf16.mxu0 %v4917_v26  ;;  %1291 = vmatprep.mubr.bf16.mxu1 %v4923_v8 }
 0x149   : > { %1067 = vmatmul.mubr.bf16.gmra.mrb[40].mxu0 %v4929_v22  ;;  %1292 = vmatmul.mubr.bf16.gmra.mrb[40].mxu1 %v4845_v6 }
 0x14a   : > { %1074 = vmatprep.mubr.bf16.mxu0 %v4931_v23  ;;  %1299 = vmatprep.mubr.bf16.mxu1 %v688_v54  ;;  %v4081_v54 = vld [vmem:[#allocation2 + $0x51] sm:$0xff] }
 0x14b   : > { %v1872_v18 = vpack.c.bf16 %v4081_v54, %v4080_v29 }
 0x151   : > { %1075 = vmatmul.mubr.bf16.gmra.mrb[44].mxu0 %v4940_v51  ;;  %1300 = vmatmul.mubr.bf16.gmra.mrb[44].mxu1 %v4858_v49 }
 0x152   : > { %1307 = vmatprep.mubr.bf16.mxu1 %v689_v24  ;;  %1629 = vmatprep.mubr.bf16.mxu0 %v4822_v4  ;;  %v5807_v4 = vmax.f32 %v4678_v37, 0.0  ;;  %v4065_v37 = vld [vmem:[#allocation11 + $0x28] sm:$0xff]   ;;  %v1873_v24 = vpack.c.bf16 %v4085_v11, %v4084_v9  ;;  %v2211_v9 = vld [vmem:[#allocation2 + $0x4a] sm:$0xff]  ;;  %v2212_v11 = vld [vmem:[#allocation2 + $0x52] sm:$0xff] }
 0x154   : > { %v691_v34 = vpack.c.bf16 %v5807_v4, %v5806_v33  ;;  %v5005_v33 = vpack.c.bf16 %v1427_v31, %v1426_v30  ;;  %v4088_v4 = vld [vmem:[#allocation2 + $0x79] sm:$0xff]  ;;  %v2214_v30 = vld [vmem:[#allocation2 + $0x6a] sm:$0xff] }
 0x159   : > { %1308 = vmatmul.mubr.bf16.gmra.mrb[48].mxu1 %v4872_v63  ;;  %1630 = vmatmul.mubr.bf16.vlgmr.msra.gmra.mrb[48].mxu0 %v4851_v2  ;;  %v5808_v2 = vmax.f32 %v4680_v38, 0.0  ;;  %v5811_v38 = vmax.f32 %v4686_v41, 0.0  ;;  %v4071_v41 = vld [vmem:[#allocation2 + $0x159] sm:$0xff] }
 0x15a   : > { %3836 = vmatpush3.bf16.msra.mxu0 %v4880_v1  ;;  %1315 = vmatprep.mubr.bf16.mxu1 %v690_v25  ;;  %v4086_v25 = vld [vmem:[#allocation2 + $0x109] sm:$0xff] }
 0x15b   : > { %1637 = vmatprep.mubr.bf16.mxu0 %v4831_v48  ;;  %3837 = vmatprep.subr.bf16.mxu0 %v4056_v61  ;;  %v4064_v48 = vld [vmem:[#allocation11 + $0x20] sm:$0xff]   ;;  %v692_v1 = vpack.c.bf16 %v5809_v36, %v5808_v2  ;;  %v1429_v36 = vld [vmem:[#allocation2 + $0x142] sm:$0xff] }
 0x15c   : > { %v1428_v2 = vld [vmem:[#allocation2 + $0x13a] sm:$0xff] }
 0x15e   : > { %3838 = vmatpush3.bf16.msra.mxu0 %v4056_v61  ;;  %v4087_v61 = vld [vmem:[#allocation2 + $0x111] sm:$0xff] }
 0x15f   : > { %3839 = vmatprep.subr.bf16.mxu0 %v4059_v32 }
 0x161   : > { %1316 = vmatmul.mubr.bf16.gmra.mrb[52].mxu1 %v4889_v46  ;;  %1638 = vmatmul.mubr.bf16.gmra.mrb[52].mxu0 %v4864_v5  ;;  %v5810_v5 = vmax.f32 %v4684_v40, 0.0  ;;  %v4070_v40 = vld [vmem:[#allocation2 + $0x151] sm:$0xff] }
 0x162   : > { %1323 = vmatprep.mubr.bf16.mxu1 %v691_v34  ;;  %1645 = vmatprep.mubr.bf16.mxu0 %v4837_v44  ;;  %v4066_v44 = vld [vmem:[#allocation11 + $0x30] sm:$0xff]   ;;  %v695_v42 = vpack.c.bf16 %v4071_v41, %v4070_v40  ;;  %v1399_v40 = vld [vmem:[#allocation2 + $0x159] sm:$0xff] }
 0x163   : > { %3840 = vmatpush3.bf16.msra.mxu0 %v4059_v32  ;;  %v693_v62 = vpack.c.bf16 %v5811_v38, %v5810_v5  ;;  %v5003_v32 = vpack.c.bf16 %v4087_v61, %v4086_v25  ;;  %v4089_v34 = vld [vmem:[#allocation2 + $0x81] sm:$0xff]  ;;  %v4091_v5 = vld [vmem:[#allocation2 + $0x99] sm:$0xff]  ;;  %v1432_v41 = vld [vmem:[#allocation2 + $0x16a] sm:$0xff] }
 0x164   : > { %3841 = vmatprep.subr.bf16.mxu0 %v4062_v35 }
 0x167   : > { %3842 = vmatpush3.bf16.msra.mxu0 %v4062_v35  ;;  %v1874_v35 = vpack.c.bf16 %v4089_v34, %v4088_v4  ;;  %v2242_v34 = vpack.c.bf16 %v2212_v11, %v2211_v9 }
 0x168   : > { %3843 = vmatprep.subr.bf16.mxu0 %v4064_v48 }
 0x169   : > { %1324 = vmatmul.mubr.bf16.gmra.mrb[56].mxu1 %v4903_v57  ;;  %1646 = vmatmul.mubr.bf16.gmra.mrb[56].mxu0 %v4878_v15  ;;  %v4069_v15 = vld [vmem:[#allocation2 + $0x141] sm:$0xff] }
 0x16a   : > { %1331 = vmatprep.mubr.bf16.mxu1 %v692_v1  ;;  %1653 = vmatprep.mubr.bf16.mxu0 %v4843_v43  ;;  %v4068_v43 = vld [vmem:[#allocation2 + $0x139] sm:$0xff] }
 0x16b   : > { %3844 = vmatpush3.bf16.msra.mxu0 %v4064_v48  ;;  %v694_v13 = vpack.c.bf16 %v4069_v15, %v4068_v43  ;;  %v1395_v48 = vld [vmem:[#allocation2 + $0x129] sm:$0xff]  ;;  %v1431_v43 = vld [vmem:[#allocation2 + $0x15a] sm:$0xff] }
 0x16c   : > { %3845 = vmatprep.subr.bf16.mxu0 %v4065_v37 }
 0x16f   : > { %3846 = vmatpush3.bf16.msra.mxu0 %v4065_v37  ;;  %v5012_v37 = vpack.c.bf16 %v1429_v36, %v1428_v2 }
 0x170   : > { %3847 = vmatprep.subr.bf16.mxu0 %v4066_v44 }
 0x171   : > { %1332 = vmatmul.mubr.bf16.gmra.mrb[60].mxu1 %v4917_v26  ;;  %1654 = vmatmul.mubr.bf16.gmra.mrb[60].mxu0 %v4895_v3  ;;  %v4073_v3 = vld [vmem:[#allocation2 + $0xb1] sm:$0xff] }
 0x172   : > { %1339 = vmatprep.mubr.bf16.mxu1 %v693_v62  ;;  %1661 = vmatprep.mubr.bf16.mxu0 %v4856_v50  ;;  %v4072_v50 = vld [vmem:[#allocation2 + $0xa9] sm:$0xff]  ;;  %v1397_v62 = vld [vmem:[#allocation2 + $0x141] sm:$0xff] }
 0x173   : > { %3848 = vmatpush3.bf16.msra.mxu0 %v4066_v44  ;;  %v4984_v20 = vpack.c.bf16 %v4073_v3, %v4072_v50  ;;  %v4090_v44 = vld [vmem:[#allocation2 + $0x91] sm:$0xff] }
 0x174   : > { %3849 = vmatprep.subr.bf16.mxu0 %v4067_v39  ;;  %v1875_v38 = vpack.c.bf16 %v4091_v5, %v4090_v44 }
 0x177   : > { %3850 = vmatpush3.bf16.msra.mxu0 %v4067_v39  ;;  %v1430_v39 = vld [vmem:[#allocation2 + $0x152] sm:$0xff] }
 0x179   : > { %1340 = vmatmul.mubr.bf16.gmra.mrb[64].mxu1 %v4931_v23  ;;  %1662 = vmatmul.mubr.bf16.gmra.mrb[64].mxu0 %v4909_v12  ;;  %v696_v12 = vpack.c.bf16 %v4075_v27, %v4074_v21  ;;  %v1401_v21 = vld [vmem:[#allocation2 + $0x171] sm:$0xff]  ;;  %v1434_v27 = vld [vmem:[#allocation2 + $0x182] sm:$0xff] }
 0x17a   : > { %1347 = vmatprep.mubr.bf16.mxu1 %v694_v13  ;;  %1669 = vmatprep.mubr.bf16.mxu0 %v4870_v53  ;;  %v1824_v53 = vld [vmem:[#allocation2 + $0x39] sm:$0xff]  ;;  %v5019_v13 = vpack.c.bf16 %v1431_v43, %v1430_v39 }
 0x17b   : > { %v2218_v39 = vld [vmem:[#allocation2 + $0x9a] sm:$0xff] }
 0x181   : > { %1348 = vmatmul.mubr.bf16.gmra.mrb[68].mxu1 %v4812_v17  ;;  %1670 = vmatmul.mubr.bf16.gmra.mrb[68].mxu0 %v4923_v8  ;;  %v1823_v17 = vld [vmem:[#allocation2 + $0x31] sm:$0xff]  ;;  %v4077_v8 = vld [vmem:[#allocation2 + $0xc9] sm:$0xff] }
 0x182   : > { %1355 = vmatprep.mubr.bf16.mxu1 %v695_v42  ;;  %1677 = vmatprep.mubr.bf16.mxu0 %v4887_v55  ;;  %v4989_v60 = vpack.c.bf16 %v4077_v8, %v4076_v0  ;;  %v1871_v55 = vpack.c.bf16 %v1824_v53, %v1823_v17  ;;  %v1433_v42 = vld [vmem:[#allocation2 + $0x172] sm:$0xff]  ;;  %v1403_v53 = vld [vmem:[#allocation2 + $0x189] sm:$0xff]  ;;  %v2210_v8 = vld [vmem:[#allocation2 + $0x3a] sm:$0xff] }
 0x183   : > { %v5027_v3 = vpack.c.bf16 %v1433_v42, %v1432_v41  ;;  %v2209_v0 = vld [vmem:[#allocation2 + $0x32] sm:$0xff] }
 0x184   : > { %v2241_v54 = vpack.c.bf16 %v2210_v8, %v2209_v0  ;;  %v2219_v8 = vld [vmem:[#allocation2 + $0xaa] sm:$0xff] }
 0x189   : > { %1356 = vmatmul.mubr.bf16.gmra.mrb[72].mxu1 %v4818_v7  ;;  %1678 = vmatmul.mubr.bf16.gmra.mrb[72].mxu0 %v4984_v20  ;;  %v1791_v7 = vld [vmem:[#allocation2 + $0x30] sm:$0xff] }
 0x18a   : > { %1363 = vmatprep.mubr.bf16.mxu1 %v696_v12  ;;  %1685 = vmatprep.mubr.bf16.mxu0 %v4901_v56  ;;  %v1855_v56 = vpack.c.bf16 %v1792_v45, %v1791_v7 }
 0x191   : > { %1364 = vmatmul.mubr.bf16.gmra.mrb[76].mxu1 %v4826_v16  ;;  %1686 = vmatmul.mubr.bf16.gmra.mrb[76].mxu0 %v4989_v60  ;;  %v4082_v16 = vld [vmem:[#allocation2 + $0xf1] sm:$0xff] }
 0x192   : > { %1693 = vmatprep.mubr.bf16.mxu0 %v4915_v52  ;;  %2048 = vmatprep.mubr.bf16.mxu1 %v1871_v55  ;;  %v4998_v52 = vpack.c.bf16 %v4083_v19, %v4082_v16 }
 0x199   : > { %1694 = vmatmul.mubr.bf16.gmra.mrb[80].mxu0 %v4994_v28  ;;  %2049 = vmatmul.mubr.bf16.vlgmr.msra.gmra.mrb[80].mxu1 %v1855_v56 }
 0x19a   : > { %1701 = vmatprep.mubr.bf16.mxu0 %v4929_v22  ;;  %2056 = vmatprep.mubr.bf16.mxu1 %v1872_v18 }
 0x1a1   : > { %1702 = vmatmul.mubr.bf16.gmra.mrb[84].mxu0 %v4998_v52  ;;  %2057 = vmatmul.mubr.bf16.gmra.mrb[84].mxu1 %v4824_v14  ;;  %v1394_v14 = vld [vmem:[#allocation2 + $0x121] sm:$0xff] }
 0x1a2   : > { %1709 = vmatprep.mubr.bf16.mxu0 %v4940_v51  ;;  %2064 = vmatprep.mubr.bf16.mxu1 %v1873_v24  ;;  %v5010_v1 = vpack.c.bf16 %v1395_v48, %v1394_v14  ;;  %v2213_v24 = vld [vmem:[#allocation2 + $0x62] sm:$0xff] }
 0x1a3   : > { %v2243_v36 = vpack.c.bf16 %v2214_v30, %v2213_v24 }
 0x1a9   : > { %1710 = vmatmul.mubr.bf16.gmra.mrb[88].mxu0 %v5003_v32  ;;  %2065 = vmatmul.mubr.bf16.gmra.mrb[88].mxu1 %v4833_v10  ;;  %v1396_v10 = vld [vmem:[#allocation2 + $0x139] sm:$0xff] }
 0x1aa   : > { %1717 = vmatprep.mubr.bf16.mxu0 %v5005_v33  ;;  %2072 = vmatprep.mubr.bf16.mxu1 %v1874_v35  ;;  %v5017_v15 = vpack.c.bf16 %v1397_v62, %v1396_v10  ;;  %v2216_v10 = vld [vmem:[#allocation2 + $0x82] sm:$0xff]  ;;  %v2217_v62 = vld [vmem:[#allocation2 + $0x92] sm:$0xff] }
 0x1b1   : > { %1718 = vmatmul.mubr.bf16.gmra.mrb[92].mxu0 %v5010_v1  ;;  %2073 = vmatmul.mubr.bf16.gmra.mrb[92].mxu1 %v4839_v47  ;;  %v1398_v47 = vld [vmem:[#allocation2 + $0x151] sm:$0xff] }
 0x1b2   : > { %1725 = vmatprep.mubr.bf16.mxu0 %v5012_v37  ;;  %2080 = vmatprep.mubr.bf16.mxu1 %v1875_v38  ;;  %v5025_v50 = vpack.c.bf16 %v1399_v40, %v1398_v47  ;;  %v2215_v38 = vld [vmem:[#allocation2 + $0x7a] sm:$0xff] }
 0x1b3   : > { %v2244_v42 = vpack.c.bf16 %v2216_v10, %v2215_v38 }
 0x1b9   : > { %1726 = vmatmul.mubr.bf16.gmra.mrb[96].mxu0 %v5017_v15  ;;  %2081 = vmatmul.mubr.bf16.gmra.mrb[96].mxu1 %v4845_v6  ;;  %v1400_v6 = vld [vmem:[#allocation2 + $0x169] sm:$0xff] }
 0x1ba   : > { %1733 = vmatprep.mubr.bf16.mxu0 %v5019_v13  ;;  %2088 = vmatprep.mubr.bf16.mxu1 %v4984_v20  ;;  %v1435_v20 = vld [vmem:[#allocation2 + $0x18a] sm:$0xff]  ;;  %v5033_v12 = vpack.c.bf16 %v1401_v21, %v1400_v6 }
 0x1bb   : > { %v5035_v17 = vpack.c.bf16 %v1435_v20, %v1434_v27 }
 0x1c1   : > { %1734 = vmatmul.mubr.bf16.gmra.mrb[100].mxu0 %v5025_v50  ;;  %2089 = vmatmul.mubr.bf16.gmra.mrb[100].mxu1 %v4858_v49  ;;  %v1402_v49 = vld [vmem:[#allocation2 + $0x181] sm:$0xff] }
 0x1c2   : > { %1741 = vmatprep.mubr.bf16.mxu0 %v5027_v3  ;;  %2096 = vmatprep.mubr.bf16.mxu1 %v4989_v60  ;;  %v5041_v58 = vpack.c.bf16 %v1403_v53, %v1402_v49 }
 0x1c9   : > { %1742 = vmatmul.mubr.bf16.gmra.mrb[104].mxu0 %v5033_v12  ;;  %2097 = vmatmul.mubr.bf16.gmra.mrb[104].mxu1 %v4872_v63 }
 0x1ca   : > { %1749 = vmatprep.mubr.bf16.mxu0 %v5035_v17  ;;  %2104 = vmatprep.mubr.bf16.mxu1 %v4994_v28 }
 0x1cc   : > { %v3379_v60 = vpop.f32.mrb[0].mxu0  ;;  %v3451_v55 = vpop.f32.mrb[0].mxu1 }
 0x1cd   : > { %v3380_v7 = vpop.f32.mrb[1].mxu0  ;;  %v3452_v45 = vpop.f32.mrb[1].mxu1 }
 0x1ce   : > { %v5043_v59 = vadd.f32 %v3380_v7, %v3379_v60  ;;  %v5045_v56 = vadd.f32 %v3452_v45, %v3451_v55  ;;  %v3382_v29 = vpop.f32.mrb[2].mxu0  ;;  %v3454_v63 = vpop.f32.mrb[2].mxu1  ;;  %v2220_v60 = vld [vmem:[#allocation2 + $0xb2] sm:$0xff]  ;;  %v2221_v55 = vld [vmem:[#allocation2 + $0xc2] sm:$0xff]  ;;  %v2222_v7 = vld [vmem:[#allocation2 + $0xca] sm:$0xff] }
 0x1cf   : > { %v3383_v18 = vpop.f32.mrb[3].mxu0  ;;  %v3455_v16 = vpop.f32.mrb[3].mxu1 }
 0x1d0   : > { %v5047_v28 = vadd.f32 %v3383_v18, %v3382_v29  ;;  %v5049_v19 = vadd.f32 %v3455_v16, %v3454_v63  ;;  %v2246_v18 = vpack.c.bf16 %v2220_v60, %v2219_v8 }
 0x1d1   : > { %1750 = vmatmul.mubr.bf16.gmra.mrb[108].mxu0 %v5041_v58  ;;  %2105 = vmatmul.mubr.bf16.gmra.mrb[108].mxu1 %v4889_v46 }
 0x1d2   : > { %2112 = vmatprep.mubr.bf16.mxu1 %v4998_v52  ;;  %3851 = vmatprep.mubr.bf16.mxu0 %v2241_v54 }
 0x1d4   : > { %v3385_v31 = vpop.f32.mrb[4].mxu0  ;;  %v3457_v25 = vpop.f32.mrb[4].mxu1 }
 0x1d5   : > { %v3386_v61 = vpop.f32.mrb[5].mxu0  ;;  %v3458_v4 = vpop.f32.mrb[5].mxu1 }
 0x1d6   : > { %v5054_v35 = vadd.f32 %v3386_v61, %v3385_v31  ;;  %v5056_v14 = vadd.f32 %v3458_v4, %v3457_v25  ;;  %v3388_v48 = vpop.f32.mrb[6].mxu0  ;;  %v3460_v2 = vpop.f32.mrb[6].mxu1  ;;  %v1813_v61 = vld [vmem:[#allocation2 + $0x138] sm:$0xff]  ;;  %v1814_v4 = vld [vmem:[#allocation2 + $0x140] sm:$0xff] }
 0x1d7   : > { %v3389_v46 = vpop.f32.mrb[7].mxu0  ;;  %v3461_v44 = vpop.f32.mrb[7].mxu1  ;;  %v1866_v38 = vpack.c.bf16 %v1814_v4, %v1813_v61 }
 0x1d8   : > { %v5058_v52 = vadd.f32 %v3389_v46, %v3388_v48  ;;  %v5060_v5 = vadd.f32 %v3461_v44, %v3460_v2  ;;  %v2224_v48 = vld [vmem:[#allocation2 + $0xe2] sm:$0xff] }
 0x1d9   : > { %2113 = vmatmul.mubr.bf16.gmra.mrb[112].mxu1 %v4903_v57  ;;  %3852 = vmatmul.mubr.bf16.vlgmr.msra.gmra.mrb[112].mxu0 %v2242_v34  ;;  %v2245_v57 = vpack.c.bf16 %v2218_v39, %v2217_v62  ;;  %v2223_v34 = vld [vmem:[#allocation2 + $0xda] sm:$0xff] }
 0x1da   : > { %2120 = vmatprep.mubr.bf16.mxu1 %v5003_v32  ;;  %3855 = vmatprep.mubr.bf16.mxu0 %v2243_v36  ;;  %v2248_v10 = vpack.c.bf16 %v2224_v48, %v2223_v34 }
 0x1dc   : > { %v3391_v43 = vpop.f32.mrb[8].mxu0  ;;  %v3463_v47 = vpop.f32.mrb[8].mxu1 }
 0x1dd   : > { %v3392_v40 = vpop.f32.mrb[9].mxu0  ;;  %v3464_v41 = vpop.f32.mrb[9].mxu1 }
 0x1de   : > { %v5064_v6 = vadd.f32 %v3392_v40, %v3391_v43  ;;  %v5066_v21 = vadd.f32 %v3464_v41, %v3463_v47  ;;  %v3394_v27 = vpop.f32.mrb[10].mxu0  ;;  %v3466_v20 = vpop.f32.mrb[10].mxu1 }
 0x1df   : > { %v3395_v49 = vpop.f32.mrb[11].mxu0  ;;  %v3467_v53 = vpop.f32.mrb[11].mxu1 }
 0x1e0   : > { %v5068_v32 = vadd.f32 %v3395_v49, %v3394_v27  ;;  %v5070_v0 = vadd.f32 %v3467_v53, %v3466_v20  ;;  %v1815_v20 = vld [vmem:[#allocation2 + $0x150] sm:$0xff] }
 0x1e1   : > { %2121 = vmatmul.mubr.bf16.gmra.mrb[116].mxu1 %v4917_v26  ;;  %3856 = vmatmul.mubr.bf16.gmra.mrb[116].mxu0 %v2244_v42  ;;  %v2247_v26 = vpack.c.bf16 %v2222_v7, %v2221_v55 }
 0x1e2   : > { %2128 = vmatprep.mubr.bf16.mxu1 %v5010_v1  ;;  %3859 = vmatprep.mubr.bf16.mxu0 %v2245_v57  ;;  %v1816_v57 = vld [vmem:[#allocation2 + $0x158] sm:$0xff] }
 0x1e4   : > { %v3397_v45 = vpop.f32.mrb[12].mxu0  ;;  %v3469_v29 = vpop.f32.mrb[12].mxu1 }
 0x1e5   : > { %v3398_v63 = vpop.f32.mrb[13].mxu0  ;;  %v3470_v54 = vpop.f32.mrb[13].mxu1 }
 0x1e6   : > { %v5074_v16 = vadd.f32 %v3398_v63, %v3397_v45  ;;  %v5076_v9 = vadd.f32 %v3470_v54, %v3469_v29  ;;  %v3400_v11 = vpop.f32.mrb[14].mxu0  ;;  %v3472_v24 = vpop.f32.mrb[14].mxu1 }
 0x1e7   : > { %v3401_v30 = vpop.f32.mrb[15].mxu0  ;;  %v3473_v31 = vpop.f32.mrb[15].mxu1 }
 0x1e8   : > { %v5078_v1 = vadd.f32 %v3401_v30, %v3400_v11  ;;  %v5080_v25 = vadd.f32 %v3473_v31, %v3472_v24  ;;  %v1817_v11 = vld [vmem:[#allocation2 + $0x168] sm:$0xff]  ;;  %v1818_v24 = vld [vmem:[#allocation2 + $0x170] sm:$0xff] }
 0x1e9   : > { %2129 = vmatmul.mubr.bf16.gmra.mrb[120].mxu1 %v4931_v23  ;;  %3860 = vmatmul.mubr.bf16.gmra.mrb[120].mxu0 %v2246_v18  ;;  %v1868_v61 = vpack.c.bf16 %v1818_v24, %v1817_v11 }
 0x1ea   : > { %2136 = vmatprep.mubr.bf16.mxu1 %v5017_v15  ;;  %3863 = vmatprep.mubr.bf16.mxu0 %v2247_v26 }
 0x1ec   : > { %v3403_v2 = vpop.f32.mrb[16].mxu0  ;;  %v3491_v36 = vpop.f32.mrb[16].mxu1 }
 0x1ed   : > { %v3404_v46 = vpop.f32.mrb[17].mxu0  ;;  %v3492_v44 = vpop.f32.mrb[17].mxu1 }
 0x1ee   : > { %v5084_v62 = vadd.f32 %v3404_v46, %v3403_v2  ;;  %v3493_v39 = vadd.f32 %v3492_v44, %v3491_v36  ;;  %v3406_v43 = vpop.f32.mrb[18].mxu0  ;;  %v3494_v47 = vpop.f32.mrb[18].mxu1  ;;  %v1819_v44 = vld [vmem:[#allocation2 + $0x180] sm:$0xff] }
 0x1ef   : > { %v3407_v23 = vpop.f32.mrb[19].mxu0  ;;  %v3495_v40 = vpop.f32.mrb[19].mxu1 }
 0x1f0   : > { %v5087_v41 = vadd.f32 %v3493_v39, %v5043_v59  ;;  %v5089_v15 = vadd.f32 %v3407_v23, %v3406_v43  ;;  %v3496_v42 = vadd.f32 %v3495_v40, %v3494_v47  ;;  %v1867_v59 = vpack.c.bf16 %v1816_v57, %v1815_v20  ;;  %v1854_v39 = vld [vmem:[#allocation2 + $0x1a1] sm:$0xff] }
 0x1f1   : > { %2137 = vmatmul.mubr.bf16.gmra.mrb[124].mxu1 %v1866_v38  ;;  %3864 = vmatmul.mubr.bf16.gmra.mrb[124].mxu0 %v2248_v10  ;;  %v1820_v38 = vld [vmem:[#allocation2 + $0x188] sm:$0xff]  ;;  %v1853_v10 = vld [vmem:[#allocation2 + $0x199] sm:$0xff] }
 0x1f2   : > { %v5092_v27 = vadd.f32 %v3496_v42, %v5047_v28  ;;  %2144 = vmatprep.mubr.bf16.mxu1 %v5025_v50  ;;  %3867 = vmatprep.mubr.bf16.mxu0 %v4929_v22  ;;  %v1869_v40 = vpack.c.bf16 %v1820_v38, %v1819_v44 }
 0x1f4   : > { %v3409_v49 = vpop.f32.mrb[20].mxu0  ;;  %v3497_v53 = vpop.f32.mrb[20].mxu1 }
 0x1f5   : > { %v3410_v8 = vpop.f32.mrb[21].mxu0  ;;  %v3498_v60 = vpop.f32.mrb[21].mxu1 }
 0x1f6   : > { %v5096_v55 = vadd.f32 %v3410_v8, %v3409_v49  ;;  %v3499_v7 = vadd.f32 %v3498_v60, %v3497_v53  ;;  %v3412_v45 = vpop.f32.mrb[22].mxu0  ;;  %v3500_v29 = vpop.f32.mrb[22].mxu1  ;;  %v1821_v60 = vld [vmem:[#allocation2 + $0x198] sm:$0xff] }
 0x1f7   : > { %v3413_v63 = vpop.f32.mrb[23].mxu0  ;;  %v3501_v54 = vpop.f32.mrb[23].mxu1 }
 0x1f8   : > { %v5099_v28 = vadd.f32 %v3499_v7, %v5054_v35  ;;  %v5101_v50 = vadd.f32 %v3413_v63, %v3412_v45  ;;  %v3502_v22 = vadd.f32 %v3501_v54, %v3500_v29  ;;  %v1822_v7 = vld [vmem:[#allocation2 + $0x1a0] sm:$0xff] }
 0x1f9   : > { %2145 = vmatmul.mubr.bf16.gmra.mrb[128].mxu1 %v1867_v59  ;;  %3868 = vmatmul.mubr.bf16.gmra.mrb[128].mxu0 %v4940_v51  ;;  %v2239_v45 = vld [vmem:[#allocation2 + $0x19a] sm:$0xff]  ;;  %v2240_v29 = vld [vmem:[#allocation2 + $0x1a2] sm:$0xff]  ;;  %v1870_v11 = vpack.c.bf16 %v1822_v7, %v1821_v60 }
 0x1fa   : > { %v5105_v18 = vadd.f32 %v3502_v22, %v5058_v52  ;;  %2152 = vmatprep.mubr.bf16.mxu1 %v5033_v12  ;;  %3871 = vmatprep.mubr.bf16.mxu0 %v5005_v33  ;;  %v2256_v24 = vpack.c.bf16 %v2240_v29, %v2239_v45 }
 0x1fc   : > { %v3415_v26 = vpop.f32.mrb[24].mxu0  ;;  %v3503_v30 = vpop.f32.mrb[24].mxu1 }
 0x1fd   : > { %v3416_v31 = vpop.f32.mrb[25].mxu0  ;;  %v3504_v35 = vpop.f32.mrb[25].mxu1 }
 0x1fe   : > { %v5109_v4 = vadd.f32 %v3416_v31, %v3415_v26  ;;  %v3505_v34 = vadd.f32 %v3504_v35, %v3503_v30  ;;  %v3418_v48 = vpop.f32.mrb[26].mxu0  ;;  %v3506_v2 = vpop.f32.mrb[26].mxu1 }
 0x1ff   : > { %v3419_v51 = vpop.f32.mrb[27].mxu0  ;;  %v3507_v36 = vpop.f32.mrb[27].mxu1 }
 0x200   : > { %v5112_v52 = vadd.f32 %v3505_v34, %v5064_v6  ;;  %v5114_v12 = vadd.f32 %v3419_v51, %v3418_v48  ;;  %v3508_v33 = vadd.f32 %v3507_v36, %v3506_v2 }
 0x201   : > { %2153 = vmatmul.mubr.bf16.gmra.mrb[132].mxu1 %v1868_v61  ;;  %3872 = vmatmul.mubr.bf16.gmra.mrb[132].mxu0 %v5012_v37 }
 0x202   : > { %v5118_v46 = vadd.f32 %v3508_v33, %v5068_v32  ;;  %2160 = vmatprep.mubr.bf16.mxu1 %v5041_v58  ;;  %3875 = vmatprep.mubr.bf16.mxu0 %v5019_v13  ;;  %v1886_v32 = vpack.c.bf16 %v1854_v39, %v1853_v10 }
 0x204   : > { %v3421_v43 = vpop.f32.mrb[28].mxu0  ;;  %v3509_v6 = vpop.f32.mrb[28].mxu1 }
 0x205   : > { %v3422_v47 = vpop.f32.mrb[29].mxu0  ;;  %v3510_v23 = vpop.f32.mrb[29].mxu1 }
 0x206   : > { %v5122_v42 = vadd.f32 %v3422_v47, %v3421_v43  ;;  %v3511_v20 = vadd.f32 %v3510_v23, %v3509_v6  ;;  %v3424_v37 = vpop.f32.mrb[30].mxu0  ;;  %v3512_v57 = vpop.f32.mrb[30].mxu1 }
 0x207   : > { %v3425_v49 = vpop.f32.mrb[31].mxu0  ;;  %v3513_v53 = vpop.f32.mrb[31].mxu1 }
 0x208   : > { %v5125_v58 = vadd.f32 %v3511_v20, %v5074_v16  ;;  %v5127_v13 = vadd.f32 %v3425_v49, %v3424_v37  ;;  %v3514_v8 = vadd.f32 %v3513_v53, %v3512_v57 }
 0x209   : > { %2161 = vmatmul.mubr.bf16.gmra.mrb[136].mxu1 %v1869_v40  ;;  %3876 = vmatmul.mubr.bf16.gmra.mrb[136].mxu0 %v5027_v3 }
 0x20a   : > { %v5131_v59 = vadd.f32 %v3514_v8, %v5078_v1  ;;  %2168 = vmatprep.mubr.bf16.mxu1 %v1886_v32  ;;  %3879 = vmatprep.mubr.bf16.mxu0 %v5035_v17 }
 0x20c   : > { %v3427_v63 = vpop.f32.mrb[32].mxu0  ;;  %v3515_v54 = vpop.f32.mrb[32].mxu1 }
 0x20d   : > { %v3428_v16 = vpop.f32.mrb[33].mxu0  ;;  %v3516_v22 = vpop.f32.mrb[33].mxu1 }
 0x20e   : > { %v5134_v26 = vadd.f32 %v3428_v16, %v3427_v63  ;;  %v3517_v30 = vadd.f32 %v3516_v22, %v3515_v54  ;;  %v3430_v3 = vpop.f32.mrb[34].mxu0  ;;  %v3518_v31 = vpop.f32.mrb[34].mxu1 }
 0x20f   : > { %v3431_v35 = vpop.f32.mrb[35].mxu0  ;;  %v3519_v1 = vpop.f32.mrb[35].mxu1 }
 0x210   : > { %v5137_v61 = vadd.f32 %v3517_v30, %v5084_v62  ;;  %v3432_v17 = vadd.f32 %v3431_v35, %v3430_v3  ;;  %v3520_v34 = vadd.f32 %v3519_v1, %v3518_v31 }
 0x211   : > { %2169 = vmatmul.mubr.bf16.gmra.mrb[140].mxu1 %v1870_v11  ;;  %3880 = vmatmul.mubr.bf16.gmra.mrb[140].mxu0 %v2256_v24 }
 0x212   : > { %v5140_v48 = vadd.f32 %v3520_v34, %v5089_v15 }
 0x214   : > { %v3433_v2 = vpop.f32.mrb[36].mxu0  ;;  %v3521_v51 = vpop.f32.mrb[36].mxu1 }
 0x215   : > { %v3434_v36 = vpop.f32.mrb[37].mxu0  ;;  %v3522_v33 = vpop.f32.mrb[37].mxu1 }
 0x216   : > { %v5142_v44 = vadd.f32 %v3434_v36, %v3433_v2  ;;  %v3523_v38 = vadd.f32 %v3522_v33, %v3521_v51  ;;  %v3436_v10 = vpop.f32.mrb[38].mxu0  ;;  %v3524_v39 = vpop.f32.mrb[38].mxu1 }
 0x217   : > { %v3437_v43 = vpop.f32.mrb[39].mxu0  ;;  %v3525_v6 = vpop.f32.mrb[39].mxu1 }
 0x218   : > { %v5145_v62 = vadd.f32 %v3523_v38, %v5096_v55  ;;  %v3438_v47 = vadd.f32 %v3437_v43, %v3436_v10  ;;  %v3526_v23 = vadd.f32 %v3525_v6, %v3524_v39 }
 0x21a   : > { %v5148_v40 = vadd.f32 %v3526_v23, %v5101_v50 }
 0x21c   : > { %v3439_v15 = vpop.f32.mrb[40].mxu0  ;;  %v3527_v20 = vpop.f32.mrb[40].mxu1 }
 0x21d   : > { %v3440_v37 = vpop.f32.mrb[41].mxu0  ;;  %v3528_v57 = vpop.f32.mrb[41].mxu1 }
 0x21e   : > { %v5150_v32 = vadd.f32 %v3440_v37, %v3439_v15  ;;  %v3529_v49 = vadd.f32 %v3528_v57, %v3527_v20  ;;  %v3442_v53 = vpop.f32.mrb[42].mxu0  ;;  %v3530_v8 = vpop.f32.mrb[42].mxu1 }
 0x21f   : > { %v3443_v60 = vpop.f32.mrb[43].mxu0  ;;  %v3531_v7 = vpop.f32.mrb[43].mxu1 }
 0x220   : > { %v5153_v45 = vadd.f32 %v3529_v49, %v5109_v4  ;;  %v5155_v55 = vadd.f32 %v3443_v60, %v3442_v53  ;;  %v3532_v29 = vadd.f32 %v3531_v7, %v3530_v8 }
 0x222   : > { %v5158_v50 = vadd.f32 %v3532_v29, %v5114_v12 }
 0x224   : > { %v3445_v63 = vpop.f32.mrb[44].mxu0  ;;  %v3533_v54 = vpop.f32.mrb[44].mxu1 }
 0x225   : > { %v3446_v16 = vpop.f32.mrb[45].mxu0  ;;  %v3534_v22 = vpop.f32.mrb[45].mxu1 }
 0x226   : > { %v5160_v11 = vadd.f32 %v3446_v16, %v3445_v63  ;;  %v3535_v24 = vadd.f32 %v3534_v22, %v3533_v54  ;;  %v3448_v30 = vpop.f32.mrb[46].mxu0  ;;  %v3536_v3 = vpop.f32.mrb[46].mxu1 }
 0x227   : > { %v3449_v31 = vpop.f32.mrb[47].mxu0  ;;  %v3537_v35 = vpop.f32.mrb[47].mxu1 }
 0x228   : > { %v5163_v4 = vadd.f32 %v3535_v24, %v5122_v42  ;;  %v5165_v1 = vadd.f32 %v3449_v31, %v3448_v30  ;;  %v3538_v34 = vadd.f32 %v3537_v35, %v3536_v3 }
 0x22a   : > { %v5168_v12 = vadd.f32 %v3538_v34, %v5127_v13 }
 0x22c   : > { %v3539_v2 = vpop.f32.mrb[48].mxu1  ;;  %v3603_v51 = vpop.f32.mrb[48].mxu0 }
 0x22d   : > { %v3540_v36 = vpop.f32.mrb[49].mxu1  ;;  %v3604_v33 = vpop.f32.mrb[49].mxu0 }
 0x22e   : > { %v3541_v38 = vadd.f32 %v3540_v36, %v3539_v2  ;;  %v3605_v10 = vadd.f32 %v3604_v33, %v3603_v51  ;;  %v3542_v39 = vpop.f32.mrb[50].mxu1  ;;  %v3606_v43 = vpop.f32.mrb[50].mxu0 }
 0x22f   : > { %v3543_v6 = vpop.f32.mrb[51].mxu1  ;;  %v3607_v23 = vpop.f32.mrb[51].mxu0 }
 0x230   : > { %v5171_v15 = vadd.f32 %v3541_v38, %v5134_v26  ;;  %v5174_v42 = vadd.f32 %v3605_v10, %v5087_v41  ;;  %v3544_v20 = vadd.f32 %v3543_v6, %v3542_v39  ;;  %v3608_v37 = vadd.f32 %v3607_v23, %v3606_v43 }
 0x232   : > { %v5176_v13 = vadd.f32 %v3544_v20, %v3432_v17  ;;  %v5179_v57 = vadd.f32 %v3608_v37, %v5092_v27 }
 0x234   : > { %v3545_v49 = vpop.f32.mrb[52].mxu1  ;;  %v3609_v53 = vpop.f32.mrb[52].mxu0 }
 0x235   : > { %v3546_v8 = vpop.f32.mrb[53].mxu1  ;;  %v3610_v60 = vpop.f32.mrb[53].mxu0 }
 0x236   : > { %v3547_v7 = vadd.f32 %v3546_v8, %v3545_v49  ;;  %v3611_v29 = vadd.f32 %v3610_v60, %v3609_v53  ;;  %v3548_v63 = vpop.f32.mrb[54].mxu1  ;;  %v3612_v54 = vpop.f32.mrb[54].mxu0 }
 0x237   : > { %v3549_v26 = vpop.f32.mrb[55].mxu1  ;;  %v3613_v16 = vpop.f32.mrb[55].mxu0 }
 0x238   : > { %v5182_v41 = vadd.f32 %v3547_v7, %v5142_v44  ;;  %v5185_v22 = vadd.f32 %v3611_v29, %v5099_v28  ;;  %v3550_v17 = vadd.f32 %v3549_v26, %v3548_v63  ;;  %v3614_v24 = vadd.f32 %v3613_v16, %v3612_v54 }
 0x23a   : > { %v5187_v27 = vadd.f32 %v3550_v17, %v3438_v47  ;;  %v5190_v30 = vadd.f32 %v3614_v24, %v5105_v18 }
 0x23c   : > { %v3551_v3 = vpop.f32.mrb[56].mxu1  ;;  %v3615_v31 = vpop.f32.mrb[56].mxu0 }
 0x23d   : > { %v3552_v35 = vpop.f32.mrb[57].mxu1  ;;  %v3616_v34 = vpop.f32.mrb[57].mxu0 }
 0x23e   : > { %v3553_v2 = vadd.f32 %v3552_v35, %v3551_v3  ;;  %v3617_v51 = vadd.f32 %v3616_v34, %v3615_v31  ;;  %v3554_v36 = vpop.f32.mrb[58].mxu1  ;;  %v3618_v33 = vpop.f32.mrb[58].mxu0 }
 0x23f   : > { %v3555_v44 = vpop.f32.mrb[59].mxu1  ;;  %v3619_v38 = vpop.f32.mrb[59].mxu0 }
 0x240   : > { %v5193_v28 = vadd.f32 %v3553_v2, %v5150_v32  ;;  %v5196_v10 = vadd.f32 %v3617_v51, %v5112_v52  ;;  %v3556_v47 = vadd.f32 %v3555_v44, %v3554_v36  ;;  %v3620_v39 = vadd.f32 %v3619_v38, %v3618_v33 }
 0x242   : > { %v5199_v18 = vadd.f32 %v3556_v47, %v5155_v55  ;;  %v5202_v43 = vadd.f32 %v3620_v39, %v5118_v46 }
 0x244   : > { %v3557_v6 = vpop.f32.mrb[60].mxu1  ;;  %v3621_v23 = vpop.f32.mrb[60].mxu0 }
 0x245   : > { %v3558_v20 = vpop.f32.mrb[61].mxu1  ;;  %v3622_v37 = vpop.f32.mrb[61].mxu0 }
 0x246   : > { %v3559_v49 = vadd.f32 %v3558_v20, %v3557_v6  ;;  %v3623_v53 = vadd.f32 %v3622_v37, %v3621_v23  ;;  %v3560_v8 = vpop.f32.mrb[62].mxu1  ;;  %v3624_v32 = vpop.f32.mrb[62].mxu0 }
 0x247   : > { %v3561_v60 = vpop.f32.mrb[63].mxu1  ;;  %v3625_v7 = vpop.f32.mrb[63].mxu0 }
 0x248   : > { %v5205_v52 = vadd.f32 %v3559_v49, %v5160_v11  ;;  %v5208_v29 = vadd.f32 %v3623_v53, %v5125_v58  ;;  %v3562_v55 = vadd.f32 %v3561_v60, %v3560_v8  ;;  %v3626_v63 = vadd.f32 %v3625_v7, %v3624_v32 }
 0x24a   : > { %v5211_v46 = vadd.f32 %v3562_v55, %v5165_v1  ;;  %v5214_v54 = vadd.f32 %v3626_v63, %v5131_v59 }
 0x24c   : > { %v3563_v26 = vpop.f32.mrb[64].mxu1  ;;  %v3627_v16 = vpop.f32.mrb[64].mxu0 }
 0x24d   : > { %v3564_v17 = vpop.f32.mrb[65].mxu1  ;;  %v3628_v24 = vpop.f32.mrb[65].mxu0 }
 0x24e   : > { %v3565_v3 = vadd.f32 %v3564_v17, %v3563_v26  ;;  %v3629_v31 = vadd.f32 %v3628_v24, %v3627_v16  ;;  %v3566_v35 = vpop.f32.mrb[66].mxu1  ;;  %v3630_v11 = vpop.f32.mrb[66].mxu0 }
 0x24f   : > { %v3567_v34 = vpop.f32.mrb[67].mxu1  ;;  %v3631_v2 = vpop.f32.mrb[67].mxu0 }
 0x250   : > { %v5217_v58 = vadd.f32 %v3565_v3, %v5045_v56  ;;  %v5220_v51 = vadd.f32 %v3629_v31, %v5137_v61  ;;  %v3568_v1 = vadd.f32 %v3567_v34, %v3566_v35  ;;  %v3632_v36 = vadd.f32 %v3631_v2, %v3630_v11 }
 0x252   : > { %v5223_v59 = vadd.f32 %v3568_v1, %v5049_v19  ;;  %v5226_v33 = vadd.f32 %v3632_v36, %v5140_v48 }
 0x254   : > { %v3569_v44 = vpop.f32.mrb[68].mxu1  ;;  %v3633_v38 = vpop.f32.mrb[68].mxu0 }
 0x255   : > { %v3570_v47 = vpop.f32.mrb[69].mxu1  ;;  %v3634_v39 = vpop.f32.mrb[69].mxu0 }
 0x256   : > { %v3571_v6 = vadd.f32 %v3570_v47, %v3569_v44  ;;  %v3635_v23 = vadd.f32 %v3634_v39, %v3633_v38  ;;  %v3572_v20 = vpop.f32.mrb[70].mxu1  ;;  %v3636_v56 = vpop.f32.mrb[70].mxu0 }
 0x257   : > { %v3573_v37 = vpop.f32.mrb[71].mxu1  ;;  %v3637_v49 = vpop.f32.mrb[71].mxu0 }
 0x258   : > { %v5229_v61 = vadd.f32 %v3571_v6, %v5056_v14  ;;  %v5232_v53 = vadd.f32 %v3635_v23, %v5145_v62  ;;  %v3574_v19 = vadd.f32 %v3573_v37, %v3572_v20  ;;  %v3638_v8 = vadd.f32 %v3637_v49, %v3636_v56 }
 0x25a   : > { %v5235_v48 = vadd.f32 %v3574_v19, %v5060_v5  ;;  %v5238_v32 = vadd.f32 %v3638_v8, %v5148_v40 }
 0x25c   : > { %v3575_v60 = vpop.f32.mrb[72].mxu1  ;;  %v3639_v7 = vpop.f32.mrb[72].mxu0 }
 0x25d   : > { %v3576_v55 = vpop.f32.mrb[73].mxu1  ;;  %v3640_v63 = vpop.f32.mrb[73].mxu0 }
 0x25e   : > { %v3577_v26 = vadd.f32 %v3576_v55, %v3575_v60  ;;  %v3641_v16 = vadd.f32 %v3640_v63, %v3639_v7  ;;  %v3578_v17 = vpop.f32.mrb[74].mxu1  ;;  %v3642_v14 = vpop.f32.mrb[74].mxu0 }
 0x25f   : > { %v3579_v24 = vpop.f32.mrb[75].mxu1  ;;  %v3643_v3 = vpop.f32.mrb[75].mxu0 }
 0x260   : > { %v5241_v62 = vadd.f32 %v3577_v26, %v5066_v21  ;;  %v5244_v31 = vadd.f32 %v3641_v16, %v5153_v45  ;;  %v3580_v5 = vadd.f32 %v3579_v24, %v3578_v17  ;;  %v3644_v35 = vadd.f32 %v3643_v3, %v3642_v14 }
 0x262   : > { %v5247_v40 = vadd.f32 %v3580_v5, %v5070_v0  ;;  %v5250_v11 = vadd.f32 %v3644_v35, %v5158_v50 }
 0x264   : > { %v3581_v34 = vpop.f32.mrb[76].mxu1  ;;  %v3645_v2 = vpop.f32.mrb[76].mxu0 }
 0x265   : > { %v3582_v1 = vpop.f32.mrb[77].mxu1  ;;  %v3646_v36 = vpop.f32.mrb[77].mxu0 }
 0x266   : > { %v3583_v44 = vadd.f32 %v3582_v1, %v3581_v34  ;;  %v3647_v38 = vadd.f32 %v3646_v36, %v3645_v2  ;;  %v3584_v47 = vpop.f32.mrb[78].mxu1  ;;  %v3648_v21 = vpop.f32.mrb[78].mxu0 }
 0x267   : > { %v3585_v39 = vpop.f32.mrb[79].mxu1  ;;  %v3649_v6 = vpop.f32.mrb[79].mxu0 }
 0x268   : > { %v5253_v45 = vadd.f32 %v3583_v44, %v5076_v9  ;;  %v5256_v23 = vadd.f32 %v3647_v38, %v5163_v4  ;;  %v3586_v0 = vadd.f32 %v3585_v39, %v3584_v47  ;;  %v3650_v20 = vadd.f32 %v3649_v6, %v3648_v21 }
 0x26a   : > { %v5259_v50 = vadd.f32 %v3586_v0, %v5080_v25  ;;  %v5262_v56 = vadd.f32 %v3650_v20, %v5168_v12 }
 0x26c   : > { %v3651_v37 = vpop.f32.mrb[80].mxu0  ;;  %v3715_v49 = vpop.f32.mrb[80].mxu1 }
 0x26d   : > { %v3652_v19 = vpop.f32.mrb[81].mxu0  ;;  %v3716_v8 = vpop.f32.mrb[81].mxu1 }
 0x26e   : > { %v3653_v60 = vadd.f32 %v3652_v19, %v3651_v37  ;;  %v3717_v7 = vadd.f32 %v3716_v8, %v3715_v49  ;;  %v3654_v55 = vpop.f32.mrb[82].mxu0  ;;  %v3718_v9 = vpop.f32.mrb[82].mxu1 }
 0x26f   : > { %v3655_v63 = vpop.f32.mrb[83].mxu0  ;;  %v3719_v26 = vpop.f32.mrb[83].mxu1 }
 0x270   : > { %v5265_v4 = vadd.f32 %v3653_v60, %v5171_v15  ;;  %v3656_v16 = vadd.f32 %v3655_v63, %v3654_v55  ;;  %v3720_v17 = vadd.f32 %v3719_v26, %v3718_v9  ;;  %v5268_v25 = vadd.f32 %v3717_v7, %v5174_v42 }
 0x272   : > { %v5271_v12 = vadd.f32 %v3656_v16, %v5176_v13  ;;  %v5274_v14 = vadd.f32 %v3720_v17, %v5179_v57 }
 0x274   : > { %v3657_v24 = vpop.f32.mrb[84].mxu0  ;;  %v3721_v3 = vpop.f32.mrb[84].mxu1 }
 0x275   : > { %v3658_v5 = vpop.f32.mrb[85].mxu0  ;;  %v3722_v35 = vpop.f32.mrb[85].mxu1 }
 0x276   : > { %v3659_v34 = vadd.f32 %v3658_v5, %v3657_v24  ;;  %v3723_v2 = vadd.f32 %v3722_v35, %v3721_v3  ;;  %v3660_v1 = vpop.f32.mrb[86].mxu0  ;;  %v3724_v15 = vpop.f32.mrb[86].mxu1 }
 0x277   : > { %v3661_v36 = vpop.f32.mrb[87].mxu0  ;;  %v3725_v44 = vpop.f32.mrb[87].mxu1 }
 0x278   : > { %v5277_v38 = vadd.f32 %v3659_v34, %v5182_v41  ;;  %v3662_v42 = vadd.f32 %v3661_v36, %v3660_v1  ;;  %v3726_v47 = vadd.f32 %v3725_v44, %v3724_v15  ;;  %v5280_v13 = vadd.f32 %v3723_v2, %v5185_v22 }
 0x27a   : > { %v5283_v57 = vadd.f32 %v3662_v42, %v5187_v27  ;;  %v5286_v21 = vadd.f32 %v3726_v47, %v5190_v30 }
 0x27c   : > { %v3663_v39 = vpop.f32.mrb[88].mxu0  ;;  %v3727_v6 = vpop.f32.mrb[88].mxu1 }
 0x27d   : > { %v3664_v0 = vpop.f32.mrb[89].mxu0  ;;  %v3728_v20 = vpop.f32.mrb[89].mxu1 }
 0x27e   : > { %v3665_v37 = vadd.f32 %v3664_v0, %v3663_v39  ;;  %v3729_v49 = vadd.f32 %v3728_v20, %v3727_v6  ;;  %v3666_v19 = vpop.f32.mrb[90].mxu0  ;;  %v3730_v41 = vpop.f32.mrb[90].mxu1 }
 0x27f   : > { %v3667_v8 = vpop.f32.mrb[91].mxu0  ;;  %v3731_v60 = vpop.f32.mrb[91].mxu1 }
 0x280   : > { %v5289_v7 = vadd.f32 %v3665_v37, %v5193_v28  ;;  %v3668_v22 = vadd.f32 %v3667_v8, %v3666_v19  ;;  %v3732_v55 = vadd.f32 %v3731_v60, %v3730_v41  ;;  %v5292_v27 = vadd.f32 %v3729_v49, %v5196_v10 }
 0x282   : > { %v5295_v30 = vadd.f32 %v3668_v22, %v5199_v18  ;;  %v5298_v9 = vadd.f32 %v3732_v55, %v5202_v43 }
 0x284   : > { %v3669_v63 = vpop.f32.mrb[92].mxu0  ;;  %v3733_v26 = vpop.f32.mrb[92].mxu1 }
 0x285   : > { %v3670_v16 = vpop.f32.mrb[93].mxu0  ;;  %v3734_v17 = vpop.f32.mrb[93].mxu1 }
 0x286   : > { %v3671_v24 = vadd.f32 %v3670_v16, %v3669_v63  ;;  %v3735_v3 = vadd.f32 %v3734_v17, %v3733_v26  ;;  %v3672_v5 = vpop.f32.mrb[94].mxu0  ;;  %v3736_v28 = vpop.f32.mrb[94].mxu1 }
 0x287   : > { %v3673_v35 = vpop.f32.mrb[95].mxu0  ;;  %v3737_v34 = vpop.f32.mrb[95].mxu1 }
 0x288   : > { %v5301_v2 = vadd.f32 %v3671_v24, %v5205_v52  ;;  %v3674_v10 = vadd.f32 %v3673_v35, %v3672_v5  ;;  %v3738_v1 = vadd.f32 %v3737_v34, %v3736_v28  ;;  %v5304_v18 = vadd.f32 %v3735_v3, %v5208_v29 }
 0x28a   : > { %v5307_v43 = vadd.f32 %v3674_v10, %v5211_v46  ;;  %v5310_v15 = vadd.f32 %v3738_v1, %v5214_v54 }
 0x28c   : > { %v3675_v36 = vpop.f32.mrb[96].mxu0  ;;  %v3739_v44 = vpop.f32.mrb[96].mxu1 }
 0x28d   : > { %v3676_v42 = vpop.f32.mrb[97].mxu0  ;;  %v3740_v47 = vpop.f32.mrb[97].mxu1 }
 0x28e   : > { %v3677_v39 = vadd.f32 %v3676_v42, %v3675_v36  ;;  %v3741_v6 = vadd.f32 %v3740_v47, %v3739_v44  ;;  %v3678_v0 = vpop.f32.mrb[98].mxu0  ;;  %v3742_v52 = vpop.f32.mrb[98].mxu1 }
 0x28f   : > { %v3679_v20 = vpop.f32.mrb[99].mxu0  ;;  %v3743_v37 = vpop.f32.mrb[99].mxu1 }
 0x290   : > { %v5313_v49 = vadd.f32 %v3677_v39, %v5217_v58  ;;  %v3680_v29 = vadd.f32 %v3679_v20, %v3678_v0  ;;  %v3744_v19 = vadd.f32 %v3743_v37, %v3742_v52  ;;  %v5316_v46 = vadd.f32 %v3741_v6, %v5220_v51 }
 0x292   : > { %v5319_v54 = vadd.f32 %v3680_v29, %v5223_v59  ;;  %v5322_v41 = vadd.f32 %v3744_v19, %v5226_v33 }
 0x294   : > { %v3681_v8 = vpop.f32.mrb[100].mxu0  ;;  %v3745_v60 = vpop.f32.mrb[100].mxu1 }
 0x295   : > { %v3682_v22 = vpop.f32.mrb[101].mxu0  ;;  %v3746_v55 = vpop.f32.mrb[101].mxu1 }
 0x296   : > { %v3683_v63 = vadd.f32 %v3682_v22, %v3681_v8  ;;  %v3747_v26 = vadd.f32 %v3746_v55, %v3745_v60  ;;  %v3684_v16 = vpop.f32.mrb[102].mxu0  ;;  %v3748_v58 = vpop.f32.mrb[102].mxu1 }
 0x297   : > { %v3685_v17 = vpop.f32.mrb[103].mxu0  ;;  %v3749_v24 = vpop.f32.mrb[103].mxu1 }
 0x298   : > { %v5325_v3 = vadd.f32 %v3683_v63, %v5229_v61  ;;  %v3686_v51 = vadd.f32 %v3685_v17, %v3684_v16  ;;  %v3750_v5 = vadd.f32 %v3749_v24, %v3748_v58  ;;  %v5328_v59 = vadd.f32 %v3747_v26, %v5232_v53 }
 0x29a   : > { %v5331_v33 = vadd.f32 %v3686_v51, %v5235_v48  ;;  %v5334_v28 = vadd.f32 %v3750_v5, %v5238_v32 }
 0x29c   : > { %v3687_v35 = vpop.f32.mrb[104].mxu0  ;;  %v3751_v34 = vpop.f32.mrb[104].mxu1 }
 0x29d   : > { %v3688_v10 = vpop.f32.mrb[105].mxu0  ;;  %v3752_v1 = vpop.f32.mrb[105].mxu1 }
 0x29e   : > { %v3689_v36 = vadd.f32 %v3688_v10, %v3687_v35  ;;  %v3753_v44 = vadd.f32 %v3752_v1, %v3751_v34  ;;  %v3690_v42 = vpop.f32.mrb[106].mxu0  ;;  %v3754_v61 = vpop.f32.mrb[106].mxu1 }
 0x29f   : > { %v3691_v47 = vpop.f32.mrb[107].mxu0  ;;  %v3755_v39 = vpop.f32.mrb[107].mxu1 }
 0x2a0   : > { %v5337_v6 = vadd.f32 %v3689_v36, %v5241_v62  ;;  %v3692_v53 = vadd.f32 %v3691_v47, %v3690_v42  ;;  %v3756_v0 = vadd.f32 %v3755_v39, %v3754_v61  ;;  %v5340_v48 = vadd.f32 %v3753_v44, %v5244_v31 }
 0x2a2   : > { %v5343_v32 = vadd.f32 %v3692_v53, %v5247_v40  ;;  %v5346_v52 = vadd.f32 %v3756_v0, %v5250_v11 }
 0x2a4   : > { %v3693_v20 = vpop.f32.mrb[108].mxu0  ;;  %v3757_v37 = vpop.f32.mrb[108].mxu1 }
 0x2a5   : > { %v3694_v29 = vpop.f32.mrb[109].mxu0  ;;  %v3758_v19 = vpop.f32.mrb[109].mxu1 }
 0x2a6   : > { %v3695_v8 = vadd.f32 %v3694_v29, %v3693_v20  ;;  %v3759_v60 = vadd.f32 %v3758_v19, %v3757_v37  ;;  %v3696_v22 = vpop.f32.mrb[110].mxu0  ;;  %v3760_v62 = vpop.f32.mrb[110].mxu1 }
 0x2a7   : > { %v3697_v55 = vpop.f32.mrb[111].mxu0  ;;  %v3761_v63 = vpop.f32.mrb[111].mxu1 }
 0x2a8   : > { %v5349_v26 = vadd.f32 %v3695_v8, %v5253_v45  ;;  %v3698_v31 = vadd.f32 %v3697_v55, %v3696_v22  ;;  %v3762_v16 = vadd.f32 %v3761_v63, %v3760_v62  ;;  %v5352_v40 = vadd.f32 %v3759_v60, %v5256_v23 }
 0x2aa   : > { %v5355_v11 = vadd.f32 %v3698_v31, %v5259_v50  ;;  %v5358_v58 = vadd.f32 %v3762_v16, %v5262_v56 }
 0x2ac   : > { %v3763_v17 = vpop.f32.mrb[112].mxu1  ;;  %v3853_v24 = vpop.f32.mrb[112].mxu0 }
 0x2ad   : > { %v2484_v51 = vadd.f32 %v3853_v24, %v5280_v13  ;;  %v3764_v5 = vpop.f32.mrb[113].mxu1  ;;  %v2355_v45 = vpop.f32.mrb[113].mxu0 }
 0x2ae   : > { %v3765_v35 = vadd.f32 %v3764_v5, %v3763_v17  ;;  %v2482_v34 = vadd.f32 %v2355_v45, %v5268_v25  ;;  %v3766_v10 = vpop.f32.mrb[114].mxu1  ;;  %v3854_v23 = vpop.f32.mrb[114].mxu0 }
 0x2af   : > { %v2485_v1 = vadd.f32 %v3854_v23, %v5286_v21  ;;  %v3767_v50 = vpop.f32.mrb[115].mxu1  ;;  %v2358_v36 = vpop.f32.mrb[115].mxu0 }
 0x2b0   : > { %v3768_v44 = vadd.f32 %v3767_v50, %v3766_v10  ;;  %v2483_v56 = vadd.f32 %v2358_v36, %v5274_v14  ;;  %v5365_v42 = vadd.f32 %v3765_v35, %v5265_v4 }
 0x2b1   : > { %v5367_v13 = vpack.c.bf16 %v2485_v1, %v2484_v51 }
 0x2b2   : > { %v5369_v61 = vpack.c.bf16 %v2483_v56, %v2482_v34  ;;  %v5372_v47 = vadd.f32 %v3768_v44, %v5271_v12 }
 0x2b3   : > { %3348 = vst [vmem:[%s4738_s29 + $0x8] sm:$0xff] %v5367_v13   ;;  %v2676_v20 = vunpack.c.l.bf16 %v5367_v13  ;;  %v2677_v17 = vunpack.c.h.bf16 %v5367_v13 }
 0x2b4   : > { %3257 = vst [vmem:[%s4738_s29] sm:$0xff] %v5369_v61   ;;  %v2674_v25 = vunpack.c.l.bf16 %v5369_v61  ;;  %v2675_v21 = vunpack.c.h.bf16 %v5369_v61  ;;  %v3769_v39 = vpop.f32.mrb[116].mxu1  ;;  %v3857_v14 = vpop.f32.mrb[116].mxu0 }
 0x2b5   : > { %v2488_v4 = vadd.f32 %v3857_v14, %v5304_v18  ;;  %v3770_v53 = vpop.f32.mrb[117].mxu1  ;;  %v2371_v0 = vpop.f32.mrb[117].mxu0 }
 0x2b6   : > { %v2706_v12 = vadd.f32 %v2675_v21, %v2674_v25  ;;  %v3771_v37 = vadd.f32 %v3770_v53, %v3769_v39  ;;  %v2486_v29 = vadd.f32 %v2371_v0, %v5292_v27  ;;  %v3772_v19 = vpop.f32.mrb[118].mxu1  ;;  %v3858_v8 = vpop.f32.mrb[118].mxu0 }
 0x2b7   : > { %v2489_v60 = vadd.f32 %v3858_v8, %v5310_v15  ;;  %v3773_v22 = vpop.f32.mrb[119].mxu1  ;;  %v2374_v18 = vpop.f32.mrb[119].mxu0 }
 0x2b8   : > { %v2707_v62 = vadd.f32 %v2706_v12, %v2676_v20  ;;  %v3774_v55 = vadd.f32 %v3773_v22, %v3772_v19  ;;  %v2487_v63 = vadd.f32 %v2374_v18, %v5298_v9  ;;  %v5392_v31 = vadd.f32 %v3771_v37, %v5277_v38 }
 0x2b9   : > { %v5394_v16 = vpack.c.bf16 %v2489_v60, %v2488_v4 }
 0x2ba   : > { %v5397_v27 = vpack.c.bf16 %v2487_v63, %v2486_v29  ;;  %v5400_v24 = vadd.f32 %v3774_v55, %v5283_v57  ;;  %v2708_v9 = vadd.f32 %v2707_v62, %v2677_v17 }
 0x2bb   : > { %3350 = vst [vmem:[%s4738_s29 + $0x18] sm:$0xff] %v5394_v16   ;;  %v2680_v36 = vunpack.c.l.bf16 %v5394_v16  ;;  %v2681_v0 = vunpack.c.h.bf16 %v5394_v16 }
 0x2bc   : > { %3349 = vst [vmem:[%s4738_s29 + $0x10] sm:$0xff] %v5397_v27   ;;  %v2678_v15 = vunpack.c.l.bf16 %v5397_v27  ;;  %v3775_v38 = vpop.f32.mrb[120].mxu1  ;;  %v3861_v51 = vpop.f32.mrb[120].mxu0  ;;  %v2679_v34 = vunpack.c.h.bf16 %v5397_v27 }
 0x2bd   : > { %v2492_v5 = vadd.f32 %v3861_v51, %v5328_v59  ;;  %v3776_v45 = vpop.f32.mrb[121].mxu1  ;;  %v2387_v35 = vpop.f32.mrb[121].mxu0 }
 0x2be   : > { %v2709_v57 = vadd.f32 %v2708_v9, %v2678_v15  ;;  %v3777_v10 = vadd.f32 %v3776_v45, %v3775_v38  ;;  %v2490_v23 = vadd.f32 %v2387_v35, %v5316_v46  ;;  %v3778_v1 = vpop.f32.mrb[122].mxu1  ;;  %v3862_v50 = vpop.f32.mrb[122].mxu0 }
 0x2bf   : > { %v2493_v44 = vadd.f32 %v3862_v50, %v5334_v28  ;;  %v3779_v56 = vpop.f32.mrb[123].mxu1  ;;  %v2390_v59 = vpop.f32.mrb[123].mxu0 }
 0x2c0   : > { %v2710_v39 = vadd.f32 %v2709_v57, %v2679_v34  ;;  %v3780_v14 = vadd.f32 %v3779_v56, %v3778_v1  ;;  %v2491_v4 = vadd.f32 %v2390_v59, %v5322_v41  ;;  %v5420_v53 = vadd.f32 %v3777_v10, %v5289_v7 }
 0x2c1   : > { %v5422_v46 = vpack.c.bf16 %v2493_v44, %v2492_v5 }
 0x2c2   : > { %v2711_v12 = vadd.f32 %v2710_v39, %v2680_v36  ;;  %v5427_v37 = vpack.c.bf16 %v2491_v4, %v2490_v23  ;;  %v5430_v28 = vadd.f32 %v3780_v14, %v5295_v30 }
 0x2c3   : > { %3352 = vst [vmem:[%s4738_s29 + $0x28] sm:$0xff] %v5422_v46   ;;  %v2684_v38 = vunpack.c.l.bf16 %v5422_v46 }
 0x2c4   : > { %3351 = vst [vmem:[%s4738_s29 + $0x20] sm:$0xff] %v5427_v37   ;;  %v2682_v41 = vunpack.c.l.bf16 %v5427_v37  ;;  %v2712_v7 = vadd.f32 %v2711_v12, %v2681_v0  ;;  %v3781_v29 = vpop.f32.mrb[124].mxu1  ;;  %v3865_v19 = vpop.f32.mrb[124].mxu0  ;;  %v2683_v18 = vunpack.c.h.bf16 %v5427_v37 }
 0x2c5   : > { %v2496_v8 = vadd.f32 %v3865_v19, %v5352_v40  ;;  %v3782_v60 = vpop.f32.mrb[125].mxu1  ;;  %v2403_v22 = vpop.f32.mrb[125].mxu0 }
 0x2c6   : > { %v2713_v30 = vadd.f32 %v2712_v7, %v2682_v41  ;;  %v3783_v62 = vadd.f32 %v3782_v60, %v3781_v29  ;;  %v2494_v55 = vadd.f32 %v2403_v22, %v5340_v48  ;;  %v3784_v63 = vpop.f32.mrb[126].mxu1  ;;  %v3866_v9 = vpop.f32.mrb[126].mxu0  ;;  %v2685_v48 = vunpack.c.h.bf16 %v5422_v46 }
 0x2c7   : > { %v2497_v51 = vadd.f32 %v3866_v9, %v5358_v58  ;;  %v3785_v5 = vpop.f32.mrb[127].mxu1  ;;  %v2406_v40 = vpop.f32.mrb[127].mxu0 }
 0x2c8   : > { %v2714_v45 = vadd.f32 %v2713_v30, %v2683_v18  ;;  %v3786_v35 = vadd.f32 %v3785_v5, %v3784_v63  ;;  %v2495_v57 = vadd.f32 %v2406_v40, %v5346_v52  ;;  %v2199_v10 = vadd.f32 %v3783_v62, %v5301_v2 }
 0x2c9   : > { %v5450_v23 = vpack.c.bf16 %v2497_v51, %v2496_v8 }
 0x2ca   : > { %v2715_v1 = vadd.f32 %v2714_v45, %v2684_v38  ;;  %v5455_v50 = vpack.c.bf16 %v2495_v57, %v2494_v55  ;;  %v2200_v58 = vadd.f32 %v3786_v35, %v5307_v43 }
 0x2cb   : > { %3354 = vst [vmem:[%s4738_s29 + $0x38] sm:$0xff] %v5450_v23   ;;  %v2688_v8 = vunpack.c.l.bf16 %v5450_v23 }
 0x2cc   : > { %3353 = vst [vmem:[%s4738_s29 + $0x30] sm:$0xff] %v5455_v50   ;;  %v2686_v44 = vunpack.c.l.bf16 %v5455_v50  ;;  %v2716_v2 = vadd.f32 %v2715_v1, %v2685_v48  ;;  %v3787_v52 = vpop.f32.mrb[128].mxu1  ;;  %v3869_v56 = vpop.f32.mrb[128].mxu0  ;;  %v2687_v4 = vunpack.c.h.bf16 %v5455_v50 }
 0x2cd   : > { %v2500_v59 = vadd.f32 %v3869_v56, %v5392_v31  ;;  %v3788_v39 = vpop.f32.mrb[129].mxu1  ;;  %v2419_v14 = vpop.f32.mrb[129].mxu0 }
 0x2ce   : > { %v2717_v43 = vadd.f32 %v2716_v2, %v2686_v44  ;;  %v3789_v12 = vadd.f32 %v3788_v39, %v3787_v52  ;;  %v2498_v7 = vadd.f32 %v2419_v14, %v5365_v42  ;;  %v3790_v29 = vpop.f32.mrb[130].mxu1  ;;  %v3870_v19 = vpop.f32.mrb[130].mxu0  ;;  %v2689_v42 = vunpack.c.h.bf16 %v5450_v23 }
 0x2cf   : > { %v2501_v60 = vadd.f32 %v3870_v19, %v5400_v24  ;;  %v3791_v22 = vpop.f32.mrb[131].mxu1  ;;  %v2422_v31 = vpop.f32.mrb[131].mxu0 }
 0x2d0   : > { %v2718_v30 = vadd.f32 %v2717_v43, %v2687_v4  ;;  %v3792_v62 = vadd.f32 %v3791_v22, %v3790_v29  ;;  %v2499_v55 = vadd.f32 %v2422_v31, %v5372_v47  ;;  %v2201_v63 = vadd.f32 %v3789_v12, %v5313_v49 }
 0x2d1   : > { %v5476_v9 = vpack.c.bf16 %v2501_v60, %v2500_v59 }
 0x2d2   : > { %v2719_v51 = vadd.f32 %v2718_v30, %v2688_v8  ;;  %v5481_v5 = vpack.c.bf16 %v2499_v55, %v2498_v7  ;;  %v2202_v24 = vadd.f32 %v3792_v62, %v5319_v54 }
 0x2d3   : > { %3356 = vst [vmem:[%s4738_s29 + $0x48] sm:$0xff] %v5476_v9   ;;  %v2692_v14 = vunpack.c.l.bf16 %v5476_v9 }
 0x2d4   : > { %3355 = vst [vmem:[%s4738_s29 + $0x40] sm:$0xff] %v5481_v5   ;;  %v2690_v40 = vunpack.c.l.bf16 %v5481_v5  ;;  %v2720_v49 = vadd.f32 %v2719_v51, %v2689_v42  ;;  %v3793_v47 = vpop.f32.mrb[132].mxu1  ;;  %v3873_v45 = vpop.f32.mrb[132].mxu0  ;;  %v2691_v2 = vunpack.c.h.bf16 %v5481_v5 }
 0x2d5   : > { %v2504_v35 = vadd.f32 %v3873_v45, %v2199_v10  ;;  %v3794_v57 = vpop.f32.mrb[133].mxu1  ;;  %v2435_v1 = vpop.f32.mrb[133].mxu0 }
 0x2d6   : > { %v2721_v52 = vadd.f32 %v2720_v49, %v2690_v40  ;;  %v3795_v54 = vadd.f32 %v3794_v57, %v3793_v47  ;;  %v2502_v56 = vadd.f32 %v2435_v1, %v5420_v53  ;;  %v3796_v59 = vpop.f32.mrb[134].mxu1  ;;  %v3874_v39 = vpop.f32.mrb[134].mxu0  ;;  %v2693_v53 = vunpack.c.h.bf16 %v5476_v9 }
 0x2d7   : > { %v2505_v43 = vadd.f32 %v3874_v39, %v2200_v58  ;;  %v3797_v12 = vpop.f32.mrb[135].mxu1  ;;  %v2438_v7 = vpop.f32.mrb[135].mxu0 }
 0x2d8   : > { %v2722_v10 = vadd.f32 %v2721_v52, %v2691_v2  ;;  %v3798_v29 = vadd.f32 %v3797_v12, %v3796_v59  ;;  %v2503_v19 = vadd.f32 %v2438_v7, %v5430_v28  ;;  %v2203_v60 = vadd.f32 %v3795_v54, %v5325_v3 }
 0x2d9   : > { %v5500_v22 = vpack.c.bf16 %v2505_v43, %v2504_v35 }
 0x2da   : > { %v2723_v31 = vadd.f32 %v2722_v10, %v2692_v14  ;;  %v5505_v30 = vpack.c.bf16 %v2503_v19, %v2502_v56  ;;  %v2204_v58 = vadd.f32 %v3798_v29, %v5331_v33 }
 0x2db   : > { %3358 = vst [vmem:[%s4738_s29 + $0x58] sm:$0xff] %v5500_v22   ;;  %v2696_v54 = vunpack.c.l.bf16 %v5500_v22 }
 0x2dc   : > { %3357 = vst [vmem:[%s4738_s29 + $0x50] sm:$0xff] %v5505_v30   ;;  %v2694_v62 = vunpack.c.l.bf16 %v5505_v30  ;;  %v2724_v3 = vadd.f32 %v2723_v31, %v2693_v53  ;;  %v3799_v28 = vpop.f32.mrb[136].mxu1  ;;  %v3877_v55 = vpop.f32.mrb[136].mxu0  ;;  %v2695_v45 = vunpack.c.h.bf16 %v5505_v30 }
 0x2dd   : > { %v2508_v51 = vadd.f32 %v3877_v55, %v2203_v60  ;;  %v3800_v49 = vpop.f32.mrb[137].mxu1  ;;  %v2451_v47 = vpop.f32.mrb[137].mxu0 }
 0x2de   : > { %v2725_v35 = vadd.f32 %v2724_v3, %v2694_v62  ;;  %v3801_v33 = vadd.f32 %v3800_v49, %v3799_v28  ;;  %v2506_v57 = vadd.f32 %v2451_v47, %v2201_v63  ;;  %v3802_v1 = vpop.f32.mrb[138].mxu1  ;;  %v3878_v52 = vpop.f32.mrb[138].mxu0  ;;  %v2697_v63 = vunpack.c.h.bf16 %v5500_v22 }
 0x2df   : > { %v2509_v56 = vadd.f32 %v3878_v52, %v2204_v58  ;;  %v3803_v59 = vpop.f32.mrb[139].mxu1  ;;  %v2454_v39 = vpop.f32.mrb[139].mxu0 }
 0x2e0   : > { %v2726_v43 = vadd.f32 %v2725_v35, %v2695_v45  ;;  %v3804_v12 = vadd.f32 %v3803_v59, %v3802_v1  ;;  %v2507_v7 = vadd.f32 %v2454_v39, %v2202_v24  ;;  %v2205_v10 = vadd.f32 %v3801_v33, %v5337_v6 }
 0x2e1   : > { %v5522_v29 = vpack.c.bf16 %v2509_v56, %v2508_v51 }
 0x2e2   : > { %v2727_v19 = vadd.f32 %v2726_v43, %v2696_v54  ;;  %v5527_v60 = vpack.c.bf16 %v2507_v7, %v2506_v57  ;;  %v2206_v31 = vadd.f32 %v3804_v12, %v5343_v32 }
 0x2e3   : > { %3360 = vst [vmem:[%s4738_s29 + $0x68] sm:$0xff] %v5522_v29   ;;  %v2700_v57 = vunpack.c.l.bf16 %v5522_v29  ;;  %v2701_v12 = vunpack.c.h.bf16 %v5522_v29 }
 0x2e4   : > { %3359 = vst [vmem:[%s4738_s29 + $0x60] sm:$0xff] %v5527_v60   ;;  %v2698_v58 = vunpack.c.l.bf16 %v5527_v60  ;;  %v2728_v6 = vadd.f32 %v2727_v19, %v2697_v63  ;;  %v3805_v24 = vpop.f32.mrb[140].mxu1  ;;  %v3881_v3 = vpop.f32.mrb[140].mxu0  ;;  %v2699_v51 = vunpack.c.h.bf16 %v5527_v60 }
 0x2e5   : > { %v3806_v28 = vpop.f32.mrb[141].mxu1  ;;  %v2467_v55 = vpop.f32.mrb[141].mxu0 }
 0x2e6   : > { %v2729_v49 = vadd.f32 %v2728_v6, %v2698_v58  ;;  %v3807_v47 = vadd.f32 %v3806_v28, %v3805_v24  ;;  %v2510_v32 = vadd.f32 %v2467_v55, %v2205_v10  ;;  %v3808_v35 = vpop.f32.mrb[142].mxu1  ;;  %v3882_v33 = vpop.f32.mrb[142].mxu0 }
 0x2e7   : > { %v3809_v1 = vpop.f32.mrb[143].mxu1  ;;  %v2470_v52 = vpop.f32.mrb[143].mxu0 }
 0x2e8   : > { %v2730_v56 = vadd.f32 %v2729_v49, %v2699_v51  ;;  %v2207_v59 = vadd.f32 %v3807_v47, %v5349_v26  ;;  %v3810_v39 = vadd.f32 %v3809_v1, %v3808_v35  ;;  %v2511_v43 = vadd.f32 %v2470_v52, %v2206_v31 }
 0x2ea   : > { %v2731_v7 = vadd.f32 %v2730_v56, %v2700_v57  ;;  %v2512_v10 = vadd.f32 %v3881_v3, %v2207_v59  ;;  %v2208_v19 = vadd.f32 %v3810_v39, %v5355_v11  ;;  %v5548_v6 = vpack.c.bf16 %v2511_v43, %v2510_v32 }
 0x2ec   : > { %v2513_v24 = vadd.f32 %v3882_v33, %v2208_v19  ;;  %3361 = vst [vmem:[%s4738_s29 + $0x70] sm:$0xff] %v5548_v6   ;;  %v2702_v26 = vunpack.c.l.bf16 %v5548_v6  ;;  %v2732_v31 = vadd.f32 %v2731_v7, %v2701_v12  ;;  %v2703_v3 = vunpack.c.h.bf16 %v5548_v6 }
 0x2ee   : > { %v5564_v11 = vpack.c.bf16 %v2513_v24, %v2512_v10  ;;  %v2733_v28 = vadd.f32 %v2732_v31, %v2702_v26 }
 0x2f0   : > { %3362 = vst [vmem:[%s4738_s29 + $0x78] sm:$0xff] %v5564_v11   ;;  %v2704_v55 = vunpack.c.l.bf16 %v5564_v11  ;;  %v2734_v49 = vadd.f32 %v2733_v28, %v2703_v3 }
 0x2f1   : > { %4247 = shalt.err (!%p4244_p13)
}
 0x2f2   : > { %s4248_s11 = scalar_lea.hbm %s5560_s17, 2048  ;;  %s4252_s30 = scalar_lea.hbm %s5760_s5, 4096 }
 0x2f3   : > { %p4249_p5 = scmp.ne.s32.totalorder %s5560_s17, %s4248_s11  ;;  %p4253_p10 = scmp.lt.u32.totalorder %s5560_s17, %s5760_s5 }
 0x2f4   : > { %p4254_p2 = scmp.lt.u32.totalorder %s4252_s30, %s4248_s11  ;;  %p4256_p6 = scmp.lt.u32.totalorder %s4248_s11, %s5560_s17 }
 0x2f5   : > { %p4250_p12 = pnand %p4249_p5, %p4548_p1 }
 0x2f6   : > { %p4255_p4 = por %p4254_p2, %p4253_p10 }
 0x2f7   : > { %p4251_p8 = pneg %p4250_p12 }
 0x2f8   : > { %p4257_p9 = por %p4256_p6, %p4255_p4 }
 0x2fa   : > { %p4258_p3 = pnand %p4257_p9, %p4251_p8 }
 0x2fc   : > { %4261 = shalt.err (!%p4258_p3)
}
 0x2fd   : > { %s4351_s14 = smov 64   ;;  %s4352_s7 = smov 4   ;;  %v2705_v47 = vunpack.c.h.bf16 %v5564_v11  ;;  %v2735_v32 = vadd.f32 %v2734_v49, %v2704_v55  ;;  %vm2845_vm0 = vcmask 1040384  }
 0x2fe   : > { %3917 = dma.vmem_to_hbm [thread:$0]  (%p4548_p1), %s5562_s9, 2048, %s5560_s17, %s2849_s19, %s4351_s14, %s4351_s14, %s4352_s7  }
 0x2ff   : > { %v2736_v35 = vadd.f32 %v2735_v32, %v2705_v47  ;;  %s3152_s9 = sshll.u32 %s4410_s25, 5  ;;  %s2883_s17 = sshll.u32 %s4742_s26, 4  ;;  %s5711_s17 = int_to_ptr.vmem [resolvable:$true] %s2883_s17 }
 0x300   : > { %s5709_s12 = scalar_lea.hbm %s5761_s6, %s3152_s9  ;;  %s2854_s11 = scalar_lea.sflag [#allocation14], %s4603_s13 }
 0x301   : > { %v2737_v33 = vrot.slane %v2736_v35, 4  ;;  %s4262_s27 = scalar_lea.vmem %s5711_s17, 32  ;;  %s4353_s25 = smov [#allocation13]  }
 0x302   : > { %p4263_p7 = scmp.ne.s32.totalorder %s5711_s17, %s4262_s27  ;;  %s4266_s29 = sshll.u32 %s4353_s25, 4  ;;  %s4267_s29 = int_to_ptr.vmem [resolvable:$false] %s4266_s29 }
 0x303   : > { %v2738_v1 = vadd.f32 %v2737_v33, %v2736_v35  ;;  %s4268_s30 = scalar_lea.vmem %s4267_s29, 64  ;;  %p4269_p13 = scmp.lt.s32.totalorder %s5711_s17, %s4267_s29 }
 0x304   : > { %p4264_p11 = pnand %p4263_p7, %p4548_p1  ;;  %p4270_p5 = scmp.lt.s32.totalorder %s4268_s30, %s4262_s27 }
 0x305   : > { %v2739_v52 = vrot.slane %v2738_v1, 2 }
 0x306   : > { %p4265_p0 = pneg %p4264_p11  ;;  %p4271_p12 = por %p4270_p5, %p4269_p13 }
 0x307   : > { %v2740_v56 = vadd.f32 %v2739_v52, %v2738_v1 }
 0x308   : > { %p4272_p8 = pnand %p4271_p12, %p4265_p0 }
 0x309   : > { %v2741_v59 = vrot.slane %v2740_v56, 1 }
 0x30b   : > { %v5603_v39 = vadd.f32 %v2741_v59, %v2740_v56 }
 0x30d   : > { %v5606_v43 = vmul.f32 0.00390625, %v5603_v39 }
 0x30f   : > { %v2744_v7 = vsub.f32 %v2674_v25, %v5606_v43  ;;  %v2745_v10 = vsub.f32 %v2675_v21, %v5606_v43  ;;  %v2746_v19 = vsub.f32 %v2676_v20, %v5606_v43  ;;  %v2747_v28 = vsub.f32 %v2677_v17, %v5606_v43 }
 0x310   : > { %v2748_v49 = vsub.f32 %v2678_v15, %v5606_v43  ;;  %v2749_v61 = vsub.f32 %v2679_v34, %v5606_v43  ;;  %v2750_v20 = vsub.f32 %v2680_v36, %v5606_v43  ;;  %v2751_v13 = vsub.f32 %v2681_v0, %v5606_v43 }
 0x311   : > { %v2776_v24 = vmul.f32 %v2744_v7, %v2744_v7  ;;  %v2777_v31 = vmul.f32 %v2745_v10, %v2745_v10  ;;  %v2778_v32 = vmul.f32 %v2746_v19, %v2746_v19  ;;  %v2779_v21 = vmul.f32 %v2747_v28, %v2747_v28 }
 0x312   : > { %v2780_v33 = vmul.f32 %v2748_v49, %v2748_v49  ;;  %v2781_v17 = vmul.f32 %v2749_v61, %v2749_v61  ;;  %v2752_v52 = vsub.f32 %v2682_v41, %v5606_v43  ;;  %v2782_v27 = vmul.f32 %v2750_v20, %v2750_v20 }
 0x313   : > { %v2808_v25 = vadd.f32 %v2777_v31, %v2776_v24  ;;  %v2753_v56 = vsub.f32 %v2683_v18, %v5606_v43  ;;  %v2783_v59 = vmul.f32 %v2751_v13, %v2751_v13  ;;  %v2754_v7 = vsub.f32 %v2684_v38, %v5606_v43 }
 0x314   : > { %v2784_v16 = vmul.f32 %v2752_v52, %v2752_v52  ;;  %v2755_v10 = vsub.f32 %v2685_v48, %v5606_v43  ;;  %v2756_v24 = vsub.f32 %v2686_v44, %v5606_v43  ;;  %v2757_v31 = vsub.f32 %v2687_v4, %v5606_v43 }
 0x315   : > { %v2809_v35 = vadd.f32 %v2808_v25, %v2778_v32  ;;  %v2785_v19 = vmul.f32 %v2753_v56, %v2753_v56  ;;  %v2786_v37 = vmul.f32 %v2754_v7, %v2754_v7  ;;  %v2758_v49 = vsub.f32 %v2688_v8, %v5606_v43 }
 0x316   : > { %v2787_v28 = vmul.f32 %v2755_v10, %v2755_v10  ;;  %v2788_v46 = vmul.f32 %v2756_v24, %v2756_v24  ;;  %v2759_v32 = vsub.f32 %v2689_v42, %v5606_v43  ;;  %v2789_v25 = vmul.f32 %v2757_v31, %v2757_v31 }
 0x317   : > { %v2810_v1 = vadd.f32 %v2809_v35, %v2779_v21  ;;  %v2760_v61 = vsub.f32 %v2690_v40, %v5606_v43  ;;  %v2790_v50 = vmul.f32 %v2758_v49, %v2758_v49  ;;  %v2761_v21 = vsub.f32 %v2691_v2, %v5606_v43 }
 0x318   : > { %v2791_v35 = vmul.f32 %v2759_v32, %v2759_v32  ;;  %v2762_v20 = vsub.f32 %v2692_v14, %v5606_v43  ;;  %v2764_v13 = vsub.f32 %v2694_v62, %v5606_v43  ;;  %v2766_v52 = vsub.f32 %v2696_v54, %v5606_v43 }
 0x319   : > { %v2811_v15 = vadd.f32 %v2810_v1, %v2780_v33  ;;  %v2792_v23 = vmul.f32 %v2760_v61, %v2760_v61  ;;  %v2763_v33 = vsub.f32 %v2693_v53, %v5606_v43  ;;  %v2793_v1 = vmul.f32 %v2761_v21, %v2761_v21 }
 0x31a   : > { %v2794_v5 = vmul.f32 %v2762_v20, %v2762_v20  ;;  %v2796_v9 = vmul.f32 %v2764_v13, %v2764_v13  ;;  %v2768_v56 = vsub.f32 %v2698_v58, %v5606_v43  ;;  %v2798_v30 = vmul.f32 %v2766_v52, %v2766_v52 }
 0x31b   : > { %v2812_v34 = vadd.f32 %v2811_v15, %v2781_v17  ;;  %v2765_v17 = vsub.f32 %v2695_v45, %v5606_v43  ;;  %v2795_v15 = vmul.f32 %v2763_v33, %v2763_v33  ;;  %v2770_v7 = vsub.f32 %v2700_v57, %v5606_v43 }
 0x31c   : > { %v2800_v22 = vmul.f32 %v2768_v56, %v2768_v56  ;;  %v2772_v10 = vsub.f32 %v2702_v26, %v5606_v43  ;;  %v2774_v24 = vsub.f32 %v2704_v55, %v5606_v43  ;;  %v2775_v26 = vsub.f32 %v2705_v47, %v5606_v43 }
 0x31d   : > { %v2813_v36 = vadd.f32 %v2812_v34, %v2782_v27  ;;  %v2767_v27 = vsub.f32 %v2697_v63, %v5606_v43  ;;  %v2797_v34 = vmul.f32 %v2765_v17, %v2765_v17  ;;  %v2802_v60 = vmul.f32 %v2770_v7, %v2770_v7 }
 0x31e   : > { %v2804_v29 = vmul.f32 %v2772_v10, %v2772_v10  ;;  %v2806_v31 = vmul.f32 %v2774_v24, %v2774_v24 }
 0x31f   : > { %v2814_v0 = vadd.f32 %v2813_v36, %v2783_v59  ;;  %v2769_v59 = vsub.f32 %v2699_v51, %v5606_v43  ;;  %v2799_v36 = vmul.f32 %v2767_v27, %v2767_v27 }
 0x321   : > { %v2815_v41 = vadd.f32 %v2814_v0, %v2784_v16  ;;  %v2771_v16 = vsub.f32 %v2701_v12, %v5606_v43  ;;  %v2801_v0 = vmul.f32 %v2769_v59, %v2769_v59 }
 0x323   : > { %v2816_v18 = vadd.f32 %v2815_v41, %v2785_v19  ;;  %v2773_v19 = vsub.f32 %v2703_v3, %v5606_v43  ;;  %v2803_v41 = vmul.f32 %v2771_v16, %v2771_v16  ;;  %v2807_v3 = vmul.f32 %v2775_v26, %v2775_v26 }
 0x325   : > { %v2817_v38 = vadd.f32 %v2816_v18, %v2786_v37  ;;  %v2805_v37 = vmul.f32 %v2773_v19, %v2773_v19 }
 0x327   : > { %v2818_v48 = vadd.f32 %v2817_v38, %v2787_v28 }
 0x329   : > { %v2819_v44 = vadd.f32 %v2818_v48, %v2788_v46 }
 0x32b   : > { %v2820_v4 = vadd.f32 %v2819_v44, %v2789_v25 }
 0x32d   : > { %v2821_v8 = vadd.f32 %v2820_v4, %v2790_v50 }
 0x32f   : > { %v2822_v42 = vadd.f32 %v2821_v8, %v2791_v35 }
 0x331   : > { %v2823_v40 = vadd.f32 %v2822_v42, %v2792_v23 }
 0x333   : > { %v2824_v2 = vadd.f32 %v2823_v40, %v2793_v1 }
 0x335   : > { %v2825_v14 = vadd.f32 %v2824_v2, %v2794_v5 }
 0x337   : > { %v2826_v53 = vadd.f32 %v2825_v14, %v2795_v15 }
 0x339   : > { %v2827_v62 = vadd.f32 %v2826_v53, %v2796_v9 }
 0x33b   : > { %v2828_v45 = vadd.f32 %v2827_v62, %v2797_v34 }
 0x33d   : > { %v2829_v54 = vadd.f32 %v2828_v45, %v2798_v30 }
 0x33f   : > { %v2830_v63 = vadd.f32 %v2829_v54, %v2799_v36 }
 0x341   : > { %v2831_v58 = vadd.f32 %v2830_v63, %v2800_v22 }
 0x343   : > { %v2832_v51 = vadd.f32 %v2831_v58, %v2801_v0 }
 0x345   : > { %v2833_v57 = vadd.f32 %v2832_v51, %v2802_v60 }
 0x347   : > { %v2834_v12 = vadd.f32 %v2833_v57, %v2803_v41 }
 0x349   : > { %v2835_v18 = vadd.f32 %v2834_v12, %v2804_v29 }
 0x34b   : > { %v2836_v28 = vadd.f32 %v2835_v18, %v2805_v37 }
 0x34d   : > { %v2837_v6 = vadd.f32 %v2836_v28, %v2806_v31 }
 0x34f   : > { %v2838_v38 = vadd.f32 %v2837_v6, %v2807_v3 }
 0x351   : > { %v2839_v49 = vrot.slane %v2838_v38, 4 }
 0x353   : > { %v2840_v55 = vadd.f32 %v2839_v49, %v2838_v38 }
 0x355   : > { %v2841_v46 = vrot.slane %v2840_v55, 2 }
 0x357   : > { %v2842_v48 = vadd.f32 %v2841_v46, %v2840_v55 }
 0x359   : > { %v2843_v32 = vrot.slane %v2842_v48, 1 }
 0x35b   : > { %v2844_v25 = vadd.f32 %v2843_v32, %v2842_v48 }
 0x35d   : > { %v2846_v11 = vsel %vm2845_vm0, %v5603_v39, %v2844_v25 }
 0x35e   : > { %2847 = vst [vmem:[%s4742_s26] sm:$0x3] %v2846_v11 }
 0x35f   : > { %4275 = shalt.err (!%p4272_p8)
}
 0x360   : > { %s4276_s13 = scalar_lea.hbm %s5709_s12, 32  ;;  %s4280_s10 = scalar_lea.hbm %s5761_s6, 64 }
 0x361   : > { %p4277_p10 = scmp.ne.s32.totalorder %s5709_s12, %s4276_s13  ;;  %p4281_p6 = scmp.lt.u32.totalorder %s5709_s12, %s5761_s6 }
 0x362   : > { %p4282_p9 = scmp.lt.u32.totalorder %s4280_s10, %s4276_s13  ;;  %p4284_p7 = scmp.lt.u32.totalorder %s4276_s13, %s5709_s12 }
 0x363   : > { %p4278_p2 = pnand %p4277_p10, %p4548_p1 }
 0x364   : > { %p4283_p3 = por %p4282_p9, %p4281_p6 }
 0x365   : > { %p4279_p4 = pneg %p4278_p2 }
 0x366   : > { %p4285_p11 = por %p4284_p7, %p4283_p3 }
 0x368   : > { %p4286_p0 = pnand %p4285_p11, %p4279_p4 }
 0x36a   : > { %4289 = shalt.err (!%p4286_p0)
}
 0x36b   : > { %3918 = dma.vmem_to_hbm [thread:$0]  (%p4548_p1), %s5711_s17, 32, %s5709_s12, %s2854_s11  }
 0x36c PF: > { %s2895_s9 = sand.u32 1, %s4328_s21   ;;  %p5812_p13 = scmp.ne.s32.totalorder %s5780_s28, 0 }
 0x36d   : > { %p5813_p5 = scmp.ge.s32.totalorder %s4340_s24, 2  ;;  %s2896_s19 = scalar_lea.sflag [#allocation5], %s2895_s9 }
 0x36f   : > { %p3939_p12 = pnand %p5813_p5, %p5812_p13 }
 0x371   : > { %4319 = dma.done.wait (!%p3939_p12), %s2896_s19, 2048  }
 0x372   : > { %4321 = vsyncadd (!%p3939_p12), %s2896_s19, 4294965248  ;;  %s2905_s20 = scalar_lea.sflag [#allocation14], %s2895_s9 }
 0x373   : > { %4323 = dma.done.wait (!%p3939_p12), %s2905_s20, 32  }
 0x374   : > { %4325 = vsyncadd (!%p3939_p12), %s2905_s20, 4294967264  ;;  %p25_p1 = scmp.ge.s32.totalorder %s4538_s18, 4   ;;  %s5814_s21 = smov %s4332_s22 }
 0x375   : > { %s5815_s22 = smov %s4336_s23  ;;  %s5816_s23 = smov %s4554_s16 }
 0x376   : > { %s5817_s24 = smov %s4538_s18  ;;  %27 = sbr.rel (!%p25_p1) target bundleno = 9 (0x9), region = 127 }
 0x37d   :  { %2910 = vsyncpa [#allocation4], 1 }
 0x37e   :  { %2912 = vsyncpa [#allocation4 + $0x1], 1 }
 0x37f   :  { %2913 = vsyncpa [#allocation7], 1 }
 0x380   :  { %2914 = vsyncpa [#allocation10], 1 }
 0x381   :  { %2915 = vsyncpa [#allocation5], 1 }
 0x382   :  { %2917 = vsyncpa [#allocation5 + $0x1], 1 }
 0x383   :  { %2918 = vsyncpa [#allocation14], 1 }
 0x384   :  { %2920 = vsyncpa [#allocation14 + $0x1], 1 }

// kernel: dense_block_forward.9
= control target key start
LH: loop header
LB: loop body
LE: loop exit
PB: predicated region body
PF: predicated region fallthrough
CT: control target
= control target key end

     0   :  { %s4702_s0 = inlined_call_operand.hbm [shape: bf16[2,16,16,128], index: 0, kind: input, shape index: {}, may-alias: {0,7}]   ;;  %s4703_s1 = inlined_call_operand.hbm [shape: bf16[2,16,16,128], index: 1, kind: input, shape index: {}]   ;;  %s4704_s2 = inlined_call_operand.hbm [shape: f32[1,128], index: 2, kind: input, shape index: {}]   ;;  %s4705_s3 = inlined_call_operand.hbm [shape: f32[1,128], index: 3, kind: input, shape index: {}]   ;;  %s4706_s4 = inlined_call_operand.hbm [shape: bf16[128,128], index: 4, kind: input, shape index: {}]   ;;  %s4707_s5 = inlined_call_operand.hbm [shape: bf16[128,128], index: 5, kind: input, shape index: {}]   ;;  %s4708_s6 = inlined_call_operand.hbm [shape: bf16[128,128], index: 6, kind: input, shape index: {}]   ;;  %s4709_s7 = inlined_call_operand.hbm [shape: bf16[2,16,16,128], index: 7, kind: output, shape index: {0}, may-alias: {0,7}]   ;;  %s4710_s8 = inlined_call_operand.hbm [shape: bf16[2,16,16,128], index: 8, kind: output, shape index: {1}]   ;;  %s4711_s9 = inlined_call_operand.hbm [shape: f32[2,2,128], index: 9, kind: output, shape index: {2}]  }
   0x1   :  { %4721 = sst [smem:[#allocation26_spill]] %s4702_s0 }
   0x2   :  { %4722 = sst [smem:[#allocation27_spill]] %s4704_s2 }
   0x3   :  { %4723 = sst [smem:[#allocation28_spill]] %s4705_s3 }
   0x4   :  { %4724 = sst [smem:[#allocation29_spill]] %s4706_s4 }
   0x5   :  { %4725 = sst [smem:[#allocation30_spill]] %s4707_s5 }
   0x6   :  { %4726 = sst [smem:[#allocation31_spill]] %s4708_s6 }
   0x7   :  { %4727 = sst [smem:[#allocation32_spill]] %s4711_s9 }
   0x8   :  { %15 = vsyncpa [#allocation3], 0 }
   0x9   :  { %17 = vsyncpa [#allocation3 + $0x1], 0 }
   0xa   :  { %18 = vsyncpa [#allocation6], 0 }
   0xb   :  { %20 = vsyncpa [#allocation6 + $0x1], 0 }
   0xc   :  { %21 = vsyncpa [#allocation9], 0 }
   0xd   :  { %22 = vsyncpa [#allocation12], 0 }
   0xe   :  { %23 = vsyncpa [#allocation4], 0 }
   0xf   :  { %25 = vsyncpa [#allocation4 + $0x1], 0 }
  0x10   :  { %26 = vsyncpa [#allocation16], 0 }
  0x11   :  { %28 = vsyncpa [#allocation16 + $0x1], 0  ;;  %s3703_s30 = smov 0   ;;  %s3705_s10 = smov 0  }
  0x12   :  { %s3707_s11 = smov 0   ;;  %s3709_s12 = smov 0  }
  0x13 LB: > { %s3639_s13 = smov [#allocation7]   ;;  %s3724_s15 = sadd.s32 4294967295, %s3637_s12   ;;  %s3637_s12 = sphi %s3709_s12, %s4761_s12   ;;  %s3633_s11 = sphi %s3707_s11, %s4760_s11   ;;  %s3629_s10 = sphi %s3705_s10, %s4759_s10   ;;  %s3625_s30 = sphi %s3703_s30, %s4758_s30  }
  0x14   : > { %s287_s14 = sshll.u32 %s3639_s13, 4  ;;  %p2319_p0 = scmp.ge.s32.totalorder %s3637_s12, 1  ;;  %s3729_s14 = int_to_ptr.vmem [resolvable:$true] %s287_s14 }
  0x15   : > { %p4713_p1 = scmp.eq.s32.totalorder %s3724_s15, 0  ;;  %p274_p2 = scmp.lt.s32.totalorder %s3637_s12, 3 }
  0x16   : > { %s3640_s17 = smov [#allocation8]   ;;  %s3641_s20 = smov [#allocation11]  }
  0x17   : > { %p3731_p3 = pnand %p2319_p0, %p274_p2  ;;  %s298_s18 = sshll.u32 %s3640_s17, 4  ;;  %s3738_s18 = int_to_ptr.vmem [resolvable:$true] %s298_s18 }
  0x18   : > { %s321_s21 = sshll.u32 %s3641_s20, 4  ;;  %s4730_s2 = sld [smem:[#allocation27_spill]]  ;;  %s3746_s21 = int_to_ptr.vmem [resolvable:$true] %s321_s21 }
  0x19   : > { %s4728_s16 = scalar_select %p3731_p3, 1, 0 }
  0x1a   : > { %p3169_p5 = pneg %p3731_p3 }
  0x1c   : > { %p3742_p6 = pnand %p3169_p5, %p4713_p1 }
  0x1e   : > { %s3295_s24 = scalar_lea.hbm %s4730_s2, 16  ;;  %p3756_p8 = pneg %p3742_p6 }
  0x1f   : > { %p3296_p7 = scmp.ne.s32.totalorder %s4730_s2, %s3295_s24  ;;  %p3302_p11 = scmp.lt.u32.totalorder %s3295_s24, %s4730_s2 }
  0x21   : > { %p3298_p9 = pnand %p3756_p8, %p3296_p7 }
  0x23   : > { %p3299_p10 = pneg %p3298_p9 }
  0x25   : > { %p3304_p12 = pnand %p3302_p11, %p3299_p10 }
  0x27   : > { %3307 = shalt.err (!%p3304_p12)
}
  0x28   : > { %s3308_s13 = scalar_lea.vmem %s3729_s14, 16  ;;  %s3315_s17 = scalar_lea.vmem %s3729_s14, 32 }
  0x29   : > { %p3309_p13 = scmp.ne.s32.totalorder %s3729_s14, %s3308_s13  ;;  %p3316_p5 = scmp.lt.s32.totalorder %s3729_s14, %s3729_s14 }
  0x2a   : > { %p3317_p7 = scmp.lt.s32.totalorder %s3315_s17, %s3308_s13 }
  0x2b   : > { %p3311_p0 = pnand %p3309_p13, %p3756_p8 }
  0x2c   : > { %p3318_p9 = por %p3317_p7, %p3316_p5 }
  0x2d   : > { %p3312_p2 = pneg %p3311_p0 }
  0x2f   : > { %p3319_p4 = pnand %p3318_p9, %p3312_p2 }
  0x31   : > { %3322 = shalt.err (!%p3319_p4)
}
  0x32   : > { %3172 = dma.hbm_to_vmem [thread:$0]  (!%p3742_p6), %s4730_s2, 16, %s3729_s14, [#allocation6]  }
  0x33   : > { %s4732_s3 = sld [smem:[#allocation28_spill]] }
  0x39   : > { %s3323_s25 = scalar_lea.hbm %s4732_s3, 16 }
  0x3a   : > { %p3324_p10 = scmp.ne.s32.totalorder %s4732_s3, %s3323_s25  ;;  %p3330_p4 = scmp.lt.u32.totalorder %s3323_s25, %s4732_s3 }
  0x3c   : > { %p3326_p11 = pnand %p3324_p10, %p3756_p8 }
  0x3e   : > { %p3327_p12 = pneg %p3326_p11 }
  0x40   : > { %p3332_p13 = pnand %p3330_p4, %p3327_p12 }
  0x42   : > { %3335 = shalt.err (!%p3332_p13)
}
  0x43   : > { %s3336_s14 = scalar_lea.vmem %s3738_s18, 16  ;;  %s3343_s17 = scalar_lea.vmem %s3738_s18, 32 }
  0x44   : > { %p3337_p0 = scmp.ne.s32.totalorder %s3738_s18, %s3336_s14  ;;  %p3344_p7 = scmp.lt.s32.totalorder %s3738_s18, %s3738_s18 }
  0x45   : > { %p3345_p9 = scmp.lt.s32.totalorder %s3343_s17, %s3336_s14 }
  0x46   : > { %p3339_p2 = pnand %p3337_p0, %p3756_p8 }
  0x47   : > { %p3346_p10 = por %p3345_p9, %p3344_p7 }
  0x48   : > { %p3340_p5 = pneg %p3339_p2 }
  0x4a   : > { %p3347_p11 = pnand %p3346_p10, %p3340_p5 }
  0x4c   : > { %3350 = shalt.err (!%p3347_p11)
}
  0x4d   : > { %3175 = dma.hbm_to_vmem [thread:$0]  (!%p3742_p6), %s4732_s3, 16, %s3738_s18, [#allocation9]  }
  0x4e   : > { %s4733_s5 = sld [smem:[#allocation30_spill]] }
  0x54   : > { %s3351_s25 = scalar_lea.hbm %s4733_s5, 1024 }
  0x55   : > { %p3352_p12 = scmp.ne.s32.totalorder %s4733_s5, %s3351_s25  ;;  %p3358_p0 = scmp.lt.u32.totalorder %s3351_s25, %s4733_s5 }
  0x57   : > { %p3354_p4 = pnand %p3352_p12, %p3756_p8 }
  0x59   : > { %p3355_p13 = pneg %p3354_p4 }
  0x5b   : > { %p3360_p2 = pnand %p3358_p0, %p3355_p13 }
  0x5d   : > { %3363 = shalt.err (!%p3360_p2)
}
  0x5e   : > { %s3364_s18 = scalar_lea.vmem %s3746_s21, 1024  ;;  %p3372_p10 = scmp.lt.s32.totalorder %s3746_s21, %s3746_s21 }
  0x5f   : > { %p3365_p5 = scmp.ne.s32.totalorder %s3746_s21, %s3364_s18  ;;  %p3373_p11 = scmp.lt.s32.totalorder %s3364_s18, %s3364_s18 }
  0x61   : > { %p3367_p7 = pnand %p3365_p5, %p3756_p8  ;;  %p3374_p12 = por %p3373_p11, %p3372_p10 }
  0x63   : > { %p3368_p9 = pneg %p3367_p7 }
  0x65   : > { %p3375_p4 = pnand %p3374_p12, %p3368_p9 }
  0x67   : > { %3378 = shalt.err (!%p3375_p4)
}
  0x68   : > { %s4716_s14 = smov 64   ;;  %s4718_s17 = smov 4  }
  0x69   : > { %3181 = dma.hbm_to_vmem [thread:$0]  (!%p3742_p6), %s4733_s5, 1024, %s3746_s21, [#allocation12], %s4716_s14, %s4716_s14, %s4718_s17  }
  0x6a   : > { %s3644_s23 = smov [#allocation10]   ;;  %s3645_s25 = smov [#allocation13]  }
  0x6b   : > { %s308_s24 = sshll.u32 %s3644_s23, 4  ;;  %s334_s26 = sshll.u32 %s3645_s25, 4  ;;  %s309_s24 = int_to_ptr.vmem [resolvable:$true] %s308_s24  ;;  %s335_s26 = int_to_ptr.vmem [resolvable:$true] %s334_s26 }
  0x6c   : > { %s4734_s4 = sld [smem:[#allocation29_spill]] }
  0x72   : > { %s3379_s13 = scalar_lea.hbm %s4734_s4, 1024 }
  0x73   : > { %p3380_p13 = scmp.ne.s32.totalorder %s4734_s4, %s3379_s13  ;;  %p3386_p5 = scmp.lt.u32.totalorder %s3379_s13, %s4734_s4 }
  0x75   : > { %p3382_p0 = pnand %p3380_p13, %p3756_p8 }
  0x77   : > { %p3383_p2 = pneg %p3382_p0 }
  0x79   : > { %p3388_p7 = pnand %p3386_p5, %p3383_p2 }
  0x7b   : > { %3391 = shalt.err (!%p3388_p7)
}
  0x7c   : > { %s3392_s21 = scalar_lea.vmem %s309_s24, 1024  ;;  %p3400_p12 = scmp.lt.s32.totalorder %s309_s24, %s309_s24 }
  0x7d   : > { %p3393_p9 = scmp.ne.s32.totalorder %s309_s24, %s3392_s21  ;;  %p3401_p4 = scmp.lt.s32.totalorder %s3392_s21, %s3392_s21 }
  0x7f   : > { %p3395_p10 = pnand %p3393_p9, %p3756_p8  ;;  %p3402_p1 = por %p3401_p4, %p3400_p12 }
  0x81   : > { %p3396_p11 = pneg %p3395_p10 }
  0x83   : > { %p3403_p3 = pnand %p3402_p1, %p3396_p11 }
  0x85   : > { %3406 = shalt.err (!%p3403_p3)
}
  0x86   : > { %3178 = dma.hbm_to_vmem [thread:$0]  (!%p3742_p6), %s4734_s4, 1024, %s309_s24, [#allocation9], %s4716_s14, %s4716_s14, %s4718_s17  }
  0x87   : > { %s4735_s6 = sld [smem:[#allocation31_spill]] }
  0x8d   : > { %s3407_s22 = scalar_lea.hbm %s4735_s6, 1024 }
  0x8e   : > { %p3408_p1 = scmp.ne.s32.totalorder %s4735_s6, %s3407_s22  ;;  %p3414_p0 = scmp.lt.u32.totalorder %s3407_s22, %s4735_s6 }
  0x90   : > { %p3410_p3 = pnand %p3408_p1, %p3756_p8 }
  0x92   : > { %p3411_p13 = pneg %p3410_p3 }
  0x94   : > { %p3416_p2 = pnand %p3414_p0, %p3411_p13 }
  0x96   : > { %3419 = shalt.err (!%p3416_p2)
}
  0x97   : > { %s3420_s13 = scalar_lea.vmem %s335_s26, 1024  ;;  %p3428_p10 = scmp.lt.s32.totalorder %s335_s26, %s335_s26 }
  0x98   : > { %p3421_p5 = scmp.ne.s32.totalorder %s335_s26, %s3420_s13  ;;  %p3429_p11 = scmp.lt.s32.totalorder %s3420_s13, %s3420_s13 }
  0x9a   : > { %p3423_p7 = pnand %p3421_p5, %p3756_p8  ;;  %p3430_p12 = por %p3429_p11, %p3428_p10 }
  0x9c   : > { %p3424_p9 = pneg %p3423_p7 }
  0x9e   : > { %p3431_p4 = pnand %p3430_p12, %p3424_p9 }
  0xa0   : > { %3434 = shalt.err (!%p3431_p4)
}
  0xa1   : > { %3184 = dma.hbm_to_vmem [thread:$0]  (!%p3742_p6), %s4735_s6, 1024, %s335_s26, [#allocation12], %s4716_s14, %s4716_s14, %s4718_s17  }
  0xa2   : > { %s4715_s19 = sadd.s32 4294967294, %s3637_s12   ;;  %s3872_s27 = sadd.s32 1, %s3637_s12  }
  0xa3   : > { %s41_s21 = sadd.s32 1, %s3633_s11  ;;  %s38_s2 = ssub.s32 %s3637_s12, %s3872_s27 }
  0xa4   : > { %p48_p8 = scmp.ne.s32.totalorder %s3633_s11, %s3629_s10  ;;  %p39_p1 = scmp.eq.s32.totalorder %s38_s2, 0 }
  0xa5   : > { %p49_p3 = scmp.eq.s32.totalorder %s3637_s12, 0  ;;  %p54_p13 = scmp.ne.s32.totalorder %s3629_s10, %s3625_s30 }
  0xa6   : > { %p209_p0 = scmp.eq.s32.totalorder %s3724_s15, 1  ;;  %p4737_p5 = scmp.eq.s32.totalorder %s3724_s15, 0 }
  0xa7   : > { %s3884_s3 = scalar_select %p39_p1, %s3633_s11, %s41_s21  }
  0xa8   : > { %p50_p2 = por %p49_p3, %p48_p8  ;;  %p3888_p7 = por %p4737_p5, %p54_p13 }
  0xa9   : > { %4736 = sst [smem:[#allocation25_spill]] %s3884_s3  ;;  %p3892_p6 = por %p209_p0, %p48_p8 }
  0xaa   : > { %p215_p9 = scmp.eq.s32.totalorder %s4715_s19, 1  ;;  %p3207_p10 = scmp.lt.s32.totalorder %s3637_s12, 2 }
  0xab   : > { %s4739_s26 = scalar_select %p3892_p6, 1, 0 }
  0xac   : > { %s348_s20 = sand.u32 1, %s3633_s11   ;;  %p3900_p11 = por %p215_p9, %p54_p13 }
  0xad   : > { %s3904_s23 = sshll.u32 %s348_s20, 7  ;;  %s2459_s25 = sshll.u32 %s3637_s12, 11 }
  0xae   : > { %s4740_s22 = scalar_select %p3900_p11, 1, 0 }
  0xaf   : > { %s4741_s0 = sld [smem:[#allocation26_spill]]  ;;  %s352_s24 = scalar_lea.vmem [#allocation2], %s3904_s23 }
  0xb0   : > { %s359_s18 = sshll.u32 %s352_s24, 4  ;;  %p3913_p12 = pnand %p3207_p10, %p50_p2  ;;  %s3917_s18 = int_to_ptr.vmem [resolvable:$true] %s359_s18 }
  0xb1   : > { %s3922_s28 = scalar_lea.hbm %s4703_s1, %s2459_s25  ;;  %s3924_s29 = scalar_lea.sflag [#allocation3], %s348_s20 }
  0xb2   : > { %p3437_p8 = pneg %p3913_p12 }
  0xb5   : > { %s3910_s13 = scalar_lea.hbm %s4741_s0, %s2459_s25  ;;  %s3440_s4 = scalar_lea.hbm %s4741_s0, 4096 }
  0xb6   : > { %s3435_s14 = scalar_lea.hbm %s3910_s13, 2048  ;;  %p3441_p13 = scmp.lt.u32.totalorder %s3910_s13, %s4741_s0 }
  0xb7   : > { %p3436_p4 = scmp.ne.s32.totalorder %s3910_s13, %s3435_s14  ;;  %p3442_p0 = scmp.lt.u32.totalorder %s3440_s4, %s3435_s14 }
  0xb8   : > { %p3444_p5 = scmp.lt.u32.totalorder %s3435_s14, %s3910_s13 }
  0xb9   : > { %p3438_p1 = pnand %p3437_p8, %p3436_p4  ;;  %p3443_p2 = por %p3442_p0, %p3441_p13 }
  0xbb   : > { %p3439_p3 = pneg %p3438_p1  ;;  %p3445_p9 = por %p3444_p5, %p3443_p2 }
  0xbd   : > { %p3446_p10 = pnand %p3445_p9, %p3439_p3 }
  0xbf   : > { %3449 = shalt.err (!%p3446_p10)
}
  0xc0   : > { %s3450_s19 = scalar_lea.vmem %s3917_s18, 2048  ;;  %s3646_s17 = smov [#allocation2]  }
  0xc1   : > { %p3451_p4 = scmp.ne.s32.totalorder %s3917_s18, %s3450_s19  ;;  %s3455_s20 = sshll.u32 %s3646_s17, 4  ;;  %s3456_s20 = int_to_ptr.vmem [resolvable:$false] %s3455_s20 }
  0xc2   : > { %s3457_s5 = scalar_lea.vmem %s3456_s20, 4096  ;;  %p3458_p6 = scmp.lt.s32.totalorder %s3917_s18, %s3456_s20 }
  0xc3   : > { %p3453_p1 = pnand %p3451_p4, %p3437_p8  ;;  %p3459_p13 = scmp.lt.s32.totalorder %s3457_s5, %s3450_s19 }
  0xc5   : > { %p3454_p11 = pneg %p3453_p1  ;;  %p3460_p0 = por %p3459_p13, %p3458_p6 }
  0xc7   : > { %p3461_p2 = pnand %p3460_p0, %p3454_p11 }
  0xc9   : > { %3464 = shalt.err (!%p3461_p2)
}
  0xca   : > { %s4743_s4 = smov 4   ;;  %s4744_s6 = smov 64  }
  0xcb   : > { %3188 = dma.hbm_to_vmem [thread:$0]  (!%p3913_p12), %s3910_s13, 2048, %s3917_s18, %s3924_s29, %s4744_s6, %s4744_s6, %s4743_s4  }
  0xcc   : > { %s373_s14 = scalar_lea.vmem [#allocation5], %s3904_s23  ;;  %s369_s2 = sand.u32 1, %s3637_s12  }
  0xcd   : > { %s380_s25 = sshll.u32 %s373_s14, 4  ;;  %s3959_s24 = scalar_lea.sflag [#allocation6], %s369_s2  ;;  %s3957_s25 = int_to_ptr.vmem [resolvable:$true] %s380_s25 }
  0xce   : > { %s3465_s19 = scalar_lea.hbm %s3922_s28, 2048  ;;  %s3470_s5 = scalar_lea.hbm %s4703_s1, 4096 }
  0xcf   : > { %p3466_p6 = scmp.ne.s32.totalorder %s3922_s28, %s3465_s19  ;;  %p3471_p5 = scmp.lt.u32.totalorder %s3922_s28, %s4703_s1 }
  0xd0   : > { %p3472_p9 = scmp.lt.u32.totalorder %s3470_s5, %s3465_s19  ;;  %p3474_p4 = scmp.lt.u32.totalorder %s3465_s19, %s3922_s28 }
  0xd1   : > { %p3468_p11 = pnand %p3466_p6, %p3437_p8 }
  0xd2   : > { %p3473_p10 = por %p3472_p9, %p3471_p5 }
  0xd3   : > { %p3469_p3 = pneg %p3468_p11 }
  0xd4   : > { %p3475_p1 = por %p3474_p4, %p3473_p10 }
  0xd6   : > { %p3476_p13 = pnand %p3475_p1, %p3469_p3 }
  0xd8   : > { %3479 = shalt.err (!%p3476_p13)
}
  0xd9   : > { %s3480_s23 = scalar_lea.vmem %s3957_s25, 2048  ;;  %s3647_s13 = smov [#allocation5]  }
  0xda   : > { %p3481_p0 = scmp.ne.s32.totalorder %s3957_s25, %s3480_s23  ;;  %s3485_s18 = sshll.u32 %s3647_s13, 4  ;;  %s3486_s18 = int_to_ptr.vmem [resolvable:$false] %s3485_s18 }
  0xdb   : > { %s3487_s0 = scalar_lea.vmem %s3486_s18, 4096  ;;  %p3488_p11 = scmp.lt.s32.totalorder %s3957_s25, %s3486_s18 }
  0xdc   : > { %p3483_p2 = pnand %p3481_p0, %p3437_p8  ;;  %p3489_p5 = scmp.lt.s32.totalorder %s3487_s0, %s3480_s23 }
  0xde   : > { %p3484_p6 = pneg %p3483_p2  ;;  %p3490_p9 = por %p3489_p5, %p3488_p11 }
  0xe0   : > { %p3491_p10 = pnand %p3490_p9, %p3484_p6 }
  0xe2   : > { %3494 = shalt.err (!%p3491_p10)
}
  0xe3   : > { %3191 = dma.hbm_to_vmem [thread:$0]  (!%p3913_p12), %s3922_s28, 2048, %s3957_s25, %s3959_s24, %s4744_s6, %s4744_s6, %s4743_s4  }
  0xe4   : > { %p4745_p8 = scmp.ne.s32.totalorder %s4728_s16, 0 }
  0xe5   : > { %s3991_s3 = sand.u32 (!%p4745_p8), 1, %s3629_s10  }
  0xe6   : > { %392 = sbr.rel (%p4745_p8) target bundleno = 774 (0x306), region = 48  ;;  %s3994_s29 = sshll.u32 (!%p4745_p8), %s3991_s3, 7 }
  0xe7   : > { %s395_s21 = scalar_lea.sflag (!%p4745_p8), [#allocation3], %s3991_s3  ;;  %s3998_s14 = scalar_lea.vmem (!%p4745_p8), [#allocation2], %s3994_s29 }
  0xed   : > { %3596 = dma.done.wait (%p3888_p7), %s395_s21, 2048  }
  0xee   : > { %3598 = vsyncadd (%p3888_p7), %s395_s21, 4294965248  ;;  %s403_s16 = sand.u32 1, %s3724_s15   ;;  %s4008_s4 = scalar_lea.vmem [#allocation5], %s3994_s29 }
  0xef   : > { %s404_s28 = scalar_lea.sflag [#allocation6], %s403_s16 }
  0xf0   : > { %3600 = dma.done.wait (%p3888_p7), %s404_s28, 2048  }
  0xf1   : > { %3602 = vsyncadd (%p3888_p7), %s404_s28, 4294965248  ;;  %p4746_p12 = scmp.eq.s32.totalorder %s3724_s15, 0 }
  0xf3   : > { %3604 = dma.done.wait (%p4746_p12), [#allocation6], 16   ;;  %p4747_p3 = pmov %p4746_p12 }
  0xf5   : > { %3606 = vsyncadd (%p4747_p3), [#allocation6], 4294967280  ;;  %p4748_p4 = pmov %p4747_p3 }
  0xf6   : > { %p4749_p1 = pmov %p4747_p3 }
  0xf7   : > { %3608 = dma.done.wait (%p4748_p4), [#allocation9], 1040  }
  0xf8   : > { %3610 = vsyncadd (%p4749_p1), [#allocation9], 4294966256  ;;  %p4750_p13 = pmov %p4749_p1 }
  0xf9   : > { %p4751_p0 = pmov %p4749_p1 }
  0xfa   : > { %3612 = dma.done.wait (%p4750_p13), [#allocation12], 2048  }
  0xfb   : > { %3614 = vsyncadd (%p4751_p0), [#allocation12], 4294965248  ;;  %v3255_v0 = vld [vmem:[#allocation10] sm:$0xff]   ;;  %v3257_v2 = vld [vmem:[#allocation10 + $0x8] sm:$0xff]   ;;  %s4231_s9 = scalar_lea.vmem [#allocation14], %s3994_s29  ;;  %s4304_s6 = scalar_lea.vmem [#allocation15], %s3994_s29 }
  0xfc   : > { %v4026_v1 = vld [vmem:[#allocation13] sm:$0xff]   ;;  %2947 = vmatprep.subr.bf16.mxu0 %v3255_v0  ;;  %v4029_v3 = vld [vmem:[#allocation13 + $0x8] sm:$0xff]   ;;  %v3259_v4 = vld [vmem:[#allocation10 + $0x10] sm:$0xff]   ;;  %s2525_s25 = sshll.u32 %s3724_s15, 11  ;;  %s2101_s17 = sshll.u32 %s4304_s6, 4  ;;  %s4440_s17 = int_to_ptr.vmem [resolvable:$true] %s2101_s17 }
  0xfd   : > { %3091 = vmatprep.subr.bf16.mxu1 %v4026_v1  ;;  %2948 = vmatpush3.bf16.msra.mxu0 %v3255_v0  ;;  %v4033_v5 = vld [vmem:[#allocation13 + $0x10] sm:$0xff]   ;;  %v3261_v6 = vld [vmem:[#allocation10 + $0x18] sm:$0xff]   ;;  %v3263_v8 = vld [vmem:[#allocation10 + $0x20] sm:$0xff]   ;;  %s4437_s19 = scalar_lea.hbm %s4710_s8, %s2525_s25  ;;  %s4447_s20 = scalar_lea.sflag [#allocation16], %s403_s16 }
  0xfe   : > { %3099 = vmatpush3.bf16.msra.mxu1 %v4026_v1  ;;  %2949 = vmatprep.subr.bf16.mxu0 %v3257_v2  ;;  %v4037_v7 = vld [vmem:[#allocation13 + $0x18] sm:$0xff]   ;;  %v4041_v9 = vld [vmem:[#allocation13 + $0x20] sm:$0xff]   ;;  %v3265_v10 = vld [vmem:[#allocation10 + $0x28] sm:$0xff]   ;;  %s3495_s5 = scalar_lea.vmem %s4440_s17, 2048  ;;  %p4752_p2 = scmp.ne.s32.totalorder %s4739_s26, 0 }
  0xff   : > { %3092 = vmatprep.subr.bf16.mxu1 %v4029_v3  ;;  %v4044_v11 = vld [vmem:[#allocation13 + $0x28] sm:$0xff]   ;;  %v2528_v12 = vld [vmem:[%s4008_s4] sm:$0xff]   ;;  %v3267_v28 = vld [vmem:[#allocation10 + $0x30] sm:$0xff]   ;;  %p3496_p7 = scmp.ne.s32.totalorder %s4440_s17, %s3495_s5  ;;  %s3648_s23 = smov [#allocation15]  }
 0x100   : > { %v4047_v13 = vld [vmem:[#allocation7] ss:$0 sm:$0xff]  ;;  %v2529_v14 = vunpack.c.l.bf16 %v2528_v12  ;;  %v2530_v15 = vunpack.c.h.bf16 %v2528_v12  ;;  %v2815_v17 = vld [vmem:[%s4008_s4 + $0x8] sm:$0xff]   ;;  %v4053_v19 = vld [vmem:[#allocation8] ss:$0 sm:$0xff]  ;;  %s3499_s13 = sshll.u32 %s3648_s23, 4  ;;  %s3500_s13 = int_to_ptr.vmem [resolvable:$false] %s3499_s13 }
 0x101   : > { %2950 = vmatpush3.bf16.msra.mxu0 %v3257_v2  ;;  %v2822_v16 = vld [vmem:[%s4008_s4 + $0x40] sm:$0xff]   ;;  %v2823_v18 = vld [vmem:[%s4008_s4 + $0x48] sm:$0xff]   ;;  %v2533_v22 = vunpack.c.l.bf16 %v2815_v17  ;;  %v2534_v23 = vunpack.c.h.bf16 %v2815_v17  ;;  %v4062_v32 = vld [vmem:[#allocation13 + $0x30] sm:$0xff]   ;;  %p3497_p6 = pnand %p3496_p7, %p4752_p2  ;;  %s3501_s18 = scalar_lea.vmem %s3500_s13, 4096 }
 0x102   : > { %3100 = vmatpush3.bf16.msra.mxu1 %v4029_v3  ;;  %2951 = vmatprep.subr.bf16.mxu0 %v3259_v4  ;;  %v2561_v20 = vunpack.c.l.bf16 %v2822_v16  ;;  %v2562_v21 = vunpack.c.h.bf16 %v2822_v16  ;;  %v549_v24 = vmul.f32 %v2529_v14, %v4047_v13  ;;  %v550_v25 = vmul.f32 %v2530_v15, %v4047_v13  ;;  %v2816_v41 = vld [vmem:[%s4008_s4 + $0x10] sm:$0xff]   ;;  %v3269_v47 = vld [vmem:[#allocation10 + $0x38] sm:$0xff]   ;;  %v3271_v14 = vld [vmem:[#allocation11] sm:$0xff]   ;;  %p3502_p5 = scmp.lt.s32.totalorder %s4440_s17, %s3500_s13  ;;  %p3503_p9 = scmp.lt.s32.totalorder %s3501_s18, %s3495_s5 }
 0x103   : > { %3093 = vmatprep.subr.bf16.mxu1 %v4033_v5  ;;  %v2565_v26 = vunpack.c.l.bf16 %v2823_v18  ;;  %v2566_v27 = vunpack.c.h.bf16 %v2823_v18  ;;  %v551_v31 = vmul.f32 %v2533_v22, %v4047_v13  ;;  %v552_v35 = vmul.f32 %v2534_v23, %v4047_v13  ;;  %v2824_v46 = vld [vmem:[%s4008_s4 + $0x50] sm:$0xff]   ;;  %v4077_v48 = vld [vmem:[#allocation13 + $0x38] sm:$0xff]   ;;  %p3498_p11 = pneg %p3497_p6 }
 0x104   : > { %v565_v29 = vmul.f32 %v2561_v20, %v4047_v13  ;;  %v566_v30 = vmul.f32 %v2562_v21, %v4047_v13  ;;  %v588_v33 = vadd.f32 %v4053_v19, %v549_v24  ;;  %v589_v34 = vadd.f32 %v4053_v19, %v550_v25  ;;  %v2817_v53 = vld [vmem:[%s4008_s4 + $0x18] sm:$0xff]   ;;  %v2818_v24 = vld [vmem:[%s4008_s4 + $0x20] sm:$0xff]   ;;  %p3504_p10 = por %p3503_p9, %p3502_p5 }
 0x105   : > { %2952 = vmatpush3.bf16.msra.mxu0 %v3259_v4  ;;  %v567_v36 = vmul.f32 %v2565_v26, %v4047_v13  ;;  %v590_v39 = vadd.f32 %v4053_v19, %v551_v31  ;;  %v568_v40 = vmul.f32 %v2566_v27, %v4047_v13  ;;  %v591_v44 = vadd.f32 %v4053_v19, %v552_v35  ;;  %v2825_v62 = vld [vmem:[%s4008_s4 + $0x58] sm:$0xff]   ;;  %v2826_v35 = vld [vmem:[%s4008_s4 + $0x60] sm:$0xff]  }
 0x106   : > { %3101 = vmatpush3.bf16.msra.mxu1 %v4033_v5  ;;  %2953 = vmatprep.subr.bf16.mxu0 %v3261_v6  ;;  %v604_v37 = vadd.f32 %v4053_v19, %v565_v29  ;;  %v605_v38 = vadd.f32 %v4053_v19, %v566_v30  ;;  %v620_v42 = vmax.f32 %v588_v33, 0.0  ;;  %v621_v43 = vmax.f32 %v589_v34, 0.0  ;;  %v3272_v29 = vld [vmem:[#allocation11 + $0x8] sm:$0xff]   ;;  %p3505_p8 = pnand %p3504_p10, %p3498_p11 }
 0x107   : > { %3094 = vmatprep.subr.bf16.mxu1 %v4037_v7  ;;  %v606_v45 = vadd.f32 %v4053_v19, %v567_v36  ;;  %v622_v51 = vmax.f32 %v590_v39, 0.0  ;;  %v607_v52 = vadd.f32 %v4053_v19, %v568_v40  ;;  %v623_v55 = vmax.f32 %v591_v44, 0.0  ;;  %v2819_v44 = vld [vmem:[%s4008_s4 + $0x28] sm:$0xff]  }
 0x108   : > { %v636_v49 = vmax.f32 %v604_v37, 0.0  ;;  %v637_v50 = vmax.f32 %v605_v38, 0.0  ;;  %v4082_v54 = vpack.c.bf16 %v621_v43, %v620_v42  ;;  %v2537_v57 = vunpack.c.l.bf16 %v2816_v41 }
 0x109   : > { %2954 = vmatpush3.bf16.msra.mxu0 %v3261_v6  ;;  %v638_v56 = vmax.f32 %v606_v45, 0.0  ;;  %v639_v59 = vmax.f32 %v607_v52, 0.0  ;;  %v2538_v60 = vunpack.c.h.bf16 %v2816_v41  ;;  %v2569_v61 = vunpack.c.l.bf16 %v2824_v46 }
 0x10a   : > { %3102 = vmatpush3.bf16.msra.mxu1 %v4037_v7  ;;  %2955 = vmatprep.subr.bf16.mxu0 %v3263_v8  ;;  %v4084_v58 = vpack.c.bf16 %v637_v50, %v636_v49  ;;  %v4088_v63 = vpack.c.bf16 %v623_v55, %v622_v51  ;;  %v553_v0 = vmul.f32 %v2537_v57, %v4047_v13  ;;  %v2570_v2 = vunpack.c.h.bf16 %v2824_v46  ;;  %v2827_v50 = vld [vmem:[%s4008_s4 + $0x68] sm:$0xff]  }
 0x10b   : > { %3095 = vmatprep.subr.bf16.mxu1 %v4041_v9  ;;  %2963 = vmatprep.mubr.bf16.mxu0 %v4082_v54  ;;  %v2541_v4 = vunpack.c.l.bf16 %v2817_v53  ;;  %v4092_v6 = vpack.c.bf16 %v639_v59, %v638_v56  ;;  %v2542_v12 = vunpack.c.h.bf16 %v2817_v53  ;;  %v2573_v18 = vunpack.c.l.bf16 %v2825_v62 }
 0x10c   : > { %3027 = vmatprep.mubr.bf16.mxu1 %v4084_v58  ;;  %v592_v15 = vadd.f32 %v4053_v19, %v553_v0  ;;  %v570_v16 = vmul.f32 %v2570_v2, %v4047_v13  ;;  %v2574_v23 = vunpack.c.h.bf16 %v2825_v62  ;;  %v2545_v39 = vunpack.c.l.bf16 %v2818_v24 }
 0x10d   : > { %2956 = vmatpush3.bf16.msra.mxu0 %v3263_v8  ;;  %v554_v8 = vmul.f32 %v2538_v60, %v4047_v13  ;;  %v555_v17 = vmul.f32 %v2541_v4, %v4047_v13  ;;  %v556_v22 = vmul.f32 %v2542_v12, %v4047_v13  ;;  %v2546_v43 = vunpack.c.h.bf16 %v2818_v24  ;;  %v2820_v4 = vld [vmem:[%s4008_s4 + $0x30] sm:$0xff]  }
 0x10e   : > { %3103 = vmatpush3.bf16.msra.mxu1 %v4041_v9  ;;  %2957 = vmatprep.subr.bf16.mxu0 %v3265_v10  ;;  %v624_v25 = vmax.f32 %v592_v15, 0.0  ;;  %v609_v26 = vadd.f32 %v4053_v19, %v570_v16  ;;  %v572_v34 = vmul.f32 %v2574_v23, %v4047_v13  ;;  %v2577_v49 = vunpack.c.l.bf16 %v2826_v35  ;;  %v3274_v15 = vld [vmem:[#allocation11 + $0x18] sm:$0xff]   ;;  %v2828_v24 = vld [vmem:[%s4008_s4 + $0x70] sm:$0xff]  }
 0x10f   : > { %3096 = vmatprep.subr.bf16.mxu1 %v4044_v11  ;;  %v593_v20 = vadd.f32 %v4053_v19, %v554_v8  ;;  %v594_v27 = vadd.f32 %v4053_v19, %v555_v17  ;;  %v595_v33 = vadd.f32 %v4053_v19, %v556_v22  ;;  %v558_v53 = vmul.f32 %v2546_v43, %v4047_v13 }
 0x110   : > { %v641_v36 = vmax.f32 %v609_v26, 0.0  ;;  %v611_v42 = vadd.f32 %v4053_v19, %v572_v34  ;;  %v2578_v55 = vunpack.c.h.bf16 %v2826_v35  ;;  %v573_v57 = vmul.f32 %v2577_v49, %v4047_v13  ;;  %v2821_v35 = vld [vmem:[%s4008_s4 + $0x38] sm:$0xff]  }
 0x111   : > { %2958 = vmatpush3.bf16.msra.mxu0 %v3265_v10  ;;  %v569_v10 = vmul.f32 %v2569_v61, %v4047_v13  ;;  %v625_v30 = vmax.f32 %v593_v20, 0.0  ;;  %v626_v37 = vmax.f32 %v594_v27, 0.0  ;;  %v627_v41 = vmax.f32 %v595_v33, 0.0 }
 0x112   : > { %3104 = vmatpush3.bf16.msra.mxu1 %v4044_v11  ;;  %2959 = vmatprep.subr.bf16.mxu0 %v3267_v28  ;;  %v643_v52 = vmax.f32 %v611_v42, 0.0  ;;  %v2549_v59 = vunpack.c.l.bf16 %v2819_v44  ;;  %v2550_v60 = vunpack.c.h.bf16 %v2819_v44  ;;  %v597_v62 = vadd.f32 %v4053_v19, %v558_v53 }
 0x113   : > { %3097 = vmatprep.subr.bf16.mxu1 %v4062_v32  ;;  %v608_v21 = vadd.f32 %v4053_v19, %v569_v10  ;;  %v4115_v40 = vpack.c.bf16 %v625_v30, %v624_v25  ;;  %v4126_v51 = vpack.c.bf16 %v627_v41, %v626_v37  ;;  %v574_v0 = vmul.f32 %v2578_v55, %v4047_v13  ;;  %v2829_v41 = vld [vmem:[%s4008_s4 + $0x78] sm:$0xff]  }
 0x114   : > { %v2581_v2 = vunpack.c.l.bf16 %v2827_v50  ;;  %v612_v10 = vadd.f32 %v4053_v19, %v573_v57  ;;  %v559_v12 = vmul.f32 %v2549_v59, %v4047_v13  ;;  %v629_v16 = vmax.f32 %v597_v62, 0.0  ;;  %v3276_v62 = vld [vmem:[#allocation11 + $0x28] sm:$0xff]  }
 0x115   : > { %2960 = vmatpush3.bf16.msra.mxu0 %v3267_v28  ;;  %v571_v28 = vmul.f32 %v2573_v18, %v4047_v13  ;;  %v640_v31 = vmax.f32 %v608_v21, 0.0  ;;  %v613_v17 = vadd.f32 %v4053_v19, %v574_v0  ;;  %v2582_v18 = vunpack.c.h.bf16 %v2827_v50 }
 0x116   : > { %3105 = vmatpush3.bf16.msra.mxu1 %v4062_v32  ;;  %2961 = vmatprep.subr.bf16.mxu0 %v3269_v47  ;;  %v575_v20 = vmul.f32 %v2581_v2, %v4047_v13  ;;  %v598_v21 = vadd.f32 %v4053_v19, %v559_v12  ;;  %v2553_v23 = vunpack.c.l.bf16 %v2820_v4  ;;  %v2554_v33 = vunpack.c.h.bf16 %v2820_v4 }
 0x117   : > { %3098 = vmatprep.subr.bf16.mxu1 %v4077_v48  ;;  %v610_v38 = vadd.f32 %v4053_v19, %v571_v28  ;;  %v4121_v45 = vpack.c.bf16 %v641_v36, %v640_v31  ;;  %v645_v26 = vmax.f32 %v613_v17, 0.0  ;;  %v576_v27 = vmul.f32 %v2582_v18, %v4047_v13  ;;  %v3275_v31 = vld [vmem:[#allocation11 + $0x20] sm:$0xff]  }
 0x118   : > { %v614_v28 = vadd.f32 %v4053_v19, %v575_v20  ;;  %v561_v34 = vmul.f32 %v2553_v23, %v4047_v13  ;;  %v562_v43 = vmul.f32 %v2554_v33, %v4047_v13  ;;  %v2586_v44 = vunpack.c.h.bf16 %v2828_v24  ;;  %v3277_v23 = vld [vmem:[#allocation11 + $0x30] sm:$0xff]  }
 0x119   : > { %2962 = vmatpush3.bf16.msra.mxu0 %v3269_v47  ;;  %v642_v46 = vmax.f32 %v610_v38, 0.0  ;;  %v557_v47 = vmul.f32 %v2545_v39, %v4047_v13  ;;  %v615_v37 = vadd.f32 %v4053_v19, %v576_v27  ;;  %v2585_v39 = vunpack.c.l.bf16 %v2828_v24  ;;  %v3278_v27 = vld [vmem:[#allocation11 + $0x38] sm:$0xff]   ;;  %v3293_v33 = vld [vmem:[%s3998_s14 + $0x70] sm:$0xff]  }
 0x11a   : > { %3106 = vmatpush3.bf16.msra.mxu1 %v4077_v48  ;;  %2995 = vmatprep.subr.bf16.mxu0 %v4026_v1  ;;  %v646_v38 = vmax.f32 %v614_v28, 0.0  ;;  %v2557_v49 = vunpack.c.l.bf16 %v2821_v35  ;;  %v2558_v50 = vunpack.c.h.bf16 %v2821_v35  ;;  %v578_v55 = vmul.f32 %v2586_v44, %v4047_v13  ;;  %v3283_v28 = vld [vmem:[%s3998_s14 + $0x20] sm:$0xff]  }
 0x11b   : > { %3043 = vmatprep.subr.bf16.mxu1 %v3271_v14  ;;  %v596_v56 = vadd.f32 %v4053_v19, %v557_v47  ;;  %v4133_v61 = vpack.c.bf16 %v643_v52, %v642_v46  ;;  %v647_v46 = vmax.f32 %v615_v37, 0.0  ;;  %v577_v47 = vmul.f32 %v2585_v39, %v4047_v13 }
 0x11c   : > { %2964 = vmatmul.mubr.bf16.vlgmr.msra.gmra.mrb[0].mxu0 %v4088_v63  ;;  %v601_v52 = vadd.f32 %v4053_v19, %v562_v43  ;;  %v563_v59 = vmul.f32 %v2557_v49, %v4047_v13  ;;  %v617_v2 = vadd.f32 %v4053_v19, %v578_v55  ;;  %v2590_v4 = vunpack.c.h.bf16 %v2829_v41  ;;  %v2831_v49 = vld [vmem:[%s3998_s14 + $0x10] sm:$0xff]  }
 0x11d   : > { %3028 = vmatmul.mubr.bf16.vlgmr.msra.gmra.mrb[0].mxu1 %v4092_v6  ;;  %2996 = vmatpush3.bf16.msra.mxu0 %v4026_v1  ;;  %v3273_v1 = vld [vmem:[#allocation11 + $0x10] sm:$0xff]   ;;  %v628_v8 = vmax.f32 %v596_v56, 0.0  ;;  %v4172_v56 = vpack.c.bf16 %v647_v46, %v646_v38  ;;  %v616_v57 = vadd.f32 %v4053_v19, %v577_v47 }
 0x11e   : > { %3044 = vmatpush3.bf16.msra.mxu1 %v3271_v14  ;;  %2967 = vmatprep.mubr.bf16.mxu0 %v4115_v40  ;;  %v560_v14 = vmul.f32 %v2550_v60, %v4047_v13  ;;  %v564_v60 = vmul.f32 %v2558_v50, %v4047_v13  ;;  %v633_v0 = vmax.f32 %v601_v52, 0.0  ;;  %v2832_v46 = vld [vmem:[%s3998_s14 + $0x18] sm:$0xff]  }
 0x11f   : > { %3045 = vmatprep.subr.bf16.mxu1 %v3272_v29  ;;  %3031 = vmatprep.mubr.bf16.mxu1 %v4121_v45  ;;  %v4149_v25 = vpack.c.bf16 %v629_v16, %v628_v8  ;;  %v580_v16 = vmul.f32 %v2590_v4, %v4047_v13  ;;  %v2605_v52 = vunpack.c.l.bf16 %v2832_v46 }
 0x120   : > { %2997 = vmatprep.subr.bf16.mxu0 %v4029_v3  ;;  %v599_v22 = vadd.f32 %v4053_v19, %v560_v14  ;;  %v603_v12 = vadd.f32 %v4053_v19, %v564_v60 }
 0x121   : > { %2998 = vmatpush3.bf16.msra.mxu0 %v4029_v3  ;;  %v644_v3 = vmax.f32 %v612_v10, 0.0  ;;  %v602_v10 = vadd.f32 %v4053_v19, %v563_v59 }
 0x122   : > { %3046 = vmatpush3.bf16.msra.mxu1 %v3272_v29  ;;  %2999 = vmatprep.subr.bf16.mxu0 %v4033_v5  ;;  %v630_v29 = vmax.f32 %v598_v21, 0.0  ;;  %v631_v30 = vmax.f32 %v599_v22, 0.0  ;;  %v635_v20 = vmax.f32 %v603_v12, 0.0  ;;  %v619_v21 = vadd.f32 %v4053_v19, %v580_v16 }
 0x123   : > { %3047 = vmatprep.subr.bf16.mxu1 %v3273_v1  ;;  %v4158_v36 = vpack.c.bf16 %v645_v26, %v644_v3  ;;  %v634_v18 = vmax.f32 %v602_v10, 0.0  ;;  %v2833_v10 = vld [vmem:[%s3998_s14 + $0x20] sm:$0xff]  }
 0x124   : > { %2968 = vmatmul.mubr.bf16.gmra.mrb[4].mxu0 %v4126_v51  ;;  %v4162_v42 = vpack.c.bf16 %v631_v30, %v630_v29  ;;  %v3289_v29 = vld [vmem:[%s3998_s14 + $0x50] sm:$0xff]   ;;  %v3290_v30 = vld [vmem:[%s3998_s14 + $0x58] sm:$0xff]  }
 0x125   : > { %3032 = vmatmul.mubr.bf16.gmra.mrb[4].mxu1 %v4133_v61  ;;  %3000 = vmatpush3.bf16.msra.mxu0 %v4033_v5  ;;  %v600_v5 = vadd.f32 %v4053_v19, %v561_v34  ;;  %v659_v24 = vpack.c.bf16 %v635_v20, %v634_v18  ;;  %v2592_v34 = vld [vmem:[%s3998_s14] sm:$0xff]   ;;  %v2610_v18 = vunpack.c.h.bf16 %v2833_v10 }
 0x126   : > { %3048 = vmatpush3.bf16.msra.mxu1 %v3273_v1  ;;  %2971 = vmatprep.mubr.bf16.mxu0 %v4149_v25  ;;  %v2589_v1 = vunpack.c.l.bf16 %v2829_v41  ;;  %v2594_v37 = vunpack.c.h.bf16 %v2592_v34 }
 0x127   : > { %3049 = vmatprep.subr.bf16.mxu1 %v3274_v15  ;;  %3001 = vmatprep.subr.bf16.mxu0 %v4037_v7  ;;  %v632_v53 = vmax.f32 %v600_v5, 0.0 }
 0x128   : > { %3035 = vmatprep.mubr.bf16.mxu1 %v4158_v36  ;;  %v579_v8 = vmul.f32 %v2589_v1, %v4047_v13  ;;  %v651_v13 = vmax.f32 %v619_v21, 0.0  ;;  %v2601_v1 = vunpack.c.l.bf16 %v2831_v49 }
 0x129   : > { %3002 = vmatpush3.bf16.msra.mxu0 %v4037_v7  ;;  %v648_v7 = vmax.f32 %v616_v57, 0.0  ;;  %v4184_v14 = vpack.c.bf16 %v633_v0, %v632_v53  ;;  %v2606_v53 = vunpack.c.h.bf16 %v2832_v46 }
 0x12a   : > { %3050 = vmatpush3.bf16.msra.mxu1 %v3274_v15  ;;  %3003 = vmatprep.subr.bf16.mxu0 %v4041_v9  ;;  %v649_v15 = vmax.f32 %v617_v2, 0.0  ;;  %v618_v17 = vadd.f32 %v4053_v19, %v579_v8  ;;  %v3281_v19 = vld [vmem:[%s3998_s14 + $0x10] sm:$0xff]   ;;  %v2834_v8 = vld [vmem:[%s3998_s14 + $0x28] sm:$0xff]  }
 0x12b   : > { %3051 = vmatprep.subr.bf16.mxu1 %v3275_v31 }
 0x12c   : > { %2972 = vmatmul.mubr.bf16.gmra.mrb[8].mxu0 %v4162_v42  ;;  %v666_v3 = vpack.c.bf16 %v649_v15, %v648_v7  ;;  %v650_v22 = vmax.f32 %v618_v17, 0.0  ;;  %v2614_v15 = vunpack.c.h.bf16 %v2834_v8  ;;  %v2609_v17 = vunpack.c.l.bf16 %v2833_v10 }
 0x12d   : > { %3036 = vmatmul.mubr.bf16.gmra.mrb[8].mxu1 %v4172_v56  ;;  %3004 = vmatpush3.bf16.msra.mxu0 %v4041_v9  ;;  %v3279_v9 = vld [vmem:[%s3998_s14] sm:$0xff]  }
 0x12e   : > { %3052 = vmatpush3.bf16.msra.mxu1 %v3275_v31  ;;  %3005 = vmatprep.subr.bf16.mxu0 %v4044_v11  ;;  %v667_v26 = vpack.c.bf16 %v651_v13, %v650_v22  ;;  %v3291_v31 = vld [vmem:[%s3998_s14 + $0x60] sm:$0xff]  }
 0x12f   : > { %3053 = vmatprep.subr.bf16.mxu1 %v3276_v62  ;;  %2975 = vmatprep.mubr.bf16.mxu0 %v4184_v14 }
 0x130   : > { %3039 = vmatprep.mubr.bf16.mxu1 %v666_v3 }
 0x131   : > { %3006 = vmatpush3.bf16.msra.mxu0 %v4044_v11  ;;  %v3280_v11 = vld [vmem:[%s3998_s14 + $0x8] sm:$0xff]  }
 0x132   : > { %3054 = vmatpush3.bf16.msra.mxu1 %v3276_v62  ;;  %3007 = vmatprep.subr.bf16.mxu0 %v4062_v32 }
 0x133   : > { %3055 = vmatprep.subr.bf16.mxu1 %v3277_v23 }
 0x134   : > { %2976 = vmatmul.mubr.bf16.gmra.mrb[12].mxu0 %v659_v24 }
 0x135   : > { %3040 = vmatmul.mubr.bf16.gmra.mrb[12].mxu1 %v667_v26  ;;  %2979 = vmatprep.mubr.bf16.mxu0 %v4084_v58  ;;  %v3282_v58 = vld [vmem:[%s3998_s14 + $0x18] sm:$0xff]  }
 0x136   : > { %3056 = vmatpush3.bf16.msra.mxu1 %v3277_v23  ;;  %3059 = vmatprep.mubr.bf16.mxu1 %v3279_v9  ;;  %v2836_v9 = vld [vmem:[%s3998_s14 + $0x38] sm:$0xff]  }
 0x137   : > { %3057 = vmatprep.subr.bf16.mxu1 %v3278_v27  ;;  %3008 = vmatpush3.bf16.msra.mxu0 %v4062_v32  ;;  %v3284_v32 = vld [vmem:[%s3998_s14 + $0x28] sm:$0xff]  }
 0x138   : > { %3009 = vmatprep.subr.bf16.mxu0 %v4077_v48 }
 0x13a   : > { %3058 = vmatpush3.bf16.msra.mxu1 %v3278_v27  ;;  %v2835_v27 = vld [vmem:[%s3998_s14 + $0x30] sm:$0xff]  }
 0x13b   : > { %3010 = vmatpush3.bf16.msra.mxu0 %v4077_v48  ;;  %v3285_v48 = vld [vmem:[%s3998_s14 + $0x30] sm:$0xff]  }
 0x13c   : > { %2980 = vmatmul.mubr.bf16.gmra.mrb[16].mxu0 %v4092_v6  ;;  %v3286_v6 = vld [vmem:[%s3998_s14 + $0x38] sm:$0xff]  }
 0x13d   : > { %3060 = vmatmul.mubr.bf16.vlgmr.msra.gmra.mrb[16].mxu1 %v3280_v11  ;;  %2983 = vmatprep.mubr.bf16.mxu0 %v4121_v45  ;;  %v3287_v45 = vld [vmem:[%s3998_s14 + $0x40] sm:$0xff]  }
 0x13e   : > { %3063 = vmatprep.mubr.bf16.mxu1 %v3281_v19  ;;  %v2621_v19 = vunpack.c.l.bf16 %v2836_v9 }
 0x144   : > { %2984 = vmatmul.mubr.bf16.gmra.mrb[20].mxu0 %v4133_v61  ;;  %v3288_v61 = vld [vmem:[%s3998_s14 + $0x48] sm:$0xff]  }
 0x145   : > { %3064 = vmatmul.mubr.bf16.gmra.mrb[20].mxu1 %v3282_v58  ;;  %2987 = vmatprep.mubr.bf16.mxu0 %v4158_v36  ;;  %v2593_v36 = vunpack.c.l.bf16 %v2592_v34  ;;  %v2622_v58 = vunpack.c.h.bf16 %v2836_v9 }
 0x146   : > { %3067 = vmatprep.mubr.bf16.mxu1 %v3283_v28 }
 0x14c   : > { %2988 = vmatmul.mubr.bf16.gmra.mrb[24].mxu0 %v4172_v56  ;;  %v2602_v56 = vunpack.c.h.bf16 %v2831_v49 }
 0x14d   : > { %3068 = vmatmul.mubr.bf16.gmra.mrb[24].mxu1 %v3284_v32  ;;  %2991 = vmatprep.mubr.bf16.mxu0 %v666_v3  ;;  %v2617_v32 = vunpack.c.l.bf16 %v2835_v27 }
 0x14e   : > { %3071 = vmatprep.mubr.bf16.mxu1 %v3285_v48  ;;  %v2618_v48 = vunpack.c.h.bf16 %v2835_v27 }
 0x154   : > { %2992 = vmatmul.mubr.bf16.gmra.mrb[28].mxu0 %v667_v26 }
 0x155   : > { %3072 = vmatmul.mubr.bf16.gmra.mrb[28].mxu1 %v3286_v6  ;;  %3011 = vmatprep.mubr.bf16.mxu0 %v4082_v54  ;;  %v3292_v54 = vld [vmem:[%s3998_s14 + $0x68] sm:$0xff]  }
 0x156   : > { %3075 = vmatprep.mubr.bf16.mxu1 %v3287_v45 }
 0x15c   : > { %3012 = vmatmul.mubr.bf16.vlgmr.msra.gmra.mrb[32].mxu0 %v4088_v63  ;;  %v3294_v63 = vld [vmem:[%s3998_s14 + $0x78] sm:$0xff]  }
 0x15d   : > { %3076 = vmatmul.mubr.bf16.gmra.mrb[0].mxu1 %v3288_v61  ;;  %3015 = vmatprep.mubr.bf16.mxu0 %v4115_v40  ;;  %v2830_v40 = vld [vmem:[%s3998_s14 + $0x8] sm:$0xff]  }
 0x15e   : > { %3079 = vmatprep.mubr.bf16.mxu1 %v3289_v29  ;;  %v2598_v35 = vunpack.c.h.bf16 %v2830_v40 }
 0x164   : > { %3016 = vmatmul.mubr.bf16.gmra.mrb[36].mxu0 %v4126_v51  ;;  %v2597_v51 = vunpack.c.l.bf16 %v2830_v40  ;;  %v2837_v40 = vld [vmem:[%s3998_s14 + $0x40] sm:$0xff]  }
 0x165   : > { %3080 = vmatmul.mubr.bf16.gmra.mrb[4].mxu1 %v3290_v30  ;;  %3019 = vmatprep.mubr.bf16.mxu0 %v4149_v25 }
 0x166   : > { %3083 = vmatprep.mubr.bf16.mxu1 %v3291_v31 }
 0x16c   : > { %3020 = vmatmul.mubr.bf16.gmra.mrb[40].mxu0 %v4162_v42 }
 0x16d   : > { %3084 = vmatmul.mubr.bf16.gmra.mrb[8].mxu1 %v3292_v54  ;;  %3023 = vmatprep.mubr.bf16.mxu0 %v4184_v14  ;;  %v2613_v14 = vunpack.c.l.bf16 %v2834_v8 }
 0x16e   : > { %3087 = vmatprep.mubr.bf16.mxu1 %v3293_v33  ;;  %v2838_v33 = vld [vmem:[%s3998_s14 + $0x48] sm:$0xff]  }
 0x174   : > { %3024 = vmatmul.mubr.bf16.gmra.mrb[44].mxu0 %v659_v24 }
 0x175   : > { %3088 = vmatmul.mubr.bf16.gmra.mrb[12].mxu1 %v3294_v63 }
 0x1ef   : > { %v2965_v25 = vpop.f32.mrb[0].mxu0 }
 0x1f0   : > { %v766_v38 = vpop.f32.mrb[1].mxu0  ;;  %v959_v41 = vadd.f32 %v2965_v25, %v2597_v51  ;;  %v2629_v51 = vunpack.c.l.bf16 %v2838_v33 }
 0x1f1   : > { %v2966_v39 = vpop.f32.mrb[2].mxu0  ;;  %v957_v5 = vadd.f32 %v2593_v36, %v766_v38  ;;  %v2625_v36 = vunpack.c.l.bf16 %v2837_v40 }
 0x1f2   : > { %v960_v42 = vadd.f32 %v2966_v39, %v2598_v35  ;;  %v769_v43 = vpop.f32.mrb[3].mxu0  ;;  %v2630_v35 = vunpack.c.h.bf16 %v2838_v33 }
 0x1f3   : > { %v958_v44 = vadd.f32 %v2594_v37, %v769_v43  ;;  %v2626_v37 = vunpack.c.h.bf16 %v2837_v40 }
 0x1f4   : > { %v2663_v47 = vpack.c.bf16 %v960_v42, %v959_v41 }
 0x1f5   : > { %v2658_v50 = vpack.c.bf16 %v958_v44, %v957_v5 }
 0x1f6   : > { %2845 = vst [vmem:[%s4231_s9 + $0x8] sm:$0xff] %v2663_v47  }
 0x1f7   : > { %2659 = vst [vmem:[%s4231_s9] sm:$0xff] %v2658_v50   ;;  %v2969_v55 = vpop.f32.mrb[4].mxu0  ;;  %v2840_v50 = vld [vmem:[%s3998_s14 + $0x58] sm:$0xff]  }
 0x1f8   : > { %v782_v57 = vpop.f32.mrb[5].mxu0  ;;  %v963_v60 = vadd.f32 %v2969_v55, %v2605_v52  ;;  %v2839_v55 = vld [vmem:[%s3998_s14 + $0x50] sm:$0xff]  }
 0x1f9   : > { %v2970_v59 = vpop.f32.mrb[6].mxu0  ;;  %v961_v2 = vadd.f32 %v2601_v1, %v782_v57  ;;  %v2638_v57 = vunpack.c.h.bf16 %v2840_v50 }
 0x1fa   : > { %v964_v62 = vadd.f32 %v2970_v59, %v2606_v53  ;;  %v785_v0 = vpop.f32.mrb[7].mxu0 }
 0x1fb   : > { %v962_v4 = vadd.f32 %v2602_v56, %v785_v0  ;;  %v2637_v56 = vunpack.c.l.bf16 %v2840_v50 }
 0x1fc   : > { %v2673_v7 = vpack.c.bf16 %v964_v62, %v963_v60  ;;  %v2633_v60 = vunpack.c.l.bf16 %v2839_v55  ;;  %v2634_v62 = vunpack.c.h.bf16 %v2839_v55 }
 0x1fd   : > { %v2668_v12 = vpack.c.bf16 %v962_v4, %v961_v2 }
 0x1fe   : > { %2847 = vst [vmem:[%s4231_s9 + $0x18] sm:$0xff] %v2673_v7  }
 0x1ff   : > { %2846 = vst [vmem:[%s4231_s9 + $0x10] sm:$0xff] %v2668_v12   ;;  %v2973_v16 = vpop.f32.mrb[8].mxu0 }
 0x200   : > { %v798_v20 = vpop.f32.mrb[9].mxu0  ;;  %v967_v21 = vadd.f32 %v2973_v16, %v2613_v14 }
 0x201   : > { %v2974_v3 = vpop.f32.mrb[10].mxu0  ;;  %v965_v24 = vadd.f32 %v2609_v17, %v798_v20  ;;  %v2842_v17 = vld [vmem:[%s3998_s14 + $0x68] sm:$0xff]  }
 0x202   : > { %v968_v22 = vadd.f32 %v2974_v3, %v2614_v15  ;;  %v801_v23 = vpop.f32.mrb[11].mxu0  ;;  %v2841_v3 = vld [vmem:[%s3998_s14 + $0x60] sm:$0xff]  }
 0x203   : > { %v966_v13 = vadd.f32 %v2610_v18, %v801_v23  ;;  %v2646_v23 = vunpack.c.h.bf16 %v2842_v17  ;;  %v2642_v9 = vunpack.c.h.bf16 %v2841_v3 }
 0x204   : > { %v2683_v26 = vpack.c.bf16 %v968_v22, %v967_v21  ;;  %v2645_v22 = vunpack.c.l.bf16 %v2842_v17 }
 0x205   : > { %v2678_v11 = vpack.c.bf16 %v966_v13, %v965_v24  ;;  %v2641_v13 = vunpack.c.l.bf16 %v2841_v3 }
 0x206   : > { %2849 = vst [vmem:[%s4231_s9 + $0x28] sm:$0xff] %v2683_v26  }
 0x207   : > { %2848 = vst [vmem:[%s4231_s9 + $0x20] sm:$0xff] %v2678_v11   ;;  %v2977_v28 = vpop.f32.mrb[12].mxu0 }
 0x208   : > { %v814_v6 = vpop.f32.mrb[13].mxu0  ;;  %v971_v61 = vadd.f32 %v2977_v28, %v2621_v19 }
 0x209   : > { %v2978_v45 = vpop.f32.mrb[14].mxu0  ;;  %v969_v31 = vadd.f32 %v2617_v32, %v814_v6 }
 0x20a   : > { %v972_v29 = vadd.f32 %v2978_v45, %v2622_v58  ;;  %v817_v30 = vpop.f32.mrb[15].mxu0 }
 0x20b   : > { %v970_v54 = vadd.f32 %v2618_v48, %v817_v30 }
 0x20c   : > { %v2693_v63 = vpack.c.bf16 %v972_v29, %v971_v61  ;;  %v2844_v61 = vld [vmem:[%s3998_s14 + $0x78] sm:$0xff]  }
 0x20d   : > { %v2688_v34 = vpack.c.bf16 %v970_v54, %v969_v31  ;;  %v2843_v31 = vld [vmem:[%s3998_s14 + $0x70] sm:$0xff]   ;;  %v2653_v33 = vunpack.c.l.bf16 %v2844_v61 }
 0x20e   : > { %2851 = vst [vmem:[%s4231_s9 + $0x38] sm:$0xff] %v2693_v63   ;;  %v2654_v63 = vunpack.c.h.bf16 %v2844_v61 }
 0x20f   : > { %2850 = vst [vmem:[%s4231_s9 + $0x30] sm:$0xff] %v2688_v34   ;;  %v2981_v25 = vpop.f32.mrb[16].mxu0  ;;  %v2649_v34 = vunpack.c.l.bf16 %v2843_v31 }
 0x210   : > { %v830_v38 = vpop.f32.mrb[17].mxu0  ;;  %v4247_v39 = vpop.f32.mrb[16].mxu1  ;;  %v975_v43 = vadd.f32 %v2981_v25, %v2629_v51  ;;  %v2650_v51 = vunpack.c.h.bf16 %v2843_v31 }
 0x211   : > { %v2982_v41 = vpop.f32.mrb[18].mxu0  ;;  %v4249_v42 = vpop.f32.mrb[17].mxu1  ;;  %v973_v47 = vadd.f32 %v2625_v36, %v830_v38 }
 0x212   : > { %v976_v5 = vadd.f32 %v2982_v41, %v2630_v35  ;;  %v833_v44 = vpop.f32.mrb[19].mxu0  ;;  %v4251_v46 = vpop.f32.mrb[18].mxu1 }
 0x213   : > { %v974_v49 = vadd.f32 %v2626_v37, %v833_v44  ;;  %v4254_v52 = vpop.f32.mrb[19].mxu1 }
 0x214   : > { %v2703_v53 = vpack.c.bf16 %v976_v5, %v975_v43 }
 0x215   : > { %v2698_v1 = vpack.c.bf16 %v974_v49, %v973_v47 }
 0x216   : > { %2853 = vst [vmem:[%s4231_s9 + $0x48] sm:$0xff] %v2703_v53  }
 0x217   : > { %2852 = vst [vmem:[%s4231_s9 + $0x40] sm:$0xff] %v2698_v1   ;;  %v2985_v59 = vpop.f32.mrb[20].mxu0 }
 0x218   : > { %v846_v0 = vpop.f32.mrb[21].mxu0  ;;  %v4259_v2 = vpop.f32.mrb[20].mxu1  ;;  %v979_v7 = vadd.f32 %v2985_v59, %v2637_v56 }
 0x219   : > { %v2986_v4 = vpop.f32.mrb[22].mxu0  ;;  %v4261_v8 = vpop.f32.mrb[21].mxu1  ;;  %v977_v15 = vadd.f32 %v2633_v60, %v846_v0 }
 0x21a   : > { %v980_v10 = vadd.f32 %v2986_v4, %v2638_v57  ;;  %v849_v12 = vpop.f32.mrb[23].mxu0  ;;  %v4263_v14 = vpop.f32.mrb[22].mxu1 }
 0x21b   : > { %v978_v16 = vadd.f32 %v2634_v62, %v849_v12  ;;  %v4266_v18 = vpop.f32.mrb[23].mxu1 }
 0x21c   : > { %v2713_v20 = vpack.c.bf16 %v980_v10, %v979_v7 }
 0x21d   : > { %v2708_v21 = vpack.c.bf16 %v978_v16, %v977_v15 }
 0x21e   : > { %2855 = vst [vmem:[%s4231_s9 + $0x58] sm:$0xff] %v2713_v20  }
 0x21f   : > { %2854 = vst [vmem:[%s4231_s9 + $0x50] sm:$0xff] %v2708_v21   ;;  %v2989_v24 = vpop.f32.mrb[24].mxu0 }
 0x220   : > { %v862_v26 = vpop.f32.mrb[25].mxu0  ;;  %v4271_v27 = vpop.f32.mrb[24].mxu1  ;;  %v983_v58 = vadd.f32 %v2989_v24, %v2645_v22 }
 0x221   : > { %v2990_v11 = vpop.f32.mrb[26].mxu0  ;;  %v4273_v19 = vpop.f32.mrb[25].mxu1  ;;  %v981_v6 = vadd.f32 %v2641_v13, %v862_v26 }
 0x222   : > { %v984_v28 = vadd.f32 %v2990_v11, %v2646_v23  ;;  %v865_v32 = vpop.f32.mrb[27].mxu0  ;;  %v4275_v48 = vpop.f32.mrb[26].mxu1 }
 0x223   : > { %v982_v45 = vadd.f32 %v2642_v9, %v865_v32  ;;  %v4278_v29 = vpop.f32.mrb[27].mxu1 }
 0x224   : > { %v2723_v30 = vpack.c.bf16 %v984_v28, %v983_v58 }
 0x225   : > { %v2718_v54 = vpack.c.bf16 %v982_v45, %v981_v6 }
 0x226   : > { %2857 = vst [vmem:[%s4231_s9 + $0x68] sm:$0xff] %v2723_v30  }
 0x227   : > { %2856 = vst [vmem:[%s4231_s9 + $0x60] sm:$0xff] %v2718_v54   ;;  %v2993_v40 = vpop.f32.mrb[28].mxu0 }
 0x228   : > { %v878_v35 = vpop.f32.mrb[29].mxu0  ;;  %v4283_v25 = vpop.f32.mrb[28].mxu1  ;;  %v987_v38 = vadd.f32 %v2993_v40, %v2653_v33 }
 0x229   : > { %v2994_v36 = vpop.f32.mrb[30].mxu0  ;;  %v4285_v37 = vpop.f32.mrb[29].mxu1  ;;  %v985_v44 = vadd.f32 %v2649_v34, %v878_v35 }
 0x22a   : > { %v988_v41 = vadd.f32 %v2994_v36, %v2654_v63  ;;  %v881_v43 = vpop.f32.mrb[31].mxu0  ;;  %v4287_v5 = vpop.f32.mrb[30].mxu1 }
 0x22b   : > { %v986_v47 = vadd.f32 %v2650_v51, %v881_v43  ;;  %v4289_v49 = vpop.f32.mrb[31].mxu1 }
 0x22c   : > { %v2733_v50 = vpack.c.bf16 %v988_v41, %v987_v38 }
 0x22d   : > { %v2728_v53 = vpack.c.bf16 %v986_v47, %v985_v44 }
 0x22e   : > { %2859 = vst [vmem:[%s4231_s9 + $0x78] sm:$0xff] %v2733_v50  }
 0x22f   : > { %2858 = vst [vmem:[%s4231_s9 + $0x70] sm:$0xff] %v2728_v53   ;;  %v3013_v55 = vpop.f32.mrb[32].mxu0 }
 0x230   : > { %v1609_v1 = vadd.f32 %v4247_v39, %v3013_v55  ;;  %v3077_v56 = vpop.f32.mrb[0].mxu1  ;;  %v1295_v57 = vpop.f32.mrb[33].mxu0 }
 0x231   : > { %v1601_v59 = vadd.f32 %v4249_v42, %v1295_v57  ;;  %v1664_v60 = vpop.f32.mrb[1].mxu1  ;;  %v3014_v62 = vpop.f32.mrb[34].mxu0 }
 0x232   : > { %v1612_v0 = vadd.f32 %v4251_v46, %v3014_v62  ;;  %v3078_v4 = vpop.f32.mrb[2].mxu1  ;;  %v1298_v7 = vpop.f32.mrb[35].mxu0 }
 0x233   : > { %v4296_v10 = vpack.c.bf16 %v3078_v4, %v3077_v56  ;;  %v1604_v12 = vadd.f32 %v4254_v52, %v1298_v7  ;;  %v1667_v15 = vpop.f32.mrb[3].mxu1 }
 0x234   : > { %v4299_v16 = vpack.c.bf16 %v1612_v0, %v1609_v1  ;;  %v4301_v17 = vpack.c.bf16 %v1667_v15, %v1664_v60 }
 0x235   : > { %2868 = vst [vmem:[%s4304_s6 + $0x48] sm:$0xff] %v4296_v10   ;;  %v4308_v39 = vpack.c.bf16 %v1604_v12, %v1601_v59 }
 0x236   : > { %2860 = vst [vmem:[%s4304_s6 + $0x8] sm:$0xff] %v4299_v16   ;;  %2867 = vst [vmem:[%s4304_s6 + $0x40] sm:$0xff] %v4301_v17   ;;  %v1889_v22 = vunpack.c.l.bf16 %v4299_v16 }
 0x237   : > { %2739 = vst [vmem:[%s4304_s6] sm:$0xff] %v4308_v39   ;;  %v1887_v42 = vunpack.c.l.bf16 %v4308_v39  ;;  %v1888_v46 = vunpack.c.h.bf16 %v4308_v39  ;;  %v3017_v52 = vpop.f32.mrb[36].mxu0 }
 0x238   : > { %v1625_v20 = vadd.f32 %v4259_v2, %v3017_v52  ;;  %v3081_v3 = vpop.f32.mrb[4].mxu1  ;;  %v1311_v21 = vpop.f32.mrb[37].mxu0 }
 0x239   : > { %v1919_v23 = vadd.f32 %v1888_v46, %v1887_v42  ;;  %v1617_v24 = vadd.f32 %v4261_v8, %v1311_v21  ;;  %v1680_v13 = vpop.f32.mrb[5].mxu1  ;;  %v3018_v9 = vpop.f32.mrb[38].mxu0  ;;  %v1890_v8 = vunpack.c.h.bf16 %v4299_v16 }
 0x23a   : > { %v1628_v26 = vadd.f32 %v4263_v14, %v3018_v9  ;;  %v3082_v2 = vpop.f32.mrb[6].mxu1  ;;  %v1314_v11 = vpop.f32.mrb[39].mxu0 }
 0x23b   : > { %v1920_v58 = vadd.f32 %v1919_v23, %v1889_v22  ;;  %v4328_v28 = vpack.c.bf16 %v3082_v2, %v3081_v3  ;;  %v1620_v32 = vadd.f32 %v4266_v18, %v1314_v11  ;;  %v1683_v6 = vpop.f32.mrb[7].mxu1 }
 0x23c   : > { %v4331_v45 = vpack.c.bf16 %v1628_v26, %v1625_v20  ;;  %v4333_v61 = vpack.c.bf16 %v1683_v6, %v1680_v13 }
 0x23d   : > { %2870 = vst [vmem:[%s4304_s6 + $0x58] sm:$0xff] %v4328_v28   ;;  %v4338_v30 = vpack.c.bf16 %v1620_v32, %v1617_v24  ;;  %v1921_v18 = vadd.f32 %v1920_v58, %v1890_v8 }
 0x23e   : > { %2862 = vst [vmem:[%s4304_s6 + $0x18] sm:$0xff] %v4331_v45   ;;  %2869 = vst [vmem:[%s4304_s6 + $0x50] sm:$0xff] %v4333_v61   ;;  %v1894_v1 = vunpack.c.h.bf16 %v4331_v45 }
 0x23f   : > { %2861 = vst [vmem:[%s4304_s6 + $0x10] sm:$0xff] %v4338_v30   ;;  %v1891_v14 = vunpack.c.l.bf16 %v4338_v30  ;;  %v3021_v31 = vpop.f32.mrb[40].mxu0  ;;  %v1892_v40 = vunpack.c.h.bf16 %v4338_v30 }
 0x240   : > { %v1641_v54 = vadd.f32 %v4271_v27, %v3021_v31  ;;  %v3085_v33 = vpop.f32.mrb[8].mxu1  ;;  %v1327_v63 = vpop.f32.mrb[41].mxu0  ;;  %v1893_v27 = vunpack.c.l.bf16 %v4331_v45 }
 0x241   : > { %v1922_v34 = vadd.f32 %v1921_v18, %v1891_v14  ;;  %v1633_v51 = vadd.f32 %v4273_v19, %v1327_v63  ;;  %v1696_v35 = vpop.f32.mrb[9].mxu1  ;;  %v3022_v36 = vpop.f32.mrb[42].mxu0  ;;  %v1903_v63 = vunpack.c.l.bf16 %v4301_v17 }
 0x242   : > { %v1644_v38 = vadd.f32 %v4275_v48, %v3022_v36  ;;  %v3086_v41 = vpop.f32.mrb[10].mxu1  ;;  %v1330_v43 = vpop.f32.mrb[43].mxu0  ;;  %v1905_v36 = vunpack.c.l.bf16 %v4296_v10 }
 0x243   : > { %v1923_v44 = vadd.f32 %v1922_v34, %v1892_v40  ;;  %v4358_v47 = vpack.c.bf16 %v3086_v41, %v3085_v33  ;;  %v1636_v50 = vadd.f32 %v4278_v29, %v1330_v43  ;;  %v1699_v53 = vpop.f32.mrb[11].mxu1  ;;  %v1906_v41 = vunpack.c.h.bf16 %v4296_v10 }
 0x244   : > { %v4361_v19 = vpack.c.bf16 %v1644_v38, %v1641_v54  ;;  %v4363_v55 = vpack.c.bf16 %v1699_v53, %v1696_v35 }
 0x245   : > { %v1924_v48 = vadd.f32 %v1923_v44, %v1893_v27  ;;  %2872 = vst [vmem:[%s4304_s6 + $0x68] sm:$0xff] %v4358_v47   ;;  %v4370_v56 = vpack.c.bf16 %v1636_v50, %v1633_v51  ;;  %v1904_v51 = vunpack.c.h.bf16 %v4301_v17 }
 0x246   : > { %2864 = vst [vmem:[%s4304_s6 + $0x28] sm:$0xff] %v4361_v19   ;;  %2871 = vst [vmem:[%s4304_s6 + $0x60] sm:$0xff] %v4363_v55   ;;  %v1898_v2 = vunpack.c.h.bf16 %v4361_v19 }
 0x247   : > { %2863 = vst [vmem:[%s4304_s6 + $0x20] sm:$0xff] %v4370_v56   ;;  %v1895_v29 = vunpack.c.l.bf16 %v4370_v56  ;;  %v1925_v57 = vadd.f32 %v1924_v48, %v1894_v1  ;;  %v3025_v59 = vpop.f32.mrb[44].mxu0  ;;  %v1896_v4 = vunpack.c.h.bf16 %v4370_v56 }
 0x248   : > { %v1657_v60 = vadd.f32 %v4283_v25, %v3025_v59  ;;  %v3089_v62 = vpop.f32.mrb[12].mxu1  ;;  %v1343_v0 = vpop.f32.mrb[45].mxu0  ;;  %v1897_v25 = vunpack.c.l.bf16 %v4361_v19 }
 0x249   : > { %v1926_v7 = vadd.f32 %v1925_v57, %v1895_v29  ;;  %v1649_v12 = vadd.f32 %v4285_v37, %v1343_v0  ;;  %v1712_v15 = vpop.f32.mrb[13].mxu1  ;;  %v3026_v52 = vpop.f32.mrb[46].mxu0 }
 0x24a   : > { %v1660_v20 = vadd.f32 %v4287_v5, %v3026_v52  ;;  %v3090_v3 = vpop.f32.mrb[14].mxu1  ;;  %v1346_v21 = vpop.f32.mrb[47].mxu0 }
 0x24b   : > { %v1927_v23 = vadd.f32 %v1926_v7, %v1896_v4  ;;  %v4390_v24 = vpack.c.bf16 %v3090_v3, %v3089_v62  ;;  %v1652_v13 = vadd.f32 %v4289_v49, %v1346_v21  ;;  %v1715_v9 = vpop.f32.mrb[15].mxu1 }
 0x24c   : > { %v4393_v37 = vpack.c.bf16 %v1660_v20, %v1657_v60  ;;  %v4395_v26 = vpack.c.bf16 %v1715_v9, %v1712_v15 }
 0x24d   : > { %v1928_v5 = vadd.f32 %v1927_v23, %v1897_v25  ;;  %2874 = vst [vmem:[%s4304_s6 + $0x78] sm:$0xff] %v4390_v24   ;;  %v4402_v11 = vpack.c.bf16 %v1652_v13, %v1649_v12 }
 0x24e   : > { %2866 = vst [vmem:[%s4304_s6 + $0x38] sm:$0xff] %v4393_v37   ;;  %2873 = vst [vmem:[%s4304_s6 + $0x70] sm:$0xff] %v4395_v26   ;;  %v1901_v18 = vunpack.c.l.bf16 %v4393_v37  ;;  %v1902_v54 = vunpack.c.h.bf16 %v4393_v37 }
 0x24f   : > { %2865 = vst [vmem:[%s4304_s6 + $0x30] sm:$0xff] %v4402_v11   ;;  %v1899_v49 = vunpack.c.l.bf16 %v4402_v11  ;;  %v1929_v58 = vadd.f32 %v1928_v5, %v1898_v2  ;;  %v1900_v32 = vunpack.c.h.bf16 %v4402_v11 }
 0x251   : > { %v1930_v6 = vadd.f32 %v1929_v58, %v1899_v49 }
 0x253   : > { %v1931_v31 = vadd.f32 %v1930_v6, %v1900_v32 }
 0x255   : > { %v1932_v33 = vadd.f32 %v1931_v31, %v1901_v18 }
 0x257   : > { %v1933_v34 = vadd.f32 %v1932_v33, %v1902_v54 }
 0x259   : > { %v1934_v35 = vadd.f32 %v1933_v34, %v1903_v63 }
 0x25b   : > { %v1935_v38 = vadd.f32 %v1934_v35, %v1904_v51 }
 0x25d   : > { %v1936_v43 = vadd.f32 %v1935_v38, %v1905_v36 }
 0x25e   : > { %3508 = shalt.err (!%p3505_p8)
}
 0x25f   : > { %s3509_s0 = scalar_lea.hbm %s4437_s19, 2048  ;;  %s3513_s14 = scalar_lea.hbm %s4710_s8, 4096 }
 0x260   : > { %p3510_p12 = scmp.ne.s32.totalorder %s4437_s19, %s3509_s0  ;;  %p3514_p1 = scmp.lt.u32.totalorder %s4437_s19, %s4710_s8 }
 0x261   : > { %p3515_p13 = scmp.lt.u32.totalorder %s3513_s14, %s3509_s0  ;;  %p3517_p7 = scmp.lt.u32.totalorder %s3509_s0, %s4437_s19 }
 0x262   : > { %p3511_p3 = pnand %p3510_p12, %p4752_p2 }
 0x263   : > { %p3516_p0 = por %p3515_p13, %p3514_p1 }
 0x264   : > { %p3512_p4 = pneg %p3511_p3 }
 0x265   : > { %p3518_p6 = por %p3517_p7, %p3516_p0 }
 0x267   : > { %p3519_p11 = pnand %p3518_p6, %p3512_p4 }
 0x269   : > { %3522 = shalt.err (!%p3519_p11)
}
 0x26a   : > { %s3649_s4 = smov 64   ;;  %s3650_s6 = smov 4   ;;  %v1907_v44 = vunpack.c.l.bf16 %v4333_v61  ;;  %v1937_v50 = vadd.f32 %v1936_v43, %v1906_v41 }
 0x26b   : > { %3164 = dma.vmem_to_hbm [thread:$0]  (%p4752_p2), %s4440_s17, 2048, %s4437_s19, %s4447_s20, %s3649_s4, %s3649_s4, %s3650_s6  }
 0x26c   : > { %s4479_s5 = scalar_lea.hbm %s4709_s7, %s2525_s25  ;;  %s2085_s23 = sshll.u32 %s4231_s9, 4  ;;  %s4485_s23 = int_to_ptr.vmem [resolvable:$true] %s2085_s23 }
 0x26d   : > { %s2062_s13 = scalar_lea.sflag [#allocation4], %s3991_s3  ;;  %s3523_s18 = scalar_lea.vmem %s4485_s23, 2048 }
 0x26e   : > { %p3524_p5 = scmp.ne.s32.totalorder %s4485_s23, %s3523_s18  ;;  %s3651_s19 = smov [#allocation14]  }
 0x26f   : > { %s3527_s25 = sshll.u32 %s3651_s19, 4  ;;  %s3528_s25 = int_to_ptr.vmem [resolvable:$false] %s3527_s25 }
 0x270   : > { %p3525_p9 = pnand %p3524_p5, %p4752_p2  ;;  %s3529_s9 = scalar_lea.vmem %s3528_s25, 4096 }
 0x271   : > { %p3530_p8 = scmp.lt.s32.totalorder %s4485_s23, %s3528_s25  ;;  %p3531_p12 = scmp.lt.s32.totalorder %s3529_s9, %s3523_s18 }
 0x272   : > { %p3526_p10 = pneg %p3525_p9 }
 0x273   : > { %p3532_p3 = por %p3531_p12, %p3530_p8 }
 0x275   : > { %p3533_p4 = pnand %p3532_p3, %p3526_p10 }
 0x277   : > { %3536 = shalt.err (!%p3533_p4)
}
 0x278   : > { %s3537_s17 = scalar_lea.hbm %s4479_s5, 2048  ;;  %s3541_s21 = scalar_lea.hbm %s4709_s7, 4096 }
 0x279   : > { %p3538_p1 = scmp.ne.s32.totalorder %s4479_s5, %s3537_s17  ;;  %p3542_p7 = scmp.lt.u32.totalorder %s4479_s5, %s4709_s7 }
 0x27a   : > { %p3543_p6 = scmp.lt.u32.totalorder %s3541_s21, %s3537_s17  ;;  %p3545_p5 = scmp.lt.u32.totalorder %s3537_s17, %s4479_s5 }
 0x27b   : > { %p3539_p13 = pnand %p3538_p1, %p4752_p2 }
 0x27c   : > { %p3544_p11 = por %p3543_p6, %p3542_p7 }
 0x27d   : > { %p3540_p0 = pneg %p3539_p13 }
 0x27e   : > { %p3546_p9 = por %p3545_p5, %p3544_p11 }
 0x280   : > { %p3547_p10 = pnand %p3546_p9, %p3540_p0 }
 0x282   : > { %3550 = shalt.err (!%p3547_p10)
}
 0x283   : > { %3163 = dma.vmem_to_hbm [thread:$0]  (%p4752_p2), %s4485_s23, 2048, %s4479_s5, %s2062_s13, %s3649_s4, %s3649_s4, %s3650_s6   ;;  %v1908_v53 = vunpack.c.h.bf16 %v4333_v61  ;;  %v1938_v48 = vadd.f32 %v1937_v50, %v1907_v44  ;;  %v1909_v57 = vunpack.c.l.bf16 %v4328_v28  ;;  %v1910_v60 = vunpack.c.h.bf16 %v4328_v28 }
 0x284   : > { %v1911_v0 = vunpack.c.l.bf16 %v4363_v55  ;;  %v1912_v12 = vunpack.c.h.bf16 %v4363_v55  ;;  %v1913_v52 = vunpack.c.l.bf16 %v4358_v47  ;;  %v1914_v3 = vunpack.c.h.bf16 %v4358_v47  ;;  %s2342_s28 = sshll.u32 %s3991_s3, 1  ;;  %s2456_s4 = sshll.u32 %s3724_s15, 5 }
 0x285   : > { %v1939_v59 = vadd.f32 %v1938_v48, %v1908_v53  ;;  %v1915_v23 = vunpack.c.l.bf16 %v4395_v26  ;;  %v1916_v9 = vunpack.c.h.bf16 %v4395_v26  ;;  %v1917_v58 = vunpack.c.l.bf16 %v4390_v24  ;;  %s476_s6 = scalar_lea.vmem [#allocation17], %s2342_s28  ;;  %s4753_s23 = sld [smem:[#allocation32_spill]] }
 0x286   : > { %v1918_v31 = vunpack.c.h.bf16 %v4390_v24  ;;  %s2117_s2 = sshll.u32 %s476_s6, 4  ;;  %vm2058_vm0 = vcmask 1040384   ;;  %s3652_s15 = smov [#allocation17]   ;;  %s4657_s2 = int_to_ptr.vmem [resolvable:$true] %s2117_s2 }
 0x287   : > { %v1940_v62 = vadd.f32 %v1939_v59, %v1909_v57  ;;  %s3551_s3 = scalar_lea.vmem %s4657_s2, 32  ;;  %s3555_s18 = sshll.u32 %s3652_s15, 4  ;;  %s3556_s18 = int_to_ptr.vmem [resolvable:$false] %s3555_s18 }
 0x288   : > { %p3552_p8 = scmp.ne.s32.totalorder %s4657_s2, %s3551_s3  ;;  %s3557_s19 = scalar_lea.vmem %s3556_s18, 64 }
 0x289   : > { %v1941_v7 = vadd.f32 %v1940_v62, %v1910_v60  ;;  %p3558_p4 = scmp.lt.s32.totalorder %s4657_s2, %s3556_s18  ;;  %p3559_p1 = scmp.lt.s32.totalorder %s3557_s19, %s3551_s3 }
 0x28a   : > { %p3553_p12 = pnand %p3552_p8, %p4752_p2 }
 0x28b   : > { %v1942_v15 = vadd.f32 %v1941_v7, %v1911_v0  ;;  %s4655_s13 = scalar_lea.hbm %s4753_s23, %s2456_s4  ;;  %p3560_p13 = por %p3559_p1, %p3558_p4 }
 0x28c   : > { %p3554_p3 = pneg %p3553_p12 }
 0x28d   : > { %v1943_v20 = vadd.f32 %v1942_v15, %v1912_v12 }
 0x28e   : > { %p3561_p0 = pnand %p3560_p13, %p3554_p3 }
 0x28f   : > { %v1944_v21 = vadd.f32 %v1943_v20, %v1913_v52 }
 0x291   : > { %v1945_v13 = vadd.f32 %v1944_v21, %v1914_v3 }
 0x293   : > { %v1946_v5 = vadd.f32 %v1945_v13, %v1915_v23 }
 0x295   : > { %v1947_v6 = vadd.f32 %v1946_v5, %v1916_v9 }
 0x297   : > { %v1948_v33 = vadd.f32 %v1947_v6, %v1917_v58 }
 0x299   : > { %v1949_v34 = vadd.f32 %v1948_v33, %v1918_v31 }
 0x29b   : > { %v1950_v35 = vrot.slane %v1949_v34, 4 }
 0x29d   : > { %v1951_v38 = vadd.f32 %v1950_v35, %v1949_v34 }
 0x29f   : > { %v1952_v43 = vrot.slane %v1951_v38, 2 }
 0x2a1   : > { %v1953_v50 = vadd.f32 %v1952_v43, %v1951_v38 }
 0x2a3   : > { %v1954_v48 = vrot.slane %v1953_v50, 1 }
 0x2a5   : > { %v4549_v59 = vadd.f32 %v1954_v48, %v1953_v50 }
 0x2a7   : > { %v4552_v62 = vmul.f32 0.00390625, %v4549_v59 }
 0x2a9   : > { %v1957_v7 = vsub.f32 %v1887_v42, %v4552_v62  ;;  %v1958_v15 = vsub.f32 %v1888_v46, %v4552_v62  ;;  %v1959_v20 = vsub.f32 %v1889_v22, %v4552_v62  ;;  %v1960_v5 = vsub.f32 %v1890_v8, %v4552_v62 }
 0x2aa   : > { %v1961_v6 = vsub.f32 %v1891_v14, %v4552_v62  ;;  %v1962_v39 = vsub.f32 %v1892_v40, %v4552_v62  ;;  %v1963_v22 = vsub.f32 %v1893_v27, %v4552_v62  ;;  %v1964_v16 = vsub.f32 %v1894_v1, %v4552_v62 }
 0x2ab   : > { %v1989_v21 = vmul.f32 %v1957_v7, %v1957_v7  ;;  %v1990_v13 = vmul.f32 %v1958_v15, %v1958_v15  ;;  %v1991_v33 = vmul.f32 %v1959_v20, %v1959_v20  ;;  %v1992_v46 = vmul.f32 %v1960_v5, %v1960_v5 }
 0x2ac   : > { %v1993_v35 = vmul.f32 %v1961_v6, %v1961_v6  ;;  %v1994_v8 = vmul.f32 %v1962_v39, %v1962_v39  ;;  %v1965_v43 = vsub.f32 %v1895_v29, %v4552_v62  ;;  %v1995_v30 = vmul.f32 %v1963_v22, %v1963_v22 }
 0x2ad   : > { %v2021_v42 = vadd.f32 %v1990_v13, %v1989_v21  ;;  %v1966_v50 = vsub.f32 %v1896_v4, %v4552_v62  ;;  %v1996_v48 = vmul.f32 %v1964_v16, %v1964_v16  ;;  %v1967_v7 = vsub.f32 %v1897_v25, %v4552_v62 }
 0x2ae   : > { %v1997_v45 = vmul.f32 %v1965_v43, %v1965_v43  ;;  %v1968_v15 = vsub.f32 %v1898_v2, %v4552_v62  ;;  %v1969_v21 = vsub.f32 %v1899_v49, %v4552_v62  ;;  %v1970_v13 = vsub.f32 %v1900_v32, %v4552_v62 }
 0x2af   : > { %v2022_v34 = vadd.f32 %v2021_v42, %v1991_v33  ;;  %v1998_v20 = vmul.f32 %v1966_v50, %v1966_v50  ;;  %v1999_v56 = vmul.f32 %v1967_v7, %v1967_v7  ;;  %v1971_v6 = vsub.f32 %v1901_v18, %v4552_v62 }
 0x2b0   : > { %v2000_v5 = vmul.f32 %v1968_v15, %v1968_v15  ;;  %v2001_v19 = vmul.f32 %v1969_v21, %v1969_v21  ;;  %v1972_v33 = vsub.f32 %v1902_v54, %v4552_v62  ;;  %v2002_v42 = vmul.f32 %v1970_v13, %v1970_v13 }
 0x2b1   : > { %v2023_v38 = vadd.f32 %v2022_v34, %v1992_v46  ;;  %v1973_v39 = vsub.f32 %v1903_v63, %v4552_v62  ;;  %v2003_v11 = vmul.f32 %v1971_v6, %v1971_v6  ;;  %v1974_v46 = vsub.f32 %v1904_v51, %v4552_v62 }
 0x2b2   : > { %v2004_v34 = vmul.f32 %v1972_v33, %v1972_v33  ;;  %v1975_v22 = vsub.f32 %v1905_v36, %v4552_v62  ;;  %v1977_v16 = vsub.f32 %v1907_v44, %v4552_v62  ;;  %v1979_v43 = vsub.f32 %v1909_v57, %v4552_v62 }
 0x2b3   : > { %v2024_v14 = vadd.f32 %v2023_v38, %v1993_v35  ;;  %v2005_v37 = vmul.f32 %v1973_v39, %v1973_v39  ;;  %v1976_v35 = vsub.f32 %v1906_v41, %v4552_v62  ;;  %v2006_v38 = vmul.f32 %v1974_v46, %v1974_v46 }
 0x2b4   : > { %v2007_v17 = vmul.f32 %v1975_v22, %v1975_v22  ;;  %v2009_v10 = vmul.f32 %v1977_v16, %v1977_v16  ;;  %v1981_v50 = vsub.f32 %v1911_v0, %v4552_v62  ;;  %v2011_v61 = vmul.f32 %v1979_v43, %v1979_v43 }
 0x2b5   : > { %v2025_v40 = vadd.f32 %v2024_v14, %v1994_v8  ;;  %v1978_v8 = vsub.f32 %v1908_v53, %v4552_v62  ;;  %v2008_v14 = vmul.f32 %v1976_v35, %v1976_v35  ;;  %v1983_v7 = vsub.f32 %v1913_v52, %v4552_v62 }
 0x2b6   : > { %v2013_v28 = vmul.f32 %v1981_v50, %v1981_v50  ;;  %v1985_v15 = vsub.f32 %v1915_v23, %v4552_v62  ;;  %v1987_v47 = vsub.f32 %v1917_v58, %v4552_v62  ;;  %v1988_v23 = vsub.f32 %v1918_v31, %v4552_v62 }
 0x2b7   : > { %v2026_v27 = vadd.f32 %v2025_v40, %v1995_v30  ;;  %v1980_v30 = vsub.f32 %v1910_v60, %v4552_v62  ;;  %v2010_v40 = vmul.f32 %v1978_v8, %v1978_v8  ;;  %v2015_v55 = vmul.f32 %v1983_v7, %v1983_v7 }
 0x2b8   : > { %v2019_v13 = vmul.f32 %v1987_v47, %v1987_v47  ;;  %v2020_v26 = vmul.f32 %v1988_v23, %v1988_v23 }
 0x2b9   : > { %v2027_v1 = vadd.f32 %v2026_v27, %v1996_v48  ;;  %v1982_v48 = vsub.f32 %v1912_v12, %v4552_v62  ;;  %v2012_v27 = vmul.f32 %v1980_v30, %v1980_v30 }
 0x2bb   : > { %v2028_v29 = vadd.f32 %v2027_v1, %v1997_v45  ;;  %v1984_v45 = vsub.f32 %v1914_v3, %v4552_v62  ;;  %v2014_v1 = vmul.f32 %v1982_v48, %v1982_v48  ;;  %v2017_v3 = vmul.f32 %v1985_v15, %v1985_v15 }
 0x2bd   : > { %v2029_v4 = vadd.f32 %v2028_v29, %v1998_v20  ;;  %v1986_v20 = vsub.f32 %v1916_v9, %v4552_v62  ;;  %v2016_v52 = vmul.f32 %v1984_v45, %v1984_v45 }
 0x2bf   : > { %v2030_v25 = vadd.f32 %v2029_v4, %v1999_v56  ;;  %v2018_v56 = vmul.f32 %v1986_v20, %v1986_v20 }
 0x2c1   : > { %v2031_v2 = vadd.f32 %v2030_v25, %v2000_v5 }
 0x2c3   : > { %v2032_v49 = vadd.f32 %v2031_v2, %v2001_v19 }
 0x2c5   : > { %v2033_v32 = vadd.f32 %v2032_v49, %v2002_v42 }
 0x2c7   : > { %v2034_v18 = vadd.f32 %v2033_v32, %v2003_v11 }
 0x2c9   : > { %v2035_v54 = vadd.f32 %v2034_v18, %v2004_v34 }
 0x2cb   : > { %v2036_v63 = vadd.f32 %v2035_v54, %v2005_v37 }
 0x2cd   : > { %v2037_v51 = vadd.f32 %v2036_v63, %v2006_v38 }
 0x2cf   : > { %v2038_v36 = vadd.f32 %v2037_v51, %v2007_v17 }
 0x2d1   : > { %v2039_v41 = vadd.f32 %v2038_v36, %v2008_v14 }
 0x2d3   : > { %v2040_v44 = vadd.f32 %v2039_v41, %v2009_v10 }
 0x2d5   : > { %v2041_v53 = vadd.f32 %v2040_v44, %v2010_v40 }
 0x2d7   : > { %v2042_v57 = vadd.f32 %v2041_v53, %v2011_v61 }
 0x2d9   : > { %v2043_v60 = vadd.f32 %v2042_v57, %v2012_v27 }
 0x2db   : > { %v2044_v0 = vadd.f32 %v2043_v60, %v2013_v28 }
 0x2dd   : > { %v2045_v12 = vadd.f32 %v2044_v0, %v2014_v1 }
 0x2df   : > { %v2046_v29 = vadd.f32 %v2045_v12, %v2015_v55 }
 0x2e1   : > { %v2047_v21 = vadd.f32 %v2046_v29, %v2016_v52 }
 0x2e3   : > { %v2048_v4 = vadd.f32 %v2047_v21, %v2017_v3 }
 0x2e5   : > { %v2049_v5 = vadd.f32 %v2048_v4, %v2018_v56 }
 0x2e7   : > { %v2050_v9 = vadd.f32 %v2049_v5, %v2019_v13 }
 0x2e9   : > { %v2051_v25 = vadd.f32 %v2050_v9, %v2020_v26 }
 0x2eb   : > { %v2052_v6 = vrot.slane %v2051_v25, 4 }
 0x2ed   : > { %v2053_v19 = vadd.f32 %v2052_v6, %v2051_v25 }
 0x2ef   : > { %v2054_v2 = vrot.slane %v2053_v19, 2 }
 0x2f1   : > { %v2055_v58 = vadd.f32 %v2054_v2, %v2053_v19 }
 0x2f3   : > { %v2056_v33 = vrot.slane %v2055_v58, 1 }
 0x2f5   : > { %v2057_v24 = vadd.f32 %v2056_v33, %v2055_v58 }
 0x2f7   : > { %v2059_v31 = vsel %vm2058_vm0, %v4549_v59, %v2057_v24 }
 0x2f8   : > { %2060 = vst [vmem:[%s476_s6] sm:$0x3] %v2059_v31 }
 0x2f9   : > { %3564 = shalt.err (!%p3561_p0)
}
 0x2fa   : > { %s3565_s25 = scalar_lea.hbm %s4655_s13, 32  ;;  %s3569_s0 = scalar_lea.hbm %s4753_s23, 64 }
 0x2fb   : > { %p3566_p7 = scmp.ne.s32.totalorder %s4655_s13, %s3565_s25  ;;  %p3570_p5 = scmp.lt.u32.totalorder %s4655_s13, %s4753_s23 }
 0x2fc   : > { %p3571_p9 = scmp.lt.u32.totalorder %s3569_s0, %s3565_s25  ;;  %p3573_p8 = scmp.lt.u32.totalorder %s3565_s25, %s4655_s13 }
 0x2fd   : > { %p3567_p6 = pnand %p3566_p7, %p4752_p2 }
 0x2fe   : > { %p3572_p10 = por %p3571_p9, %p3570_p5 }
 0x2ff   : > { %p3568_p11 = pneg %p3567_p6 }
 0x300   : > { %p3574_p12 = por %p3573_p8, %p3572_p10 }
 0x302   : > { %p3575_p3 = pnand %p3574_p12, %p3568_p11 }
 0x304   : > { %3578 = shalt.err (!%p3575_p3)
}
 0x305   : > { %3165 = dma.vmem_to_hbm [thread:$0]  (%p4752_p2), %s4657_s2, 32, %s4655_s13, %s4447_s20  }
 0x306 PF: > { %s2129_s14 = sand.u32 1, %s3625_s30   ;;  %p4754_p4 = scmp.ne.s32.totalorder %s4740_s22, 0 }
 0x307   : > { %p4755_p1 = scmp.ge.s32.totalorder %s3637_s12, 2  ;;  %s2130_s16 = scalar_lea.sflag [#allocation4], %s2129_s14 }
 0x309   : > { %p3193_p13 = pnand %p4755_p1, %p4754_p4 }
 0x30b   : > { %3616 = dma.done.wait (!%p3193_p13), %s2130_s16, 2048  }
 0x30c   : > { %3618 = vsyncadd (!%p3193_p13), %s2130_s16, 4294965248  ;;  %s4756_s28 = sadd.s32 4294967294, %s3637_s12  }
 0x30d   : > { %s2138_s4 = sand.u32 1, %s4756_s28  }
 0x30e   : > { %s2139_s6 = scalar_lea.sflag [#allocation16], %s2138_s4 }
 0x30f   : > { %3620 = dma.done.wait (!%p3193_p13), %s2139_s6, 2080  }
 0x310   : > { %3622 = vsyncadd (!%p3193_p13), %s2139_s6, 4294965216  ;;  %s4757_s26 = sld [smem:[#allocation25_spill]]  ;;  %p31_p2 = scmp.ge.s32.totalorder %s3872_s27, 4  }
 0x311   : > { %s4758_s30 = smov %s3629_s10  ;;  %s4759_s10 = smov %s3633_s11 }
 0x312   : > { %s4761_s12 = smov %s3872_s27  ;;  %33 = sbr.rel (!%p31_p2) target bundleno = 19 (0x13), region = 158 }
 0x316   : > { %s4760_s11 = smov %s4757_s26 }
 0x319   :  { %2153 = vsyncpa [#allocation3], 1 }
 0x31a   :  { %2155 = vsyncpa [#allocation3 + $0x1], 1 }
 0x31b   :  { %2156 = vsyncpa [#allocation6], 1 }
 0x31c   :  { %2158 = vsyncpa [#allocation6 + $0x1], 1 }
 0x31d   :  { %2159 = vsyncpa [#allocation9], 1 }
 0x31e   :  { %2160 = vsyncpa [#allocation12], 1 }
 0x31f   :  { %2161 = vsyncpa [#allocation4], 1 }
 0x320   :  { %2163 = vsyncpa [#allocation4 + $0x1], 1 }
 0x321   :  { %2164 = vsyncpa [#allocation16], 1 }
 0x322   :  { %2166 = vsyncpa [#allocation16 + $0x1], 1 }

</bundles_post_ra>
